<compile_context>
chip_gen: v6e
topology: v6e:2x2x1
jax: 0.10.0
libtpu: 0.0.40
codegen_flags: <defaults>
</compile_context>

<pallas_src>
import jax
import jax.numpy as jnp
from jax.experimental import pallas as pl
from jax.experimental.pallas import tpu as pltpu


# ----------------------------------------------------------------------------
# Fused kernel: pad -> conv1 (im2col matmul) -> ReLU -> pad -> conv2 -> ReLU
#               -> global max pool -> fc1..fc3 (ReLU) -> merged (mu, log_var).
# ----------------------------------------------------------------------------
def fused_kernel(img_ref, x_ref,
                 cw1_ref, cb1_ref, cw2_ref, cb2_ref,
                 w1i_ref, w1x_ref, b1_ref,
                 w2_ref, b2_ref, w3_ref, b3_ref,
                 w4_ref, b4_ref,
                 out_ref,
                 pad1_ref, pad2_ref):
    B, H, W, Cin = img_ref.shape
    C1 = cb1_ref.shape[-1]            # 24
    C2 = cb2_ref.shape[-1]            # 32
    HW = H * W

    def im2col(padded, cin):
        # padded: (B, H+2, W+2, cin) value -> (B*H*W, 9*cin) with column order
        # (kh, kw, ci) matching the (3,3,ci,co) -> (9*ci, co) weight reshape
        # done in the wrapper.
        rows = []
        for b in range(B):
            taps = []
            for kh in range(3):
                for kw in range(3):
                    taps.append(
                        padded[b, kh:kh + H, kw:kw + W, :].reshape(HW, cin))
            rows.append(jnp.concatenate(taps, axis=-1))
        return jnp.concatenate(rows, axis=0)

    # ---- conv1: in-VMEM zero pad -> im2col -> one MXU matmul -> bias+ReLU ----
    pad1_ref[...] = jnp.zeros_like(pad1_ref)
    pad1_ref[:, 1:H + 1, 1:W + 1, :] = img_ref[...]
    col1 = im2col(pad1_ref[...], Cin)                          # (B*H*W, 9*Cin)
    h1 = jnp.maximum(
        jnp.dot(col1, cw1_ref[...], preferred_element_type=jnp.float32)
        + cb1_ref[...], 0.0)                                   # (B*H*W, C1)

    # ---- conv2 (consumes h1 directly from VMEM) ----
    pad2_ref[...] = jnp.zeros_like(pad2_ref)
    pad2_ref[:, 1:H + 1, 1:W + 1, :] = h1.reshape(B, H, W, C1)
    col2 = im2col(pad2_ref[...], C1)                           # (B*H*W, 9*C1)
    h2 = jnp.maximum(
        jnp.dot(col2, cw2_ref[...], preferred_element_type=jnp.float32)
        + cb2_ref[...], 0.0)                                   # (B*H*W, C2)

    # ---- AdaptiveMaxPool2d(1) + squeeze -> (B, C2) ----
    feat = jnp.concatenate(
        [jnp.max(h2[b * HW:(b + 1) * HW, :], axis=0, keepdims=True)
         for b in range(B)], axis=0)

    # ---- MLP head: concat([feat, x]) @ W1 == feat @ W1[:C2] + x @ W1[C2:] ----
    z = jnp.maximum(
        jnp.dot(feat, w1i_ref[...], preferred_element_type=jnp.float32)
        + jnp.dot(x_ref[...], w1x_ref[...], preferred_element_type=jnp.float32)
        + b1_ref[...], 0.0)
    z = jnp.maximum(
        jnp.dot(z, w2_ref[...], preferred_element_type=jnp.float32)
        + b2_ref[...], 0.0)
    z = jnp.maximum(
        jnp.dot(z, w3_ref[...], preferred_element_type=jnp.float32)
        + b3_ref[...], 0.0)
    # Both 1-wide heads merged into one (h, 2) matmul and a single store.
    out_ref[...] = (
        jnp.dot(z, w4_ref[...], preferred_element_type=jnp.float32)
        + b4_ref[...]).astype(out_ref.dtype)


def _full_spec(shape):
    nd = len(shape)
    return pl.BlockSpec(shape, lambda i, _nd=nd: (0,) * _nd)


def uncertainty_forward_impl(img_nchw, x, params):
    img = jnp.transpose(img_nchw, (0, 2, 3, 1))            # NCHW -> NHWC (glue)
    B, H, W, Cin = img.shape
    C1 = params["cb1"].shape[0]
    C2 = params["cb2"].shape[0]

    cw1 = params["cw1"].reshape(9 * Cin, C1)               # (kh,kw,ci) row-major
    cw2 = params["cw2"].reshape(9 * C1, C2)
    w1i = params["w1"][:C2, :]                             # pooled-feature rows
    w1x = params["w1"][C2:, :]                             # extra-feature rows
    w4 = jnp.concatenate([params["w41"], params["w42"]], axis=1)      # (h, 2)
    b4 = jnp.concatenate([params["b41"], params["b42"]]).reshape(1, 2)

    args = (img, x,
            cw1, params["cb1"].reshape(1, -1),
            cw2, params["cb2"].reshape(1, -1),
            w1i, w1x, params["b1"].reshape(1, -1),
            params["w2"], params["b2"].reshape(1, -1),
            params["w3"], params["b3"].reshape(1, -1),
            w4, b4)

    out = pl.pallas_call(
        fused_kernel,
        out_shape=jax.ShapeDtypeStruct((B, 2), jnp.float32),
        grid=(1,),
        in_specs=[_full_spec(a.shape) for a in args],
        out_specs=_full_spec((B, 2)),
        scratch_shapes=[
            pltpu.VMEM((B, H + 2, W + 2, Cin), jnp.float32),   # padded input
            pltpu.VMEM((B, H + 2, W + 2, C1), jnp.float32),    # padded h1
        ],
        compiler_params=pltpu.CompilerParams(
            dimension_semantics=("arbitrary",)),
    )(*args)
    return out[:, 0:1], out[:, 1:2]                        # mu, log_var


uncertainty_forward = jax.jit(uncertainty_forward_impl)


# ----------------------------------------------------------------------------
# Parameter init (deterministic, PyTorch-style U(-1/sqrt(fan_in), 1/sqrt(fan_in)))
# ----------------------------------------------------------------------------
def init_params(key, in_channels, num_features, hidden_units):
    ks = jax.random.split(key, 14)

    def u(k, shape, fan_in):
        bound = 1.0 / float(fan_in) ** 0.5
        return jax.random.uniform(k, shape, jnp.float32, -bound, bound)

    h = hidden_units
    return {
        "cw1": u(ks[0], (3, 3, in_channels, 24), in_channels * 9),
        "cb1": u(ks[1], (24,), in_channels * 9),
        "cw2": u(ks[2], (3, 3, 24, 32), 24 * 9),
        "cb2": u(ks[3], (32,), 24 * 9),
        "w1": u(ks[4], (num_features, h), num_features),
        "b1": u(ks[5], (h,), num_features),
        "w2": u(ks[6], (h, 2 * h), h),
        "b2": u(ks[7], (2 * h,), h),
        "w3": u(ks[8], (2 * h, h), 2 * h),
        "b3": u(ks[9], (h,), 2 * h),
        "w41": u(ks[10], (h, 1), h),
        "b41": u(ks[11], (1,), h),
        "w42": u(ks[12], (h, 1), h),
        "b42": u(ks[13], (1,), h),
    }


# Pure-JAX reference for correctness checking.
def reference_forward(img_nchw, x, p):
    img = jnp.transpose(img_nchw, (0, 2, 3, 1))

    def conv(y, w, b):
        out = jax.lax.conv_general_dilated(
            y, w, (1, 1), "SAME", dimension_numbers=("NHWC", "HWIO", "NHWC"))
        return jax.nn.relu(out + b)

    h = conv(img, p["cw1"], p["cb1"])
    h = conv(h, p["cw2"], p["cb2"])
    feat = jnp.max(h, axis=(1, 2))
    z = jnp.concatenate([feat, x], axis=1)
    z = jax.nn.relu(z @ p["w1"] + p["b1"])
    z = jax.nn.relu(z @ p["w2"] + p["b2"])
    z = jax.nn.relu(z @ p["w3"] + p["b3"])
    return z @ p["w41"] + p["b41"], z @ p["w42"] + p["b42"]


if __name__ == "__main__":
    # Small shapes consistent with the module:
    #   imgbatch: (B=2, in_channels=4, 16, 16); conv stack -> 32 pooled features
    #   x: (B=2, 8) extra features; num_features = 32 + 8 = 40; hidden_units = 32
    B, in_channels, H, W = 2, 4, 16, 16
    num_extra = 8
    num_features = 32 + num_extra
    hidden_units = 32

    key = jax.random.PRNGKey(0)
    k_img, k_x, k_p = jax.random.split(key, 3)
    imgbatch = jax.random.normal(k_img, (B, in_channels, H, W), jnp.float32)
    x = jax.random.normal(k_x, (B, num_extra), jnp.float32)
    params = init_params(k_p, in_channels, num_features, hidden_units)

    mu, log_var = uncertainty_forward(imgbatch, x, params)
    mu = jax.block_until_ready(mu)
    log_var = jax.block_until_ready(log_var)

    mu_ref, lv_ref = reference_forward(imgbatch, x, params)
    assert mu.shape == (B, 1) and log_var.shape == (B, 1)
    assert jnp.allclose(mu, mu_ref, atol=1e-3, rtol=1e-3)
    assert jnp.allclose(log_var, lv_ref, atol=1e-3, rtol=1e-3)

    print("KERNEL_OK")
</pallas_src>

<mosaic_0001>
module attributes {stable_mosaic.version = 11 : i64} {
  func.func @fused_kernel(%arg0: i32, %arg1: memref<2x16x16x4xf32, #tpu.memory_space<vmem>>, %arg2: memref<2x8xf32, #tpu.memory_space<vmem>>, %arg3: memref<36x24xf32, #tpu.memory_space<vmem>>, %arg4: memref<1x24xf32, #tpu.memory_space<vmem>>, %arg5: memref<216x32xf32, #tpu.memory_space<vmem>>, %arg6: memref<1x32xf32, #tpu.memory_space<vmem>>, %arg7: memref<32x32xf32, #tpu.memory_space<vmem>>, %arg8: memref<8x32xf32, #tpu.memory_space<vmem>>, %arg9: memref<1x32xf32, #tpu.memory_space<vmem>>, %arg10: memref<32x64xf32, #tpu.memory_space<vmem>>, %arg11: memref<1x64xf32, #tpu.memory_space<vmem>>, %arg12: memref<64x32xf32, #tpu.memory_space<vmem>>, %arg13: memref<1x32xf32, #tpu.memory_space<vmem>>, %arg14: memref<32x2xf32, #tpu.memory_space<vmem>>, %arg15: memref<1x2xf32, #tpu.memory_space<vmem>>, %arg16: memref<2x2xf32, #tpu.memory_space<vmem>>, %arg17: memref<2x18x18x4xf32, #tpu.memory_space<vmem>>, %arg18: memref<2x18x18x24xf32, #tpu.memory_space<vmem>>) attributes {dimension_semantics = [#tpu.dimension_semantics<arbitrary>], iteration_bounds = array<i64: 1>, scalar_prefetch = 0 : i64, scratch_operands = 2 : i64, tpu.core_type = #tpu.core_type<tc>, window_params = [{pipeline_mode = #tpu.pipeline_mode<synchronous>, transform_indices = @transform_0, window_bounds = array<i64: 2, 16, 16, 4>}, {pipeline_mode = #tpu.pipeline_mode<synchronous>, transform_indices = @transform_1, window_bounds = array<i64: 2, 8>}, {pipeline_mode = #tpu.pipeline_mode<synchronous>, transform_indices = @transform_2, window_bounds = array<i64: 36, 24>}, {pipeline_mode = #tpu.pipeline_mode<synchronous>, transform_indices = @transform_3, window_bounds = array<i64: 1, 24>}, {pipeline_mode = #tpu.pipeline_mode<synchronous>, transform_indices = @transform_4, window_bounds = array<i64: 216, 32>}, {pipeline_mode = #tpu.pipeline_mode<synchronous>, transform_indices = @transform_5, window_bounds = array<i64: 1, 32>}, {pipeline_mode = #tpu.pipeline_mode<synchronous>, transform_indices = @transform_6, window_bounds = array<i64: 32, 32>}, {pipeline_mode = #tpu.pipeline_mode<synchronous>, transform_indices = @transform_7, window_bounds = array<i64: 8, 32>}, {pipeline_mode = #tpu.pipeline_mode<synchronous>, transform_indices = @transform_8, window_bounds = array<i64: 1, 32>}, {pipeline_mode = #tpu.pipeline_mode<synchronous>, transform_indices = @transform_9, window_bounds = array<i64: 32, 64>}, {pipeline_mode = #tpu.pipeline_mode<synchronous>, transform_indices = @transform_10, window_bounds = array<i64: 1, 64>}, {pipeline_mode = #tpu.pipeline_mode<synchronous>, transform_indices = @transform_11, window_bounds = array<i64: 64, 32>}, {pipeline_mode = #tpu.pipeline_mode<synchronous>, transform_indices = @transform_12, window_bounds = array<i64: 1, 32>}, {pipeline_mode = #tpu.pipeline_mode<synchronous>, transform_indices = @transform_13, window_bounds = array<i64: 32, 2>}, {pipeline_mode = #tpu.pipeline_mode<synchronous>, transform_indices = @transform_14, window_bounds = array<i64: 1, 2>}, {pipeline_mode = #tpu.pipeline_mode<synchronous>, transform_indices = @transform_15, window_bounds = array<i64: 2, 2>}]} {
    %cst = arith.constant 0.000000e+00 : f32
    %0 = vector.broadcast %cst : f32 to vector<2x18x18x4xf32>
    %c0 = arith.constant 0 : index
    %c0_0 = arith.constant 0 : index
    %c0_1 = arith.constant 0 : index
    %c0_2 = arith.constant 0 : index
    %1 = vector.load %arg17[%c0, %c0_0, %c0_1, %c0_2] : memref<2x18x18x4xf32, #tpu.memory_space<vmem>>, vector<2x18x18x4xf32>
    tpu.vector_store %arg17[%c0, %c0_0, %c0_1, %c0_2], %0 {strides = array<i32>} : memref<2x18x18x4xf32, #tpu.memory_space<vmem>>, vector<2x18x18x4xf32>,
    %c0_3 = arith.constant 0 : index
    %c0_4 = arith.constant 0 : index
    %c0_5 = arith.constant 0 : index
    %c0_6 = arith.constant 0 : index
    %2 = vector.load %arg1[%c0_3, %c0_4, %c0_5, %c0_6] : memref<2x16x16x4xf32, #tpu.memory_space<vmem>>, vector<2x16x16x4xf32>
    %c0_7 = arith.constant 0 : index
    %c1 = arith.constant 1 : index
    %c1_8 = arith.constant 1 : index
    %c0_9 = arith.constant 0 : index
    %3 = vector.load %arg17[%c0_7, %c1, %c1_8, %c0_9] : memref<2x18x18x4xf32, #tpu.memory_space<vmem>>, vector<2x16x16x4xf32>
    tpu.vector_store %arg17[%c0_7, %c1, %c1_8, %c0_9], %2 {strides = array<i32>} : memref<2x18x18x4xf32, #tpu.memory_space<vmem>>, vector<2x16x16x4xf32>,
    %c0_10 = arith.constant 0 : index
    %c0_11 = arith.constant 0 : index
    %c0_12 = arith.constant 0 : index
    %c0_13 = arith.constant 0 : index
    %4 = vector.load %arg17[%c0_10, %c0_11, %c0_12, %c0_13] : memref<2x18x18x4xf32, #tpu.memory_space<vmem>>, vector<2x18x18x4xf32>
    %5 = vector.extract_strided_slice %4 {offsets = [0, 0, 0, 0], sizes = [1, 16, 16, 4], strides = [1, 1, 1, 1]} : vector<2x18x18x4xf32> to vector<1x16x16x4xf32>
    %6 = vector.shape_cast %5 : vector<1x16x16x4xf32> to vector<16x16x4xf32>
    %7 = vector.shape_cast %6 : vector<16x16x4xf32> to vector<256x4xf32>
    %8 = vector.extract_strided_slice %4 {offsets = [0, 0, 1, 0], sizes = [1, 16, 16, 4], strides = [1, 1, 1, 1]} : vector<2x18x18x4xf32> to vector<1x16x16x4xf32>
    %9 = vector.shape_cast %8 : vector<1x16x16x4xf32> to vector<16x16x4xf32>
    %10 = vector.shape_cast %9 : vector<16x16x4xf32> to vector<256x4xf32>
    %11 = vector.extract_strided_slice %4 {offsets = [0, 0, 2, 0], sizes = [1, 16, 16, 4], strides = [1, 1, 1, 1]} : vector<2x18x18x4xf32> to vector<1x16x16x4xf32>
    %12 = vector.shape_cast %11 : vector<1x16x16x4xf32> to vector<16x16x4xf32>
    %13 = vector.shape_cast %12 : vector<16x16x4xf32> to vector<256x4xf32>
    %14 = vector.extract_strided_slice %4 {offsets = [0, 1, 0, 0], sizes = [1, 16, 16, 4], strides = [1, 1, 1, 1]} : vector<2x18x18x4xf32> to vector<1x16x16x4xf32>
    %15 = vector.shape_cast %14 : vector<1x16x16x4xf32> to vector<16x16x4xf32>
    %16 = vector.shape_cast %15 : vector<16x16x4xf32> to vector<256x4xf32>
    %17 = vector.extract_strided_slice %4 {offsets = [0, 1, 1, 0], sizes = [1, 16, 16, 4], strides = [1, 1, 1, 1]} : vector<2x18x18x4xf32> to vector<1x16x16x4xf32>
    %18 = vector.shape_cast %17 : vector<1x16x16x4xf32> to vector<16x16x4xf32>
    %19 = vector.shape_cast %18 : vector<16x16x4xf32> to vector<256x4xf32>
    %20 = vector.extract_strided_slice %4 {offsets = [0, 1, 2, 0], sizes = [1, 16, 16, 4], strides = [1, 1, 1, 1]} : vector<2x18x18x4xf32> to vector<1x16x16x4xf32>
    %21 = vector.shape_cast %20 : vector<1x16x16x4xf32> to vector<16x16x4xf32>
    %22 = vector.shape_cast %21 : vector<16x16x4xf32> to vector<256x4xf32>
    %23 = vector.extract_strided_slice %4 {offsets = [0, 2, 0, 0], sizes = [1, 16, 16, 4], strides = [1, 1, 1, 1]} : vector<2x18x18x4xf32> to vector<1x16x16x4xf32>
    %24 = vector.shape_cast %23 : vector<1x16x16x4xf32> to vector<16x16x4xf32>
    %25 = vector.shape_cast %24 : vector<16x16x4xf32> to vector<256x4xf32>
    %26 = vector.extract_strided_slice %4 {offsets = [0, 2, 1, 0], sizes = [1, 16, 16, 4], strides = [1, 1, 1, 1]} : vector<2x18x18x4xf32> to vector<1x16x16x4xf32>
    %27 = vector.shape_cast %26 : vector<1x16x16x4xf32> to vector<16x16x4xf32>
    %28 = vector.shape_cast %27 : vector<16x16x4xf32> to vector<256x4xf32>
    %29 = vector.extract_strided_slice %4 {offsets = [0, 2, 2, 0], sizes = [1, 16, 16, 4], strides = [1, 1, 1, 1]} : vector<2x18x18x4xf32> to vector<1x16x16x4xf32>
    %30 = vector.shape_cast %29 : vector<1x16x16x4xf32> to vector<16x16x4xf32>
    %31 = vector.shape_cast %30 : vector<16x16x4xf32> to vector<256x4xf32>
    %32 = tpu.concatenate %7, %10, %13, %16, %19, %22, %25, %28, %31 in 1 : vector<256x4xf32>, vector<256x4xf32>, vector<256x4xf32>, vector<256x4xf32>, vector<256x4xf32>, vector<256x4xf32>, vector<256x4xf32>, vector<256x4xf32>, vector<256x4xf32> -> vector<256x36xf32>
    %33 = vector.extract_strided_slice %4 {offsets = [1, 0, 0, 0], sizes = [1, 16, 16, 4], strides = [1, 1, 1, 1]} : vector<2x18x18x4xf32> to vector<1x16x16x4xf32>
    %34 = vector.shape_cast %33 : vector<1x16x16x4xf32> to vector<16x16x4xf32>
    %35 = vector.shape_cast %34 : vector<16x16x4xf32> to vector<256x4xf32>
    %36 = vector.extract_strided_slice %4 {offsets = [1, 0, 1, 0], sizes = [1, 16, 16, 4], strides = [1, 1, 1, 1]} : vector<2x18x18x4xf32> to vector<1x16x16x4xf32>
    %37 = vector.shape_cast %36 : vector<1x16x16x4xf32> to vector<16x16x4xf32>
    %38 = vector.shape_cast %37 : vector<16x16x4xf32> to vector<256x4xf32>
    %39 = vector.extract_strided_slice %4 {offsets = [1, 0, 2, 0], sizes = [1, 16, 16, 4], strides = [1, 1, 1, 1]} : vector<2x18x18x4xf32> to vector<1x16x16x4xf32>
    %40 = vector.shape_cast %39 : vector<1x16x16x4xf32> to vector<16x16x4xf32>
    %41 = vector.shape_cast %40 : vector<16x16x4xf32> to vector<256x4xf32>
    %42 = vector.extract_strided_slice %4 {offsets = [1, 1, 0, 0], sizes = [1, 16, 16, 4], strides = [1, 1, 1, 1]} : vector<2x18x18x4xf32> to vector<1x16x16x4xf32>
    %43 = vector.shape_cast %42 : vector<1x16x16x4xf32> to vector<16x16x4xf32>
    %44 = vector.shape_cast %43 : vector<16x16x4xf32> to vector<256x4xf32>
    %45 = vector.extract_strided_slice %4 {offsets = [1, 1, 1, 0], sizes = [1, 16, 16, 4], strides = [1, 1, 1, 1]} : vector<2x18x18x4xf32> to vector<1x16x16x4xf32>
    %46 = vector.shape_cast %45 : vector<1x16x16x4xf32> to vector<16x16x4xf32>
    %47 = vector.shape_cast %46 : vector<16x16x4xf32> to vector<256x4xf32>
    %48 = vector.extract_strided_slice %4 {offsets = [1, 1, 2, 0], sizes = [1, 16, 16, 4], strides = [1, 1, 1, 1]} : vector<2x18x18x4xf32> to vector<1x16x16x4xf32>
    %49 = vector.shape_cast %48 : vector<1x16x16x4xf32> to vector<16x16x4xf32>
    %50 = vector.shape_cast %49 : vector<16x16x4xf32> to vector<256x4xf32>
    %51 = vector.extract_strided_slice %4 {offsets = [1, 2, 0, 0], sizes = [1, 16, 16, 4], strides = [1, 1, 1, 1]} : vector<2x18x18x4xf32> to vector<1x16x16x4xf32>
    %52 = vector.shape_cast %51 : vector<1x16x16x4xf32> to vector<16x16x4xf32>
    %53 = vector.shape_cast %52 : vector<16x16x4xf32> to vector<256x4xf32>
    %54 = vector.extract_strided_slice %4 {offsets = [1, 2, 1, 0], sizes = [1, 16, 16, 4], strides = [1, 1, 1, 1]} : vector<2x18x18x4xf32> to vector<1x16x16x4xf32>
    %55 = vector.shape_cast %54 : vector<1x16x16x4xf32> to vector<16x16x4xf32>
    %56 = vector.shape_cast %55 : vector<16x16x4xf32> to vector<256x4xf32>
    %57 = vector.extract_strided_slice %4 {offsets = [1, 2, 2, 0], sizes = [1, 16, 16, 4], strides = [1, 1, 1, 1]} : vector<2x18x18x4xf32> to vector<1x16x16x4xf32>
    %58 = vector.shape_cast %57 : vector<1x16x16x4xf32> to vector<16x16x4xf32>
    %59 = vector.shape_cast %58 : vector<16x16x4xf32> to vector<256x4xf32>
    %60 = tpu.concatenate %35, %38, %41, %44, %47, %50, %53, %56, %59 in 1 : vector<256x4xf32>, vector<256x4xf32>, vector<256x4xf32>, vector<256x4xf32>, vector<256x4xf32>, vector<256x4xf32>, vector<256x4xf32>, vector<256x4xf32>, vector<256x4xf32> -> vector<256x36xf32>
    %61 = tpu.concatenate %32, %60 in 0 : vector<256x36xf32>, vector<256x36xf32> -> vector<512x36xf32>
    %c0_14 = arith.constant 0 : index
    %c0_15 = arith.constant 0 : index
    %62 = vector.load %arg3[%c0_14, %c0_15] : memref<36x24xf32, #tpu.memory_space<vmem>>, vector<36x24xf32>
    %cst_16 = arith.constant dense<0.000000e+00> : vector<512x24xf32>
    %63 = tpu.matmul %61, %62, %cst_16 {dimension_numbers = #tpu.dot_dimension_numbers<[1], [0], [0], [1], [0, 0, 1, 1], [], []>} : vector<512x36xf32>, vector<36x24xf32>, vector<512x24xf32> -> vector<512x24xf32>
    %c0_17 = arith.constant 0 : index
    %c0_18 = arith.constant 0 : index
    %64 = vector.load %arg4[%c0_17, %c0_18] : memref<1x24xf32, #tpu.memory_space<vmem>>, vector<1x24xf32>
    %65 = vector.broadcast %64 : vector<1x24xf32> to vector<512x24xf32>
    %66 = arith.addf %63, %65 : vector<512x24xf32>
    %cst_19 = arith.constant 0.000000e+00 : f32
    %67 = vector.broadcast %cst_19 : f32 to vector<512x24xf32>
    %68 = arith.maximumf %66, %67 : vector<512x24xf32>
    %cst_20 = arith.constant 0.000000e+00 : f32
    %69 = vector.broadcast %cst_20 : f32 to vector<2x18x18x24xf32>
    %c0_21 = arith.constant 0 : index
    %c0_22 = arith.constant 0 : index
    %c0_23 = arith.constant 0 : index
    %c0_24 = arith.constant 0 : index
    %70 = vector.load %arg18[%c0_21, %c0_22, %c0_23, %c0_24] : memref<2x18x18x24xf32, #tpu.memory_space<vmem>>, vector<2x18x18x24xf32>
    tpu.vector_store %arg18[%c0_21, %c0_22, %c0_23, %c0_24], %69 {strides = array<i32>} : memref<2x18x18x24xf32, #tpu.memory_space<vmem>>, vector<2x18x18x24xf32>,
    %71 = vector.shape_cast %68 : vector<512x24xf32> to vector<2x16x16x24xf32>
    %c0_25 = arith.constant 0 : index
    %c1_26 = arith.constant 1 : index
    %c1_27 = arith.constant 1 : index
    %c0_28 = arith.constant 0 : index
    %72 = vector.load %arg18[%c0_25, %c1_26, %c1_27, %c0_28] : memref<2x18x18x24xf32, #tpu.memory_space<vmem>>, vector<2x16x16x24xf32>
    tpu.vector_store %arg18[%c0_25, %c1_26, %c1_27, %c0_28], %71 {strides = array<i32>} : memref<2x18x18x24xf32, #tpu.memory_space<vmem>>, vector<2x16x16x24xf32>,
    %c0_29 = arith.constant 0 : index
    %c0_30 = arith.constant 0 : index
    %c0_31 = arith.constant 0 : index
    %c0_32 = arith.constant 0 : index
    %73 = vector.load %arg18[%c0_29, %c0_30, %c0_31, %c0_32] : memref<2x18x18x24xf32, #tpu.memory_space<vmem>>, vector<2x18x18x24xf32>
    %74 = vector.extract_strided_slice %73 {offsets = [0, 0, 0, 0], sizes = [1, 16, 16, 24], strides = [1, 1, 1, 1]} : vector<2x18x18x24xf32> to vector<1x16x16x24xf32>
    %75 = vector.shape_cast %74 : vector<1x16x16x24xf32> to vector<16x16x24xf32>
    %76 = vector.shape_cast %75 : vector<16x16x24xf32> to vector<256x24xf32>
    %77 = vector.extract_strided_slice %73 {offsets = [0, 0, 1, 0], sizes = [1, 16, 16, 24], strides = [1, 1, 1, 1]} : vector<2x18x18x24xf32> to vector<1x16x16x24xf32>
    %78 = vector.shape_cast %77 : vector<1x16x16x24xf32> to vector<16x16x24xf32>
    %79 = vector.shape_cast %78 : vector<16x16x24xf32> to vector<256x24xf32>
    %80 = vector.extract_strided_slice %73 {offsets = [0, 0, 2, 0], sizes = [1, 16, 16, 24], strides = [1, 1, 1, 1]} : vector<2x18x18x24xf32> to vector<1x16x16x24xf32>
    %81 = vector.shape_cast %80 : vector<1x16x16x24xf32> to vector<16x16x24xf32>
    %82 = vector.shape_cast %81 : vector<16x16x24xf32> to vector<256x24xf32>
    %83 = vector.extract_strided_slice %73 {offsets = [0, 1, 0, 0], sizes = [1, 16, 16, 24], strides = [1, 1, 1, 1]} : vector<2x18x18x24xf32> to vector<1x16x16x24xf32>
    %84 = vector.shape_cast %83 : vector<1x16x16x24xf32> to vector<16x16x24xf32>
    %85 = vector.shape_cast %84 : vector<16x16x24xf32> to vector<256x24xf32>
    %86 = vector.extract_strided_slice %73 {offsets = [0, 1, 1, 0], sizes = [1, 16, 16, 24], strides = [1, 1, 1, 1]} : vector<2x18x18x24xf32> to vector<1x16x16x24xf32>
    %87 = vector.shape_cast %86 : vector<1x16x16x24xf32> to vector<16x16x24xf32>
    %88 = vector.shape_cast %87 : vector<16x16x24xf32> to vector<256x24xf32>
    %89 = vector.extract_strided_slice %73 {offsets = [0, 1, 2, 0], sizes = [1, 16, 16, 24], strides = [1, 1, 1, 1]} : vector<2x18x18x24xf32> to vector<1x16x16x24xf32>
    %90 = vector.shape_cast %89 : vector<1x16x16x24xf32> to vector<16x16x24xf32>
    %91 = vector.shape_cast %90 : vector<16x16x24xf32> to vector<256x24xf32>
    %92 = vector.extract_strided_slice %73 {offsets = [0, 2, 0, 0], sizes = [1, 16, 16, 24], strides = [1, 1, 1, 1]} : vector<2x18x18x24xf32> to vector<1x16x16x24xf32>
    %93 = vector.shape_cast %92 : vector<1x16x16x24xf32> to vector<16x16x24xf32>
    %94 = vector.shape_cast %93 : vector<16x16x24xf32> to vector<256x24xf32>
    %95 = vector.extract_strided_slice %73 {offsets = [0, 2, 1, 0], sizes = [1, 16, 16, 24], strides = [1, 1, 1, 1]} : vector<2x18x18x24xf32> to vector<1x16x16x24xf32>
    %96 = vector.shape_cast %95 : vector<1x16x16x24xf32> to vector<16x16x24xf32>
    %97 = vector.shape_cast %96 : vector<16x16x24xf32> to vector<256x24xf32>
    %98 = vector.extract_strided_slice %73 {offsets = [0, 2, 2, 0], sizes = [1, 16, 16, 24], strides = [1, 1, 1, 1]} : vector<2x18x18x24xf32> to vector<1x16x16x24xf32>
    %99 = vector.shape_cast %98 : vector<1x16x16x24xf32> to vector<16x16x24xf32>
    %100 = vector.shape_cast %99 : vector<16x16x24xf32> to vector<256x24xf32>
    %101 = tpu.concatenate %76, %79, %82, %85, %88, %91, %94, %97, %100 in 1 : vector<256x24xf32>, vector<256x24xf32>, vector<256x24xf32>, vector<256x24xf32>, vector<256x24xf32>, vector<256x24xf32>, vector<256x24xf32>, vector<256x24xf32>, vector<256x24xf32> -> vector<256x216xf32>
    %102 = vector.extract_strided_slice %73 {offsets = [1, 0, 0, 0], sizes = [1, 16, 16, 24], strides = [1, 1, 1, 1]} : vector<2x18x18x24xf32> to vector<1x16x16x24xf32>
    %103 = vector.shape_cast %102 : vector<1x16x16x24xf32> to vector<16x16x24xf32>
    %104 = vector.shape_cast %103 : vector<16x16x24xf32> to vector<256x24xf32>
    %105 = vector.extract_strided_slice %73 {offsets = [1, 0, 1, 0], sizes = [1, 16, 16, 24], strides = [1, 1, 1, 1]} : vector<2x18x18x24xf32> to vector<1x16x16x24xf32>
    %106 = vector.shape_cast %105 : vector<1x16x16x24xf32> to vector<16x16x24xf32>
    %107 = vector.shape_cast %106 : vector<16x16x24xf32> to vector<256x24xf32>
    %108 = vector.extract_strided_slice %73 {offsets = [1, 0, 2, 0], sizes = [1, 16, 16, 24], strides = [1, 1, 1, 1]} : vector<2x18x18x24xf32> to vector<1x16x16x24xf32>
    %109 = vector.shape_cast %108 : vector<1x16x16x24xf32> to vector<16x16x24xf32>
    %110 = vector.shape_cast %109 : vector<16x16x24xf32> to vector<256x24xf32>
    %111 = vector.extract_strided_slice %73 {offsets = [1, 1, 0, 0], sizes = [1, 16, 16, 24], strides = [1, 1, 1, 1]} : vector<2x18x18x24xf32> to vector<1x16x16x24xf32>
    %112 = vector.shape_cast %111 : vector<1x16x16x24xf32> to vector<16x16x24xf32>
    %113 = vector.shape_cast %112 : vector<16x16x24xf32> to vector<256x24xf32>
    %114 = vector.extract_strided_slice %73 {offsets = [1, 1, 1, 0], sizes = [1, 16, 16, 24], strides = [1, 1, 1, 1]} : vector<2x18x18x24xf32> to vector<1x16x16x24xf32>
    %115 = vector.shape_cast %114 : vector<1x16x16x24xf32> to vector<16x16x24xf32>
    %116 = vector.shape_cast %115 : vector<16x16x24xf32> to vector<256x24xf32>
    %117 = vector.extract_strided_slice %73 {offsets = [1, 1, 2, 0], sizes = [1, 16, 16, 24], strides = [1, 1, 1, 1]} : vector<2x18x18x24xf32> to vector<1x16x16x24xf32>
    %118 = vector.shape_cast %117 : vector<1x16x16x24xf32> to vector<16x16x24xf32>
    %119 = vector.shape_cast %118 : vector<16x16x24xf32> to vector<256x24xf32>
    %120 = vector.extract_strided_slice %73 {offsets = [1, 2, 0, 0], sizes = [1, 16, 16, 24], strides = [1, 1, 1, 1]} : vector<2x18x18x24xf32> to vector<1x16x16x24xf32>
    %121 = vector.shape_cast %120 : vector<1x16x16x24xf32> to vector<16x16x24xf32>
    %122 = vector.shape_cast %121 : vector<16x16x24xf32> to vector<256x24xf32>
    %123 = vector.extract_strided_slice %73 {offsets = [1, 2, 1, 0], sizes = [1, 16, 16, 24], strides = [1, 1, 1, 1]} : vector<2x18x18x24xf32> to vector<1x16x16x24xf32>
    %124 = vector.shape_cast %123 : vector<1x16x16x24xf32> to vector<16x16x24xf32>
    %125 = vector.shape_cast %124 : vector<16x16x24xf32> to vector<256x24xf32>
    %126 = vector.extract_strided_slice %73 {offsets = [1, 2, 2, 0], sizes = [1, 16, 16, 24], strides = [1, 1, 1, 1]} : vector<2x18x18x24xf32> to vector<1x16x16x24xf32>
    %127 = vector.shape_cast %126 : vector<1x16x16x24xf32> to vector<16x16x24xf32>
    %128 = vector.shape_cast %127 : vector<16x16x24xf32> to vector<256x24xf32>
    %129 = tpu.concatenate %104, %107, %110, %113, %116, %119, %122, %125, %128 in 1 : vector<256x24xf32>, vector<256x24xf32>, vector<256x24xf32>, vector<256x24xf32>, vector<256x24xf32>, vector<256x24xf32>, vector<256x24xf32>, vector<256x24xf32>, vector<256x24xf32> -> vector<256x216xf32>
    %130 = tpu.concatenate %101, %129 in 0 : vector<256x216xf32>, vector<256x216xf32> -> vector<512x216xf32>
    %c0_33 = arith.constant 0 : index
    %c0_34 = arith.constant 0 : index
    %131 = vector.load %arg5[%c0_33, %c0_34] : memref<216x32xf32, #tpu.memory_space<vmem>>, vector<216x32xf32>
    %cst_35 = arith.constant dense<0.000000e+00> : vector<512x32xf32>
    %132 = tpu.matmul %130, %131, %cst_35 {dimension_numbers = #tpu.dot_dimension_numbers<[1], [0], [0], [1], [0, 0, 1, 1], [], []>} : vector<512x216xf32>, vector<216x32xf32>, vector<512x32xf32> -> vector<512x32xf32>
    %c0_36 = arith.constant 0 : index
    %c0_37 = arith.constant 0 : index
    %133 = vector.load %arg6[%c0_36, %c0_37] : memref<1x32xf32, #tpu.memory_space<vmem>>, vector<1x32xf32>
    %134 = vector.broadcast %133 : vector<1x32xf32> to vector<512x32xf32>
    %135 = arith.addf %132, %134 : vector<512x32xf32>
    %cst_38 = arith.constant 0.000000e+00 : f32
    %136 = vector.broadcast %cst_38 : f32 to vector<512x32xf32>
    %137 = arith.maximumf %135, %136 : vector<512x32xf32>
    %138 = vector.extract_strided_slice %137 {offsets = [0, 0], sizes = [256, 32], strides = [1, 1]} : vector<512x32xf32> to vector<256x32xf32>
    %cst_39 = arith.constant dense<0xFF800000> : vector<32xf32>
    %139 = vector.multi_reduction <maximumf>, %138, %cst_39 [0] : vector<256x32xf32> to vector<32xf32>
    %140 = vector.shape_cast %139 : vector<32xf32> to vector<1x32xf32>
    %141 = vector.extract_strided_slice %137 {offsets = [256, 0], sizes = [256, 32], strides = [1, 1]} : vector<512x32xf32> to vector<256x32xf32>
    %cst_40 = arith.constant dense<0xFF800000> : vector<32xf32>
    %142 = vector.multi_reduction <maximumf>, %141, %cst_40 [0] : vector<256x32xf32> to vector<32xf32>
    %143 = vector.shape_cast %142 : vector<32xf32> to vector<1x32xf32>
    %144 = tpu.concatenate %140, %143 in 0 : vector<1x32xf32>, vector<1x32xf32> -> vector<2x32xf32>
    %c0_41 = arith.constant 0 : index
    %c0_42 = arith.constant 0 : index
    %145 = vector.load %arg7[%c0_41, %c0_42] : memref<32x32xf32, #tpu.memory_space<vmem>>, vector<32x32xf32>
    %cst_43 = arith.constant dense<0.000000e+00> : vector<2x32xf32>
    %146 = tpu.matmul %144, %145, %cst_43 {dimension_numbers = #tpu.dot_dimension_numbers<[1], [0], [0], [1], [0, 0, 1, 1], [], []>} : vector<2x32xf32>, vector<32x32xf32>, vector<2x32xf32> -> vector<2x32xf32>
    %c0_44 = arith.constant 0 : index
    %c0_45 = arith.constant 0 : index
    %147 = vector.load %arg2[%c0_44, %c0_45] : memref<2x8xf32, #tpu.memory_space<vmem>>, vector<2x8xf32>
    %c0_46 = arith.constant 0 : index
    %c0_47 = arith.constant 0 : index
    %148 = vector.load %arg8[%c0_46, %c0_47] : memref<8x32xf32, #tpu.memory_space<vmem>>, vector<8x32xf32>
    %cst_48 = arith.constant dense<0.000000e+00> : vector<2x32xf32>
    %149 = tpu.matmul %147, %148, %cst_48 {dimension_numbers = #tpu.dot_dimension_numbers<[1], [0], [0], [1], [0, 0, 1, 1], [], []>} : vector<2x8xf32>, vector<8x32xf32>, vector<2x32xf32> -> vector<2x32xf32>
    %150 = arith.addf %146, %149 : vector<2x32xf32>
    %c0_49 = arith.constant 0 : index
    %c0_50 = arith.constant 0 : index
    %151 = vector.load %arg9[%c0_49, %c0_50] : memref<1x32xf32, #tpu.memory_space<vmem>>, vector<1x32xf32>
    %152 = vector.broadcast %151 : vector<1x32xf32> to vector<2x32xf32>
    %153 = arith.addf %150, %152 : vector<2x32xf32>
    %cst_51 = arith.constant 0.000000e+00 : f32
    %154 = vector.broadcast %cst_51 : f32 to vector<2x32xf32>
    %155 = arith.maximumf %153, %154 : vector<2x32xf32>
    %c0_52 = arith.constant 0 : index
    %c0_53 = arith.constant 0 : index
    %156 = vector.load %arg10[%c0_52, %c0_53] : memref<32x64xf32, #tpu.memory_space<vmem>>, vector<32x64xf32>
    %cst_54 = arith.constant dense<0.000000e+00> : vector<2x64xf32>
    %157 = tpu.matmul %155, %156, %cst_54 {dimension_numbers = #tpu.dot_dimension_numbers<[1], [0], [0], [1], [0, 0, 1, 1], [], []>} : vector<2x32xf32>, vector<32x64xf32>, vector<2x64xf32> -> vector<2x64xf32>
    %c0_55 = arith.constant 0 : index
    %c0_56 = arith.constant 0 : index
    %158 = vector.load %arg11[%c0_55, %c0_56] : memref<1x64xf32, #tpu.memory_space<vmem>>, vector<1x64xf32>
    %159 = vector.broadcast %158 : vector<1x64xf32> to vector<2x64xf32>
    %160 = arith.addf %157, %159 : vector<2x64xf32>
    %cst_57 = arith.constant 0.000000e+00 : f32
    %161 = vector.broadcast %cst_57 : f32 to vector<2x64xf32>
    %162 = arith.maximumf %160, %161 : vector<2x64xf32>
    %c0_58 = arith.constant 0 : index
    %c0_59 = arith.constant 0 : index
    %163 = vector.load %arg12[%c0_58, %c0_59] : memref<64x32xf32, #tpu.memory_space<vmem>>, vector<64x32xf32>
    %cst_60 = arith.constant dense<0.000000e+00> : vector<2x32xf32>
    %164 = tpu.matmul %162, %163, %cst_60 {dimension_numbers = #tpu.dot_dimension_numbers<[1], [0], [0], [1], [0, 0, 1, 1], [], []>} : vector<2x64xf32>, vector<64x32xf32>, vector<2x32xf32> -> vector<2x32xf32>
    %c0_61 = arith.constant 0 : index
    %c0_62 = arith.constant 0 : index
    %165 = vector.load %arg13[%c0_61, %c0_62] : memref<1x32xf32, #tpu.memory_space<vmem>>, vector<1x32xf32>
    %166 = vector.broadcast %165 : vector<1x32xf32> to vector<2x32xf32>
    %167 = arith.addf %164, %166 : vector<2x32xf32>
    %cst_63 = arith.constant 0.000000e+00 : f32
    %168 = vector.broadcast %cst_63 : f32 to vector<2x32xf32>
    %169 = arith.maximumf %167, %168 : vector<2x32xf32>
    %c0_64 = arith.constant 0 : index
    %c0_65 = arith.constant 0 : index
    %170 = vector.load %arg14[%c0_64, %c0_65] : memref<32x2xf32, #tpu.memory_space<vmem>>, vector<32x2xf32>
    %cst_66 = arith.constant dense<0.000000e+00> : vector<2x2xf32>
    %171 = tpu.matmul %169, %170, %cst_66 {dimension_numbers = #tpu.dot_dimension_numbers<[1], [0], [0], [1], [0, 0, 1, 1], [], []>} : vector<2x32xf32>, vector<32x2xf32>, vector<2x2xf32> -> vector<2x2xf32>
    %c0_67 = arith.constant 0 : index
    %c0_68 = arith.constant 0 : index
    %172 = vector.load %arg15[%c0_67, %c0_68] : memref<1x2xf32, #tpu.memory_space<vmem>>, vector<1x2xf32>
    %173 = vector.broadcast %172 : vector<1x2xf32> to vector<2x2xf32>
    %174 = arith.addf %171, %173 : vector<2x2xf32>
    %c0_69 = arith.constant 0 : index
    %c0_70 = arith.constant 0 : index
    %175 = vector.load %arg16[%c0_69, %c0_70] : memref<2x2xf32, #tpu.memory_space<vmem>>, vector<2x2xf32>
    tpu.vector_store %arg16[%c0_69, %c0_70], %174 {strides = array<i32>} : memref<2x2xf32, #tpu.memory_space<vmem>>, vector<2x2xf32>,
    return
  }
  func.func @transform_0(%arg0: i32) -> (i32, i32, i32, i32) {
    %c0_i32 = arith.constant 0 : i32
    %c0_i32_0 = arith.constant 0 : i32
    %c0_i32_1 = arith.constant 0 : i32
    %c0_i32_2 = arith.constant 0 : i32
    %c0_i32_3 = arith.constant 0 : i32
    return %c0_i32, %c0_i32_0, %c0_i32_1, %c0_i32_2 : i32, i32, i32, i32
  }
  func.func @transform_1(%arg0: i32) -> (i32, i32) {
    %c0_i32 = arith.constant 0 : i32
    %c0_i32_0 = arith.constant 0 : i32
    %c0_i32_1 = arith.constant 0 : i32
    return %c0_i32, %c0_i32_0 : i32, i32
  }
  func.func @transform_2(%arg0: i32) -> (i32, i32) {
    %c0_i32 = arith.constant 0 : i32
    %c0_i32_0 = arith.constant 0 : i32
    %c0_i32_1 = arith.constant 0 : i32
    return %c0_i32, %c0_i32_0 : i32, i32
  }
  func.func @transform_3(%arg0: i32) -> (i32, i32) {
    %c0_i32 = arith.constant 0 : i32
    %c0_i32_0 = arith.constant 0 : i32
    %c0_i32_1 = arith.constant 0 : i32
    return %c0_i32, %c0_i32_0 : i32, i32
  }
  func.func @transform_4(%arg0: i32) -> (i32, i32) {
    %c0_i32 = arith.constant 0 : i32
    %c0_i32_0 = arith.constant 0 : i32
    %c0_i32_1 = arith.constant 0 : i32
    return %c0_i32, %c0_i32_0 : i32, i32
  }
  func.func @transform_5(%arg0: i32) -> (i32, i32) {
    %c0_i32 = arith.constant 0 : i32
    %c0_i32_0 = arith.constant 0 : i32
    %c0_i32_1 = arith.constant 0 : i32
    return %c0_i32, %c0_i32_0 : i32, i32
  }
  func.func @transform_6(%arg0: i32) -> (i32, i32) {
    %c0_i32 = arith.constant 0 : i32
    %c0_i32_0 = arith.constant 0 : i32
    %c0_i32_1 = arith.constant 0 : i32
    return %c0_i32, %c0_i32_0 : i32, i32
  }
  func.func @transform_7(%arg0: i32) -> (i32, i32) {
    %c0_i32 = arith.constant 0 : i32
    %c0_i32_0 = arith.constant 0 : i32
    %c0_i32_1 = arith.constant 0 : i32
    return %c0_i32, %c0_i32_0 : i32, i32
  }
  func.func @transform_8(%arg0: i32) -> (i32, i32) {
    %c0_i32 = arith.constant 0 : i32
    %c0_i32_0 = arith.constant 0 : i32
    %c0_i32_1 = arith.constant 0 : i32
    return %c0_i32, %c0_i32_0 : i32, i32
  }
  func.func @transform_9(%arg0: i32) -> (i32, i32) {
    %c0_i32 = arith.constant 0 : i32
    %c0_i32_0 = arith.constant 0 : i32
    %c0_i32_1 = arith.constant 0 : i32
    return %c0_i32, %c0_i32_0 : i32, i32
  }
  func.func @transform_10(%arg0: i32) -> (i32, i32) {
    %c0_i32 = arith.constant 0 : i32
    %c0_i32_0 = arith.constant 0 : i32
    %c0_i32_1 = arith.constant 0 : i32
    return %c0_i32, %c0_i32_0 : i32, i32
  }
  func.func @transform_11(%arg0: i32) -> (i32, i32) {
    %c0_i32 = arith.constant 0 : i32
    %c0_i32_0 = arith.constant 0 : i32
    %c0_i32_1 = arith.constant 0 : i32
    return %c0_i32, %c0_i32_0 : i32, i32
  }
  func.func @transform_12(%arg0: i32) -> (i32, i32) {
    %c0_i32 = arith.constant 0 : i32
    %c0_i32_0 = arith.constant 0 : i32
    %c0_i32_1 = arith.constant 0 : i32
    return %c0_i32, %c0_i32_0 : i32, i32
  }
  func.func @transform_13(%arg0: i32) -> (i32, i32) {
    %c0_i32 = arith.constant 0 : i32
    %c0_i32_0 = arith.constant 0 : i32
    %c0_i32_1 = arith.constant 0 : i32
    return %c0_i32, %c0_i32_0 : i32, i32
  }
  func.func @transform_14(%arg0: i32) -> (i32, i32) {
    %c0_i32 = arith.constant 0 : i32
    %c0_i32_0 = arith.constant 0 : i32
    %c0_i32_1 = arith.constant 0 : i32
    return %c0_i32, %c0_i32_0 : i32, i32
  }
  func.func @transform_15(%arg0: i32) -> (i32, i32) {
    %c0_i32 = arith.constant 0 : i32
    %c0_i32_0 = arith.constant 0 : i32
    %c0_i32_1 = arith.constant 0 : i32
    return %c0_i32, %c0_i32_0 : i32, i32
  }
}

</mosaic_0001>

<bundles_post_ra>
// kernel: uncertainty_forward_impl.1
= control target key start
LH: loop header
LB: loop body
LE: loop exit
PB: predicated region body
PF: predicated region fallthrough
CT: control target
= control target key end

     0   :  { %vm50_vm0 = vcmask 31744   ;;  %vm53_vm1 = vcmask 25600   ;;  %v16021_v0 = vmov 0.0   ;;  %vm445_vm2 = vcmask 1046528   ;;  %s8881_s30 = smov 4   ;;  %s8882_s24 = smov 8   ;;  %s16005_s0 = inlined_call_operand.vmem [shape: f32[2,16,16,4], index: 0, kind: input, shape index: {}]   ;;  %s16006_s2 = inlined_call_operand.vmem [shape: f32[36,24], index: 2, kind: input, shape index: {}]   ;;  %s16007_s3 = inlined_call_operand.vmem [shape: f32[1,24], index: 3, kind: input, shape index: {}]   ;;  %s16008_s4 = inlined_call_operand.vmem [shape: f32[216,32], index: 4, kind: input, shape index: {}]   ;;  %s16009_s5 = inlined_call_operand.vmem [shape: f32[1,32], index: 5, kind: input, shape index: {}]   ;;  %s16010_s7 = inlined_call_operand.vmem [shape: f32[8,32], index: 7, kind: input, shape index: {}]   ;;  %s16011_s1 = inlined_call_operand.vmem [shape: f32[2,8], index: 1, kind: input, shape index: {}]   ;;  %s16012_s6 = inlined_call_operand.vmem [shape: f32[32,32], index: 6, kind: input, shape index: {}]   ;;  %s16013_s9 = inlined_call_operand.vmem [shape: f32[32,64], index: 9, kind: input, shape index: {}]   ;;  %s16014_s8 = inlined_call_operand.vmem [shape: f32[1,32], index: 8, kind: input, shape index: {}]   ;;  %s16015_s11 = inlined_call_operand.vmem [shape: f32[64,32], index: 11, kind: input, shape index: {}]   ;;  %s16016_s10 = inlined_call_operand.vmem [shape: f32[1,64], index: 10, kind: input, shape index: {}]   ;;  %s16017_s13 = inlined_call_operand.vmem [shape: f32[32,2], index: 13, kind: input, shape index: {}]   ;;  %s16018_s12 = inlined_call_operand.vmem [shape: f32[1,32], index: 12, kind: input, shape index: {}]   ;;  %s16019_s14 = inlined_call_operand.vmem [shape: f32[1,2], index: 14, kind: input, shape index: {}]   ;;  %s16020_s15 = inlined_call_operand.vmem [shape: f32[2,2], index: 15, kind: output, shape index: {}]  }
   0x1   :  { %51 = vst.msk [vmem:[#allocation2] sm:$0xff] %vm50_vm0, %v16021_v0  ;;  %52 = vst.msk [vmem:[#allocation2 + $0x8] sm:$0xff] %vm50_vm0, %v16021_v0  ;;  %v160_v1 = vld [vmem:[%s16005_s0] sm:$0xff]  ;;  %v161_v2 = vld [vmem:[%s16005_s0 + $0x8] sm:$0xff]  ;;  %8023 = vmatprep.subr.mxu1 %v16021_v0  ;;  %vm526_vm3 = vcmask 1045504   ;;  %s8883_s25 = smov 12  }
   0x2   :  { %55 = vst.msk [vmem:[#allocation2 + $0x18] sm:$0xff] %vm50_vm0, %v16021_v0  ;;  %56 = vst.msk [vmem:[#allocation2 + $0x20] sm:$0xff] %vm50_vm0, %v16021_v0  ;;  %v162_v3 = vld [vmem:[%s16005_s0 + $0x10] sm:$0xff]  ;;  %v163_v4 = vld [vmem:[%s16005_s0 + $0x18] sm:$0xff]  ;;  %s8884_s26 = smov 16   ;;  %s8885_s27 = smov 20  }
   0x3   :  { %58 = vst.msk [vmem:[#allocation2 + $0x30] sm:$0xff] %vm50_vm0, %v16021_v0  ;;  %59 = vst.msk [vmem:[#allocation2 + $0x38] sm:$0xff] %vm50_vm0, %v16021_v0  ;;  %v164_v5 = vld [vmem:[%s16005_s0 + $0x20] sm:$0xff]  ;;  %v165_v6 = vld [vmem:[%s16005_s0 + $0x28] sm:$0xff]  ;;  %vm1565_vm4 = vcmask 195584   ;;  %s8886_s28 = smov 24  }
   0x4   :  { %61 = vst.msk [vmem:[#allocation2 + $0x48] sm:$0xff] %vm50_vm0, %v16021_v0  ;;  %62 = vst.msk [vmem:[#allocation2 + $0x50] sm:$0xff] %vm50_vm0, %v16021_v0  ;;  %v166_v7 = vld [vmem:[%s16005_s0 + $0x30] sm:$0xff]  ;;  %v167_v8 = vld [vmem:[%s16005_s0 + $0x38] sm:$0xff]  ;;  %s8887_s23 = smov 28   ;;  %vm3127_vm5 = vcmask 1043456  }
   0x5   :  { %64 = vst.msk [vmem:[#allocation2 + $0x60] sm:$0xff] %vm50_vm0, %v16021_v0  ;;  %65 = vst.msk [vmem:[#allocation2 + $0x68] sm:$0xff] %vm50_vm0, %v16021_v0  ;;  %v168_v9 = vld [vmem:[%s16005_s0 + $0x40] sm:$0xff]  ;;  %v169_v10 = vld [vmem:[%s16005_s0 + $0x48] sm:$0xff]  ;;  %vm1433_vm6 = vcmask 64512   ;;  %vm1466_vm7 = vcmask 97280  }
   0x6   :  { %67 = vst.msk [vmem:[#allocation2 + $0x78] sm:$0xff] %vm50_vm0, %v16021_v0  ;;  %68 = vst.msk [vmem:[#allocation2 + $0x80] sm:$0xff] %vm50_vm0, %v16021_v0  ;;  %v170_v11 = vld [vmem:[%s16005_s0 + $0x50] sm:$0xff]  ;;  %v171_v12 = vld [vmem:[%s16005_s0 + $0x58] sm:$0xff]  ;;  %vm1499_vm8 = vcmask 130048   ;;  %vm1532_vm9 = vcmask 162816  }
   0x7   :  { %70 = vst.msk [vmem:[#allocation2 + $0x90] sm:$0xff] %vm50_vm0, %v16021_v0  ;;  %71 = vst.msk [vmem:[#allocation2 + $0x98] sm:$0xff] %vm50_vm0, %v16021_v0  ;;  %v172_v13 = vld [vmem:[%s16005_s0 + $0x60] sm:$0xff]  ;;  %v173_v14 = vld [vmem:[%s16005_s0 + $0x68] sm:$0xff]  ;;  %vm1598_vm10 = vcmask 228352   ;;  %vm1631_vm11 = vcmask 261120  }
   0x8   :  { %73 = vst.msk [vmem:[#allocation2 + $0xa8] sm:$0xff] %vm50_vm0, %v16021_v0  ;;  %74 = vst.msk [vmem:[#allocation2 + $0xb0] sm:$0xff] %vm50_vm0, %v16021_v0  ;;  %v174_v15 = vld [vmem:[%s16005_s0 + $0x70] sm:$0xff]  ;;  %v175_v16 = vld [vmem:[%s16005_s0 + $0x78] sm:$0xff]  ;;  %vm2934_vm12 = vcmask 293888   ;;  %vm3582_vm13 = vcmask 189440  }
   0x9   :  { %76 = vst.msk [vmem:[#allocation2 + $0xc0] sm:$0xff] %vm50_vm0, %v16021_v0  ;;  %77 = vst.msk [vmem:[#allocation2 + $0xc8] sm:$0xff] %vm50_vm0, %v16021_v0  ;;  %v176_v17 = vld [vmem:[%s16005_s0 + $0x80] sm:$0xff]  ;;  %v177_v18 = vld [vmem:[%s16005_s0 + $0x88] sm:$0xff]  ;;  %s8889_s18 = smov 48   ;;  %s8892_s16 = smov 40  }
   0xa   :  { %79 = vst.msk [vmem:[#allocation2 + $0xd8] sm:$0xff] %vm50_vm0, %v16021_v0  ;;  %80 = vst.msk [vmem:[#allocation2 + $0xe0] sm:$0xff] %vm50_vm0, %v16021_v0  ;;  %v178_v19 = vld [vmem:[%s16005_s0 + $0x90] sm:$0xff]  ;;  %v179_v20 = vld [vmem:[%s16005_s0 + $0x98] sm:$0xff]  ;;  %s8894_s17 = smov 64   ;;  %vm4896_vm14 = vcmask 392192  }
   0xb   :  { %82 = vst.msk [vmem:[#allocation2 + $0xf0] sm:$0xff] %vm50_vm0, %v16021_v0  ;;  %83 = vst.msk [vmem:[#allocation2 + $0xf8] sm:$0xff] %vm50_vm0, %v16021_v0  ;;  %v180_v21 = vld [vmem:[%s16005_s0 + $0xa0] sm:$0xff]  ;;  %v9276_v23 = vld [vmem:[#allocation2 + $0x8] sm:$0xff]  ;;  %vm5060_vm15 = vcmask 326656  }
   0xc   :  { %85 = vst.msk [vmem:[#allocation2 + $0x108] sm:$0xff] %vm50_vm0, %v16021_v0  ;;  %86 = vst.msk [vmem:[#allocation2 + $0x110] sm:$0xff] %vm50_vm0, %v16021_v0  ;;  %v9274_v22 = vld [vmem:[#allocation2] sm:$0xff]  ;;  %v447_v26 = vrot.slane %v9276_v23, 1  ;;  %v181_v57 = vld [vmem:[%s16005_s0 + $0xa8] sm:$0xff] }
   0xd   :  { %88 = vst.msk [vmem:[#allocation2 + $0x120] sm:$0xff] %vm50_vm0, %v16021_v0  ;;  %89 = vst.msk [vmem:[#allocation2 + $0x128] sm:$0xff] %vm50_vm0, %v16021_v0  ;;  %v446_v25 = vrot.slane %v9274_v22, 1  ;;  %v182_v61 = vld [vmem:[%s16005_s0 + $0xb0] sm:$0xff]  ;;  %v183_v62 = vld [vmem:[%s16005_s0 + $0xb8] sm:$0xff] }
   0xe   :  { %91 = vst.msk [vmem:[#allocation2 + $0x138] sm:$0xff] %vm50_vm0, %v16021_v0  ;;  %92 = vst.msk [vmem:[#allocation2 + $0x140] sm:$0xff] %vm50_vm0, %v16021_v0  ;;  %v184_v63 = vld [vmem:[%s16005_s0 + $0xc0] sm:$0xff] }
   0xf   :  { %94 = vst.msk [vmem:[#allocation2 + $0x150] sm:$0xff] %vm50_vm0, %v16021_v0  ;;  %95 = vst.msk [vmem:[#allocation2 + $0x158] sm:$0xff] %vm50_vm0, %v16021_v0  ;;  %v448_v35 = vsel %vm445_vm2, %v446_v25, %v447_v26 }
  0x10   :  { %97 = vst.msk [vmem:[#allocation2 + $0x168] sm:$0xff] %vm50_vm0, %v16021_v0  ;;  %98 = vst.msk [vmem:[#allocation2 + $0x170] sm:$0xff] %vm50_vm0, %v16021_v0  ;;  %633 = vrot.lane.b32.xlu0 %v448_v35, %s8881_s30 }
  0x11   :  { %100 = vst.msk [vmem:[#allocation2 + $0x180] sm:$0xff] %vm50_vm0, %v16021_v0  ;;  %101 = vst.msk [vmem:[#allocation2 + $0x188] sm:$0xff] %vm50_vm0, %v16021_v0 }
  0x12   :  { %103 = vst.msk [vmem:[#allocation2 + $0x198] sm:$0xff] %vm50_vm0, %v16021_v0  ;;  %104 = vst.msk [vmem:[#allocation2 + $0x1a0] sm:$0xff] %vm50_vm0, %v16021_v0 }
  0x13   :  { %106 = vst.msk [vmem:[#allocation2 + $0x1b0] sm:$0xff] %vm50_vm0, %v16021_v0  ;;  %107 = vst.msk [vmem:[#allocation2 + $0x1b8] sm:$0xff] %vm50_vm0, %v16021_v0 }
  0x14   :  { %109 = vst.msk [vmem:[#allocation2 + $0x1c8] sm:$0xff] %vm50_vm0, %v16021_v0  ;;  %110 = vst.msk [vmem:[#allocation2 + $0x1d0] sm:$0xff] %vm50_vm0, %v16021_v0 }
  0x15   :  { %112 = vst.msk [vmem:[#allocation2 + $0x1e0] sm:$0xff] %vm50_vm0, %v16021_v0  ;;  %113 = vst.msk [vmem:[#allocation2 + $0x1e8] sm:$0xff] %vm50_vm0, %v16021_v0 }
  0x16   :  { %115 = vst.msk [vmem:[#allocation2 + $0x1f8] sm:$0xff] %vm50_vm0, %v16021_v0  ;;  %116 = vst.msk [vmem:[#allocation2 + $0x200] sm:$0xff] %vm50_vm0, %v16021_v0 }
  0x17   :  { %118 = vst.msk [vmem:[#allocation2 + $0x210] sm:$0xff] %vm50_vm0, %v16021_v0  ;;  %119 = vst.msk [vmem:[#allocation2 + $0x218] sm:$0xff] %vm50_vm0, %v16021_v0 }
  0x18   :  { %121 = vst.msk [vmem:[#allocation2 + $0x228] sm:$0xff] %vm50_vm0, %v16021_v0  ;;  %122 = vst.msk [vmem:[#allocation2 + $0x230] sm:$0xff] %vm50_vm0, %v16021_v0 }
  0x19   :  { %124 = vst.msk [vmem:[#allocation2 + $0x240] sm:$0xff] %vm50_vm0, %v16021_v0  ;;  %125 = vst.msk [vmem:[#allocation2 + $0x248] sm:$0xff] %vm50_vm0, %v16021_v0 }
  0x1a   :  { %127 = vst.msk [vmem:[#allocation2 + $0x258] sm:$0xff] %vm50_vm0, %v16021_v0  ;;  %128 = vst.msk [vmem:[#allocation2 + $0x260] sm:$0xff] %vm50_vm0, %v16021_v0 }
  0x1b   :  { %130 = vst.msk [vmem:[#allocation2 + $0x270] sm:$0xff] %vm50_vm0, %v16021_v0  ;;  %131 = vst.msk [vmem:[#allocation2 + $0x278] sm:$0xff] %vm50_vm0, %v16021_v0 }
  0x1c   :  { %133 = vst.msk [vmem:[#allocation2 + $0x288] sm:$0xff] %vm50_vm0, %v16021_v0  ;;  %134 = vst.msk [vmem:[#allocation2 + $0x290] sm:$0xff] %vm50_vm0, %v16021_v0 }
  0x1d   :  { %136 = vst.msk [vmem:[#allocation2 + $0x2a0] sm:$0xff] %vm50_vm0, %v16021_v0  ;;  %137 = vst.msk [vmem:[#allocation2 + $0x2a8] sm:$0xff] %vm50_vm0, %v16021_v0 }
  0x1e   :  { %139 = vst.msk [vmem:[#allocation2 + $0x2b8] sm:$0xff] %vm50_vm0, %v16021_v0  ;;  %140 = vst.msk [vmem:[#allocation2 + $0x2c0] sm:$0xff] %vm50_vm0, %v16021_v0 }
  0x1f   :  { %142 = vst.msk [vmem:[#allocation2 + $0x2d0] sm:$0xff] %vm50_vm0, %v16021_v0  ;;  %143 = vst.msk [vmem:[#allocation2 + $0x2d8] sm:$0xff] %vm50_vm0, %v16021_v0 }
  0x20   :  { %145 = vst.msk [vmem:[#allocation2 + $0x2e8] sm:$0xff] %vm50_vm0, %v16021_v0  ;;  %146 = vst.msk [vmem:[#allocation2 + $0x2f0] sm:$0xff] %vm50_vm0, %v16021_v0 }
  0x21   :  { %148 = vst.msk [vmem:[#allocation2 + $0x300] sm:$0xff] %vm50_vm0, %v16021_v0  ;;  %149 = vst.msk [vmem:[#allocation2 + $0x308] sm:$0xff] %vm50_vm0, %v16021_v0 }
  0x22   :  { %151 = vst.msk [vmem:[#allocation2 + $0x318] sm:$0xff] %vm50_vm0, %v16021_v0  ;;  %152 = vst.msk [vmem:[#allocation2 + $0x320] sm:$0xff] %vm50_vm0, %v16021_v0 }
  0x23   :  { %154 = vst.msk [vmem:[#allocation2 + $0x330] sm:$0xff] %vm50_vm0, %v16021_v0  ;;  %155 = vst.msk [vmem:[#allocation2 + $0x338] sm:$0xff] %vm50_vm0, %v16021_v0 }
  0x24   :  { %157 = vst.msk [vmem:[#allocation2 + $0x348] sm:$0xff] %vm50_vm0, %v16021_v0  ;;  %158 = vst.msk [vmem:[#allocation2 + $0x350] sm:$0xff] %vm50_vm0, %v16021_v0 }
  0x25   :  { %57 = vst.msk [vmem:[#allocation2 + $0x28] sm:$0x3] %vm53_vm1, %v16021_v0  ;;  %54 = vst.msk [vmem:[#allocation2 + $0x10] sm:$0x3] %vm53_vm1, %v16021_v0 }
  0x26   :  { %60 = vst.msk [vmem:[#allocation2 + $0x40] sm:$0x3] %vm53_vm1, %v16021_v0  ;;  %63 = vst.msk [vmem:[#allocation2 + $0x58] sm:$0x3] %vm53_vm1, %v16021_v0 }
  0x27   :  { %66 = vst.msk [vmem:[#allocation2 + $0x70] sm:$0x3] %vm53_vm1, %v16021_v0  ;;  %69 = vst.msk [vmem:[#allocation2 + $0x88] sm:$0x3] %vm53_vm1, %v16021_v0 }
  0x28   :  { %72 = vst.msk [vmem:[#allocation2 + $0xa0] sm:$0x3] %vm53_vm1, %v16021_v0  ;;  %75 = vst.msk [vmem:[#allocation2 + $0xb8] sm:$0x3] %vm53_vm1, %v16021_v0 }
  0x29   :  { %78 = vst.msk [vmem:[#allocation2 + $0xd0] sm:$0x3] %vm53_vm1, %v16021_v0  ;;  %81 = vst.msk [vmem:[#allocation2 + $0xe8] sm:$0x3] %vm53_vm1, %v16021_v0 }
  0x2a   :  { %84 = vst.msk [vmem:[#allocation2 + $0x100] sm:$0x3] %vm53_vm1, %v16021_v0  ;;  %87 = vst.msk [vmem:[#allocation2 + $0x118] sm:$0x3] %vm53_vm1, %v16021_v0 }
  0x2b   :  { %90 = vst.msk [vmem:[#allocation2 + $0x130] sm:$0x3] %vm53_vm1, %v16021_v0  ;;  %93 = vst.msk [vmem:[#allocation2 + $0x148] sm:$0x3] %vm53_vm1, %v16021_v0 }
  0x2c   :  { %96 = vst.msk [vmem:[#allocation2 + $0x160] sm:$0x3] %vm53_vm1, %v16021_v0  ;;  %99 = vst.msk [vmem:[#allocation2 + $0x178] sm:$0x3] %vm53_vm1, %v16021_v0  ;;  %v9278_v24 = vld [vmem:[#allocation2 + $0x10] sm:$0x3] }
  0x2d   :  { %102 = vst.msk [vmem:[#allocation2 + $0x190] sm:$0x3] %vm53_vm1, %v16021_v0  ;;  %105 = vst.msk [vmem:[#allocation2 + $0x1a8] sm:$0x3] %vm53_vm1, %v16021_v0  ;;  %v449_v29 = vrot.slane %v9278_v24, 1 }
  0x2e   :  { %108 = vst.msk [vmem:[#allocation2 + $0x1c0] sm:$0x3] %vm53_vm1, %v16021_v0  ;;  %111 = vst.msk [vmem:[#allocation2 + $0x1d8] sm:$0x3] %vm53_vm1, %v16021_v0 }
  0x2f   :  { %114 = vst.msk [vmem:[#allocation2 + $0x1f0] sm:$0x3] %vm53_vm1, %v16021_v0  ;;  %117 = vst.msk [vmem:[#allocation2 + $0x208] sm:$0x3] %vm53_vm1, %v16021_v0  ;;  %v450_v39 = vsel %vm445_vm2, %v447_v26, %v449_v29 }
  0x30   :  { %120 = vst.msk [vmem:[#allocation2 + $0x220] sm:$0x3] %vm53_vm1, %v16021_v0  ;;  %123 = vst.msk [vmem:[#allocation2 + $0x238] sm:$0x3] %vm53_vm1, %v16021_v0  ;;  %635 = vrot.lane.b32.xlu0 %v450_v39, %s8881_s30 }
  0x31   :  { %126 = vst.msk [vmem:[#allocation2 + $0x250] sm:$0x3] %vm53_vm1, %v16021_v0  ;;  %129 = vst.msk [vmem:[#allocation2 + $0x268] sm:$0x3] %vm53_vm1, %v16021_v0 }
  0x32   :  { %132 = vst.msk [vmem:[#allocation2 + $0x280] sm:$0x3] %vm53_vm1, %v16021_v0  ;;  %135 = vst.msk [vmem:[#allocation2 + $0x298] sm:$0x3] %vm53_vm1, %v16021_v0 }
  0x33   :  { %138 = vst.msk [vmem:[#allocation2 + $0x2b0] sm:$0x3] %vm53_vm1, %v16021_v0  ;;  %141 = vst.msk [vmem:[#allocation2 + $0x2c8] sm:$0x3] %vm53_vm1, %v16021_v0 }
  0x34   :  { %144 = vst.msk [vmem:[#allocation2 + $0x2e0] sm:$0x3] %vm53_vm1, %v16021_v0  ;;  %147 = vst.msk [vmem:[#allocation2 + $0x2f8] sm:$0x3] %vm53_vm1, %v16021_v0 }
  0x35   :  { %150 = vst.msk [vmem:[#allocation2 + $0x310] sm:$0x3] %vm53_vm1, %v16021_v0  ;;  %153 = vst.msk [vmem:[#allocation2 + $0x328] sm:$0x3] %vm53_vm1, %v16021_v0 }
  0x36   :  { %156 = vst.msk [vmem:[#allocation2 + $0x340] sm:$0x3] %vm53_vm1, %v16021_v0  ;;  %159 = vst.msk [vmem:[#allocation2 + $0x358] sm:$0x3] %vm53_vm1, %v16021_v0  ;;  %vm4929_vm1 = vcmask 588800  }
  0x37   :  { %225 = vst.msk [vmem:[#allocation2 + $0x19] sm:$0xff] %vm50_vm0, %v160_v1  ;;  %226 = vst.msk [vmem:[#allocation2 + $0x21] sm:$0xff] %vm50_vm0, %v161_v2 }
  0x38   :  { %227 = vst.msk [vmem:[#allocation2 + $0x31] sm:$0xff] %vm50_vm0, %v162_v3  ;;  %228 = vst.msk [vmem:[#allocation2 + $0x39] sm:$0xff] %vm50_vm0, %v163_v4  ;;  %v185_v3 = vld [vmem:[%s16005_s0 + $0xc8] sm:$0xff]  ;;  %v186_v4 = vld [vmem:[%s16005_s0 + $0xd0] sm:$0xff] }
  0x39   :  { %229 = vst.msk [vmem:[#allocation2 + $0x49] sm:$0xff] %vm50_vm0, %v164_v5  ;;  %230 = vst.msk [vmem:[#allocation2 + $0x51] sm:$0xff] %vm50_vm0, %v165_v6  ;;  %v187_v5 = vld [vmem:[%s16005_s0 + $0xd8] sm:$0xff] }
  0x3a   :  { %231 = vst.msk [vmem:[#allocation2 + $0x61] sm:$0xff] %vm50_vm0, %v166_v7  ;;  %232 = vst.msk [vmem:[#allocation2 + $0x69] sm:$0xff] %vm50_vm0, %v167_v8  ;;  %v188_v7 = vld [vmem:[%s16005_s0 + $0xe0] sm:$0xff]  ;;  %v189_v8 = vld [vmem:[%s16005_s0 + $0xe8] sm:$0xff] }
  0x3b   :  { %233 = vst.msk [vmem:[#allocation2 + $0x79] sm:$0xff] %vm50_vm0, %v168_v9  ;;  %234 = vst.msk [vmem:[#allocation2 + $0x81] sm:$0xff] %vm50_vm0, %v169_v10 }
  0x3c   :  { %235 = vst.msk [vmem:[#allocation2 + $0x91] sm:$0xff] %vm50_vm0, %v170_v11  ;;  %236 = vst.msk [vmem:[#allocation2 + $0x99] sm:$0xff] %vm50_vm0, %v171_v12 }
  0x3d   :  { %237 = vst.msk [vmem:[#allocation2 + $0xa9] sm:$0xff] %vm50_vm0, %v172_v13  ;;  %238 = vst.msk [vmem:[#allocation2 + $0xb1] sm:$0xff] %vm50_vm0, %v173_v14 }
  0x3e   :  { %239 = vst.msk [vmem:[#allocation2 + $0xc1] sm:$0xff] %vm50_vm0, %v174_v15  ;;  %240 = vst.msk [vmem:[#allocation2 + $0xc9] sm:$0xff] %vm50_vm0, %v175_v16  ;;  %v9285_v27 = vld [vmem:[#allocation2 + $0x18] sm:$0xff]  ;;  %v9287_v28 = vld [vmem:[#allocation2 + $0x20] sm:$0xff] }
  0x3f   :  { %241 = vst.msk [vmem:[#allocation2 + $0xd9] sm:$0xff] %vm50_vm0, %v176_v17  ;;  %242 = vst.msk [vmem:[#allocation2 + $0xe1] sm:$0xff] %vm50_vm0, %v177_v18  ;;  %v451_v30 = vrot.slane %v9285_v27, 1  ;;  %v452_v31 = vrot.slane %v9287_v28, 1  ;;  %v9292_v32 = vld [vmem:[#allocation2 + $0x28] sm:$0x3] }
  0x40   :  { %243 = vst.msk [vmem:[#allocation2 + $0xf1] sm:$0xff] %vm50_vm0, %v178_v19  ;;  %244 = vst.msk [vmem:[#allocation2 + $0xf9] sm:$0xff] %vm50_vm0, %v179_v20  ;;  %v9294_v33 = vld [vmem:[#allocation2 + $0x30] sm:$0xff]  ;;  %v9296_v34 = vld [vmem:[#allocation2 + $0x38] sm:$0xff]  ;;  %v454_v36 = vrot.slane %v9292_v32, 1 }
  0x41   :  { %245 = vst.msk [vmem:[#allocation2 + $0x109] sm:$0xff] %vm50_vm0, %v180_v21  ;;  %v9300_v37 = vld [vmem:[#allocation2 + $0x40] sm:$0x3]  ;;  %v9304_v38 = vsel %vm445_vm2, %v451_v30, %v452_v31  ;;  %v456_v40 = vrot.slane %v9294_v33, 1  ;;  %v457_v41 = vrot.slane %v9296_v34, 1  ;;  %v9315_v44 = vld [vmem:[#allocation2 + $0x48] sm:$0xff] }
  0x42   :  { %637 = vrot.lane.b32.xlu1 %v9304_v38, %s8881_s30  ;;  %v9312_v42 = vsel %vm445_vm2, %v452_v31, %v454_v36  ;;  %v459_v43 = vrot.slane %v9300_v37, 1  ;;  %v9317_v45 = vld [vmem:[#allocation2 + $0x50] sm:$0xff]  ;;  %v9319_v46 = vld [vmem:[#allocation2 + $0x58] sm:$0x3]  ;;  %v461_v48 = vrot.slane %v9315_v44, 1  ;;  %v9333_v52 = vld [vmem:[#allocation2 + $0x60] sm:$0xff] }
  0x43   :  { %v9325_v47 = vsel %vm445_vm2, %v456_v40, %v457_v41  ;;  %v462_v49 = vrot.slane %v9317_v45, 1  ;;  %v464_v51 = vrot.slane %v9319_v46, 1  ;;  %v9335_v53 = vld [vmem:[#allocation2 + $0x68] sm:$0xff]  ;;  %v9337_v54 = vld [vmem:[#allocation2 + $0x70] sm:$0x3]  ;;  %v9341_v55 = vld [vmem:[#allocation2 + $0x78] sm:$0xff] }
  0x44   :  { %v9330_v50 = vsel %vm445_vm2, %v457_v41, %v459_v43  ;;  %641 = vrot.lane.b32.xlu0 %v9325_v47, %s8881_s30  ;;  %v9343_v56 = vld [vmem:[#allocation2 + $0x80] sm:$0xff]  ;;  %v466_v59 = vrot.slane %v9333_v52, 1  ;;  %v467_v60 = vrot.slane %v9335_v53, 1  ;;  %246 = vst.msk [vmem:[#allocation2 + $0x111] sm:$0xff] %vm50_vm0, %v181_v57  ;;  %v469_v2 = vrot.slane %v9337_v54, 1  ;;  %247 = vst.msk [vmem:[#allocation2 + $0x121] sm:$0xff] %vm50_vm0, %v182_v61 }
  0x45   :  { %v9351_v58 = vsel %vm445_vm2, %v461_v48, %v462_v49  ;;  %v9366_v1 = vsel %vm445_vm2, %v462_v49, %v464_v51  ;;  %248 = vst.msk [vmem:[#allocation2 + $0x129] sm:$0xff] %vm50_vm0, %v183_v62  ;;  %249 = vst.msk [vmem:[#allocation2 + $0x139] sm:$0xff] %vm50_vm0, %v184_v63  ;;  %v9381_v6 = vld [vmem:[#allocation2 + $0x88] sm:$0x3]  ;;  %v471_v10 = vrot.slane %v9341_v55, 1  ;;  %v472_v11 = vrot.slane %v9343_v56, 1 }
  0x46   :  { %639 = vrot.lane.b32.xlu1 %v9312_v42, %s8881_s30  ;;  %16170 = vst [vmem:[#allocation4_spill] sm:$0xff] %v9366_v1  ;;  %250 = vst.msk [vmem:[#allocation2 + $0x141] sm:$0xff] %vm50_vm0, %v185_v3  ;;  %v9399_v9 = vsel %vm445_vm2, %v466_v59, %v467_v60  ;;  %v9404_v12 = vsel %vm445_vm2, %v467_v60, %v469_v2  ;;  %v474_v13 = vrot.slane %v9381_v6, 1  ;;  %v9407_v14 = vld [vmem:[#allocation2 + $0x90] sm:$0xff]  ;;  %v9409_v15 = vld [vmem:[#allocation2 + $0x98] sm:$0xff] }
  0x47   :  { %251 = vst.msk [vmem:[#allocation2 + $0x151] sm:$0xff] %vm50_vm0, %v186_v4  ;;  %252 = vst.msk [vmem:[#allocation2 + $0x159] sm:$0xff] %vm50_vm0, %v187_v5  ;;  %v9411_v16 = vld [vmem:[#allocation2 + $0xa0] sm:$0x3]  ;;  %v9418_v17 = vsel %vm445_vm2, %v471_v10, %v472_v11  ;;  %v476_v18 = vrot.slane %v9407_v14, 1  ;;  %v477_v19 = vrot.slane %v9409_v15, 1 }
  0x48   :  { %645 = vrot.lane.b32.xlu0 %v9351_v58, %s8881_s30  ;;  %253 = vst.msk [vmem:[#allocation2 + $0x169] sm:$0xff] %vm50_vm0, %v188_v7  ;;  %254 = vst.msk [vmem:[#allocation2 + $0x171] sm:$0xff] %vm50_vm0, %v189_v8  ;;  %v9423_v20 = vsel %vm445_vm2, %v472_v11, %v474_v13  ;;  %v479_v21 = vrot.slane %v9411_v16, 1  ;;  %v9426_v25 = vld [vmem:[#allocation2 + $0xa8] sm:$0xff]  ;;  %v9428_v26 = vld [vmem:[#allocation2 + $0xb0] sm:$0xff] }
  0x49   :  { %16171 = vst [vmem:[#allocation5_spill] sm:$0xff] %v9399_v9  ;;  %16172 = vst [vmem:[#allocation6_spill] sm:$0xff] %v9404_v12  ;;  %v9430_v29 = vld [vmem:[#allocation2 + $0xb8] sm:$0x3]  ;;  %v9437_v30 = vsel %vm445_vm2, %v476_v18, %v477_v19  ;;  %v481_v31 = vrot.slane %v9426_v25, 1  ;;  %v482_v35 = vrot.slane %v9428_v26, 1 }
  0x4a   :  { %643 = vrot.lane.b32.xlu1 %v9330_v50, %s8881_s30  ;;  %16173 = vst [vmem:[#allocation7_spill] sm:$0xff] %v9418_v17  ;;  %16174 = vst [vmem:[#allocation8_spill] sm:$0xff] %v9423_v20  ;;  %v9442_v36 = vsel %vm445_vm2, %v477_v19, %v479_v21  ;;  %v484_v39 = vrot.slane %v9430_v29, 1  ;;  %v9445_v40 = vld [vmem:[#allocation2 + $0xc0] sm:$0xff]  ;;  %v9447_v41 = vld [vmem:[#allocation2 + $0xc8] sm:$0xff] }
  0x4b   :  { %16175 = vst [vmem:[#allocation9_spill] sm:$0xff] %v9437_v30  ;;  %16176 = vst [vmem:[#allocation10_spill] sm:$0xff] %v9442_v36  ;;  %v9449_v43 = vld [vmem:[#allocation2 + $0xd0] sm:$0x3]  ;;  %v9456_v48 = vsel %vm445_vm2, %v481_v31, %v482_v35  ;;  %v486_v49 = vrot.slane %v9445_v40, 1  ;;  %v487_v51 = vrot.slane %v9447_v41, 1 }
  0x4c   :  { %649 = vrot.lane.b32.xlu0 %v9399_v9, %s8881_s30  ;;  %16177 = vst [vmem:[#allocation11_spill] sm:$0xff] %v9456_v48  ;;  %v9461_v57 = vsel %vm445_vm2, %v482_v35, %v484_v39  ;;  %v489_v59 = vrot.slane %v9449_v43, 1  ;;  %v9464_v60 = vld [vmem:[#allocation2 + $0xd8] sm:$0xff]  ;;  %v9466_v61 = vld [vmem:[#allocation2 + $0xe0] sm:$0xff]  ;;  %v9468_v62 = vld [vmem:[#allocation2 + $0xe8] sm:$0x3] }
  0x4d   :  { %16178 = vst [vmem:[#allocation12_spill] sm:$0xff] %v9461_v57  ;;  %v9475_v63 = vsel %vm445_vm2, %v486_v49, %v487_v51  ;;  %v491_v2 = vrot.slane %v9464_v60, 1  ;;  %v492_v3 = vrot.slane %v9466_v61, 1  ;;  %v494_v5 = vrot.slane %v9468_v62, 1  ;;  %v9483_v7 = vld [vmem:[#allocation2 + $0xf0] sm:$0xff]  ;;  %v9485_v8 = vld [vmem:[#allocation2 + $0xf8] sm:$0xff] }
  0x4e   :  { %647 = vrot.lane.b32.xlu1 %v9366_v1, %s8881_s30  ;;  %16179 = vst [vmem:[#allocation13_spill] sm:$0xff] %v9475_v63  ;;  %v9480_v4 = vsel %vm445_vm2, %v487_v51, %v489_v59  ;;  %v9487_v10 = vld [vmem:[#allocation2 + $0x100] sm:$0x3]  ;;  %v496_v13 = vrot.slane %v9483_v7, 1  ;;  %v497_v18 = vrot.slane %v9485_v8, 1  ;;  %v9502_v31 = vld [vmem:[#allocation2 + $0x108] sm:$0xff] }
  0x4f   :  { %16180 = vst [vmem:[#allocation14_spill] sm:$0xff] %v9480_v4  ;;  %v9494_v11 = vsel %vm445_vm2, %v491_v2, %v492_v3  ;;  %v9499_v19 = vsel %vm445_vm2, %v492_v3, %v494_v5  ;;  %v499_v21 = vrot.slane %v9487_v10, 1  ;;  %v9504_v35 = vld [vmem:[#allocation2 + $0x110] sm:$0xff]  ;;  %v9506_v39 = vld [vmem:[#allocation2 + $0x118] sm:$0x3]  ;;  %v501_v51 = vrot.slane %v9502_v31, 1 }
  0x50   :  { %653 = vrot.lane.b32.xlu0 %v9418_v17, %s8881_s30  ;;  %16181 = vst [vmem:[#allocation15_spill] sm:$0xff] %v9494_v11  ;;  %16182 = vst [vmem:[#allocation16_spill] sm:$0xff] %v9499_v19  ;;  %v9513_v49 = vsel %vm445_vm2, %v496_v13, %v497_v18  ;;  %v502_v59 = vrot.slane %v9504_v35, 1  ;;  %v504_v3 = vrot.slane %v9506_v39, 1  ;;  %v9521_v5 = vld [vmem:[#allocation2 + $0x120] sm:$0xff]  ;;  %v9523_v0 = vld [vmem:[#allocation2 + $0x128] sm:$0xff] }
  0x51   :  { %16183 = vst [vmem:[#allocation17_spill] sm:$0xff] %v9513_v49  ;;  %v9518_v2 = vsel %vm445_vm2, %v497_v18, %v499_v21  ;;  %v506_v18 = vrot.slane %v9521_v5, 1  ;;  %v507_v21 = vrot.slane %v9523_v0, 1  ;;  %v9578_v17 = vld [vmem:[#allocation2 + $0x168] sm:$0xff]  ;;  %v528_v1 = vrot.slane %v9276_v23, 2 }
  0x52   :  { %651 = vrot.lane.b32.xlu1 %v9404_v12, %s8881_s30  ;;  %16184 = vst [vmem:[#allocation18_spill] sm:$0xff] %v9518_v2  ;;  %v9532_v13 = vsel %vm445_vm2, %v501_v51, %v502_v59  ;;  %v9580_v12 = vld [vmem:[#allocation2 + $0x170] sm:$0xff] }
  0x53   :  { %16185 = vst [vmem:[#allocation19_spill] sm:$0xff] %v9532_v13  ;;  %v9551_v51 = vsel %vm445_vm2, %v506_v18, %v507_v21  ;;  %v522_v9 = vrot.slane %v9580_v12, 1 }
  0x54   :  { %657 = vrot.lane.b32.xlu0 %v9437_v30, %s8881_s30  ;;  %16187 = vst [vmem:[#allocation21_spill] sm:$0xff] %v9551_v51  ;;  %v9561_v30 = vld [vmem:[#allocation2 + $0x158] sm:$0xff] }
  0x56   :  { %655 = vrot.lane.b32.xlu1 %v9423_v20, %s8881_s30 }
  0x58   :  { %661 = vrot.lane.b32.xlu0 %v9456_v48, %s8881_s30 }
  0x5a   :  { %659 = vrot.lane.b32.xlu1 %v9442_v36, %s8881_s30  ;;  %v9559_v36 = vld [vmem:[#allocation2 + $0x150] sm:$0xff] }
  0x5c   :  { %665 = vrot.lane.b32.xlu0 %v9475_v63, %s8881_s30  ;;  %v9540_v63 = vld [vmem:[#allocation2 + $0x138] sm:$0xff] }
  0x5e   :  { %663 = vrot.lane.b32.xlu1 %v9461_v57, %s8881_s30  ;;  %v9542_v57 = vld [vmem:[#allocation2 + $0x140] sm:$0xff] }
  0x60   :  { %669 = vrot.lane.b32.xlu0 %v9494_v11, %s8881_s30  ;;  %v9525_v11 = vld [vmem:[#allocation2 + $0x130] sm:$0x3] }
  0x62   :  { %667 = vrot.lane.b32.xlu1 %v9480_v4, %s8881_s30  ;;  %v509_v4 = vrot.slane %v9525_v11, 1 }
  0x64   :  { %673 = vrot.lane.b32.xlu0 %v9513_v49, %s8881_s30  ;;  %v9544_v49 = vld [vmem:[#allocation2 + $0x148] sm:$0x3] }
  0x65   :  { %v514_v48 = vrot.slane %v9544_v49, 1 }
  0x66   :  { %671 = vrot.lane.b32.xlu1 %v9499_v19, %s8881_s30  ;;  %v9537_v19 = vsel %vm445_vm2, %v502_v59, %v504_v3  ;;  %v511_v59 = vrot.slane %v9540_v63, 1  ;;  %v512_v3 = vrot.slane %v9542_v57, 1 }
  0x67   :  { %16186 = vst [vmem:[#allocation20_spill] sm:$0xff] %v9537_v19 }
  0x68   :  { %677 = vrot.lane.b32.xlu0 %v9532_v13, %s8881_s30  ;;  %v9563_v13 = vld [vmem:[#allocation2 + $0x160] sm:$0x3]  ;;  %v9570_v18 = vsel %vm445_vm2, %v511_v59, %v512_v3  ;;  %v190_v59 = vld [vmem:[%s16005_s0 + $0xf0] sm:$0xff] }
  0x69   :  { %16189 = vst [vmem:[#allocation23_spill] sm:$0xff] %v9570_v18  ;;  %v519_v20 = vrot.slane %v9563_v13, 1  ;;  %255 = vst.msk [vmem:[#allocation2 + $0x181] sm:$0xff] %vm50_vm0, %v190_v59 }
  0x6a   :  { %675 = vrot.lane.b32.xlu1 %v9518_v2, %s8881_s30  ;;  %v9556_v2 = vsel %vm445_vm2, %v507_v21, %v509_v4  ;;  %v516_v4 = vrot.slane %v9559_v36, 1  ;;  %v517_v21 = vrot.slane %v9561_v30, 1 }
  0x6b   :  { %16188 = vst [vmem:[#allocation22_spill] sm:$0xff] %v9556_v2 }
  0x6c   :  { %681 = vrot.lane.b32.xlu0 %v9551_v51, %s8881_s30  ;;  %v9582_v51 = vld [vmem:[#allocation2 + $0x178] sm:$0x3] }
  0x6d   :  { %v524_v59 = vrot.slane %v9582_v51, 1 }
  0x6e   :  { %679 = vrot.lane.b32.xlu1 %v9537_v19, %s8881_s30  ;;  %v9575_v19 = vsel %vm445_vm2, %v512_v3, %v514_v48  ;;  %v191_v48 = vld [vmem:[%s16005_s0 + $0xf8] sm:$0xff]  ;;  %v9596_v3 = vsel %vm445_vm2, %v516_v4, %v517_v21 }
  0x6f   :  { %16190 = vst [vmem:[#allocation24_spill] sm:$0xff] %v9575_v19  ;;  %16191 = vst [vmem:[#allocation25_spill] sm:$0xff] %v9596_v3 }
  0x70   :  { %685 = vrot.lane.b32.xlu0 %v9570_v18, %s8881_s30  ;;  %256 = vst.msk [vmem:[#allocation2 + $0x189] sm:$0xff] %vm50_vm0, %v191_v48  ;;  %v9602_v18 = vsel %vm445_vm2, %v517_v21, %v519_v20  ;;  %v9615_v48 = vsel %vm445_vm2, %v522_v9, %v524_v59  ;;  %v530_v20 = vrot.slane %v9278_v24, 2  ;;  %v537_v59 = vrot.slane %v9294_v33, 2 }
  0x71   :  { %16192 = vst [vmem:[#allocation26_spill] sm:$0xff] %v9602_v18  ;;  %16194 = vst [vmem:[#allocation28_spill] sm:$0xff] %v9615_v48 }
  0x72   :  { %683 = vrot.lane.b32.xlu1 %v9556_v2, %s8881_s30  ;;  %v521_v2 = vrot.slane %v9578_v17, 1  ;;  %v531_v23 = vsel %vm526_vm3, %v528_v1, %v530_v20  ;;  %v543_v20 = vrot.slane %v9317_v45, 2 }
  0x74   :  { %689 = vrot.lane.b32.xlu0 %v9596_v3, %s8881_s30  ;;  %v9610_v4 = vsel %vm445_vm2, %v521_v2, %v522_v9  ;;  %v532_v2 = vrot.slane %v9285_v27, 2  ;;  %v535_v9 = vrot.slane %v9292_v32, 2 }
  0x75   :  { %16193 = vst [vmem:[#allocation27_spill] sm:$0xff] %v9610_v4 }
  0x76   :  { %687 = vrot.lane.b32.xlu1 %v9575_v19, %s8881_s30  ;;  %v527_v19 = vrot.slane %v9274_v22, 2  ;;  %v533_v22 = vrot.slane %v9287_v28, 2 }
  0x78   :  { %693 = vrot.lane.b32.xlu0 %v9610_v4, %s8881_s30  ;;  %v529_v21 = vsel %vm526_vm3, %v527_v19, %v528_v1  ;;  %v9630_v24 = vsel %vm526_vm3, %v532_v2, %v533_v22  ;;  %v538_v19 = vrot.slane %v9296_v34, 2  ;;  %v540_v4 = vrot.slane %v9300_v37, 2 }
  0x79   :  { %v542_v1 = vrot.slane %v9315_v44, 2  ;;  %v545_v2 = vrot.slane %v9319_v46, 2 }
  0x7a   :  { %691 = vrot.lane.b32.xlu1 %v9602_v18, %s8881_s30  ;;  %v9643_v32 = vsel %vm526_vm3, %v537_v59, %v538_v19  ;;  %v552_v59 = vrot.slane %v9341_v55, 2 }
  0x7b   :  { %v9656_v37 = vsel %vm526_vm3, %v542_v1, %v543_v20 }
  0x7c   :  { %729 = vrot.lane.b32.xlu0 %v529_v21, %s8882_s24  ;;  %v9648_v21 = vsel %vm526_vm3, %v538_v19, %v540_v4  ;;  %v550_v4 = vrot.slane %v9337_v54, 2  ;;  %v553_v19 = vrot.slane %v9343_v56, 2 }
  0x7e   :  { %695 = vrot.lane.b32.xlu1 %v9615_v48, %s8881_s30  ;;  %v9635_v48 = vsel %vm526_vm3, %v533_v22, %v535_v9  ;;  %v547_v22 = vrot.slane %v9333_v52, 2  ;;  %v9661_v9 = vsel %vm526_vm3, %v543_v20, %v545_v2  ;;  %v555_v20 = vrot.slane %v9381_v6, 2 }
  0x7f   :  { %16195 = vst [vmem:[#allocation29_spill] sm:$0xff] %v9661_v9  ;;  %v9682_v54 = vsel %vm526_vm3, %v552_v59, %v553_v19  ;;  %v557_v2 = vrot.slane %v9407_v14, 2  ;;  %v563_v59 = vrot.slane %v9428_v26, 2 }
  0x80   :  { %733 = vrot.lane.b32.xlu0 %v9630_v24, %s8882_s24 }
  0x82   :  { %731 = vrot.lane.b32.xlu1 %v531_v23, %s8882_s24  ;;  %v548_v23 = vrot.slane %v9335_v53, 2 }
  0x84   :  { %737 = vrot.lane.b32.xlu0 %v9643_v32, %s8882_s24  ;;  %v9669_v46 = vsel %vm526_vm3, %v547_v22, %v548_v23  ;;  %v9674_v1 = vsel %vm526_vm3, %v548_v23, %v550_v4  ;;  %v558_v22 = vrot.slane %v9409_v15, 2  ;;  %v560_v23 = vrot.slane %v9411_v16, 2 }
  0x85   :  { %16196 = vst [vmem:[#allocation30_spill] sm:$0xff] %v9674_v1  ;;  %v562_v4 = vrot.slane %v9426_v25, 2 }
  0x86   :  { %735 = vrot.lane.b32.xlu1 %v9635_v48, %s8882_s24  ;;  %v9695_v6 = vsel %vm526_vm3, %v557_v2, %v558_v22  ;;  %v568_v2 = vrot.slane %v9447_v41, 2 }
  0x87   :  { %v9708_v16 = vsel %vm526_vm3, %v562_v4, %v563_v59  ;;  %v573_v4 = vrot.slane %v9466_v61, 2 }
  0x88   :  { %741 = vrot.lane.b32.xlu0 %v9656_v37, %s8882_s24 }
  0x8a   :  { %739 = vrot.lane.b32.xlu1 %v9648_v21, %s8882_s24 }
  0x8c   :  { %745 = vrot.lane.b32.xlu0 %v9669_v46, %s8882_s24 }
  0x8e   :  { %743 = vrot.lane.b32.xlu1 %v9661_v9, %s8882_s24  ;;  %v9687_v9 = vsel %vm526_vm3, %v553_v19, %v555_v20  ;;  %v565_v19 = vrot.slane %v9430_v29, 2  ;;  %v567_v20 = vrot.slane %v9445_v40, 2 }
  0x8f   :  { %16197 = vst [vmem:[#allocation31_spill] sm:$0xff] %v9687_v9 }
  0x90   :  { %749 = vrot.lane.b32.xlu0 %v9682_v54, %s8882_s24  ;;  %v9721_v29 = vsel %vm526_vm3, %v567_v20, %v568_v2  ;;  %v578_v20 = vrot.slane %v9485_v8, 2 }
  0x92   :  { %747 = vrot.lane.b32.xlu1 %v9674_v1, %s8882_s24  ;;  %v9700_v1 = vsel %vm526_vm3, %v558_v22, %v560_v23  ;;  %v570_v22 = vrot.slane %v9449_v43, 2  ;;  %v572_v23 = vrot.slane %v9464_v60, 2 }
  0x93   :  { %16198 = vst [vmem:[#allocation32_spill] sm:$0xff] %v9700_v1 }
  0x94   :  { %753 = vrot.lane.b32.xlu0 %v9695_v6, %s8882_s24  ;;  %v9734_v43 = vsel %vm526_vm3, %v572_v23, %v573_v4  ;;  %v583_v23 = vrot.slane %v9504_v35, 2 }
  0x96   :  { %751 = vrot.lane.b32.xlu1 %v9687_v9, %s8882_s24  ;;  %v9713_v9 = vsel %vm526_vm3, %v563_v59, %v565_v19  ;;  %v575_v59 = vrot.slane %v9468_v62, 2  ;;  %v577_v19 = vrot.slane %v9483_v7, 2 }
  0x97   :  { %16199 = vst [vmem:[#allocation33_spill] sm:$0xff] %v9713_v9 }
  0x98   :  { %757 = vrot.lane.b32.xlu0 %v9708_v16, %s8882_s24  ;;  %v9747_v62 = vsel %vm526_vm3, %v577_v19, %v578_v20  ;;  %v588_v19 = vrot.slane %v9523_v0, 2 }
  0x99   :  { %16202 = vst [vmem:[#allocation36_spill] sm:$0xff] %v9747_v62 }
  0x9a   :  { %755 = vrot.lane.b32.xlu1 %v9700_v1, %s8882_s24  ;;  %v9726_v1 = vsel %vm526_vm3, %v568_v2, %v570_v22  ;;  %v580_v2 = vrot.slane %v9487_v10, 2  ;;  %v582_v22 = vrot.slane %v9502_v31, 2 }
  0x9b   :  { %16200 = vst [vmem:[#allocation34_spill] sm:$0xff] %v9726_v1 }
  0x9c   :  { %761 = vrot.lane.b32.xlu0 %v9721_v29, %s8882_s24  ;;  %v9760_v10 = vsel %vm526_vm3, %v582_v22, %v583_v23  ;;  %v593_v22 = vrot.slane %v9542_v57, 2 }
  0x9e   :  { %759 = vrot.lane.b32.xlu1 %v9713_v9, %s8882_s24  ;;  %v9739_v9 = vsel %vm526_vm3, %v573_v4, %v575_v59  ;;  %v585_v4 = vrot.slane %v9506_v39, 2  ;;  %v587_v59 = vrot.slane %v9521_v5, 2 }
  0x9f   :  { %16201 = vst [vmem:[#allocation35_spill] sm:$0xff] %v9739_v9 }
  0xa0   :  { %765 = vrot.lane.b32.xlu0 %v9734_v43, %s8882_s24  ;;  %v9773_v39 = vsel %vm526_vm3, %v587_v59, %v588_v19  ;;  %v598_v59 = vrot.slane %v9561_v30, 2 }
  0xa1   :  { %16205 = vst [vmem:[#allocation39_spill] sm:$0xff] %v9773_v39 }
  0xa2   :  { %763 = vrot.lane.b32.xlu1 %v9726_v1, %s8882_s24  ;;  %v9752_v1 = vsel %vm526_vm3, %v578_v20, %v580_v2  ;;  %v590_v20 = vrot.slane %v9525_v11, 2  ;;  %v592_v2 = vrot.slane %v9540_v63, 2 }
  0xa3   :  { %16203 = vst [vmem:[#allocation37_spill] sm:$0xff] %v9752_v1 }
  0xa4   :  { %769 = vrot.lane.b32.xlu0 %v9747_v62, %s8882_s24  ;;  %v9786_v11 = vsel %vm526_vm3, %v592_v2, %v593_v22 }
  0xa5   :  { %16207 = vst [vmem:[#allocation41_spill] sm:$0xff] %v9786_v11 }
  0xa6   :  { %767 = vrot.lane.b32.xlu1 %v9739_v9, %s8882_s24  ;;  %v9765_v9 = vsel %vm526_vm3, %v583_v23, %v585_v4  ;;  %v595_v23 = vrot.slane %v9544_v49, 2  ;;  %v597_v4 = vrot.slane %v9559_v36, 2  ;;  %v600_v49 = vrot.slane %v9563_v13, 2 }
  0xa7   :  { %16204 = vst [vmem:[#allocation38_spill] sm:$0xff] %v9765_v9  ;;  %v605_v13 = vrot.slane %v9582_v51, 2 }
  0xa8   :  { %773 = vrot.lane.b32.xlu0 %v9760_v10, %s8882_s24  ;;  %v9803_v2 = vsel %vm526_vm3, %v597_v4, %v598_v59 }
  0xa9   :  { %16211 = vst [vmem:[#allocation45_spill] sm:$0xff] %v9803_v2 }
  0xaa   :  { %771 = vrot.lane.b32.xlu1 %v9752_v1, %s8882_s24  ;;  %v9778_v1 = vsel %vm526_vm3, %v588_v19, %v590_v20  ;;  %v9793_v19 = vsel %vm526_vm3, %v593_v22, %v595_v23  ;;  %v9810_v22 = vsel %vm526_vm3, %v598_v59, %v600_v49 }
  0xab   :  { %16206 = vst [vmem:[#allocation40_spill] sm:$0xff] %v9778_v1  ;;  %16209 = vst [vmem:[#allocation43_spill] sm:$0xff] %v9793_v19 }
  0xac   :  { %777 = vrot.lane.b32.xlu0 %v9773_v39, %s8882_s24  ;;  %16213 = vst [vmem:[#allocation47_spill] sm:$0xff] %v9810_v22 }
  0xae   :  { %775 = vrot.lane.b32.xlu1 %v9765_v9, %s8882_s24  ;;  %v9790_v9 = vpop.permute.xlu0 %633 }
  0xaf   :  { %16208 = vst [vmem:[#allocation42_spill] sm:$0xff] %v9790_v9  ;;  %v603_v9 = vrot.slane %v9580_v12, 2 }
  0xb0   :  { %781 = vrot.lane.b32.xlu0 %v9786_v11, %s8882_s24 }
  0xb2   :  { %779 = vrot.lane.b32.xlu1 %v9778_v1, %s8882_s24  ;;  %v602_v1 = vrot.slane %v9578_v17, 2  ;;  %v9807_v39 = vpop.permute.xlu0 %635 }
  0xb3   :  { %16212 = vst [vmem:[#allocation46_spill] sm:$0xff] %v9807_v39  ;;  %v9825_v39 = vsel %vm526_vm3, %v603_v9, %v605_v13 }
  0xb4   :  { %v9796_v20 = vpop.permute.xlu1 %637  ;;  %785 = vrot.lane.b32.xlu0 %v9803_v2, %s8882_s24  ;;  %v9820_v4 = vsel %vm526_vm3, %v602_v1, %v603_v9 }
  0xb5   :  { %16210 = vst [vmem:[#allocation44_spill] sm:$0xff] %v9796_v20 }
  0xb6   :  { %783 = vrot.lane.b32.xlu1 %v9793_v19, %s8882_s24  ;;  %v9822_v20 = vpop.permute.xlu0 %641 }
  0xb7   :  { %16215 = vst [vmem:[#allocation49_spill] sm:$0xff] %v9822_v20  ;;  %v16295_v20 = vld [vmem:[#allocation24_spill] sm:$0xff] }
  0xb8   :  { %v9813_v23 = vpop.permute.xlu1 %639  ;;  %789 = vrot.lane.b32.xlu0 %v9820_v4, %s8882_s24 }
  0xb9   :  { %16214 = vst [vmem:[#allocation48_spill] sm:$0xff] %v9813_v23 }
  0xba   :  { %787 = vrot.lane.b32.xlu1 %v9810_v22, %s8882_s24  ;;  %v9833_v51 = vpop.permute.xlu0 %645 }
  0xbb   :  { %16217 = vst [vmem:[#allocation51_spill] sm:$0xff] %v9833_v51  ;;  %v16291_v51 = vld [vmem:[#allocation22_spill] sm:$0xff] }
  0xbc   :  { %v9827_v59 = vpop.permute.xlu1 %643  ;;  %825 = vrot.lane.b32.xlu0 %v9285_v27, %s8883_s25 }
  0xbd   :  { %16216 = vst [vmem:[#allocation50_spill] sm:$0xff] %v9827_v59 }
  0xbe   :  { %791 = vrot.lane.b32.xlu1 %v9825_v39, %s8882_s24  ;;  %v9841_v9 = vpop.permute.xlu0 %649 }
  0xbf   :  { %16219 = vst [vmem:[#allocation53_spill] sm:$0xff] %v9841_v9 }
  0xc0   :  { %v9835_v49 = vpop.permute.xlu1 %647  ;;  %829 = vrot.lane.b32.xlu0 %v9294_v33, %s8883_s25 }
  0xc1   :  { %16218 = vst [vmem:[#allocation52_spill] sm:$0xff] %v9835_v49 }
  0xc2   :  { %827 = vrot.lane.b32.xlu1 %v9287_v28, %s8883_s25  ;;  %v9849_v13 = vpop.permute.xlu0 %653 }
  0xc3   :  { %16221 = vst [vmem:[#allocation55_spill] sm:$0xff] %v9849_v13 }
  0xc4   :  { %v9843_v1 = vpop.permute.xlu1 %651  ;;  %833 = vrot.lane.b32.xlu0 %v9315_v44, %s8883_s25 }
  0xc5   :  { %16220 = vst [vmem:[#allocation54_spill] sm:$0xff] %v9843_v1  ;;  %v16287_v1 = vld [vmem:[#allocation20_spill] sm:$0xff] }
  0xc6   :  { %831 = vrot.lane.b32.xlu1 %v9296_v34, %s8883_s25  ;;  %v9857_v27 = vpop.permute.xlu0 %657 }
  0xc7   :  { %16223 = vst [vmem:[#allocation57_spill] sm:$0xff] %v9857_v27 }
  0xc8   :  { %v9851_v49 = vpop.permute.xlu1 %655  ;;  %837 = vrot.lane.b32.xlu0 %v9333_v52, %s8883_s25 }
  0xc9   :  { %16222 = vst [vmem:[#allocation56_spill] sm:$0xff] %v9851_v49  ;;  %v16283_v49 = vld [vmem:[#allocation18_spill] sm:$0xff] }
  0xca   :  { %835 = vrot.lane.b32.xlu1 %v9317_v45, %s8883_s25  ;;  %v9865_v33 = vpop.permute.xlu0 %661 }
  0xcb   :  { %16225 = vst [vmem:[#allocation59_spill] sm:$0xff] %v9865_v33 }
  0xcc   :  { %v9859_v28 = vpop.permute.xlu1 %659  ;;  %841 = vrot.lane.b32.xlu0 %v9341_v55, %s8883_s25 }
  0xcd   :  { %16224 = vst [vmem:[#allocation58_spill] sm:$0xff] %v9859_v28  ;;  %v16279_v28 = vld [vmem:[#allocation16_spill] sm:$0xff] }
  0xce   :  { %839 = vrot.lane.b32.xlu1 %v9335_v53, %s8883_s25  ;;  %v9873_v44 = vpop.permute.xlu0 %665 }
  0xcf   :  { %16227 = vst [vmem:[#allocation61_spill] sm:$0xff] %v9873_v44 }
  0xd0   :  { %v9867_v34 = vpop.permute.xlu1 %663  ;;  %845 = vrot.lane.b32.xlu0 %v9407_v14, %s8883_s25 }
  0xd1   :  { %16226 = vst [vmem:[#allocation60_spill] sm:$0xff] %v9867_v34  ;;  %v16275_v34 = vld [vmem:[#allocation14_spill] sm:$0xff] }
  0xd2   :  { %843 = vrot.lane.b32.xlu1 %v9343_v56, %s8883_s25  ;;  %v9881_v52 = vpop.permute.xlu0 %669 }
  0xd3   :  { %16229 = vst [vmem:[#allocation63_spill] sm:$0xff] %v9881_v52 }
  0xd4   :  { %v9875_v45 = vpop.permute.xlu1 %667  ;;  %849 = vrot.lane.b32.xlu0 %v9426_v25, %s8883_s25 }
  0xd5   :  { %16228 = vst [vmem:[#allocation62_spill] sm:$0xff] %v9875_v45  ;;  %v16271_v45 = vld [vmem:[#allocation12_spill] sm:$0xff] }
  0xd6   :  { %847 = vrot.lane.b32.xlu1 %v9409_v15, %s8883_s25  ;;  %v9889_v55 = vpop.permute.xlu0 %673 }
  0xd7   :  { %16231 = vst [vmem:[#allocation65_spill] sm:$0xff] %v9889_v55 }
  0xd8   :  { %v9883_v53 = vpop.permute.xlu1 %671  ;;  %853 = vrot.lane.b32.xlu0 %v9445_v40, %s8883_s25 }
  0xd9   :  { %16230 = vst [vmem:[#allocation64_spill] sm:$0xff] %v9883_v53  ;;  %v16267_v53 = vld [vmem:[#allocation10_spill] sm:$0xff] }
  0xda   :  { %851 = vrot.lane.b32.xlu1 %v9428_v26, %s8883_s25  ;;  %v9897_v14 = vpop.permute.xlu0 %677 }
  0xdb   :  { %16233 = vst [vmem:[#allocation67_spill] sm:$0xff] %v9897_v14 }
  0xdc   :  { %v9891_v56 = vpop.permute.xlu1 %675  ;;  %857 = vrot.lane.b32.xlu0 %v9464_v60, %s8883_s25 }
  0xdd   :  { %16232 = vst [vmem:[#allocation66_spill] sm:$0xff] %v9891_v56  ;;  %v16263_v56 = vld [vmem:[#allocation8_spill] sm:$0xff] }
  0xde   :  { %855 = vrot.lane.b32.xlu1 %v9447_v41, %s8883_s25  ;;  %v9905_v25 = vpop.permute.xlu0 %681 }
  0xdf   :  { %16235 = vst [vmem:[#allocation69_spill] sm:$0xff] %v9905_v25 }
  0xe0   :  { %v9899_v15 = vpop.permute.xlu1 %679  ;;  %861 = vrot.lane.b32.xlu0 %v9483_v7, %s8883_s25 }
  0xe1   :  { %16234 = vst [vmem:[#allocation68_spill] sm:$0xff] %v9899_v15  ;;  %v16259_v15 = vld [vmem:[#allocation6_spill] sm:$0xff] }
  0xe2   :  { %859 = vrot.lane.b32.xlu1 %v9466_v61, %s8883_s25  ;;  %v9913_v40 = vpop.permute.xlu0 %685 }
  0xe3   :  { %16237 = vst [vmem:[#allocation71_spill] sm:$0xff] %v9913_v40 }
  0xe4   :  { %v9907_v26 = vpop.permute.xlu1 %683  ;;  %865 = vrot.lane.b32.xlu0 %v9502_v31, %s8883_s25 }
  0xe5   :  { %16236 = vst [vmem:[#allocation70_spill] sm:$0xff] %v9907_v26 }
  0xe6   :  { %863 = vrot.lane.b32.xlu1 %v9485_v8, %s8883_s25  ;;  %v9921_v60 = vpop.permute.xlu0 %689 }
  0xe7   :  { %16239 = vst [vmem:[#allocation73_spill] sm:$0xff] %v9921_v60 }
  0xe8   :  { %v9915_v41 = vpop.permute.xlu1 %687  ;;  %869 = vrot.lane.b32.xlu0 %v9521_v5, %s8883_s25 }
  0xe9   :  { %16238 = vst [vmem:[#allocation72_spill] sm:$0xff] %v9915_v41 }
  0xea   :  { %867 = vrot.lane.b32.xlu1 %v9504_v35, %s8883_s25  ;;  %v9929_v26 = vpop.permute.xlu0 %693 }
  0xeb   :  { %16241 = vst [vmem:[#allocation75_spill] sm:$0xff] %v9929_v26 }
  0xec   :  { %v9923_v61 = vpop.permute.xlu1 %691  ;;  %873 = vrot.lane.b32.xlu0 %v9540_v63, %s8883_s25 }
  0xed   :  { %16240 = vst [vmem:[#allocation74_spill] sm:$0xff] %v9923_v61 }
  0xee   :  { %871 = vrot.lane.b32.xlu1 %v9523_v0, %s8883_s25  ;;  %v9937_v41 = vpop.permute.xlu0 %729 }
  0xef   :  { %16243 = vst [vmem:[#allocation77_spill] sm:$0xff] %v9937_v41 }
  0xf0   :  { %v9931_v40 = vpop.permute.xlu1 %695  ;;  %877 = vrot.lane.b32.xlu0 %v9559_v36, %s8883_s25 }
  0xf1   :  { %16242 = vst [vmem:[#allocation76_spill] sm:$0xff] %v9931_v40  ;;  %v9953_v40 = vld [vmem:[#allocation2 + $0x180] sm:$0xff] }
  0xf2   :  { %875 = vrot.lane.b32.xlu1 %v9542_v57, %s8883_s25  ;;  %v9945_v61 = vpop.permute.xlu0 %733 }
  0xf3   :  { %16245 = vst [vmem:[#allocation79_spill] sm:$0xff] %v9945_v61 }
  0xf4   :  { %v9939_v60 = vpop.permute.xlu1 %731  ;;  %881 = vrot.lane.b32.xlu0 %v9578_v17, %s8883_s25 }
  0xf5   :  { %16244 = vst [vmem:[#allocation78_spill] sm:$0xff] %v9939_v60  ;;  %v9957_v60 = vld [vmem:[#allocation2 + $0x188] sm:$0xff] }
  0xf6   :  { %879 = vrot.lane.b32.xlu1 %v9561_v30, %s8883_s25  ;;  %v9955_v41 = vpop.permute.xlu0 %737 }
  0xf7   :  { %16247 = vst [vmem:[#allocation81_spill] sm:$0xff] %v9955_v41 }
  0xf8   :  { %v9947_v26 = vpop.permute.xlu1 %735  ;;  %885 = vrot.lane.b32.xlu0 %v9953_v40, %s8883_s25 }
  0xf9   :  { %16246 = vst [vmem:[#allocation80_spill] sm:$0xff] %v9947_v26 }
  0xfa   :  { %883 = vrot.lane.b32.xlu1 %v9580_v12, %s8883_s25  ;;  %v9965_v26 = vpop.permute.xlu0 %741 }
  0xfb   :  { %16249 = vst [vmem:[#allocation83_spill] sm:$0xff] %v9965_v26 }
  0xfc   :  { %v9959_v25 = vpop.permute.xlu1 %739  ;;  %921 = vrot.lane.b32.xlu0 %v9304_v38, %s8884_s26  ;;  %v16255_v38 = vld [vmem:[#allocation4_spill] sm:$0xff] }
  0xfd   :  { %16248 = vst [vmem:[#allocation82_spill] sm:$0xff] %v9959_v25 }
  0xfe   :  { %887 = vrot.lane.b32.xlu1 %v9957_v60, %s8883_s25  ;;  %v9973_v41 = vpop.permute.xlu0 %745 }
  0xff   :  { %16251 = vst [vmem:[#allocation85_spill] sm:$0xff] %v9973_v41 }
 0x100   :  { %v9967_v61 = vpop.permute.xlu1 %743  ;;  %925 = vrot.lane.b32.xlu0 %v9325_v47, %s8884_s26 }
 0x101   :  { %16250 = vst [vmem:[#allocation84_spill] sm:$0xff] %v9967_v61 }
 0x102   :  { %923 = vrot.lane.b32.xlu1 %v9312_v42, %s8884_s26  ;;  %v9981_v26 = vpop.permute.xlu0 %749 }
 0x103   :  { %16253 = vst [vmem:[#allocation87_spill] sm:$0xff] %v9981_v26 }
 0x104   :  { %v9975_v25 = vpop.permute.xlu1 %747  ;;  %929 = vrot.lane.b32.xlu0 %v9351_v58, %s8884_s26 }
 0x105   :  { %16252 = vst [vmem:[#allocation86_spill] sm:$0xff] %v9975_v25  ;;  %v16258_v25 = vld [vmem:[#allocation5_spill] sm:$0xff] }
 0x106   :  { %927 = vrot.lane.b32.xlu1 %v9330_v50, %s8884_s26  ;;  %v9989_v42 = vpop.permute.xlu0 %753 }
 0x107   :  { %16256 = vst [vmem:[#allocation4_spill] sm:$0xff] %v9989_v42 }
 0x108   :  { %v9983_v61 = vpop.permute.xlu1 %751  ;;  %933 = vrot.lane.b32.xlu0 %v16258_v25, %s8884_s26 }
 0x109   :  { %16254 = vst [vmem:[#allocation88_spill] sm:$0xff] %v9983_v61  ;;  %v16262_v61 = vld [vmem:[#allocation7_spill] sm:$0xff] }
 0x10a   :  { %931 = vrot.lane.b32.xlu1 %v16255_v38, %s8884_s26  ;;  %v9997_v14 = vpop.permute.xlu0 %757 }
 0x10b   :  { %16260 = vst [vmem:[#allocation5_spill] sm:$0xff] %v9997_v14 }
 0x10c   :  { %v9991_v41 = vpop.permute.xlu1 %755  ;;  %937 = vrot.lane.b32.xlu0 %v16262_v61, %s8884_s26 }
 0x10d   :  { %16257 = vst [vmem:[#allocation89_spill] sm:$0xff] %v9991_v41  ;;  %v16266_v41 = vld [vmem:[#allocation9_spill] sm:$0xff] }
 0x10e   :  { %935 = vrot.lane.b32.xlu1 %v16259_v15, %s8884_s26  ;;  %v10005_v55 = vpop.permute.xlu0 %761 }
 0x10f   :  { %16264 = vst [vmem:[#allocation7_spill] sm:$0xff] %v10005_v55 }
 0x110   :  { %v9999_v26 = vpop.permute.xlu1 %759  ;;  %941 = vrot.lane.b32.xlu0 %v16266_v41, %s8884_s26 }
 0x111   :  { %16261 = vst [vmem:[#allocation6_spill] sm:$0xff] %v9999_v26  ;;  %v16270_v26 = vld [vmem:[#allocation11_spill] sm:$0xff] }
 0x112   :  { %939 = vrot.lane.b32.xlu1 %v16263_v56, %s8884_s26  ;;  %v10013_v52 = vpop.permute.xlu0 %765 }
 0x113   :  { %16268 = vst [vmem:[#allocation9_spill] sm:$0xff] %v10013_v52 }
 0x114   :  { %v10007_v42 = vpop.permute.xlu1 %763  ;;  %945 = vrot.lane.b32.xlu0 %v16270_v26, %s8884_s26 }
 0x115   :  { %16265 = vst [vmem:[#allocation8_spill] sm:$0xff] %v10007_v42  ;;  %v16274_v42 = vld [vmem:[#allocation13_spill] sm:$0xff] }
 0x116   :  { %943 = vrot.lane.b32.xlu1 %v16267_v53, %s8884_s26  ;;  %v10021_v44 = vpop.permute.xlu0 %769 }
 0x117   :  { %16272 = vst [vmem:[#allocation11_spill] sm:$0xff] %v10021_v44 }
 0x118   :  { %v10015_v14 = vpop.permute.xlu1 %767  ;;  %949 = vrot.lane.b32.xlu0 %v16274_v42, %s8884_s26 }
 0x119   :  { %16269 = vst [vmem:[#allocation10_spill] sm:$0xff] %v10015_v14  ;;  %v16278_v14 = vld [vmem:[#allocation15_spill] sm:$0xff] }
 0x11a   :  { %947 = vrot.lane.b32.xlu1 %v16271_v45, %s8884_s26  ;;  %v10029_v33 = vpop.permute.xlu0 %773 }
 0x11b   :  { %16276 = vst [vmem:[#allocation13_spill] sm:$0xff] %v10029_v33 }
 0x11c   :  { %v10023_v55 = vpop.permute.xlu1 %771  ;;  %953 = vrot.lane.b32.xlu0 %v16278_v14, %s8884_s26 }
 0x11d   :  { %16273 = vst [vmem:[#allocation12_spill] sm:$0xff] %v10023_v55  ;;  %v16282_v55 = vld [vmem:[#allocation17_spill] sm:$0xff] }
 0x11e   :  { %951 = vrot.lane.b32.xlu1 %v16275_v34, %s8884_s26  ;;  %v10037_v27 = vpop.permute.xlu0 %777 }
 0x11f   :  { %16280 = vst [vmem:[#allocation15_spill] sm:$0xff] %v10037_v27 }
 0x120   :  { %v10031_v52 = vpop.permute.xlu1 %775  ;;  %957 = vrot.lane.b32.xlu0 %v16282_v55, %s8884_s26 }
 0x121   :  { %16277 = vst [vmem:[#allocation14_spill] sm:$0xff] %v10031_v52  ;;  %v16286_v52 = vld [vmem:[#allocation19_spill] sm:$0xff] }
 0x122   :  { %955 = vrot.lane.b32.xlu1 %v16279_v28, %s8884_s26  ;;  %v10045_v13 = vpop.permute.xlu0 %781 }
 0x123   :  { %16284 = vst [vmem:[#allocation17_spill] sm:$0xff] %v10045_v13 }
 0x124   :  { %v10039_v44 = vpop.permute.xlu1 %779  ;;  %961 = vrot.lane.b32.xlu0 %v16286_v52, %s8884_s26 }
 0x125   :  { %16281 = vst [vmem:[#allocation16_spill] sm:$0xff] %v10039_v44  ;;  %v16290_v44 = vld [vmem:[#allocation21_spill] sm:$0xff] }
 0x126   :  { %959 = vrot.lane.b32.xlu1 %v16283_v49, %s8884_s26  ;;  %v10053_v9 = vpop.permute.xlu0 %785 }
 0x127   :  { %16288 = vst [vmem:[#allocation19_spill] sm:$0xff] %v10053_v9 }
 0x128   :  { %v10047_v33 = vpop.permute.xlu1 %783  ;;  %965 = vrot.lane.b32.xlu0 %v16290_v44, %s8884_s26 }
 0x129   :  { %16285 = vst [vmem:[#allocation18_spill] sm:$0xff] %v10047_v33  ;;  %v16294_v33 = vld [vmem:[#allocation23_spill] sm:$0xff] }
 0x12a   :  { %963 = vrot.lane.b32.xlu1 %v16287_v1, %s8884_s26  ;;  %v10061_v59 = vpop.permute.xlu0 %789 }
 0x12b   :  { %16292 = vst [vmem:[#allocation91_spill] sm:$0xff] %v10061_v59  ;;  %v611_v59 = vrot.slane %v9957_v60, 1 }
 0x12c   :  { %v10055_v27 = vpop.permute.xlu1 %787  ;;  %969 = vrot.lane.b32.xlu0 %v16294_v33, %s8884_s26 }
 0x12d   :  { %16289 = vst [vmem:[#allocation90_spill] sm:$0xff] %v10055_v27  ;;  %v10073_v27 = vld [vmem:[#allocation2 + $0x190] sm:$0x3] }
 0x12e   :  { %967 = vrot.lane.b32.xlu1 %v16291_v51, %s8884_s26  ;;  %v10069_v23 = vpop.permute.xlu0 %825  ;;  %v610_v51 = vrot.slane %v9953_v40, 1 }
 0x12f   :  { %16296 = vst [vmem:[#allocation93_spill] sm:$0xff] %v10069_v23  ;;  %v16301_v23 = vld [vmem:[#allocation28_spill] sm:$0xff] }
 0x130   :  { %v10063_v13 = vpop.permute.xlu1 %791  ;;  %973 = vrot.lane.b32.xlu0 %v9596_v3, %s8884_s26  ;;  %v10091_v3 = vsel %vm445_vm2, %v610_v51, %v611_v59 }
 0x131   :  { %16293 = vst [vmem:[#allocation92_spill] sm:$0xff] %v10063_v13 }
 0x132   :  { %971 = vrot.lane.b32.xlu1 %v16295_v20, %s8884_s26  ;;  %v10081_v13 = vpop.permute.xlu0 %829  ;;  %v613_v20 = vrot.slane %v10073_v27, 1 }
 0x133   :  { %16298 = vst [vmem:[#allocation95_spill] sm:$0xff] %v10081_v13 }
 0x134   :  { %v10071_v9 = vpop.permute.xlu1 %827  ;;  %v10096_v1 = vsel %vm445_vm2, %v611_v59, %v613_v20 }
 0x135   :  { %16297 = vst [vmem:[#allocation94_spill] sm:$0xff] %v10071_v9  ;;  %v16300_v9 = vld [vmem:[#allocation27_spill] sm:$0xff] }
 0x136   :  { %975 = vrot.lane.b32.xlu1 %v9602_v18, %s8884_s26  ;;  %977 = vrot.lane.b32.xlu0 %v16300_v9, %s8884_s26  ;;  %v10093_v44 = vpop.permute.xlu0 %833 }
 0x137   :  { %16302 = vst [vmem:[#allocation27_spill] sm:$0xff] %v10093_v44 }
 0x138   :  { %v10084_v33 = vpop.permute.xlu1 %831 }
 0x139   :  { %16299 = vst [vmem:[#allocation96_spill] sm:$0xff] %v10084_v33 }
 0x13a   :  { %979 = vrot.lane.b32.xlu1 %v16301_v23, %s8884_s26  ;;  %981 = vrot.lane.b32.xlu0 %v10091_v3, %s8884_s26  ;;  %v10104_v33 = vpop.permute.xlu0 %837 }
 0x13b   :  { %16304 = vst [vmem:[#allocation97_spill] sm:$0xff] %v10104_v33 }
 0x13c   :  { %v10098_v18 = vpop.permute.xlu1 %835 }
 0x13d   :  { %16303 = vst [vmem:[#allocation28_spill] sm:$0xff] %v10098_v18 }
 0x13e   :  { %983 = vrot.lane.b32.xlu1 %v10096_v1, %s8884_s26  ;;  %1017 = vrot.lane.b32.xlu0 %v9630_v24, %s8885_s27  ;;  %v10112_v20 = vpop.permute.xlu0 %841  ;;  %v16310_v24 = vld [vmem:[#allocation29_spill] sm:$0xff] }
 0x13f   :  { %16306 = vst [vmem:[#allocation99_spill] sm:$0xff] %v10112_v20 }
 0x140   :  { %v10106_v13 = vpop.permute.xlu1 %839 }
 0x141   :  { %16305 = vst [vmem:[#allocation98_spill] sm:$0xff] %v10106_v13 }
 0x142   :  { %1019 = vrot.lane.b32.xlu1 %v9635_v48, %s8885_s27  ;;  %1021 = vrot.lane.b32.xlu0 %v9643_v32, %s8885_s27  ;;  %v10120_v51 = vpop.permute.xlu0 %845 }
 0x143   :  { %16308 = vst [vmem:[#allocation101_spill] sm:$0xff] %v10120_v51 }
 0x144   :  { %v10114_v59 = vpop.permute.xlu1 %843 }
 0x145   :  { %16307 = vst [vmem:[#allocation100_spill] sm:$0xff] %v10114_v59  ;;  %v16313_v59 = vld [vmem:[#allocation30_spill] sm:$0xff] }
 0x146   :  { %1023 = vrot.lane.b32.xlu1 %v9648_v21, %s8885_s27  ;;  %1025 = vrot.lane.b32.xlu0 %v9656_v37, %s8885_s27  ;;  %v10128_v48 = vpop.permute.xlu0 %849 }
 0x147   :  { %16311 = vst [vmem:[#allocation29_spill] sm:$0xff] %v10128_v48 }
 0x148   :  { %v10122_v13 = vpop.permute.xlu1 %847 }
 0x149   :  { %16309 = vst [vmem:[#allocation102_spill] sm:$0xff] %v10122_v13  ;;  %v16316_v13 = vld [vmem:[#allocation31_spill] sm:$0xff] }
 0x14a   :  { %1027 = vrot.lane.b32.xlu1 %v16310_v24, %s8885_s27  ;;  %1029 = vrot.lane.b32.xlu0 %v9669_v46, %s8885_s27  ;;  %v10136_v33 = vpop.permute.xlu0 %853 }
 0x14b   :  { %16314 = vst [vmem:[#allocation30_spill] sm:$0xff] %v10136_v33 }
 0x14c   :  { %v10130_v20 = vpop.permute.xlu1 %851 }
 0x14d   :  { %16312 = vst [vmem:[#allocation103_spill] sm:$0xff] %v10130_v20  ;;  %v16319_v20 = vld [vmem:[#allocation32_spill] sm:$0xff] }
 0x14e   :  { %1031 = vrot.lane.b32.xlu1 %v16313_v59, %s8885_s27  ;;  %1033 = vrot.lane.b32.xlu0 %v9682_v54, %s8885_s27  ;;  %v10144_v18 = vpop.permute.xlu0 %857 }
 0x14f   :  { %16317 = vst [vmem:[#allocation105_spill] sm:$0xff] %v10144_v18 }
 0x150   :  { %v10138_v51 = vpop.permute.xlu1 %855 }
 0x151   :  { %16315 = vst [vmem:[#allocation104_spill] sm:$0xff] %v10138_v51  ;;  %v16322_v51 = vld [vmem:[#allocation33_spill] sm:$0xff] }
 0x152   :  { %1035 = vrot.lane.b32.xlu1 %v16316_v13, %s8885_s27  ;;  %1037 = vrot.lane.b32.xlu0 %v9695_v6, %s8885_s27  ;;  %v10152_v44 = vpop.permute.xlu0 %861 }
 0x153   :  { %16320 = vst [vmem:[#allocation107_spill] sm:$0xff] %v10152_v44 }
 0x154   :  { %v10146_v48 = vpop.permute.xlu1 %859 }
 0x155   :  { %16318 = vst [vmem:[#allocation106_spill] sm:$0xff] %v10146_v48  ;;  %v16325_v48 = vld [vmem:[#allocation34_spill] sm:$0xff] }
 0x156   :  { %1039 = vrot.lane.b32.xlu1 %v16319_v20, %s8885_s27  ;;  %1041 = vrot.lane.b32.xlu0 %v9708_v16, %s8885_s27  ;;  %v10160_v13 = vpop.permute.xlu0 %865 }
 0x157   :  { %16323 = vst [vmem:[#allocation109_spill] sm:$0xff] %v10160_v13 }
 0x158   :  { %v10154_v33 = vpop.permute.xlu1 %863 }
 0x159   :  { %16321 = vst [vmem:[#allocation108_spill] sm:$0xff] %v10154_v33  ;;  %v16328_v33 = vld [vmem:[#allocation35_spill] sm:$0xff] }
 0x15a   :  { %1043 = vrot.lane.b32.xlu1 %v16322_v51, %s8885_s27  ;;  %1045 = vrot.lane.b32.xlu0 %v9721_v29, %s8885_s27  ;;  %v10168_v20 = vpop.permute.xlu0 %869 }
 0x15b   :  { %16326 = vst [vmem:[#allocation111_spill] sm:$0xff] %v10168_v20 }
 0x15c   :  { %v10162_v18 = vpop.permute.xlu1 %867 }
 0x15d   :  { %16324 = vst [vmem:[#allocation110_spill] sm:$0xff] %v10162_v18  ;;  %v16331_v18 = vld [vmem:[#allocation37_spill] sm:$0xff] }
 0x15e   :  { %1047 = vrot.lane.b32.xlu1 %v16325_v48, %s8885_s27  ;;  %1049 = vrot.lane.b32.xlu0 %v9734_v43, %s8885_s27  ;;  %v10176_v51 = vpop.permute.xlu0 %873 }
 0x15f   :  { %16329 = vst [vmem:[#allocation113_spill] sm:$0xff] %v10176_v51 }
 0x160   :  { %v10170_v44 = vpop.permute.xlu1 %871 }
 0x161   :  { %16327 = vst [vmem:[#allocation112_spill] sm:$0xff] %v10170_v44  ;;  %v16334_v44 = vld [vmem:[#allocation38_spill] sm:$0xff] }
 0x162   :  { %1051 = vrot.lane.b32.xlu1 %v16328_v33, %s8885_s27  ;;  %1053 = vrot.lane.b32.xlu0 %v9747_v62, %s8885_s27  ;;  %v10184_v48 = vpop.permute.xlu0 %877  ;;  %v16338_v62 = vld [vmem:[#allocation40_spill] sm:$0xff] }
 0x163   :  { %16332 = vst [vmem:[#allocation115_spill] sm:$0xff] %v10184_v48 }
 0x164   :  { %v10178_v13 = vpop.permute.xlu1 %875 }
 0x165   :  { %16330 = vst [vmem:[#allocation114_spill] sm:$0xff] %v10178_v13  ;;  %v16337_v13 = vld [vmem:[#allocation39_spill] sm:$0xff] }
 0x166   :  { %1055 = vrot.lane.b32.xlu1 %v16331_v18, %s8885_s27  ;;  %1057 = vrot.lane.b32.xlu0 %v9760_v10, %s8885_s27  ;;  %v10192_v33 = vpop.permute.xlu0 %881 }
 0x167   :  { %16335 = vst [vmem:[#allocation38_spill] sm:$0xff] %v10192_v33 }
 0x168   :  { %v10186_v20 = vpop.permute.xlu1 %879 }
 0x169   :  { %16333 = vst [vmem:[#allocation116_spill] sm:$0xff] %v10186_v20  ;;  %v616_v20 = vrot.slane %v9957_v60, 2 }
 0x16a   :  { %1059 = vrot.lane.b32.xlu1 %v16334_v44, %s8885_s27  ;;  %1061 = vrot.lane.b32.xlu0 %v16337_v13, %s8885_s27  ;;  %v10200_v18 = vpop.permute.xlu0 %885 }
 0x16b   :  { %16339 = vst [vmem:[#allocation39_spill] sm:$0xff] %v10200_v18  ;;  %v615_v18 = vrot.slane %v9953_v40, 2 }
 0x16c   :  { %v10194_v51 = vpop.permute.xlu1 %883 }
 0x16d   :  { %16336 = vst [vmem:[#allocation117_spill] sm:$0xff] %v10194_v51  ;;  %v16342_v51 = vmov 0.0  }
 0x16e   :  { %1063 = vrot.lane.b32.xlu1 %v16338_v62, %s8885_s27  ;;  %1065 = vrot.lane.b32.xlu0 %v9786_v11, %s8885_s27  ;;  %v10208_v33 = vpop.permute.xlu0 %921  ;;  %3580 = vst.msk [vmem:[#allocation3] sm:$0xff] %vm1565_vm4, %v16342_v51  ;;  %3581 = vst.msk [vmem:[#allocation3 + $0x8] sm:$0xff] %vm1565_vm4, %v16342_v51 }
 0x16f   :  { %16341 = vst [vmem:[#allocation119_spill] sm:$0xff] %v10208_v33  ;;  %3584 = vst.msk [vmem:[#allocation3 + $0x18] sm:$0xff] %vm1565_vm4, %v16342_v51 }
 0x170   :  { %v10202_v48 = vpop.permute.xlu1 %887  ;;  %3585 = vst.msk [vmem:[#allocation3 + $0x20] sm:$0xff] %vm1565_vm4, %v16342_v51  ;;  %3587 = vst.msk [vmem:[#allocation3 + $0x30] sm:$0xff] %vm1565_vm4, %v16342_v51 }
 0x171   :  { %16340 = vst [vmem:[#allocation118_spill] sm:$0xff] %v10202_v48  ;;  %3588 = vst.msk [vmem:[#allocation3 + $0x38] sm:$0xff] %vm1565_vm4, %v16342_v51 }
 0x172   :  { %1067 = vrot.lane.b32.xlu1 %v9793_v19, %s8885_s27  ;;  %3590 = vst.msk [vmem:[#allocation3 + $0x48] sm:$0xff] %vm1565_vm4, %v16342_v51  ;;  %3591 = vst.msk [vmem:[#allocation3 + $0x50] sm:$0xff] %vm1565_vm4, %v16342_v51  ;;  %1069 = vrot.lane.b32.xlu0 %v9803_v2, %s8885_s27  ;;  %v10362_v33 = vpop.permute.xlu0 %925  ;;  %v618_v19 = vrot.slane %v10073_v27, 2 }
 0x173   :  { %3593 = vst.msk [vmem:[#allocation3 + $0x60] sm:$0xff] %vm1565_vm4, %v16342_v51  ;;  %3594 = vst.msk [vmem:[#allocation3 + $0x68] sm:$0xff] %vm1565_vm4, %v16342_v51 }
 0x174   :  { %3596 = vst.msk [vmem:[#allocation3 + $0x78] sm:$0xff] %vm1565_vm4, %v16342_v51  ;;  %3597 = vst.msk [vmem:[#allocation3 + $0x80] sm:$0xff] %vm1565_vm4, %v16342_v51  ;;  %v10354_v48 = vpop.permute.xlu1 %923  ;;  %v10377_v62 = vsel %vm526_vm3, %v616_v20, %v618_v19 }
 0x175   :  { %3599 = vst.msk [vmem:[#allocation3 + $0x90] sm:$0xff] %vm1565_vm4, %v16342_v51  ;;  %3600 = vst.msk [vmem:[#allocation3 + $0x98] sm:$0xff] %vm1565_vm4, %v16342_v51 }
 0x176   :  { %3602 = vst.msk [vmem:[#allocation3 + $0xa8] sm:$0xff] %vm1565_vm4, %v16342_v51  ;;  %3603 = vst.msk [vmem:[#allocation3 + $0xb0] sm:$0xff] %vm1565_vm4, %v16342_v51  ;;  %1071 = vrot.lane.b32.xlu1 %v9810_v22, %s8885_s27  ;;  %1073 = vrot.lane.b32.xlu0 %v9820_v4, %s8885_s27  ;;  %v10374_v2 = vpop.permute.xlu0 %929 }
 0x177   :  { %3605 = vst.msk [vmem:[#allocation3 + $0xc0] sm:$0xff] %vm1565_vm4, %v16342_v51  ;;  %3606 = vst.msk [vmem:[#allocation3 + $0xc8] sm:$0xff] %vm1565_vm4, %v16342_v51 }
 0x178   :  { %3608 = vst.msk [vmem:[#allocation3 + $0xd8] sm:$0xff] %vm1565_vm4, %v16342_v51  ;;  %3609 = vst.msk [vmem:[#allocation3 + $0xe0] sm:$0xff] %vm1565_vm4, %v16342_v51  ;;  %v10365_v11 = vpop.permute.xlu1 %927 }
 0x179   :  { %3611 = vst.msk [vmem:[#allocation3 + $0xf0] sm:$0xff] %vm1565_vm4, %v16342_v51  ;;  %3612 = vst.msk [vmem:[#allocation3 + $0xf8] sm:$0xff] %vm1565_vm4, %v16342_v51 }
 0x17a   :  { %3614 = vst.msk [vmem:[#allocation3 + $0x108] sm:$0xff] %vm1565_vm4, %v16342_v51  ;;  %3615 = vst.msk [vmem:[#allocation3 + $0x110] sm:$0xff] %vm1565_vm4, %v16342_v51  ;;  %1075 = vrot.lane.b32.xlu1 %v9825_v39, %s8885_s27  ;;  %v10385_v27 = vpop.permute.xlu0 %933 }
 0x17b   :  { %3617 = vst.msk [vmem:[#allocation3 + $0x120] sm:$0xff] %vm1565_vm4, %v16342_v51  ;;  %3618 = vst.msk [vmem:[#allocation3 + $0x128] sm:$0xff] %vm1565_vm4, %v16342_v51 }
 0x17c   :  { %3620 = vst.msk [vmem:[#allocation3 + $0x138] sm:$0xff] %vm1565_vm4, %v16342_v51  ;;  %3621 = vst.msk [vmem:[#allocation3 + $0x140] sm:$0xff] %vm1565_vm4, %v16342_v51  ;;  %v10379_v22 = vpop.permute.xlu1 %931 }
 0x17d   :  { %3623 = vst.msk [vmem:[#allocation3 + $0x150] sm:$0xff] %vm1565_vm4, %v16342_v51  ;;  %3624 = vst.msk [vmem:[#allocation3 + $0x158] sm:$0xff] %vm1565_vm4, %v16342_v51 }
 0x17e   :  { %3626 = vst.msk [vmem:[#allocation3 + $0x168] sm:$0xff] %vm1565_vm4, %v16342_v51  ;;  %3627 = vst.msk [vmem:[#allocation3 + $0x170] sm:$0xff] %vm1565_vm4, %v16342_v51  ;;  %1079 = vrot.lane.b32.xlu1 %v10377_v62, %s8885_s27  ;;  %v10397_v19 = vpop.permute.xlu0 %937 }
 0x17f   :  { %3629 = vst.msk [vmem:[#allocation3 + $0x180] sm:$0xff] %vm1565_vm4, %v16342_v51  ;;  %3630 = vst.msk [vmem:[#allocation3 + $0x188] sm:$0xff] %vm1565_vm4, %v16342_v51 }
 0x180   :  { %3632 = vst.msk [vmem:[#allocation3 + $0x198] sm:$0xff] %vm1565_vm4, %v16342_v51  ;;  %3633 = vst.msk [vmem:[#allocation3 + $0x1a0] sm:$0xff] %vm1565_vm4, %v16342_v51 }
 0x181   :  { %3635 = vst.msk [vmem:[#allocation3 + $0x1b0] sm:$0xff] %vm1565_vm4, %v16342_v51  ;;  %3636 = vst.msk [vmem:[#allocation3 + $0x1b8] sm:$0xff] %vm1565_vm4, %v16342_v51 }
 0x182   :  { %3638 = vst.msk [vmem:[#allocation3 + $0x1c8] sm:$0xff] %vm1565_vm4, %v16342_v51  ;;  %3639 = vst.msk [vmem:[#allocation3 + $0x1d0] sm:$0xff] %vm1565_vm4, %v16342_v51 }
 0x183   :  { %3641 = vst.msk [vmem:[#allocation3 + $0x1e0] sm:$0xff] %vm1565_vm4, %v16342_v51  ;;  %3642 = vst.msk [vmem:[#allocation3 + $0x1e8] sm:$0xff] %vm1565_vm4, %v16342_v51 }
 0x184   :  { %3644 = vst.msk [vmem:[#allocation3 + $0x1f8] sm:$0xff] %vm1565_vm4, %v16342_v51  ;;  %3645 = vst.msk [vmem:[#allocation3 + $0x200] sm:$0xff] %vm1565_vm4, %v16342_v51 }
 0x185   :  { %3647 = vst.msk [vmem:[#allocation3 + $0x210] sm:$0xff] %vm1565_vm4, %v16342_v51  ;;  %3648 = vst.msk [vmem:[#allocation3 + $0x218] sm:$0xff] %vm1565_vm4, %v16342_v51 }
 0x186   :  { %3650 = vst.msk [vmem:[#allocation3 + $0x228] sm:$0xff] %vm1565_vm4, %v16342_v51  ;;  %3651 = vst.msk [vmem:[#allocation3 + $0x230] sm:$0xff] %vm1565_vm4, %v16342_v51 }
 0x187   :  { %3653 = vst.msk [vmem:[#allocation3 + $0x240] sm:$0xff] %vm1565_vm4, %v16342_v51  ;;  %3654 = vst.msk [vmem:[#allocation3 + $0x248] sm:$0xff] %vm1565_vm4, %v16342_v51 }
 0x188   :  { %3656 = vst.msk [vmem:[#allocation3 + $0x258] sm:$0xff] %vm1565_vm4, %v16342_v51  ;;  %3657 = vst.msk [vmem:[#allocation3 + $0x260] sm:$0xff] %vm1565_vm4, %v16342_v51 }
 0x189   :  { %3659 = vst.msk [vmem:[#allocation3 + $0x270] sm:$0xff] %vm1565_vm4, %v16342_v51  ;;  %3660 = vst.msk [vmem:[#allocation3 + $0x278] sm:$0xff] %vm1565_vm4, %v16342_v51 }
 0x18a   :  { %3662 = vst.msk [vmem:[#allocation3 + $0x288] sm:$0xff] %vm1565_vm4, %v16342_v51  ;;  %3663 = vst.msk [vmem:[#allocation3 + $0x290] sm:$0xff] %vm1565_vm4, %v16342_v51 }
 0x18b   :  { %3665 = vst.msk [vmem:[#allocation3 + $0x2a0] sm:$0xff] %vm1565_vm4, %v16342_v51  ;;  %3666 = vst.msk [vmem:[#allocation3 + $0x2a8] sm:$0xff] %vm1565_vm4, %v16342_v51 }
 0x18c   :  { %3668 = vst.msk [vmem:[#allocation3 + $0x2b8] sm:$0xff] %vm1565_vm4, %v16342_v51  ;;  %3669 = vst.msk [vmem:[#allocation3 + $0x2c0] sm:$0xff] %vm1565_vm4, %v16342_v51 }
 0x18d   :  { %3671 = vst.msk [vmem:[#allocation3 + $0x2d0] sm:$0xff] %vm1565_vm4, %v16342_v51  ;;  %3672 = vst.msk [vmem:[#allocation3 + $0x2d8] sm:$0xff] %vm1565_vm4, %v16342_v51 }
 0x18e   :  { %3674 = vst.msk [vmem:[#allocation3 + $0x2e8] sm:$0xff] %vm1565_vm4, %v16342_v51  ;;  %3675 = vst.msk [vmem:[#allocation3 + $0x2f0] sm:$0xff] %vm1565_vm4, %v16342_v51 }
 0x18f   :  { %3677 = vst.msk [vmem:[#allocation3 + $0x300] sm:$0xff] %vm1565_vm4, %v16342_v51  ;;  %3678 = vst.msk [vmem:[#allocation3 + $0x308] sm:$0xff] %vm1565_vm4, %v16342_v51 }
 0x190   :  { %3680 = vst.msk [vmem:[#allocation3 + $0x318] sm:$0xff] %vm1565_vm4, %v16342_v51  ;;  %3681 = vst.msk [vmem:[#allocation3 + $0x320] sm:$0xff] %vm1565_vm4, %v16342_v51 }
 0x191   :  { %3683 = vst.msk [vmem:[#allocation3 + $0x330] sm:$0xff] %vm1565_vm4, %v16342_v51  ;;  %3684 = vst.msk [vmem:[#allocation3 + $0x338] sm:$0xff] %vm1565_vm4, %v16342_v51 }
 0x192   :  { %3686 = vst.msk [vmem:[#allocation3 + $0x348] sm:$0xff] %vm1565_vm4, %v16342_v51  ;;  %3687 = vst.msk [vmem:[#allocation3 + $0x350] sm:$0xff] %vm1565_vm4, %v16342_v51 }
 0x193   :  { %16343 = vst [vmem:[#allocation120_spill] sm:$0xff] %v10354_v48  ;;  %16344 = vst [vmem:[#allocation121_spill] sm:$0xff] %v10362_v33  ;;  %v10372_v48 = vsel %vm526_vm3, %v615_v18, %v616_v20  ;;  %v10389_v33 = vld [vmem:[#allocation2 + $0x30] sm:$0xff]  ;;  %v10393_v18 = vld [vmem:[#allocation2 + $0x38] sm:$0xff] }
 0x194   :  { %16345 = vst [vmem:[#allocation122_spill] sm:$0xff] %v10365_v11  ;;  %16346 = vst [vmem:[#allocation123_spill] sm:$0xff] %v10374_v2  ;;  %1077 = vrot.lane.b32.xlu0 %v10372_v48, %s8885_s27  ;;  %v10387_v11 = vpop.permute.xlu1 %935  ;;  %1115 = vrot.lane.b32.xlu1 %v10393_v18, %s8886_s28 }
 0x195   :  { %16347 = vst [vmem:[#allocation124_spill] sm:$0xff] %v10379_v22  ;;  %16348 = vst [vmem:[#allocation125_spill] sm:$0xff] %v10385_v27  ;;  %v10401_v22 = vld [vmem:[#allocation2 + $0x48] sm:$0xff]  ;;  %v10409_v27 = vpop.permute.xlu0 %941 }
 0x196   :  { %16349 = vst [vmem:[#allocation126_spill] sm:$0xff] %v10387_v11  ;;  %16350 = vst [vmem:[#allocation127_spill] sm:$0xff] %v10389_v33  ;;  %v10405_v11 = vld [vmem:[#allocation2 + $0x50] sm:$0xff] }
 0x197   :  { %16351 = vst [vmem:[#allocation128_spill] sm:$0xff] %v10393_v18  ;;  %16352 = vst [vmem:[#allocation129_spill] sm:$0xff] %v10397_v19  ;;  %v10425_v18 = vld [vmem:[#allocation2 + $0x78] sm:$0xff] }
 0x198   :  { %1113 = vrot.lane.b32.xlu0 %v10389_v33, %s8886_s28  ;;  %v10399_v20 = vpop.permute.xlu1 %939  ;;  %16354 = vst [vmem:[#allocation131_spill] sm:$0xff] %v10401_v22  ;;  %16355 = vst [vmem:[#allocation132_spill] sm:$0xff] %v10405_v11  ;;  %1119 = vrot.lane.b32.xlu1 %v10405_v11, %s8886_s28  ;;  %v10413_v33 = vld [vmem:[#allocation2 + $0x60] sm:$0xff]  ;;  %v10437_v11 = vld [vmem:[#allocation2 + $0x90] sm:$0xff] }
 0x199   :  { %16353 = vst [vmem:[#allocation130_spill] sm:$0xff] %v10399_v20  ;;  %16356 = vst [vmem:[#allocation133_spill] sm:$0xff] %v10409_v27  ;;  %v10417_v20 = vld [vmem:[#allocation2 + $0x68] sm:$0xff]  ;;  %v10421_v19 = vpop.permute.xlu0 %945 }
 0x19a   :  { %16358 = vst [vmem:[#allocation135_spill] sm:$0xff] %v10413_v33  ;;  %16359 = vst [vmem:[#allocation136_spill] sm:$0xff] %v10417_v20 }
 0x19b   :  { %16360 = vst [vmem:[#allocation137_spill] sm:$0xff] %v10421_v19  ;;  %16362 = vst [vmem:[#allocation139_spill] sm:$0xff] %v10425_v18 }
 0x19c   :  { %1117 = vrot.lane.b32.xlu0 %v10401_v22, %s8886_s28  ;;  %v10411_v2 = vpop.permute.xlu1 %943  ;;  %1123 = vrot.lane.b32.xlu1 %v10417_v20, %s8886_s28  ;;  %16366 = vst [vmem:[#allocation143_spill] sm:$0xff] %v10437_v11  ;;  %v10449_v20 = vld [vmem:[#allocation2 + $0xa8] sm:$0xff] }
 0x19d   :  { %16357 = vst [vmem:[#allocation134_spill] sm:$0xff] %v10411_v2  ;;  %v10429_v2 = vld [vmem:[#allocation2 + $0x80] sm:$0xff]  ;;  %v10433_v27 = vpop.permute.xlu0 %949  ;;  %16370 = vst [vmem:[#allocation147_spill] sm:$0xff] %v10449_v20 }
 0x19e   :  { %16363 = vst [vmem:[#allocation140_spill] sm:$0xff] %v10429_v2  ;;  %16364 = vst [vmem:[#allocation141_spill] sm:$0xff] %v10433_v27 }
 0x1a0   :  { %1121 = vrot.lane.b32.xlu0 %v10413_v33, %s8886_s28  ;;  %v10423_v22 = vpop.permute.xlu1 %947  ;;  %1127 = vrot.lane.b32.xlu1 %v10429_v2, %s8886_s28  ;;  %v10461_v2 = vld [vmem:[#allocation2 + $0xc0] sm:$0xff] }
 0x1a1   :  { %16361 = vst [vmem:[#allocation138_spill] sm:$0xff] %v10423_v22  ;;  %v10441_v22 = vld [vmem:[#allocation2 + $0x98] sm:$0xff]  ;;  %v10445_v19 = vpop.permute.xlu0 %953  ;;  %16373 = vst [vmem:[#allocation150_spill] sm:$0xff] %v10461_v2 }
 0x1a2   :  { %16367 = vst [vmem:[#allocation144_spill] sm:$0xff] %v10441_v22  ;;  %16368 = vst [vmem:[#allocation145_spill] sm:$0xff] %v10445_v19 }
 0x1a4   :  { %1125 = vrot.lane.b32.xlu0 %v10425_v18, %s8886_s28  ;;  %v10435_v33 = vpop.permute.xlu1 %951  ;;  %1131 = vrot.lane.b32.xlu1 %v10441_v22, %s8886_s28  ;;  %v10473_v22 = vld [vmem:[#allocation2 + $0xd8] sm:$0xff] }
 0x1a5   :  { %16365 = vst [vmem:[#allocation142_spill] sm:$0xff] %v10435_v33  ;;  %v10453_v33 = vld [vmem:[#allocation2 + $0xb0] sm:$0xff]  ;;  %v10457_v27 = vpop.permute.xlu0 %957 }
 0x1a6   :  { %16371 = vst [vmem:[#allocation148_spill] sm:$0xff] %v10457_v27 }
 0x1a8   :  { %1129 = vrot.lane.b32.xlu0 %v10437_v11, %s8886_s28  ;;  %v10447_v18 = vpop.permute.xlu1 %955  ;;  %1135 = vrot.lane.b32.xlu1 %v10453_v33, %s8886_s28 }
 0x1a9   :  { %16369 = vst [vmem:[#allocation146_spill] sm:$0xff] %v10447_v18  ;;  %v10465_v18 = vld [vmem:[#allocation2 + $0xc8] sm:$0xff]  ;;  %v10469_v19 = vpop.permute.xlu0 %961 }
 0x1aa   :  { %16374 = vst [vmem:[#allocation151_spill] sm:$0xff] %v10469_v19 }
 0x1ac   :  { %1133 = vrot.lane.b32.xlu0 %v10449_v20, %s8886_s28  ;;  %v10459_v11 = vpop.permute.xlu1 %959  ;;  %1139 = vrot.lane.b32.xlu1 %v10465_v18, %s8886_s28 }
 0x1ad   :  { %16372 = vst [vmem:[#allocation149_spill] sm:$0xff] %v10459_v11  ;;  %v10477_v11 = vld [vmem:[#allocation2 + $0xe0] sm:$0xff]  ;;  %v10481_v27 = vpop.permute.xlu0 %965 }
 0x1ae   :  { %16376 = vst [vmem:[#allocation153_spill] sm:$0xff] %v10477_v11  ;;  %16377 = vst [vmem:[#allocation154_spill] sm:$0xff] %v10481_v27 }
 0x1b0   :  { %1137 = vrot.lane.b32.xlu0 %v10461_v2, %s8886_s28  ;;  %v10471_v20 = vpop.permute.xlu1 %963  ;;  %1143 = vrot.lane.b32.xlu1 %v10477_v11, %s8886_s28 }
 0x1b1   :  { %16375 = vst [vmem:[#allocation152_spill] sm:$0xff] %v10471_v20  ;;  %v10489_v20 = vpop.permute.xlu0 %969 }
 0x1b2   :  { %16379 = vst [vmem:[#allocation156_spill] sm:$0xff] %v10489_v20 }
 0x1b4   :  { %1141 = vrot.lane.b32.xlu0 %v10473_v22, %s8886_s28  ;;  %v10483_v2 = vpop.permute.xlu1 %967  ;;  %1147 = vrot.lane.b32.xlu1 %v9485_v8, %s8886_s28 }
 0x1b5   :  { %16378 = vst [vmem:[#allocation155_spill] sm:$0xff] %v10483_v2  ;;  %v10497_v11 = vpop.permute.xlu0 %973  ;;  %v16439_v2 = vld [vmem:[#allocation36_spill] sm:$0xff] }
 0x1b6   :  { %16381 = vst [vmem:[#allocation158_spill] sm:$0xff] %v10497_v11  ;;  %v216_v11 = vld [vmem:[%s16005_s0 + $0x1c0] sm:$0xff] }
 0x1b7   :  { %281 = vst.msk [vmem:[#allocation2 + $0x2e9] sm:$0xff] %vm50_vm0, %v216_v11  ;;  %v2925_v11 = vld [vmem:[%s16006_s2 + $0x18] sm:$0xff] }
 0x1b8   :  { %1145 = vrot.lane.b32.xlu0 %v9483_v7, %s8886_s28  ;;  %v10491_v19 = vpop.permute.xlu1 %971  ;;  %1151 = vrot.lane.b32.xlu1 %v9504_v35, %s8886_s28 }
 0x1b9   :  { %16380 = vst [vmem:[#allocation157_spill] sm:$0xff] %v10491_v19  ;;  %v10505_v7 = vpop.permute.xlu0 %977 }
 0x1ba   :  { %16383 = vst [vmem:[#allocation160_spill] sm:$0xff] %v10505_v7 }
 0x1bc   :  { %1149 = vrot.lane.b32.xlu0 %v9502_v31, %s8886_s28  ;;  %v10499_v27 = vpop.permute.xlu1 %975  ;;  %1155 = vrot.lane.b32.xlu1 %v9523_v0, %s8886_s28 }
 0x1bd   :  { %16382 = vst [vmem:[#allocation159_spill] sm:$0xff] %v10499_v27  ;;  %v10513_v31 = vpop.permute.xlu0 %981  ;;  %v201_v27 = vld [vmem:[%s16005_s0 + $0x148] sm:$0xff] }
 0x1be   :  { %16385 = vst [vmem:[#allocation162_spill] sm:$0xff] %v10513_v31  ;;  %v194_v31 = vld [vmem:[%s16005_s0 + $0x110] sm:$0xff]  ;;  %266 = vst.msk [vmem:[#allocation2 + $0x231] sm:$0xff] %vm50_vm0, %v201_v27 }
 0x1bf   :  { %259 = vst.msk [vmem:[#allocation2 + $0x1e1] sm:$0xff] %vm50_vm0, %v194_v31  ;;  %v197_v31 = vld [vmem:[%s16005_s0 + $0x128] sm:$0xff] }
 0x1c0   :  { %1153 = vrot.lane.b32.xlu0 %v9521_v5, %s8886_s28  ;;  %v10507_v8 = vpop.permute.xlu1 %979  ;;  %1159 = vrot.lane.b32.xlu1 %v9542_v57, %s8886_s28  ;;  %262 = vst.msk [vmem:[#allocation2 + $0x201] sm:$0xff] %vm50_vm0, %v197_v31 }
 0x1c1   :  { %16384 = vst [vmem:[#allocation161_spill] sm:$0xff] %v10507_v8  ;;  %v10521_v0 = vpop.permute.xlu0 %1017  ;;  %v196_v8 = vld [vmem:[%s16005_s0 + $0x120] sm:$0xff] }
 0x1c2   :  { %261 = vst.msk [vmem:[#allocation2 + $0x1f9] sm:$0xff] %vm50_vm0, %v196_v8 }
 0x1c4   :  { %1157 = vrot.lane.b32.xlu0 %v9540_v63, %s8886_s28  ;;  %v10515_v35 = vpop.permute.xlu1 %983  ;;  %1163 = vrot.lane.b32.xlu1 %v9561_v30, %s8886_s28  ;;  %v192_v30 = vld [vmem:[%s16005_s0 + $0x100] sm:$0xff] }
 0x1c5   :  { %16386 = vst [vmem:[#allocation163_spill] sm:$0xff] %v10515_v35  ;;  %v10529_v57 = vpop.permute.xlu0 %1021  ;;  %257 = vst.msk [vmem:[#allocation2 + $0x1c9] sm:$0xff] %vm50_vm0, %v192_v30 }
 0x1c8   :  { %1161 = vrot.lane.b32.xlu0 %v9559_v36, %s8886_s28  ;;  %v10523_v5 = vpop.permute.xlu1 %1019  ;;  %1167 = vrot.lane.b32.xlu1 %v9580_v12, %s8886_s28  ;;  %v193_v36 = vld [vmem:[%s16005_s0 + $0x108] sm:$0xff] }
 0x1c9   :  { %258 = vst.msk [vmem:[#allocation2 + $0x1d1] sm:$0xff] %vm50_vm0, %v193_v36  ;;  %v10547_v12 = vpop.permute.xlu0 %1025 }
 0x1cc   :  { %1165 = vrot.lane.b32.xlu0 %v9578_v17, %s8886_s28  ;;  %v10531_v63 = vpop.permute.xlu1 %1023  ;;  %1171 = vrot.lane.b32.xlu1 %v9957_v60, %s8886_s28  ;;  %v10543_v17 = vld [vmem:[#allocation2 + $0x198] sm:$0xff] }
 0x1cd   :  { %v195_v60 = vld [vmem:[%s16005_s0 + $0x118] sm:$0xff]  ;;  %v10564_v30 = vpop.permute.xlu0 %1029 }
 0x1ce   :  { %260 = vst.msk [vmem:[#allocation2 + $0x1e9] sm:$0xff] %vm50_vm0, %v195_v60 }
 0x1d0   :  { %1169 = vrot.lane.b32.xlu0 %v9953_v40, %s8886_s28  ;;  %v10549_v40 = vld [vmem:[#allocation2 + $0x1a0] sm:$0xff]  ;;  %v10551_v35 = vpop.permute.xlu1 %1027 }
 0x1d1   :  { %1175 = vrot.lane.b32.xlu1 %v10549_v40, %s8886_s28  ;;  %v10580_v60 = vpop.permute.xlu0 %1033 }
 0x1d2   :  { %16387 = vst [vmem:[#allocation164_spill] sm:$0xff] %v10580_v60 }
 0x1d4   :  { %1173 = vrot.lane.b32.xlu0 %v10543_v17, %s8886_s28  ;;  %v10567_v36 = vpop.permute.xlu1 %1031 }
 0x1d5   :  { %1211 = vrot.lane.b32.xlu1 %v9330_v50, %s8887_s23  ;;  %v199_v50 = vld [vmem:[%s16005_s0 + $0x138] sm:$0xff]  ;;  %v10597_v8 = vpop.permute.xlu0 %1037 }
 0x1d6   :  { %264 = vst.msk [vmem:[#allocation2 + $0x219] sm:$0xff] %vm50_vm0, %v199_v50  ;;  %16389 = vst [vmem:[#allocation166_spill] sm:$0xff] %v10597_v8  ;;  %v16510_v8 = vld [vmem:[#allocation140_spill] sm:$0xff] }
 0x1d8   :  { %1209 = vrot.lane.b32.xlu0 %v9325_v47, %s8887_s23  ;;  %v10583_v7 = vpop.permute.xlu1 %1035  ;;  %v198_v47 = vld [vmem:[%s16005_s0 + $0x130] sm:$0xff] }
 0x1d9   :  { %16388 = vst [vmem:[#allocation165_spill] sm:$0xff] %v10583_v7  ;;  %1215 = vrot.lane.b32.xlu1 %v16255_v38, %s8887_s23  ;;  %263 = vst.msk [vmem:[#allocation2 + $0x211] sm:$0xff] %vm50_vm0, %v198_v47  ;;  %v10613_v38 = vpop.permute.xlu0 %1041 }
 0x1da   :  { %16391 = vst [vmem:[#allocation168_spill] sm:$0xff] %v10613_v38 }
 0x1dc   :  { %1213 = vrot.lane.b32.xlu0 %v9351_v58, %s8887_s23  ;;  %v10599_v31 = vpop.permute.xlu1 %1039  ;;  %v200_v58 = vld [vmem:[%s16005_s0 + $0x140] sm:$0xff] }
 0x1dd   :  { %16390 = vst [vmem:[#allocation167_spill] sm:$0xff] %v10599_v31  ;;  %1219 = vrot.lane.b32.xlu1 %v16259_v15, %s8887_s23  ;;  %265 = vst.msk [vmem:[#allocation2 + $0x229] sm:$0xff] %vm50_vm0, %v200_v58  ;;  %v203_v15 = vld [vmem:[%s16005_s0 + $0x158] sm:$0xff]  ;;  %v10628_v27 = vpop.permute.xlu0 %1045 }
 0x1de   :  { %16393 = vst [vmem:[#allocation170_spill] sm:$0xff] %v10628_v27  ;;  %268 = vst.msk [vmem:[#allocation2 + $0x249] sm:$0xff] %vm50_vm0, %v203_v15 }
 0x1e0   :  { %1217 = vrot.lane.b32.xlu0 %v16258_v25, %s8887_s23  ;;  %v10615_v47 = vpop.permute.xlu1 %1043  ;;  %v202_v25 = vld [vmem:[%s16005_s0 + $0x150] sm:$0xff] }
 0x1e1   :  { %16392 = vst [vmem:[#allocation169_spill] sm:$0xff] %v10615_v47  ;;  %1223 = vrot.lane.b32.xlu1 %v16263_v56, %s8887_s23  ;;  %267 = vst.msk [vmem:[#allocation2 + $0x241] sm:$0xff] %vm50_vm0, %v202_v25  ;;  %v205_v56 = vld [vmem:[%s16005_s0 + $0x168] sm:$0xff]  ;;  %v10644_v58 = vpop.permute.xlu0 %1049  ;;  %v360_v47 = vld [vmem:[#allocation2 + $0x238] sm:$0x3] }
 0x1e2   :  { %16395 = vst [vmem:[#allocation172_spill] sm:$0xff] %v10644_v58  ;;  %270 = vst.msk [vmem:[#allocation2 + $0x261] sm:$0xff] %vm50_vm0, %v205_v56  ;;  %v209_v56 = vld [vmem:[%s16005_s0 + $0x188] sm:$0xff]  ;;  %v10992_v58 = vld [vmem:[#allocation2 + $0x1f8] sm:$0xff] }
 0x1e3   :  { %274 = vst.msk [vmem:[#allocation2 + $0x291] sm:$0xff] %vm50_vm0, %v209_v56  ;;  %16464 = vst [vmem:[#allocation203_spill] sm:$0xff] %v10992_v58 }
 0x1e4   :  { %1221 = vrot.lane.b32.xlu0 %v16262_v61, %s8887_s23  ;;  %v10631_v50 = vpop.permute.xlu1 %1047  ;;  %v204_v61 = vld [vmem:[%s16005_s0 + $0x160] sm:$0xff] }
 0x1e5   :  { %16394 = vst [vmem:[#allocation171_spill] sm:$0xff] %v10631_v50  ;;  %1227 = vrot.lane.b32.xlu1 %v16267_v53, %s8887_s23  ;;  %269 = vst.msk [vmem:[#allocation2 + $0x259] sm:$0xff] %vm50_vm0, %v204_v61  ;;  %v207_v53 = vld [vmem:[%s16005_s0 + $0x178] sm:$0xff]  ;;  %v10661_v15 = vpop.permute.xlu0 %1053 }
 0x1e6   :  { %272 = vst.msk [vmem:[#allocation2 + $0x279] sm:$0xff] %vm50_vm0, %v207_v53  ;;  %16397 = vst [vmem:[#allocation174_spill] sm:$0xff] %v10661_v15  ;;  %v10973_v15 = vld [vmem:[#allocation2 + $0x1e8] sm:$0xff]  ;;  %v356_v50 = vld [vmem:[#allocation2 + $0x218] sm:$0xff] }
 0x1e7   :  { %16458 = vst [vmem:[#allocation197_spill] sm:$0xff] %v10973_v15 }
 0x1e8   :  { %1225 = vrot.lane.b32.xlu0 %v16266_v41, %s8887_s23  ;;  %v10647_v25 = vpop.permute.xlu1 %1051  ;;  %v206_v41 = vld [vmem:[%s16005_s0 + $0x170] sm:$0xff] }
 0x1e9   :  { %16396 = vst [vmem:[#allocation173_spill] sm:$0xff] %v10647_v25  ;;  %1231 = vrot.lane.b32.xlu1 %v16271_v45, %s8887_s23  ;;  %271 = vst.msk [vmem:[#allocation2 + $0x271] sm:$0xff] %vm50_vm0, %v206_v41  ;;  %v10677_v45 = vpop.permute.xlu0 %1057 }
 0x1ea   :  { %16399 = vst [vmem:[#allocation176_spill] sm:$0xff] %v10677_v45  ;;  %v10960_v45 = vld [vmem:[#allocation2 + $0x1d8] sm:$0x3] }
 0x1eb   :  { %16456 = vst [vmem:[#allocation195_spill] sm:$0xff] %v10960_v45 }
 0x1ec   :  { %1229 = vrot.lane.b32.xlu0 %v16270_v26, %s8887_s23  ;;  %v10663_v61 = vpop.permute.xlu1 %1055  ;;  %v208_v26 = vld [vmem:[%s16005_s0 + $0x180] sm:$0xff] }
 0x1ed   :  { %16398 = vst [vmem:[#allocation175_spill] sm:$0xff] %v10663_v61  ;;  %1235 = vrot.lane.b32.xlu1 %v16275_v34, %s8887_s23  ;;  %273 = vst.msk [vmem:[#allocation2 + $0x289] sm:$0xff] %vm50_vm0, %v208_v26  ;;  %v211_v34 = vld [vmem:[%s16005_s0 + $0x198] sm:$0xff]  ;;  %v10692_v53 = vpop.permute.xlu0 %1061  ;;  %v10971_v61 = vld [vmem:[#allocation2 + $0x1e0] sm:$0xff] }
 0x1ee   :  { %16401 = vst [vmem:[#allocation178_spill] sm:$0xff] %v10692_v53  ;;  %276 = vst.msk [vmem:[#allocation2 + $0x2a9] sm:$0xff] %vm50_vm0, %v211_v34  ;;  %v16405_v34 = vld [vmem:[#allocation20_spill] sm:$0xff] }
 0x1ef   :  { %16457 = vst [vmem:[#allocation196_spill] sm:$0xff] %v10971_v61 }
 0x1f0   :  { %1233 = vrot.lane.b32.xlu0 %v16274_v42, %s8887_s23  ;;  %v10679_v41 = vpop.permute.xlu1 %1059  ;;  %v210_v42 = vld [vmem:[%s16005_s0 + $0x190] sm:$0xff] }
 0x1f1   :  { %16400 = vst [vmem:[#allocation177_spill] sm:$0xff] %v10679_v41  ;;  %1239 = vrot.lane.b32.xlu1 %v16279_v28, %s8887_s23  ;;  %275 = vst.msk [vmem:[#allocation2 + $0x2a1] sm:$0xff] %vm50_vm0, %v210_v42  ;;  %v213_v28 = vld [vmem:[%s16005_s0 + $0x1a8] sm:$0xff]  ;;  %v10708_v56 = vpop.permute.xlu0 %1065  ;;  %v10956_v41 = vld [vmem:[#allocation2 + $0x1d0] sm:$0xff] }
 0x1f2   :  { %16403 = vst [vmem:[#allocation180_spill] sm:$0xff] %v10708_v56  ;;  %278 = vst.msk [vmem:[#allocation2 + $0x2c1] sm:$0xff] %vm50_vm0, %v213_v28 }
 0x1f4   :  { %1237 = vrot.lane.b32.xlu0 %v16278_v14, %s8887_s23  ;;  %v10695_v26 = vpop.permute.xlu1 %1063  ;;  %v212_v14 = vld [vmem:[%s16005_s0 + $0x1a0] sm:$0xff] }
 0x1f5   :  { %16402 = vst [vmem:[#allocation179_spill] sm:$0xff] %v10695_v26  ;;  %1243 = vrot.lane.b32.xlu1 %v16283_v49, %s8887_s23  ;;  %277 = vst.msk [vmem:[#allocation2 + $0x2b9] sm:$0xff] %vm50_vm0, %v212_v14  ;;  %v215_v49 = vld [vmem:[%s16005_s0 + $0x1b8] sm:$0xff]  ;;  %v10725_v14 = vpop.permute.xlu0 %1069  ;;  %v375_v7 = vld [vmem:[#allocation2 + $0x2b0] sm:$0x3] }
 0x1f6   :  { %280 = vst.msk [vmem:[#allocation2 + $0x2d9] sm:$0xff] %vm50_vm0, %v215_v49  ;;  %16406 = vst [vmem:[#allocation20_spill] sm:$0xff] %v10725_v14  ;;  %v2926_v49 = vld [vmem:[%s16006_s2 + $0x20] sm:$0xf]  ;;  %v623_v14 = vrot.slane %v10543_v17, 1 }
 0x1f7   :  { %7860 = vmatprep.subr.msk.mxu0 %vm3127_vm5, %v2926_v49 }
 0x1f8   :  { %1241 = vrot.lane.b32.xlu0 %v16282_v55, %s8887_s23  ;;  %v10711_v42 = vpop.permute.xlu1 %1067  ;;  %v214_v55 = vld [vmem:[%s16005_s0 + $0x1b0] sm:$0xff]  ;;  %7861 = vmatpush3.msk.msra.mxu0 %vm3127_vm5, %v2926_v49  ;;  %vm6418_vm5 = vcmask 719872  }
 0x1f9   :  { %16404 = vst [vmem:[#allocation181_spill] sm:$0xff] %v10711_v42  ;;  %1247 = vrot.lane.b32.xlu1 %v16405_v34, %s8887_s23  ;;  %279 = vst.msk [vmem:[#allocation2 + $0x2d1] sm:$0xff] %vm50_vm0, %v214_v55  ;;  %v217_v42 = vld [vmem:[%s16005_s0 + $0x1c8] sm:$0xff]  ;;  %v16409_v34 = vld [vmem:[#allocation22_spill] sm:$0xff]  ;;  %v10741_v55 = vpop.permute.xlu0 %1073  ;;  %7862 = vmatprep.subr.mxu0 %v2925_v11 }
 0x1fa   :  { %282 = vst.msk [vmem:[#allocation2 + $0x2f1] sm:$0xff] %vm50_vm0, %v217_v42  ;;  %v16413_v42 = vld [vmem:[#allocation24_spill] sm:$0xff]  ;;  %7863 = vmatpush3.msra.mxu0 %v2925_v11  ;;  %v16417_v11 = vld [vmem:[#allocation26_spill] sm:$0xff] }
 0x1fc   :  { %1245 = vrot.lane.b32.xlu0 %v16286_v52, %s8887_s23  ;;  %v10727_v28 = vpop.permute.xlu1 %1071  ;;  %v16408_v52 = vld [vmem:[#allocation21_spill] sm:$0xff] }
 0x1fd   :  { %16407 = vst [vmem:[#allocation182_spill] sm:$0xff] %v10727_v28  ;;  %1251 = vrot.lane.b32.xlu1 %v16409_v34, %s8887_s23  ;;  %16410 = vst [vmem:[#allocation21_spill] sm:$0xff] %v10741_v55  ;;  %v16412_v28 = vld [vmem:[#allocation23_spill] sm:$0xff]  ;;  %v218_v34 = vld [vmem:[%s16005_s0 + $0x1d0] sm:$0xff] }
 0x1fe   :  { %283 = vst.msk [vmem:[#allocation2 + $0x301] sm:$0xff] %vm50_vm0, %v218_v34  ;;  %v220_v34 = vld [vmem:[%s16005_s0 + $0x1e0] sm:$0xff] }
 0x1ff   :  { %285 = vst.msk [vmem:[#allocation2 + $0x319] sm:$0xff] %vm50_vm0, %v220_v34 }
 0x200   :  { %1249 = vrot.lane.b32.xlu0 %v16408_v52, %s8887_s23  ;;  %v10746_v52 = vpop.permute.xlu1 %1075 }
 0x201   :  { %16411 = vst [vmem:[#allocation22_spill] sm:$0xff] %v10746_v52  ;;  %1255 = vrot.lane.b32.xlu1 %v16413_v42, %s8887_s23  ;;  %v219_v52 = vld [vmem:[%s16005_s0 + $0x1d8] sm:$0xff]  ;;  %v16416_v42 = vld [vmem:[#allocation25_spill] sm:$0xff] }
 0x202   :  { %284 = vst.msk [vmem:[#allocation2 + $0x309] sm:$0xff] %vm50_vm0, %v219_v52  ;;  %v221_v52 = vld [vmem:[%s16005_s0 + $0x1e8] sm:$0xff] }
 0x203   :  { %286 = vst.msk [vmem:[#allocation2 + $0x321] sm:$0xff] %vm50_vm0, %v221_v52 }
 0x204   :  { %1253 = vrot.lane.b32.xlu0 %v16412_v28, %s8887_s23  ;;  %v2924_v28 = vld [vmem:[%s16006_s2 + $0x10] sm:$0xff]  ;;  %v10768_v49 = vpop.permute.xlu1 %1079 }
 0x205   :  { %16415 = vst [vmem:[#allocation24_spill] sm:$0xff] %v10768_v49  ;;  %7864 = vmatprep.subr.mxu0 %v2924_v28  ;;  %1259 = vrot.lane.b32.xlu1 %v16417_v11, %s8887_s23  ;;  %v10792_v11 = vld [vmem:[#allocation2 + $0x1a8] sm:$0x3] }
 0x206   :  { %v10761_v55 = vpop.permute.xlu0 %1077  ;;  %7865 = vmatpush3.msra.mxu0 %v2924_v28  ;;  %v2922_v28 = vld [vmem:[%s16006_s2] sm:$0xff]  ;;  %v626_v52 = vrot.slane %v10792_v11, 1 }
 0x207   :  { %16414 = vst [vmem:[#allocation23_spill] sm:$0xff] %v10761_v55  ;;  %v2923_v55 = vld [vmem:[%s16006_s2 + $0x8] sm:$0xff]  ;;  %s8888_s2 = smov 32  }
 0x208   :  { %1257 = vrot.lane.b32.xlu0 %v16416_v42, %s8887_s23  ;;  %7866 = vmatprep.subr.mxu0 %v2923_v55  ;;  %v10790_v42 = vpop.permute.xlu1 %1115 }
 0x209   :  { %7867 = vmatpush3.msra.mxu0 %v2923_v55  ;;  %v624_v55 = vrot.slane %v10549_v40, 1  ;;  %1263 = vrot.lane.b32.xlu1 %v16301_v23, %s8887_s23 }
 0x20a   :  { %v10783_v49 = vpop.permute.xlu0 %1113  ;;  %7868 = vmatprep.subr.mxu0 %v2922_v28 }
 0x20b   :  { %7869 = vmatpush3.msra.mxu0 %v2922_v28  ;;  %v627_v23 = vsel %vm445_vm2, %v624_v55, %v626_v52 }
 0x20c   :  { %1261 = vrot.lane.b32.xlu0 %v16300_v9, %s8887_s23  ;;  %6611 = vmatprep.subr.mxu0 %v16342_v51  ;;  %v10804_v56 = vpop.permute.xlu1 %1119  ;;  %v625_v9 = vsel %vm445_vm2, %v623_v14, %v624_v55 }
 0x20d   :  { %1267 = vrot.lane.b32.xlu1 %v10096_v1, %s8887_s23 }
 0x20e   :  { %v10801_v34 = vpop.permute.xlu0 %1117 }
 0x210   :  { %1265 = vrot.lane.b32.xlu0 %v10091_v3, %s8887_s23  ;;  %v10814_v19 = vpop.permute.xlu1 %1123 }
 0x211   :  { %1271 = vrot.lane.b32.xlu1 %v627_v23, %s8887_s23 }
 0x212   :  { %v10811_v28 = vpop.permute.xlu0 %1121 }
 0x214   :  { %1269 = vrot.lane.b32.xlu0 %v625_v9, %s8887_s23  ;;  %v10820_v20 = vpop.permute.xlu1 %1127 }
 0x215   :  { %1307 = vrot.lane.b32.xlu1 %v9648_v21, %s8888_s2 }
 0x216   :  { %v10818_v51 = vpop.permute.xlu0 %1125 }
 0x218   :  { %1305 = vrot.lane.b32.xlu0 %v9643_v32, %s8888_s2  ;;  %v10828_v1 = vpop.permute.xlu1 %1131 }
 0x219   :  { %16419 = vst [vmem:[#allocation26_spill] sm:$0xff] %v10828_v1  ;;  %1311 = vrot.lane.b32.xlu1 %v16310_v24, %s8888_s2 }
 0x21a   :  { %v10826_v3 = vpop.permute.xlu0 %1129 }
 0x21b   :  { %16418 = vst [vmem:[#allocation25_spill] sm:$0xff] %v10826_v3 }
 0x21c   :  { %1309 = vrot.lane.b32.xlu0 %v9656_v37, %s8888_s2  ;;  %v10836_v55 = vpop.permute.xlu1 %1135  ;;  %v16424_v37 = vld [vmem:[#allocation31_spill] sm:$0xff] }
 0x21d   :  { %16421 = vst [vmem:[#allocation184_spill] sm:$0xff] %v10836_v55  ;;  %1315 = vrot.lane.b32.xlu1 %v16313_v59, %s8888_s2  ;;  %v16499_v55 = vld [vmem:[#allocation131_spill] sm:$0xff] }
 0x21e   :  { %v10834_v14 = vpop.permute.xlu0 %1133 }
 0x21f   :  { %16420 = vst [vmem:[#allocation183_spill] sm:$0xff] %v10834_v14 }
 0x220   :  { %1313 = vrot.lane.b32.xlu0 %v9669_v46, %s8888_s2  ;;  %v10844_v21 = vpop.permute.xlu1 %1139  ;;  %v16427_v46 = vld [vmem:[#allocation32_spill] sm:$0xff] }
 0x221   :  { %16423 = vst [vmem:[#allocation186_spill] sm:$0xff] %v10844_v21  ;;  %1319 = vrot.lane.b32.xlu1 %v16424_v37, %s8888_s2  ;;  %v357_v21 = vld [vmem:[#allocation2 + $0x220] sm:$0x3] }
 0x222   :  { %v10842_v32 = vpop.permute.xlu0 %1137 }
 0x223   :  { %16422 = vst [vmem:[#allocation185_spill] sm:$0xff] %v10842_v32 }
 0x224   :  { %1317 = vrot.lane.b32.xlu0 %v9682_v54, %s8888_s2  ;;  %v10852_v52 = vpop.permute.xlu1 %1143  ;;  %v16430_v54 = vld [vmem:[#allocation33_spill] sm:$0xff] }
 0x225   :  { %16426 = vst [vmem:[#allocation187_spill] sm:$0xff] %v10852_v52  ;;  %1323 = vrot.lane.b32.xlu1 %v16427_v46, %s8888_s2  ;;  %v353_v52 = vld [vmem:[#allocation2 + $0x200] sm:$0xff] }
 0x226   :  { %v10850_v24 = vpop.permute.xlu0 %1141 }
 0x227   :  { %16425 = vst [vmem:[#allocation31_spill] sm:$0xff] %v10850_v24  ;;  %v355_v24 = vld [vmem:[#allocation2 + $0x210] sm:$0xff] }
 0x228   :  { %1321 = vrot.lane.b32.xlu0 %v9695_v6, %s8888_s2  ;;  %v10860_v9 = vpop.permute.xlu1 %1147  ;;  %v16433_v6 = vld [vmem:[#allocation34_spill] sm:$0xff] }
 0x229   :  { %16429 = vst [vmem:[#allocation188_spill] sm:$0xff] %v10860_v9  ;;  %1327 = vrot.lane.b32.xlu1 %v16430_v54, %s8888_s2 }
 0x22a   :  { %v10858_v59 = vpop.permute.xlu0 %1145 }
 0x22b   :  { %16428 = vst [vmem:[#allocation32_spill] sm:$0xff] %v10858_v59 }
 0x22c   :  { %1325 = vrot.lane.b32.xlu0 %v9708_v16, %s8888_s2  ;;  %v10868_v37 = vpop.permute.xlu1 %1151  ;;  %v16436_v16 = vld [vmem:[#allocation35_spill] sm:$0xff] }
 0x22d   :  { %16432 = vst [vmem:[#allocation189_spill] sm:$0xff] %v10868_v37  ;;  %1331 = vrot.lane.b32.xlu1 %v16433_v6, %s8888_s2 }
 0x22e   :  { %v10866_v23 = vpop.permute.xlu0 %1149 }
 0x22f   :  { %16431 = vst [vmem:[#allocation33_spill] sm:$0xff] %v10866_v23  ;;  %v1720_v23 = vrot.slane %v10960_v45, 1 }
 0x230   :  { %1329 = vrot.lane.b32.xlu0 %v9721_v29, %s8888_s2  ;;  %v10876_v26 = vpop.permute.xlu1 %1155  ;;  %v16440_v29 = vld [vmem:[#allocation37_spill] sm:$0xff] }
 0x231   :  { %16435 = vst [vmem:[#allocation190_spill] sm:$0xff] %v10876_v26  ;;  %1335 = vrot.lane.b32.xlu1 %v16436_v16, %s8888_s2  ;;  %v10954_v26 = vld [vmem:[#allocation2 + $0x1c8] sm:$0xff] }
 0x232   :  { %v10874_v46 = vpop.permute.xlu0 %1153 }
 0x233   :  { %16434 = vst [vmem:[#allocation34_spill] sm:$0xff] %v10874_v46 }
 0x234   :  { %1333 = vrot.lane.b32.xlu0 %v9734_v43, %s8888_s2  ;;  %v10884_v53 = vpop.permute.xlu1 %1159 }
 0x235   :  { %16438 = vst [vmem:[#allocation191_spill] sm:$0xff] %v10884_v53  ;;  %1339 = vrot.lane.b32.xlu1 %v16440_v29, %s8888_s2  ;;  %v10941_v53 = vld [vmem:[#allocation2 + $0x1c0] sm:$0x3] }
 0x236   :  { %v10882_v54 = vpop.permute.xlu0 %1157 }
 0x237   :  { %16437 = vst [vmem:[#allocation35_spill] sm:$0xff] %v10882_v54  ;;  %v1715_v54 = vrot.slane %v10941_v53, 1 }
 0x238   :  { %1337 = vrot.lane.b32.xlu0 %v16439_v2, %s8888_s2  ;;  %v10892_v46 = vpop.permute.xlu1 %1163  ;;  %v16445_v2 = vld [vmem:[#allocation40_spill] sm:$0xff] }
 0x239   :  { %16442 = vst [vmem:[#allocation37_spill] sm:$0xff] %v10892_v46  ;;  %1343 = vrot.lane.b32.xlu1 %v16334_v44, %s8888_s2  ;;  %v16448_v46 = vld [vmem:[#allocation41_spill] sm:$0xff] }
 0x23a   :  { %v10890_v6 = vpop.permute.xlu0 %1161 }
 0x23b   :  { %16441 = vst [vmem:[#allocation36_spill] sm:$0xff] %v10890_v6 }
 0x23c   :  { %1341 = vrot.lane.b32.xlu0 %v9760_v10, %s8888_s2  ;;  %v10900_v16 = vpop.permute.xlu1 %1167  ;;  %v16449_v10 = vld [vmem:[#allocation43_spill] sm:$0xff] }
 0x23d   :  { %16444 = vst [vmem:[#allocation193_spill] sm:$0xff] %v10900_v16  ;;  %1347 = vrot.lane.b32.xlu1 %v16445_v2, %s8888_s2  ;;  %v16452_v16 = vld [vmem:[#allocation45_spill] sm:$0xff] }
 0x23e   :  { %v10898_v43 = vpop.permute.xlu0 %1165  ;;  %16454 = vst [vmem:[#allocation45_spill] sm:$0xff] %v10954_v26 }
 0x23f   :  { %16443 = vst [vmem:[#allocation192_spill] sm:$0xff] %v10898_v43 }
 0x240   :  { %1345 = vrot.lane.b32.xlu0 %v16337_v13, %s8888_s2  ;;  %v10908_v6 = vpop.permute.xlu1 %1171  ;;  %v16453_v13 = vld [vmem:[#allocation47_spill] sm:$0xff] }
 0x241   :  { %16447 = vst [vmem:[#allocation194_spill] sm:$0xff] %v10908_v6  ;;  %1351 = vrot.lane.b32.xlu1 %v16449_v10, %s8888_s2  ;;  %v629_v10 = vrot.slane %v10549_v40, 2  ;;  %16455 = vst [vmem:[#allocation47_spill] sm:$0xff] %v10956_v41 }
 0x242   :  { %v10906_v29 = vpop.permute.xlu0 %1169 }
 0x243   :  { %16446 = vst [vmem:[#allocation40_spill] sm:$0xff] %v10906_v29 }
 0x244   :  { %1349 = vrot.lane.b32.xlu0 %v16448_v46, %s8888_s2  ;;  %v10916_v43 = vpop.permute.xlu1 %1175  ;;  %v628_v46 = vrot.slane %v10543_v17, 2 }
 0x245   :  { %16451 = vst [vmem:[#allocation43_spill] sm:$0xff] %v10916_v43  ;;  %1355 = vrot.lane.b32.xlu1 %v16453_v13, %s8888_s2  ;;  %v10937_v13 = vld [vmem:[#allocation2 + $0x1b8] sm:$0xff] }
 0x246   :  { %v10914_v44 = vpop.permute.xlu0 %1173  ;;  %v1713_v17 = vrot.slane %v10937_v13, 1 }
 0x247   :  { %16450 = vst [vmem:[#allocation41_spill] sm:$0xff] %v10914_v44  ;;  %v10935_v44 = vld [vmem:[#allocation2 + $0x1b0] sm:$0xff] }
 0x248   :  { %1353 = vrot.lane.b32.xlu0 %v16452_v16, %s8888_s2  ;;  %v10924_v29 = vpop.permute.xlu1 %1211  ;;  %v631_v16 = vrot.slane %v10792_v11, 2  ;;  %v1716_v37 = vsel %vm445_vm2, %v1713_v17, %v1715_v54  ;;  %v1723_v54 = vrot.slane %v10973_v15, 1 }
 0x249   :  { %1359 = vrot.lane.b32.xlu1 %v9825_v39, %s8888_s2  ;;  %v630_v39 = vsel %vm526_vm3, %v628_v46, %v629_v10  ;;  %v1717_v46 = vrot.slane %v10954_v26, 1 }
 0x24a   :  { %v10922_v2 = vpop.permute.xlu0 %1209  ;;  %v632_v11 = vsel %vm526_vm3, %v629_v10, %v631_v16  ;;  %v1718_v10 = vrot.slane %v10956_v41, 1 }
 0x24c   :  { %1357 = vrot.lane.b32.xlu0 %v9820_v4, %s8888_s2  ;;  %v10939_v6 = vpop.permute.xlu1 %1215  ;;  %v1712_v4 = vrot.slane %v10935_v44, 1  ;;  %v10989_v59 = vsel %vm445_vm2, %v1718_v10, %v1720_v23  ;;  %v1727_v23 = vrot.slane %v10992_v58, 1  ;;  %v1733_v58 = vrot.slane %v356_v50, 1 }
 0x24d   :  { %1363 = vrot.lane.b32.xlu1 %v10377_v62, %s8888_s2  ;;  %16463 = vst [vmem:[#allocation202_spill] sm:$0xff] %v10989_v59 }
 0x24e   :  { %v10932_v43 = vpop.permute.xlu0 %1213  ;;  %v1714_v62 = vsel %vm445_vm2, %v1712_v4, %v1713_v17  ;;  %v10982_v4 = vsel %vm445_vm2, %v1717_v46, %v1718_v10  ;;  %v1728_v10 = vrot.slane %v353_v52, 1  ;;  %v1732_v52 = vrot.slane %v355_v24, 1 }
 0x24f   :  { %16461 = vst [vmem:[#allocation200_spill] sm:$0xff] %v10982_v4 }
 0x250   :  { %1361 = vrot.lane.b32.xlu0 %v10372_v48, %s8888_s2  ;;  %v10958_v48 = vpop.permute.xlu1 %1219  ;;  %v11030_v24 = vsel %vm445_vm2, %v1732_v52, %v1733_v58 }
 0x251   :  { %1367 = vrot.lane.b32.xlu1 %v632_v11, %s8888_s2  ;;  %v1722_v11 = vrot.slane %v10971_v61, 1  ;;  %16474 = vst [vmem:[#allocation213_spill] sm:$0xff] %v11030_v24 }
 0x252   :  { %v10950_v40 = vpop.permute.xlu0 %1217 }
 0x253   :  { %v11001_v46 = vsel %vm445_vm2, %v1722_v11, %v1723_v54  ;;  %v11016_v11 = vsel %vm445_vm2, %v1727_v23, %v1728_v10 }
 0x254   :  { %1365 = vrot.lane.b32.xlu0 %v630_v39, %s8888_s2  ;;  %v10975_v9 = vpop.permute.xlu1 %1223  ;;  %v10977_v39 = vld [vmem:[#allocation2 + $0x1f0] sm:$0x3]  ;;  %16466 = vst [vmem:[#allocation205_spill] sm:$0xff] %v11001_v46  ;;  %16470 = vst [vmem:[#allocation209_spill] sm:$0xff] %v11016_v11 }
 0x255   :  { %16459 = vst [vmem:[#allocation198_spill] sm:$0xff] %v10975_v9  ;;  %16460 = vst [vmem:[#allocation199_spill] sm:$0xff] %v10977_v39  ;;  %1900 = vrot.lane.b32.xlu1 %v1716_v37, %s8881_s30  ;;  %v1725_v25 = vrot.slane %v10977_v39, 1  ;;  %v354_v37 = vld [vmem:[#allocation2 + $0x208] sm:$0x3] }
 0x256   :  { %v10967_v16 = vpop.permute.xlu0 %1221  ;;  %v1730_v61 = vrot.slane %v354_v37, 1  ;;  %v358_v37 = vld [vmem:[#allocation2 + $0x228] sm:$0xff] }
 0x257   :  { %v11007_v39 = vsel %vm445_vm2, %v1723_v54, %v1725_v25  ;;  %v1735_v54 = vrot.slane %v357_v21, 1  ;;  %v1737_v50 = vrot.slane %v358_v37, 1  ;;  %v1740_v21 = vrot.slane %v360_v47, 1  ;;  %v378_v9 = vld [vmem:[#allocation2 + $0x2c8] sm:$0x3] }
 0x258   :  { %1898 = vrot.lane.b32.xlu0 %v1714_v62, %s8881_s30  ;;  %v10994_v62 = vpop.permute.xlu1 %1227  ;;  %16468 = vst [vmem:[#allocation207_spill] sm:$0xff] %v11007_v39  ;;  %v11021_v25 = vsel %vm445_vm2, %v1728_v10, %v1730_v61  ;;  %v361_v10 = vld [vmem:[#allocation2 + $0x240] sm:$0xff] }
 0x259   :  { %16465 = vst [vmem:[#allocation204_spill] sm:$0xff] %v10994_v62  ;;  %1904 = vrot.lane.b32.xlu1 %v10989_v59, %s8881_s30  ;;  %16472 = vst [vmem:[#allocation211_spill] sm:$0xff] %v11021_v25  ;;  %v359_v59 = vld [vmem:[#allocation2 + $0x230] sm:$0xff]  ;;  %v11035_v61 = vsel %vm445_vm2, %v1733_v58, %v1735_v54  ;;  %v364_v54 = vld [vmem:[#allocation2 + $0x258] sm:$0xff] }
 0x25a   :  { %v10986_v17 = vpop.permute.xlu0 %1225  ;;  %v1738_v23 = vrot.slane %v359_v59, 1  ;;  %16476 = vst [vmem:[#allocation215_spill] sm:$0xff] %v11035_v61  ;;  %v1742_v59 = vrot.slane %v361_v10, 1 }
 0x25b   :  { %16462 = vst [vmem:[#allocation201_spill] sm:$0xff] %v10986_v17  ;;  %v374_v17 = vld [vmem:[#allocation2 + $0x2a8] sm:$0xff] }
 0x25c   :  { %1902 = vrot.lane.b32.xlu0 %v10982_v4, %s8881_s30  ;;  %v11009_v27 = vpop.permute.xlu1 %1231  ;;  %v11044_v52 = vsel %vm445_vm2, %v1737_v50, %v1738_v23  ;;  %v11049_v47 = vsel %vm445_vm2, %v1738_v23, %v1740_v21  ;;  %v367_v21 = vld [vmem:[#allocation2 + $0x270] sm:$0xff] }
 0x25d   :  { %16469 = vst [vmem:[#allocation208_spill] sm:$0xff] %v11009_v27  ;;  %1908 = vrot.lane.b32.xlu1 %v11007_v39, %s8881_s30  ;;  %16478 = vst [vmem:[#allocation217_spill] sm:$0xff] %v11044_v52  ;;  %v371_v4 = vld [vmem:[#allocation2 + $0x290] sm:$0xff] }
 0x25e   :  { %v11004_v15 = vpop.permute.xlu0 %1229  ;;  %16480 = vst [vmem:[#allocation219_spill] sm:$0xff] %v11049_v47 }
 0x25f   :  { %16467 = vst [vmem:[#allocation206_spill] sm:$0xff] %v11004_v15 }
 0x260   :  { %1906 = vrot.lane.b32.xlu0 %v11001_v46, %s8881_s30  ;;  %v11023_v32 = vpop.permute.xlu1 %1235  ;;  %v362_v46 = vld [vmem:[#allocation2 + $0x248] sm:$0xff] }
 0x261   :  { %16473 = vst [vmem:[#allocation212_spill] sm:$0xff] %v11023_v32  ;;  %1912 = vrot.lane.b32.xlu1 %v11021_v25, %s8881_s30  ;;  %v1743_v37 = vrot.slane %v362_v46, 1  ;;  %v1747_v46 = vrot.slane %v364_v54, 1 }
 0x262   :  { %v11018_v45 = vpop.permute.xlu0 %1233 }
 0x263   :  { %16471 = vst [vmem:[#allocation210_spill] sm:$0xff] %v11018_v45  ;;  %v363_v45 = vld [vmem:[#allocation2 + $0x250] sm:$0x3]  ;;  %v11058_v50 = vsel %vm445_vm2, %v1742_v59, %v1743_v37 }
 0x264   :  { %1910 = vrot.lane.b32.xlu0 %v11016_v11, %s8881_s30  ;;  %v11037_v32 = vpop.permute.xlu1 %1239  ;;  %v1745_v58 = vrot.slane %v363_v45, 1  ;;  %v365_v11 = vld [vmem:[#allocation2 + $0x260] sm:$0xff]  ;;  %16482 = vst [vmem:[#allocation221_spill] sm:$0xff] %v11058_v50 }
 0x265   :  { %16477 = vst [vmem:[#allocation216_spill] sm:$0xff] %v11037_v32  ;;  %1916 = vrot.lane.b32.xlu1 %v11035_v61, %s8881_s30  ;;  %v1748_v10 = vrot.slane %v365_v11, 1  ;;  %v1752_v11 = vrot.slane %v367_v21, 1  ;;  %v8746_v21 = vld [vmem:[#allocation2 + $0x8] sm:$0xff] }
 0x266   :  { %v11032_v39 = vpop.permute.xlu0 %1237  ;;  %v11063_v45 = vsel %vm445_vm2, %v1743_v37, %v1745_v58  ;;  %v16487_v37 = vld [vmem:[#allocation42_spill] sm:$0xff]  ;;  %v8745_v58 = vld [vmem:[#allocation2 + $0x18] sm:$0xff] }
 0x267   :  { %16475 = vst [vmem:[#allocation214_spill] sm:$0xff] %v11032_v39  ;;  %v366_v39 = vld [vmem:[#allocation2 + $0x268] sm:$0x3]  ;;  %16484 = vst [vmem:[#allocation223_spill] sm:$0xff] %v11063_v45  ;;  %v11072_v59 = vsel %vm445_vm2, %v1747_v46, %v1748_v10 }
 0x268   :  { %1914 = vrot.lane.b32.xlu0 %v11030_v24, %s8881_s30  ;;  %v11051_v32 = vpop.permute.xlu1 %1243  ;;  %v1750_v23 = vrot.slane %v366_v39, 1  ;;  %v368_v24 = vld [vmem:[#allocation2 + $0x278] sm:$0xff]  ;;  %16486 = vst [vmem:[#allocation225_spill] sm:$0xff] %v11072_v59  ;;  %v370_v46 = vld [vmem:[#allocation2 + $0x288] sm:$0xff] }
 0x269   :  { %16481 = vst [vmem:[#allocation220_spill] sm:$0xff] %v11051_v32  ;;  %1920 = vrot.lane.b32.xlu1 %v11049_v47, %s8881_s30  ;;  %v1753_v54 = vrot.slane %v368_v24, 1  ;;  %v8744_v47 = vld [vmem:[#allocation2] sm:$0xff]  ;;  %v16491_v24 = vld [vmem:[#allocation46_spill] sm:$0xff] }
 0x26a   :  { %v11046_v25 = vpop.permute.xlu0 %1241  ;;  %v11076_v39 = vsel %vm50_vm0, %v8744_v47, %v16487_v37  ;;  %v11089_v38 = vsel %vm50_vm0, %v8746_v21, %v16491_v24  ;;  %v8747_v47 = vld [vmem:[#allocation2 + $0x20] sm:$0xff]  ;;  %v372_v21 = vld [vmem:[#allocation2 + $0x298] sm:$0x3] }
 0x26b   :  { %16479 = vst [vmem:[#allocation218_spill] sm:$0xff] %v11046_v25  ;;  %v369_v25 = vld [vmem:[#allocation2 + $0x280] sm:$0x3]  ;;  %v16498_v24 = vld [vmem:[#allocation51_spill] sm:$0xff] }
 0x26c   :  { %1918 = vrot.lane.b32.xlu0 %v11044_v52, %s8881_s30  ;;  %v11065_v32 = vpop.permute.xlu1 %1247  ;;  %v16488_v52 = vld [vmem:[#allocation44_spill] sm:$0xff]  ;;  %v11110_v41 = vsel %vm50_vm0, %v16499_v55, %v16498_v24  ;;  %v16506_v55 = vld [vmem:[#allocation55_spill] sm:$0xff] }
 0x26d   :  { %16485 = vst [vmem:[#allocation224_spill] sm:$0xff] %v11065_v32  ;;  %1924 = vrot.lane.b32.xlu1 %v11063_v45, %s8881_s30  ;;  %v11080_v32 = vsel %vm50_vm0, %v8745_v58, %v16488_v52  ;;  %v1755_v45 = vrot.slane %v369_v25, 1  ;;  %v16492_v37 = vld [vmem:[#allocation48_spill] sm:$0xff]  ;;  %v16493_v52 = vld [vmem:[#allocation49_spill] sm:$0xff]  ;;  %v16494_v58 = vld [vmem:[#allocation127_spill] sm:$0xff] }
 0x26e   :  { %v11060_v61 = vpop.permute.xlu0 %1245  ;;  %v11093_v27 = vsel %vm50_vm0, %v8747_v47, %v16492_v37  ;;  %v16500_v47 = vld [vmem:[#allocation52_spill] sm:$0xff]  ;;  %v16507_v24 = vld [vmem:[#allocation139_spill] sm:$0xff] }
 0x26f   :  { %16483 = vst [vmem:[#allocation222_spill] sm:$0xff] %v11060_v61  ;;  %v16501_v37 = vld [vmem:[#allocation132_spill] sm:$0xff]  ;;  %v11132_v26 = vsel %vm50_vm0, %v16507_v24, %v16506_v55  ;;  %v11152_v24 = vsel %vm445_vm2, %v1753_v54, %v1755_v45  ;;  %v16520_v45 = vld [vmem:[#allocation61_spill] sm:$0xff] }
 0x270   :  { %1922 = vrot.lane.b32.xlu0 %v11058_v50, %s8881_s30  ;;  %v11085_v50 = vsel %vm445_vm2, %v1748_v10, %v1750_v23  ;;  %v16495_v10 = vld [vmem:[#allocation50_spill] sm:$0xff]  ;;  %v16496_v23 = vld [vmem:[#allocation128_spill] sm:$0xff]  ;;  %v11105_v15 = vpop.permute.xlu1 %1251  ;;  %v11115_v14 = vsel %vm50_vm0, %v16501_v37, %v16500_v47  ;;  %v11137_v47 = vsel %vm445_vm2, %v1752_v11, %v1753_v54  ;;  %v1757_v37 = vrot.slane %v370_v46, 1  ;;  %16514 = vst [vmem:[#allocation127_spill] sm:$0xff] %v11152_v24 }
 0x271   :  { %16490 = vst [vmem:[#allocation44_spill] sm:$0xff] %v11085_v50  ;;  %v11103_v25 = vsel %vm50_vm0, %v16496_v23, %v16495_v10  ;;  %16497 = vst [vmem:[#allocation46_spill] sm:$0xff] %v11105_v15  ;;  %v16504_v10 = vld [vmem:[#allocation54_spill] sm:$0xff]  ;;  %v16505_v23 = vld [vmem:[#allocation136_spill] sm:$0xff]  ;;  %1928 = vrot.lane.b32.xlu1 %v11085_v50, %s8881_s30  ;;  %v1760_v50 = vrot.slane %v372_v21, 1 }
 0x272   :  { %v11082_v61 = vpop.permute.xlu0 %1249  ;;  %v11125_v15 = vsel %vm50_vm0, %v16505_v23, %v16504_v10  ;;  %16508 = vst [vmem:[#allocation48_spill] sm:$0xff] %v11137_v47  ;;  %v16511_v23 = vld [vmem:[#allocation57_spill] sm:$0xff]  ;;  %v373_v11 = vld [vmem:[#allocation2 + $0x2a0] sm:$0xff]  ;;  %v16515_v46 = vld [vmem:[#allocation58_spill] sm:$0xff] }
 0x273   :  { %16489 = vst [vmem:[#allocation42_spill] sm:$0xff] %v11082_v61  ;;  %v11098_v61 = vsel %vm50_vm0, %v16494_v58, %v16493_v52  ;;  %v16502_v52 = vld [vmem:[#allocation53_spill] sm:$0xff]  ;;  %v16503_v58 = vld [vmem:[#allocation135_spill] sm:$0xff]  ;;  %v16521_v54 = vld [vmem:[#allocation150_spill] sm:$0xff] }
 0x274   :  { %v11120_v31 = vsel %vm50_vm0, %v16503_v58, %v16502_v52  ;;  %1926 = vrot.lane.b32.xlu0 %v11072_v59, %s8881_s30  ;;  %v1758_v52 = vrot.slane %v371_v4, 1  ;;  %v16509_v58 = vld [vmem:[#allocation56_spill] sm:$0xff]  ;;  %v16512_v59 = vld [vmem:[#allocation143_spill] sm:$0xff]  ;;  %v11172_v21 = vsel %vm50_vm0, %v16521_v54, %v16520_v45  ;;  %v8748_v45 = vld [vmem:[#allocation2 + $0xf0] sm:$0xff] }
 0x275   :  { %v11142_v10 = vsel %vm50_vm0, %v16510_v8, %v16509_v58  ;;  %v11147_v62 = vsel %vm50_vm0, %v16512_v59, %v16511_v23  ;;  %v16516_v4 = vld [vmem:[#allocation144_spill] sm:$0xff]  ;;  %v16517_v8 = vld [vmem:[#allocation59_spill] sm:$0xff]  ;;  %v16530_v54 = vld [vmem:[#allocation65_spill] sm:$0xff]  ;;  %1932 = vrot.lane.b32.xlu1 %v11152_v24, %s8881_s30  ;;  %v1765_v24 = vrot.slane %v375_v7, 1 }
 0x276   :  { %v11149_v55 = vpop.permute.xlu0 %1253  ;;  %v11157_v1 = vsel %vm50_vm0, %v16516_v4, %v16515_v46  ;;  %v16518_v58 = vld [vmem:[#allocation147_spill] sm:$0xff]  ;;  %v16519_v59 = vld [vmem:[#allocation60_spill] sm:$0xff]  ;;  %v16523_v46 = vld [vmem:[#allocation62_spill] sm:$0xff] }
 0x277   :  { %16513 = vst [vmem:[#allocation49_spill] sm:$0xff] %v11149_v55  ;;  %v11162_v3 = vsel %vm50_vm0, %v16518_v58, %v16517_v8  ;;  %v11167_v23 = vsel %vm50_vm0, %v10453_v33, %v16519_v59  ;;  %v11174_v55 = vpop.permute.xlu1 %1255  ;;  %v11179_v4 = vsel %vm50_vm0, %v10465_v18, %v16523_v46  ;;  %v16525_v8 = vld [vmem:[#allocation63_spill] sm:$0xff]  ;;  %v16527_v33 = vld [vmem:[#allocation64_spill] sm:$0xff]  ;;  %v16528_v59 = vld [vmem:[#allocation153_spill] sm:$0xff] }
 0x278   :  { %16522 = vst [vmem:[#allocation50_spill] sm:$0xff] %v11174_v55  ;;  %16524 = vst [vmem:[#allocation128_spill] sm:$0xff] %v11179_v4  ;;  %v11184_v58 = vsel %vm50_vm0, %v10473_v22, %v16525_v8  ;;  %v11189_v60 = vsel %vm50_vm0, %v16528_v59, %v16527_v33  ;;  %v11193_v55 = vsel %vm50_vm0, %v8748_v45, %v16530_v54  ;;  %1930 = vrot.lane.b32.xlu0 %v11137_v47, %s8881_s30  ;;  %v8749_v18 = vld [vmem:[#allocation2 + $0xf8] sm:$0xff]  ;;  %v16532_v46 = vld [vmem:[#allocation66_spill] sm:$0xff] }
 0x279   :  { %16526 = vst [vmem:[#allocation51_spill] sm:$0xff] %v11184_v58  ;;  %16529 = vst [vmem:[#allocation131_spill] sm:$0xff] %v11189_v60  ;;  %v11199_v4 = vsel %vm50_vm0, %v8749_v18, %v16532_v46  ;;  %v11204_v22 = vsel %vm445_vm2, %v1757_v37, %v1758_v52  ;;  %v1762_v8 = vrot.slane %v373_v11, 1  ;;  %v1763_v33 = vrot.slane %v374_v17, 1  ;;  %v8750_v59 = vld [vmem:[#allocation2 + $0x108] sm:$0xff]  ;;  %v16535_v45 = vld [vmem:[#allocation67_spill] sm:$0xff] }
 0x27a   :  { %16531 = vst [vmem:[#allocation52_spill] sm:$0xff] %v11193_v55  ;;  %16533 = vst [vmem:[#allocation132_spill] sm:$0xff] %v11199_v4  ;;  %v11208_v54 = vsel %vm50_vm0, %v8750_v59, %v16535_v45  ;;  %v8751_v47 = vld [vmem:[#allocation2 + $0x110] sm:$0xff]  ;;  %v16537_v55 = vld [vmem:[#allocation68_spill] sm:$0xff]  ;;  %v11214_v18 = vpop.permute.xlu0 %1257  ;;  %v11217_v46 = vsel %vm445_vm2, %v1758_v52, %v1760_v50 }
 0x27b   :  { %16534 = vst [vmem:[#allocation53_spill] sm:$0xff] %v11204_v22  ;;  %16536 = vst [vmem:[#allocation135_spill] sm:$0xff] %v11208_v54  ;;  %v11212_v60 = vsel %vm50_vm0, %v8751_v47, %v16537_v55  ;;  %v376_v37 = vld [vmem:[#allocation2 + $0x2b8] sm:$0xff]  ;;  %v377_v4 = vld [vmem:[#allocation2 + $0x2c0] sm:$0xff]  ;;  %1936 = vrot.lane.b32.xlu1 %v11217_v46, %s8881_s30 }
 0x27c   :  { %16538 = vst [vmem:[#allocation54_spill] sm:$0xff] %v11212_v60  ;;  %16539 = vst [vmem:[#allocation136_spill] sm:$0xff] %v11214_v18  ;;  %v8752_v11 = vld [vmem:[#allocation2 + $0x120] sm:$0xff]  ;;  %v16541_v17 = vld [vmem:[#allocation69_spill] sm:$0xff]  ;;  %v11235_v60 = vpop.permute.xlu1 %1259  ;;  %1934 = vrot.lane.b32.xlu0 %v11204_v22, %s8881_s30  ;;  %v11269_v22 = vsel %vm445_vm2, %v1763_v33, %v1765_v24 }
 0x27d   :  { %16540 = vst [vmem:[#allocation55_spill] sm:$0xff] %v11217_v46  ;;  %v11221_v58 = vsel %vm50_vm0, %v8752_v11, %v16541_v17  ;;  %v8753_v59 = vld [vmem:[#allocation2 + $0x128] sm:$0xff]  ;;  %v16543_v45 = vld [vmem:[#allocation70_spill] sm:$0xff]  ;;  %v8754_v47 = vld [vmem:[#allocation2 + $0x138] sm:$0xff] }
 0x27e   :  { %16542 = vst [vmem:[#allocation139_spill] sm:$0xff] %v11221_v58  ;;  %v11225_v54 = vsel %vm50_vm0, %v8753_v59, %v16543_v45  ;;  %v16545_v55 = vld [vmem:[#allocation71_spill] sm:$0xff]  ;;  %v8755_v50 = vld [vmem:[#allocation2 + $0x140] sm:$0xff]  ;;  %16548 = vst [vmem:[#allocation57_spill] sm:$0xff] %v11235_v60 }
 0x27f   :  { %16544 = vst [vmem:[#allocation56_spill] sm:$0xff] %v11225_v54  ;;  %v11229_v18 = vsel %vm50_vm0, %v8754_v47, %v16545_v55  ;;  %v16547_v52 = vld [vmem:[#allocation72_spill] sm:$0xff]  ;;  %v8756_v11 = vld [vmem:[#allocation2 + $0x150] sm:$0xff]  ;;  %v16549_v17 = vld [vmem:[#allocation73_spill] sm:$0xff]  ;;  %1940 = vrot.lane.b32.xlu1 %v11269_v22, %s8881_s30 }
 0x280   :  { %16546 = vst [vmem:[#allocation140_spill] sm:$0xff] %v11229_v18  ;;  %v11233_v7 = vsel %vm50_vm0, %v8755_v50, %v16547_v52  ;;  %v11239_v58 = vsel %vm50_vm0, %v8756_v11, %v16549_v17  ;;  %v8757_v59 = vld [vmem:[#allocation2 + $0x158] sm:$0xff]  ;;  %v16551_v45 = vld [vmem:[#allocation74_spill] sm:$0xff]  ;;  %v8758_v47 = vld [vmem:[#allocation2 + $0x168] sm:$0xff]  ;;  %v11258_v11 = vsel %vm445_vm2, %v1762_v8, %v1763_v33  ;;  %v1767_v17 = vrot.slane %v376_v37, 1  ;;  %v11283_v33 = vpop.permute.xlu1 %1263 }
 0x281   :  { %16550 = vst [vmem:[#allocation143_spill] sm:$0xff] %v11239_v58  ;;  %v11243_v54 = vsel %vm50_vm0, %v8757_v59, %v16551_v45  ;;  %v16553_v55 = vld [vmem:[#allocation75_spill] sm:$0xff]  ;;  %v8759_v50 = vld [vmem:[#allocation2 + $0x170] sm:$0xff]  ;;  %v16555_v52 = vld [vmem:[#allocation76_spill] sm:$0xff]  ;;  %v1768_v59 = vrot.slane %v377_v4, 1  ;;  %1938 = vrot.lane.b32.xlu0 %v11258_v11, %s8881_s30 }
 0x282   :  { %16552 = vst [vmem:[#allocation58_spill] sm:$0xff] %v11243_v54  ;;  %v11247_v18 = vsel %vm50_vm0, %v8758_v47, %v16553_v55  ;;  %v11251_v60 = vsel %vm50_vm0, %v8759_v50, %v16555_v52  ;;  %16557 = vst [vmem:[#allocation147_spill] sm:$0xff] %v11258_v11  ;;  %v16558_v45 = vld [vmem:[#allocation77_spill] sm:$0xff]  ;;  %v16559_v55 = vld [vmem:[#allocation78_spill] sm:$0xff]  ;;  %v11266_v52 = vpop.permute.xlu0 %1261 }
 0x283   :  { %16554 = vst [vmem:[#allocation144_spill] sm:$0xff] %v11247_v18  ;;  %16556 = vst [vmem:[#allocation59_spill] sm:$0xff] %v11251_v60  ;;  %v1434_v47 = vsel %vm1433_vm6, %v11076_v39, %v16558_v45  ;;  %v1435_v50 = vsel %vm1433_vm6, %v11089_v38, %v16559_v55  ;;  %v1770_v60 = vrot.slane %v378_v9, 1  ;;  %v379_v46 = vld [vmem:[#allocation2 + $0x2d0] sm:$0xff]  ;;  %v380_v18 = vld [vmem:[#allocation2 + $0x2d8] sm:$0xff] }
 0x284   :  { %16560 = vst [vmem:[#allocation60_spill] sm:$0xff] %v11266_v52  ;;  %16561 = vst [vmem:[#allocation61_spill] sm:$0xff] %v11269_v22  ;;  %v16562_v8 = vld [vmem:[#allocation79_spill] sm:$0xff]  ;;  %v16563_v37 = vld [vmem:[#allocation80_spill] sm:$0xff] }
 0x285   :  { %v1436_v4 = vsel %vm1433_vm6, %v11080_v32, %v16562_v8  ;;  %v1437_v39 = vsel %vm1433_vm6, %v11093_v27, %v16563_v37  ;;  %v16564_v45 = vld [vmem:[#allocation81_spill] sm:$0xff]  ;;  %v16565_v55 = vld [vmem:[#allocation82_spill] sm:$0xff]  ;;  %16566 = vst [vmem:[#allocation150_spill] sm:$0xff] %v11283_v33  ;;  %v381_v9 = vld [vmem:[#allocation2 + $0x2e0] sm:$0x3] }
 0x286   :  { %v1438_v38 = vsel %vm1433_vm6, %v11098_v61, %v16564_v45  ;;  %v1439_v24 = vsel %vm1433_vm6, %v11103_v25, %v16565_v55  ;;  %v16567_v52 = vld [vmem:[#allocation83_spill] sm:$0xff]  ;;  %v16568_v32 = vld [vmem:[#allocation84_spill] sm:$0xff]  ;;  %v16569_v27 = vld [vmem:[#allocation85_spill] sm:$0xff] }
 0x287   :  { %v1440_v54 = vsel %vm1433_vm6, %v11110_v41, %v16567_v52  ;;  %v11291_v8 = vsel %vm1433_vm6, %v11115_v14, %v16568_v32  ;;  %v11296_v61 = vsel %vm1433_vm6, %v11120_v31, %v16569_v27  ;;  %v16570_v37 = vld [vmem:[#allocation86_spill] sm:$0xff]  ;;  %v16571_v45 = vld [vmem:[#allocation87_spill] sm:$0xff]  ;;  %v11313_v14 = vsel %vm445_vm2, %v1767_v17, %v1768_v59  ;;  %v16573_v55 = vld [vmem:[#allocation88_spill] sm:$0xff] }
 0x288   :  { %v11301_v25 = vsel %vm1433_vm6, %v11125_v15, %v16570_v37  ;;  %v11308_v41 = vsel %vm1433_vm6, %v11132_v26, %v16571_v45  ;;  %16572 = vst [vmem:[#allocation62_spill] sm:$0xff] %v11313_v14  ;;  %v1772_v31 = vrot.slane %v379_v46, 1  ;;  %v1773_v52 = vrot.slane %v380_v18, 1  ;;  %v16574_v32 = vld [vmem:[#allocation4_spill] sm:$0xff]  ;;  %v11325_v26 = vpop.permute.xlu0 %1265  ;;  %v382_v17 = vld [vmem:[#allocation2 + $0x2e8] sm:$0xff]  ;;  %v383_v22 = vld [vmem:[#allocation2 + $0x2f0] sm:$0xff]  ;;  %1942 = vrot.lane.b32.xlu0 %v11313_v14, %s8881_s30 }
 0x289   :  { %v11318_v15 = vsel %vm1433_vm6, %v11142_v10, %v16573_v55  ;;  %v11323_v27 = vsel %vm1433_vm6, %v11147_v62, %v16574_v32  ;;  %16575 = vst [vmem:[#allocation63_spill] sm:$0xff] %v11325_v26  ;;  %v11328_v37 = vsel %vm445_vm2, %v1768_v59, %v1770_v60  ;;  %v1775_v45 = vrot.slane %v381_v9, 1  ;;  %v16577_v46 = vld [vmem:[#allocation89_spill] sm:$0xff]  ;;  %v16579_v62 = vld [vmem:[#allocation6_spill] sm:$0xff]  ;;  %v16580_v60 = vld [vmem:[#allocation7_spill] sm:$0xff]  ;;  %v11350_v9 = vpop.permute.xlu1 %1267 }
 0x28a   :  { %16576 = vst [vmem:[#allocation64_spill] sm:$0xff] %v11328_v37  ;;  %v11333_v18 = vsel %vm1433_vm6, %v11157_v1, %v16577_v46  ;;  %v16578_v10 = vld [vmem:[#allocation5_spill] sm:$0xff]  ;;  %v11343_v32 = vsel %vm1433_vm6, %v11167_v23, %v16579_v62  ;;  %v11348_v59 = vsel %vm1433_vm6, %v11172_v21, %v16580_v60  ;;  %16581 = vst [vmem:[#allocation153_spill] sm:$0xff] %v11350_v9  ;;  %v384_v11 = vld [vmem:[#allocation2 + $0x2f8] sm:$0x3]  ;;  %1944 = vrot.lane.b32.xlu1 %v11328_v37, %s8881_s30 }
 0x28b   :  { %v11338_v55 = vsel %vm1433_vm6, %v11162_v3, %v16578_v10  ;;  %v16582_v1 = vld [vmem:[#allocation93_spill] sm:$0xff]  ;;  %v16583_v26 = vld [vmem:[#allocation94_spill] sm:$0xff]  ;;  %v16584_v10 = vld [vmem:[#allocation95_spill] sm:$0xff]  ;;  %v11365_v62 = vsel %vm445_vm2, %v1772_v31, %v1773_v52  ;;  %v1778_v60 = vrot.slane %v383_v22, 1  ;;  %v11374_v14 = vsel %vm445_vm2, %v1773_v52, %v1775_v45 }
 0x28c   :  { %v1467_v46 = vsel %vm1466_vm7, %v1434_v47, %v16582_v1  ;;  %v1468_v3 = vsel %vm1466_vm7, %v1435_v50, %v16583_v26  ;;  %v1469_v33 = vsel %vm1466_vm7, %v1436_v4, %v16584_v10  ;;  %v16585_v23 = vld [vmem:[#allocation96_spill] sm:$0xff]  ;;  %v1777_v47 = vrot.slane %v382_v17, 1  ;;  %v16586_v1 = vld [vmem:[#allocation27_spill] sm:$0xff]  ;;  %v11371_v10 = vpop.permute.xlu0 %1269  ;;  %v386_v9 = vld [vmem:[#allocation2 + $0x308] sm:$0xff]  ;;  %1946 = vrot.lane.b32.xlu0 %v11365_v62, %s8881_s30 }
 0x28d   :  { %v1470_v21 = vsel %vm1466_vm7, %v1437_v39, %v16585_v23  ;;  %v1471_v50 = vsel %vm1466_vm7, %v1438_v38, %v16586_v1  ;;  %v16587_v26 = vld [vmem:[#allocation119_spill] sm:$0xff]  ;;  %v1780_v39 = vrot.slane %v384_v11, 1  ;;  %v385_v23 = vld [vmem:[#allocation2 + $0x300] sm:$0xff]  ;;  %v11382_v17 = vpop.permute.xlu1 %1271  ;;  %v16590_v1 = vld [vmem:[#allocation97_spill] sm:$0xff] }
 0x28e   :  { %v1500_v4 = vsel %vm1499_vm8, %v1467_v46, %v16587_v26  ;;  %v16588_v37 = vld [vmem:[#allocation28_spill] sm:$0xff]  ;;  %v387_v46 = vld [vmem:[#allocation2 + $0x310] sm:$0x3]  ;;  %v1473_v52 = vsel %vm1466_vm7, %v1440_v54, %v16590_v1  ;;  %1948 = vrot.lane.b32.xlu1 %v11374_v14, %s8881_s30  ;;  %v388_v26 = vld [vmem:[#allocation2 + $0x318] sm:$0xff] }
 0x28f   :  { %v1472_v31 = vsel %vm1466_vm7, %v1439_v24, %v16588_v37  ;;  %v16589_v58 = vld [vmem:[#allocation120_spill] sm:$0xff]  ;;  %v1533_v38 = vsel %vm1532_vm9, %v1500_v4, %v10521_v0  ;;  %v11395_v0 = vsel %vm445_vm2, %v1777_v47, %v1778_v60  ;;  %v1783_v24 = vrot.slane %v386_v9, 1 }
 0x290   :  { %v1501_v22 = vsel %vm1499_vm8, %v1468_v3, %v16589_v58  ;;  %v1566_v45 = vsel %vm1565_vm4, %v1533_v38, %v10783_v49  ;;  %v1782_v58 = vrot.slane %v385_v23, 1  ;;  %v1306_v49 = vpop.permute.xlu0 %1305  ;;  %v11402_v37 = vsel %vm445_vm2, %v1778_v60, %v1780_v39  ;;  %v389_v4 = vld [vmem:[#allocation2 + $0x320] sm:$0xff]  ;;  %v16592_v38 = vld [vmem:[#allocation122_spill] sm:$0xff]  ;;  %1950 = vrot.lane.b32.xlu0 %v11395_v0, %s8881_s30 }
 0x291   :  { %v1534_v11 = vsel %vm1532_vm9, %v1501_v22, %v10523_v5  ;;  %v1599_v5 = vsel %vm1598_vm10, %v1566_v45, %v10922_v2  ;;  %v1785_v3 = vrot.slane %v387_v46, 1  ;;  %v16591_v22 = vld [vmem:[#allocation121_spill] sm:$0xff]  ;;  %v1503_v23 = vsel %vm1499_vm8, %v1470_v21, %v16592_v38 }
 0x292   :  { %v1567_v54 = vsel %vm1565_vm4, %v1534_v11, %v10790_v42  ;;  %v1502_v47 = vsel %vm1499_vm8, %v1469_v33, %v16591_v22  ;;  %v1308_v42 = vpop.permute.xlu1 %1307  ;;  %v1632_v1 = vsel %vm1631_vm11, %v1599_v5, %v1306_v49  ;;  %v390_v2 = vld [vmem:[#allocation2 + $0x328] sm:$0x3]  ;;  %v1536_v39 = vsel %vm1532_vm9, %v1503_v23, %v10531_v63  ;;  %1952 = vrot.lane.b32.xlu1 %v11402_v37, %s8881_s30  ;;  %v16593_v5 = vld [vmem:[#allocation123_spill] sm:$0xff]  ;;  %v16594_v22 = vld [vmem:[#allocation124_spill] sm:$0xff] }
 0x293   :  { %v1600_v9 = vsel %vm1598_vm10, %v1567_v54, %v10924_v29  ;;  %v1535_v60 = vsel %vm1532_vm9, %v1502_v47, %v10529_v57  ;;  %7870 = vmatprep.mubr.msk.f32.mxu0 %vm2934_vm12, %v1632_v1  ;;  %v11425_v57 = vsel %vm445_vm2, %v1782_v58, %v1783_v24  ;;  %v1787_v33 = vrot.slane %v388_v26, 1  ;;  %v16598_v1 = vld [vmem:[#allocation125_spill] sm:$0xff] }
 0x294   :  { %v1633_v46 = vsel %vm1631_vm11, %v1600_v9, %v1308_v42  ;;  %v1568_v29 = vsel %vm1565_vm4, %v1535_v60, %v10801_v34  ;;  %v1788_v63 = vrot.slane %v389_v4, 1  ;;  %v1569_v21 = vsel %vm1565_vm4, %v1536_v39, %v10804_v56  ;;  %v1310_v45 = vpop.permute.xlu0 %1309  ;;  %1954 = vrot.lane.b32.xlu0 %v11425_v57, %s8881_s30  ;;  %v16597_v9 = vld [vmem:[#allocation98_spill] sm:$0xff] }
 0x295   :  { %7871 = vmatmul.mubr.msk.f32.vlgmr.msra.gmra.mxu0 %vm2934_vm12, %v1633_v46  ;;  %v1601_v11 = vsel %vm1598_vm10, %v1568_v29, %v10932_v43  ;;  %v11432_v54 = vsel %vm445_vm2, %v1783_v24, %v1785_v3  ;;  %v1790_v34 = vrot.slane %v390_v2, 1  ;;  %v1504_v49 = vsel %vm1499_vm8, %v1471_v50, %v16593_v5 }
 0x296   :  { %v1505_v58 = vsel %vm1499_vm8, %v1472_v31, %v16594_v22  ;;  %v1602_v26 = vsel %vm1598_vm10, %v1569_v21, %v10939_v6  ;;  %v1634_v4 = vsel %vm1631_vm11, %v1601_v11, %v1310_v45  ;;  %v1312_v56 = vpop.permute.xlu1 %1311  ;;  %v1537_v43 = vsel %vm1532_vm9, %v1504_v49, %v10547_v12  ;;  %1956 = vrot.lane.b32.xlu1 %v11432_v54, %s8881_s30  ;;  %v16602_v11 = vld [vmem:[#allocation129_spill] sm:$0xff] }
 0x297   :  { %v1538_v24 = vsel %vm1532_vm9, %v1505_v58, %v10551_v35  ;;  %v1635_v3 = vsel %vm1631_vm11, %v1602_v26, %v1312_v56  ;;  %7873 = vmatprep.mubr.msk.f32.mxu0 %vm2934_vm12, %v1634_v4  ;;  %v1570_v50 = vsel %vm1565_vm4, %v1537_v43, %v10811_v28  ;;  %v11455_v12 = vsel %vm445_vm2, %v1787_v33, %v1788_v63  ;;  %v16607_v4 = vld [vmem:[#allocation128_spill] sm:$0xff]  ;;  %v16608_v43 = vld [vmem:[#allocation165_spill] sm:$0xff] }
 0x298   :  { %16595 = vst [vmem:[#allocation65_spill] sm:$0xff] %v11455_v12  ;;  %v1792_v35 = vrot.slane %v10935_v44, 2  ;;  %v1793_v6 = vrot.slane %v10937_v13, 2  ;;  %v1571_v31 = vsel %vm1565_vm4, %v1538_v24, %v10814_v19  ;;  %v1603_v47 = vsel %vm1598_vm10, %v1570_v50, %v10950_v40  ;;  %v1314_v38 = vpop.permute.xlu0 %1313  ;;  %v16599_v40 = vld [vmem:[#allocation126_spill] sm:$0xff]  ;;  %1958 = vrot.lane.b32.xlu0 %v11455_v12, %s8881_s30 }
 0x299   :  { %7874 = vmatmul.mubr.msk.f32.gmra.mxu0 %vm2934_vm12, %v1635_v3  ;;  %v11464_v28 = vsel %vm445_vm2, %v1788_v63, %v1790_v34  ;;  %v1795_v23 = vrot.slane %v10941_v53, 2  ;;  %v1474_v42 = vsel %vm1466_vm7, %v11291_v8, %v16597_v9  ;;  %v1506_v44 = vsel %vm1499_vm8, %v1473_v52, %v16598_v1  ;;  %v16600_v52 = vld [vmem:[#allocation99_spill] sm:$0xff]  ;;  %v16601_v63 = vld [vmem:[#allocation100_spill] sm:$0xff]  ;;  %v16603_v34 = vld [vmem:[#allocation198_spill] sm:$0xff] }
 0x29a   :  { %16596 = vst [vmem:[#allocation66_spill] sm:$0xff] %v11464_v28  ;;  %v1604_v13 = vsel %vm1598_vm10, %v1571_v31, %v10958_v48  ;;  %v1636_v19 = vsel %vm1631_vm11, %v1603_v47, %v1314_v38  ;;  %v1316_v2 = vpop.permute.xlu1 %1315  ;;  %v1507_v60 = vsel %vm1499_vm8, %v1474_v42, %v16599_v40  ;;  %v1539_v39 = vsel %vm1532_vm9, %v1506_v44, %v10564_v30  ;;  %v16609_v3 = vld [vmem:[#allocation25_spill] sm:$0xff] }
 0x29b   :  { %v1637_v53 = vsel %vm1631_vm11, %v1604_v13, %v1316_v2  ;;  %7876 = vmatprep.mubr.msk.f32.mxu0 %vm2934_vm12, %v1636_v19  ;;  %v1540_v8 = vsel %vm1532_vm9, %v1507_v60, %v10567_v36  ;;  %v1572_v48 = vsel %vm1565_vm4, %v1539_v39, %v10818_v51  ;;  %1960 = vrot.lane.b32.xlu1 %v11464_v28, %s8881_s30  ;;  %v16612_v47 = vld [vmem:[#allocation101_spill] sm:$0xff]  ;;  %v16615_v13 = vld [vmem:[#allocation102_spill] sm:$0xff]  ;;  %v16617_v60 = vld [vmem:[#allocation204_spill] sm:$0xff] }
 0x29c   :  { %v1794_v30 = vsel %vm526_vm3, %v1792_v35, %v1793_v6  ;;  %v1475_v46 = vsel %vm1466_vm7, %v11296_v61, %v16600_v52  ;;  %v1573_v29 = vsel %vm1565_vm4, %v1540_v8, %v10820_v20  ;;  %v1605_v36 = vsel %vm1598_vm10, %v1572_v48, %v10967_v16  ;;  %v1318_v33 = vpop.permute.xlu0 %1317  ;;  %v16604_v20 = vld [vmem:[#allocation130_spill] sm:$0xff]  ;;  %v16605_v16 = vld [vmem:[#allocation164_spill] sm:$0xff]  ;;  %v16610_v35 = vld [vmem:[#allocation9_spill] sm:$0xff] }
 0x29d   :  { %7877 = vmatmul.mubr.msk.f32.gmra.mxu0 %vm2934_vm12, %v1637_v53  ;;  %v1796_v51 = vsel %vm526_vm3, %v1793_v6, %v1795_v23  ;;  %v1476_v21 = vsel %vm1466_vm7, %v11301_v25, %v16601_v63  ;;  %v1508_v45 = vsel %vm1499_vm8, %v1475_v46, %v16602_v11  ;;  %v1606_v5 = vsel %vm1598_vm10, %v1573_v29, %v16603_v34  ;;  %v16606_v25 = vld [vmem:[#allocation8_spill] sm:$0xff]  ;;  %v16611_v6 = vld [vmem:[#allocation51_spill] sm:$0xff]  ;;  %v16613_v23 = vld [vmem:[#allocation26_spill] sm:$0xff] }
 0x29e   :  { %v1638_v61 = vsel %vm1631_vm11, %v1605_v36, %v1318_v33  ;;  %v1320_v49 = vpop.permute.xlu1 %1319  ;;  %v1509_v22 = vsel %vm1499_vm8, %v1476_v21, %v16604_v20  ;;  %v1541_v58 = vsel %vm1532_vm9, %v1508_v45, %v16605_v16  ;;  %1994 = vrot.lane.b32.xlu0 %v1794_v30, %s8882_s24  ;;  %v11517_v56 = vsel %vm1433_vm6, %v16607_v4, %v16606_v25  ;;  %v16614_v42 = vld [vmem:[#allocation201_spill] sm:$0xff]  ;;  %v16618_v8 = vld [vmem:[#allocation134_spill] sm:$0xff]  ;;  %v16622_v33 = vld [vmem:[#allocation183_spill] sm:$0xff] }
 0x29f   :  { %v1639_v26 = vsel %vm1631_vm11, %v1606_v5, %v1320_v49  ;;  %7879 = vmatprep.mubr.msk.f32.mxu0 %vm2934_vm12, %v1638_v61  ;;  %v1542_v24 = vsel %vm1532_vm9, %v1509_v22, %v16608_v43  ;;  %v1574_v50 = vsel %vm1565_vm4, %v1541_v58, %v16609_v3  ;;  %1996 = vrot.lane.b32.xlu1 %v1796_v51, %s8882_s24  ;;  %v16616_v2 = vld [vmem:[#allocation133_spill] sm:$0xff]  ;;  %v16619_v30 = vld [vmem:[#allocation166_spill] sm:$0xff]  ;;  %v16623_v63 = vld [vmem:[#allocation47_spill] sm:$0xff] }
 0x2a0   :  { %v11528_v31 = vsel %vm1433_vm6, %v16611_v6, %v16610_v35  ;;  %v1477_v38 = vsel %vm1466_vm7, %v11308_v41, %v16612_v47  ;;  %v1575_v9 = vsel %vm1565_vm4, %v1542_v24, %v16613_v23  ;;  %v1607_v1 = vsel %vm1598_vm10, %v1574_v50, %v16614_v42  ;;  %v1322_v44 = vpop.permute.xlu0 %1321  ;;  %v16620_v29 = vld [vmem:[#allocation45_spill] sm:$0xff]  ;;  %v16624_v45 = vld [vmem:[#allocation10_spill] sm:$0xff]  ;;  %v16625_v34 = vld [vmem:[#allocation131_spill] sm:$0xff] }
 0x2a1   :  { %7880 = vmatmul.mubr.msk.f32.gmra.mxu0 %vm2934_vm12, %v1639_v26  ;;  %v1478_v19 = vsel %vm1466_vm7, %v11318_v15, %v16615_v13  ;;  %v1510_v40 = vsel %vm1499_vm8, %v1477_v38, %v16616_v2  ;;  %v1608_v39 = vsel %vm1598_vm10, %v1575_v9, %v16617_v60  ;;  %v1640_v53 = vsel %vm1631_vm11, %v1607_v1, %v1322_v44  ;;  %v16621_v15 = vld [vmem:[#allocation167_spill] sm:$0xff]  ;;  %v16626_v61 = vld [vmem:[#allocation29_spill] sm:$0xff]  ;;  %v16627_v20 = vld [vmem:[#allocation184_spill] sm:$0xff] }
 0x2a2   :  { %v1324_v41 = vpop.permute.xlu1 %1323  ;;  %v1511_v48 = vsel %vm1499_vm8, %v1478_v19, %v16618_v8  ;;  %v1543_v52 = vsel %vm1532_vm9, %v1510_v40, %v16619_v30  ;;  %2090 = vrot.lane.b32.xlu0 %v16620_v29, %s8883_s25  ;;  %7882 = vmatprep.mubr.msk.f32.mxu0 %vm2934_vm12, %v1640_v53  ;;  %v1797_v21 = vrot.slane %v16620_v29, 2  ;;  %v1798_v11 = vrot.slane %v16623_v63, 2  ;;  %v16628_v16 = vld [vmem:[#allocation206_spill] sm:$0xff]  ;;  %v16629_v25 = vld [vmem:[#allocation103_spill] sm:$0xff]  ;;  %v16630_v43 = vld [vmem:[#allocation137_spill] sm:$0xff] }
 0x2a3   :  { %v1641_v46 = vsel %vm1631_vm11, %v1608_v39, %v1324_v41  ;;  %v1544_v36 = vsel %vm1532_vm9, %v1511_v48, %v16621_v15  ;;  %v1576_v51 = vsel %vm1565_vm4, %v1543_v52, %v16622_v33  ;;  %2092 = vrot.lane.b32.xlu1 %v16623_v63, %s8883_s25  ;;  %v11565_v5 = vsel %vm1433_vm6, %v16625_v34, %v16624_v45  ;;  %v16631_v3 = vld [vmem:[#allocation208_spill] sm:$0xff]  ;;  %v16632_v6 = vld [vmem:[#allocation138_spill] sm:$0xff]  ;;  %v16636_v44 = vld [vmem:[#allocation185_spill] sm:$0xff] }
 0x2a4   :  { %v1479_v49 = vsel %vm1466_vm7, %v11323_v27, %v16626_v61  ;;  %v1577_v22 = vsel %vm1565_vm4, %v1544_v36, %v16627_v20  ;;  %v1609_v58 = vsel %vm1598_vm10, %v1576_v51, %v16628_v16  ;;  %v1326_v26 = vpop.permute.xlu0 %1325  ;;  %v1480_v4 = vsel %vm1466_vm7, %v11333_v18, %v16629_v25  ;;  %v16633_v38 = vld [vmem:[#allocation168_spill] sm:$0xff]  ;;  %v16635_v18 = vld [vmem:[#allocation169_spill] sm:$0xff]  ;;  %v16637_v19 = vld [vmem:[#allocation202_spill] sm:$0xff] }
 0x2a5   :  { %7883 = vmatmul.mubr.msk.f32.gmra.mxu0 %vm2934_vm12, %v1641_v46  ;;  %v1512_v24 = vsel %vm1499_vm8, %v1479_v49, %v16630_v43  ;;  %v1610_v50 = vsel %vm1598_vm10, %v1577_v22, %v16631_v3  ;;  %v1642_v35 = vsel %vm1631_vm11, %v1609_v58, %v1326_v26  ;;  %v1513_v47 = vsel %vm1499_vm8, %v1480_v4, %v16632_v6  ;;  %v16634_v42 = vld [vmem:[#allocation200_spill] sm:$0xff]  ;;  %v16638_v40 = vld [vmem:[#allocation195_spill] sm:$0xff]  ;;  %v16641_v8 = vld [vmem:[#allocation30_spill] sm:$0xff] }
 0x2a6   :  { %v1328_v27 = vpop.permute.xlu1 %1327  ;;  %v1545_v23 = vsel %vm1532_vm9, %v1512_v24, %v16633_v38  ;;  %2186 = vrot.lane.b32.xlu0 %v16634_v42, %s8884_s26  ;;  %7885 = vmatprep.mubr.msk.f32.mxu0 %vm2934_vm12, %v1642_v35  ;;  %v1546_v1 = vsel %vm1532_vm9, %v1513_v47, %v16635_v18  ;;  %v1799_v2 = vsel %vm526_vm3, %v1797_v21, %v1798_v11  ;;  %v1800_v60 = vrot.slane %v16638_v40, 2  ;;  %v16639_v39 = vld [vmem:[#allocation11_spill] sm:$0xff]  ;;  %v16640_v53 = vld [vmem:[#allocation52_spill] sm:$0xff]  ;;  %v16642_v30 = vld [vmem:[#allocation186_spill] sm:$0xff] }
 0x2a7   :  { %v1643_v9 = vsel %vm1631_vm11, %v1610_v50, %v1328_v27  ;;  %v1578_v13 = vsel %vm1565_vm4, %v1545_v23, %v16636_v44  ;;  %2188 = vrot.lane.b32.xlu1 %v16637_v19, %s8884_s26  ;;  %v1454_v41 = vsel %vm1433_vm6, %v16640_v53, %v16639_v39  ;;  %v1481_v48 = vsel %vm1466_vm7, %v11338_v55, %v16641_v8  ;;  %v16643_v46 = vld [vmem:[#allocation210_spill] sm:$0xff]  ;;  %v16644_v36 = vld [vmem:[#allocation104_spill] sm:$0xff]  ;;  %v16645_v51 = vld [vmem:[#allocation141_spill] sm:$0xff] }
 0x2a8   :  { %v1579_v52 = vsel %vm1565_vm4, %v1546_v1, %v16642_v30  ;;  %v1611_v29 = vsel %vm1598_vm10, %v1578_v13, %v16643_v46  ;;  %v1330_v15 = vpop.permute.xlu0 %1329  ;;  %v1482_v33 = vsel %vm1466_vm7, %v11343_v32, %v16644_v36  ;;  %v1514_v63 = vsel %vm1499_vm8, %v1481_v48, %v16645_v51  ;;  %v16646_v21 = vld [vmem:[#allocation212_spill] sm:$0xff]  ;;  %v16647_v61 = vld [vmem:[#allocation142_spill] sm:$0xff]  ;;  %v16649_v32 = vld [vmem:[#allocation171_spill] sm:$0xff] }
 0x2a9   :  { %7886 = vmatmul.mubr.msk.f32.gmra.mxu0 %vm2934_vm12, %v1643_v9  ;;  %v1612_v45 = vsel %vm1598_vm10, %v1579_v52, %v16646_v21  ;;  %v1644_v34 = vsel %vm1631_vm11, %v1611_v29, %v1330_v15  ;;  %v1515_v49 = vsel %vm1499_vm8, %v1482_v33, %v16647_v61  ;;  %v16648_v20 = vld [vmem:[#allocation170_spill] sm:$0xff]  ;;  %v16650_v26 = vld [vmem:[#allocation31_spill] sm:$0xff]  ;;  %v1801_v4 = vsel %vm526_vm3, %v1798_v11, %v1800_v60  ;;  %v16651_v43 = vld [vmem:[#allocation12_spill] sm:$0xff] }
 0x2aa   :  { %v1332_v55 = vpop.permute.xlu1 %1331  ;;  %v1547_v22 = vsel %vm1532_vm9, %v1514_v63, %v16648_v20  ;;  %2282 = vrot.lane.b32.xlu0 %v1799_v2, %s8885_s27  ;;  %7888 = vmatprep.mubr.msk.f32.mxu0 %vm2934_vm12, %v1644_v34  ;;  %v1548_v58 = vsel %vm1532_vm9, %v1515_v49, %v16649_v32  ;;  %v16652_v24 = vld [vmem:[#allocation132_spill] sm:$0xff]  ;;  %v16653_v50 = vld [vmem:[#allocation105_spill] sm:$0xff]  ;;  %v16654_v27 = vld [vmem:[#allocation187_spill] sm:$0xff] }
 0x2ab   :  { %v1645_v16 = vsel %vm1631_vm11, %v1612_v45, %v1332_v55  ;;  %v1580_v25 = vsel %vm1565_vm4, %v1547_v22, %v16650_v26  ;;  %1998 = vrot.lane.b32.xlu1 %v1799_v2, %s8882_s24  ;;  %v1455_v3 = vsel %vm1433_vm6, %v16652_v24, %v16651_v43  ;;  %v1483_v35 = vsel %vm1466_vm7, %v11348_v59, %v16653_v50  ;;  %v16655_v47 = vld [vmem:[#allocation214_spill] sm:$0xff]  ;;  %v16657_v11 = vld [vmem:[#allocation145_spill] sm:$0xff]  ;;  %v16658_v1 = vld [vmem:[#allocation216_spill] sm:$0xff] }
 0x2ac   :  { %v1581_v6 = vsel %vm1565_vm4, %v1548_v58, %v16654_v27  ;;  %v1613_v38 = vsel %vm1598_vm10, %v1580_v25, %v16655_v47  ;;  %v1334_v23 = vpop.permute.xlu0 %1333  ;;  %v16656_v9 = vld [vmem:[#allocation106_spill] sm:$0xff]  ;;  %v1516_v18 = vsel %vm1499_vm8, %v1483_v35, %v16657_v11  ;;  %v16660_v40 = vld [vmem:[#allocation172_spill] sm:$0xff]  ;;  %v16662_v53 = vld [vmem:[#allocation135_spill] sm:$0xff] }
 0x2ad   :  { %7889 = vmatmul.mubr.msk.f32.gmra.mxu0 %vm2934_vm12, %v1645_v16  ;;  %v1484_v42 = vsel %vm1466_vm7, %v11517_v56, %v16656_v9  ;;  %v1614_v44 = vsel %vm1598_vm10, %v1581_v6, %v16658_v1  ;;  %v1646_v13 = vsel %vm1631_vm11, %v1613_v38, %v1334_v23  ;;  %v16659_v19 = vld [vmem:[#allocation146_spill] sm:$0xff]  ;;  %v1549_v60 = vsel %vm1532_vm9, %v1516_v18, %v16660_v40  ;;  %v16661_v56 = vld [vmem:[#allocation13_spill] sm:$0xff]  ;;  %v16664_v52 = vld [vmem:[#allocation32_spill] sm:$0xff] }
 0x2ae   :  { %v1336_v59 = vpop.permute.xlu1 %1335  ;;  %v1517_v2 = vsel %vm1499_vm8, %v1484_v42, %v16659_v19  ;;  %2284 = vrot.lane.b32.xlu0 %v1801_v4, %s8885_s27  ;;  %7891 = vmatprep.mubr.msk.f32.mxu0 %vm2934_vm12, %v1646_v13  ;;  %v1456_v8 = vsel %vm1433_vm6, %v16662_v53, %v16661_v56  ;;  %v16663_v48 = vld [vmem:[#allocation173_spill] sm:$0xff]  ;;  %v1582_v46 = vsel %vm1565_vm4, %v1549_v60, %v16664_v52  ;;  %v16665_v29 = vld [vmem:[#allocation196_spill] sm:$0xff]  ;;  %v16666_v15 = vld [vmem:[#allocation14_spill] sm:$0xff] }
 0x2af   :  { %v1647_v39 = vsel %vm1631_vm11, %v1614_v44, %v1336_v59  ;;  %v1550_v30 = vsel %vm1532_vm9, %v1517_v2, %v16663_v48  ;;  %2378 = vrot.lane.b32.xlu1 %v16665_v29, %s8886_s28  ;;  %v16667_v36 = vld [vmem:[#allocation54_spill] sm:$0xff]  ;;  %v16668_v51 = vld [vmem:[#allocation107_spill] sm:$0xff]  ;;  %v16669_v21 = vld [vmem:[#allocation188_spill] sm:$0xff] }
 0x2b0   :  { %v1457_v33 = vsel %vm1433_vm6, %v16667_v36, %v16666_v15  ;;  %v1485_v63 = vsel %vm1466_vm7, %v11528_v31, %v16668_v51  ;;  %v1583_v45 = vsel %vm1565_vm4, %v1550_v30, %v16669_v21  ;;  %v16670_v34 = vld [vmem:[#allocation218_spill] sm:$0xff]  ;;  %v1338_v61 = vpop.permute.xlu0 %1337  ;;  %v16671_v49 = vld [vmem:[#allocation108_spill] sm:$0xff]  ;;  %v16674_v25 = vld [vmem:[#allocation149_spill] sm:$0xff] }
 0x2b1   :  { %7892 = vmatmul.mubr.msk.f32.gmra.mxu0 %vm2934_vm12, %v1647_v39  ;;  %v1615_v55 = vsel %vm1598_vm10, %v1582_v46, %v16670_v34  ;;  %v1486_v20 = vsel %vm1466_vm7, %v11565_v5, %v16671_v49  ;;  %v16672_v22 = vld [vmem:[#allocation148_spill] sm:$0xff]  ;;  %v16675_v24 = vld [vmem:[#allocation174_spill] sm:$0xff]  ;;  %v16676_v5 = vld [vmem:[#allocation15_spill] sm:$0xff] }
 0x2b2   :  { %v1518_v16 = vsel %vm1499_vm8, %v1485_v63, %v16672_v22  ;;  %v16673_v32 = vld [vmem:[#allocation220_spill] sm:$0xff]  ;;  %v1648_v26 = vsel %vm1631_vm11, %v1615_v55, %v1338_v61  ;;  %v1340_v31 = vpop.permute.xlu1 %1339  ;;  %v1519_v43 = vsel %vm1499_vm8, %v1486_v20, %v16674_v25  ;;  %2000 = vrot.lane.b32.xlu0 %v1801_v4, %s8882_s24  ;;  %v16677_v27 = vld [vmem:[#allocation139_spill] sm:$0xff]  ;;  %v16679_v23 = vld [vmem:[#allocation33_spill] sm:$0xff] }
 0x2b3   :  { %v1616_v58 = vsel %vm1598_vm10, %v1583_v45, %v16673_v32  ;;  %v1551_v50 = vsel %vm1532_vm9, %v1518_v16, %v16675_v24  ;;  %7894 = vmatprep.mubr.msk.f32.mxu0 %vm2934_vm12, %v1648_v26  ;;  %v1458_v6 = vsel %vm1433_vm6, %v16677_v27, %v16676_v5  ;;  %v16678_v47 = vld [vmem:[#allocation175_spill] sm:$0xff]  ;;  %2094 = vrot.lane.b32.xlu1 %v16665_v29, %s8883_s25  ;;  %v16680_v42 = vld [vmem:[#allocation16_spill] sm:$0xff]  ;;  %v16682_v18 = vld [vmem:[#allocation109_spill] sm:$0xff] }
 0x2b4   :  { %v1649_v35 = vsel %vm1631_vm11, %v1616_v58, %v1340_v31  ;;  %v1552_v38 = vsel %vm1532_vm9, %v1519_v43, %v16678_v47  ;;  %v1584_v9 = vsel %vm1565_vm4, %v1551_v50, %v16679_v23  ;;  %v16681_v11 = vld [vmem:[#allocation56_spill] sm:$0xff]  ;;  %v1487_v1 = vsel %vm1466_vm7, %v1454_v41, %v16682_v18  ;;  %v16683_v44 = vld [vmem:[#allocation189_spill] sm:$0xff]  ;;  %v16684_v59 = vld [vmem:[#allocation222_spill] sm:$0xff]  ;;  %v1342_v2 = vpop.permute.xlu0 %1341 }
 0x2b5   :  { %7895 = vmatmul.mubr.msk.f32.gmra.mxu0 %vm2934_vm12, %v1649_v35  ;;  %v1459_v4 = vsel %vm1433_vm6, %v16681_v11, %v16680_v42  ;;  %v1585_v13 = vsel %vm1565_vm4, %v1552_v38, %v16683_v44  ;;  %v1617_v19 = vsel %vm1598_vm10, %v1584_v9, %v16684_v59  ;;  %v16685_v40 = vld [vmem:[#allocation110_spill] sm:$0xff]  ;;  %v16686_v39 = vld [vmem:[#allocation151_spill] sm:$0xff]  ;;  %v16687_v53 = vld [vmem:[#allocation224_spill] sm:$0xff] }
 0x2b6   :  { %v1488_v60 = vsel %vm1466_vm7, %v1455_v3, %v16685_v40  ;;  %v1520_v56 = vsel %vm1499_vm8, %v1487_v1, %v16686_v39  ;;  %v1618_v48 = vsel %vm1598_vm10, %v1585_v13, %v16687_v53  ;;  %v1650_v30 = vsel %vm1631_vm11, %v1617_v19, %v1342_v2  ;;  %v1344_v52 = vpop.permute.xlu1 %1343  ;;  %v16688_v41 = vld [vmem:[#allocation152_spill] sm:$0xff]  ;;  %v16690_v63 = vld [vmem:[#allocation197_spill] sm:$0xff]  ;;  %v16691_v3 = vld [vmem:[#allocation111_spill] sm:$0xff] }
 0x2b7   :  { %v1521_v46 = vsel %vm1499_vm8, %v1488_v60, %v16688_v41  ;;  %v16689_v15 = vld [vmem:[#allocation176_spill] sm:$0xff]  ;;  %v1651_v51 = vsel %vm1631_vm11, %v1618_v48, %v1344_v52  ;;  %2380 = vrot.lane.b32.xlu0 %v16690_v63, %s8886_s28  ;;  %7897 = vmatprep.mubr.msk.f32.mxu0 %vm2934_vm12, %v1650_v30  ;;  %v1489_v21 = vsel %vm1466_vm7, %v1456_v8, %v16691_v3  ;;  %v16692_v45 = vld [vmem:[#allocation177_spill] sm:$0xff]  ;;  %v16693_v55 = vld [vmem:[#allocation34_spill] sm:$0xff]  ;;  %v1802_v8 = vrot.slane %v16665_v29, 2 }
 0x2b8   :  { %v1553_v36 = vsel %vm1532_vm9, %v1520_v56, %v16689_v15  ;;  %v1554_v34 = vsel %vm1532_vm9, %v1521_v46, %v16692_v45  ;;  %v16694_v49 = vld [vmem:[#allocation205_spill] sm:$0xff]  ;;  %v16695_v20 = vld [vmem:[#allocation190_spill] sm:$0xff]  ;;  %v1346_v58 = vpop.permute.xlu0 %1345  ;;  %v1803_v26 = vrot.slane %v16690_v63, 2  ;;  %v16697_v31 = vld [vmem:[#allocation112_spill] sm:$0xff] }
 0x2b9   :  { %v1586_v61 = vsel %vm1565_vm4, %v1553_v36, %v16693_v55  ;;  %2474 = vrot.lane.b32.xlu1 %v16694_v49, %s8887_s23  ;;  %7898 = vmatmul.mubr.msk.f32.gmra.mxu0 %vm2934_vm12, %v1651_v51  ;;  %v1587_v22 = vsel %vm1565_vm4, %v1554_v34, %v16695_v20  ;;  %v16696_v16 = vld [vmem:[#allocation42_spill] sm:$0xff]  ;;  %v1490_v25 = vsel %vm1466_vm7, %v1457_v33, %v16697_v31  ;;  %v16700_v47 = vld [vmem:[#allocation155_spill] sm:$0xff]  ;;  %v16702_v33 = vld [vmem:[#allocation17_spill] sm:$0xff] }
 0x2ba   :  { %v1619_v32 = vsel %vm1598_vm10, %v1586_v61, %v16696_v16  ;;  %v16698_v43 = vld [vmem:[#allocation154_spill] sm:$0xff]  ;;  %v1348_v27 = vpop.permute.xlu1 %1347  ;;  %v1523_v38 = vsel %vm1499_vm8, %v1490_v25, %v16700_v47  ;;  %v16703_v42 = vld [vmem:[#allocation140_spill] sm:$0xff]  ;;  %v16704_v18 = vld [vmem:[#allocation179_spill] sm:$0xff]  ;;  %v11772_v53 = vsel %vm526_vm3, %v1802_v8, %v1803_v26 }
 0x2bb   :  { %v1522_v24 = vsel %vm1499_vm8, %v1489_v21, %v16698_v43  ;;  %v16699_v50 = vld [vmem:[#allocation46_spill] sm:$0xff]  ;;  %v1652_v5 = vsel %vm1631_vm11, %v1619_v32, %v1346_v58  ;;  %2096 = vrot.lane.b32.xlu0 %v16690_v63, %s8883_s25  ;;  %v1460_v11 = vsel %vm1433_vm6, %v16703_v42, %v16702_v33  ;;  %v1556_v1 = vsel %vm1532_vm9, %v1523_v38, %v16704_v18  ;;  %v16705_v44 = vld [vmem:[#allocation35_spill] sm:$0xff]  ;;  %v16706_v59 = vld [vmem:[#allocation113_spill] sm:$0xff] }
 0x2bc   :  { %v1620_v35 = vsel %vm1598_vm10, %v1587_v22, %v16699_v50  ;;  %v16701_v23 = vld [vmem:[#allocation178_spill] sm:$0xff]  ;;  %7900 = vmatprep.mubr.msk.f32.mxu0 %vm2934_vm12, %v1652_v5  ;;  %v1491_v19 = vsel %vm1466_vm7, %v1458_v6, %v16706_v59  ;;  %v16707_v2 = vld [vmem:[#allocation191_spill] sm:$0xff]  ;;  %v16708_v60 = vld [vmem:[#allocation49_spill] sm:$0xff]  ;;  %v1350_v56 = vpop.permute.xlu0 %1349 }
 0x2bd   :  { %v1555_v29 = vsel %vm1532_vm9, %v1522_v24, %v16701_v23  ;;  %v1653_v9 = vsel %vm1631_vm11, %v1620_v35, %v1348_v27  ;;  %2190 = vrot.lane.b32.xlu1 %v16694_v49, %s8884_s26  ;;  %v1589_v40 = vsel %vm1565_vm4, %v1556_v1, %v16707_v2  ;;  %v16709_v48 = vld [vmem:[#allocation114_spill] sm:$0xff]  ;;  %v16710_v52 = vld [vmem:[#allocation156_spill] sm:$0xff]  ;;  %v16712_v51 = vld [vmem:[#allocation157_spill] sm:$0xff] }
 0x2be   :  { %v1588_v13 = vsel %vm1565_vm4, %v1555_v29, %v16705_v44  ;;  %7901 = vmatmul.mubr.msk.f32.gmra.mxu0 %vm2934_vm12, %v1653_v9  ;;  %v1492_v30 = vsel %vm1466_vm7, %v1459_v4, %v16709_v48  ;;  %v1524_v41 = vsel %vm1499_vm8, %v1491_v19, %v16710_v52  ;;  %v16711_v46 = vld [vmem:[#allocation50_spill] sm:$0xff]  ;;  %v1352_v36 = vpop.permute.xlu1 %1351  ;;  %v16713_v3 = vld [vmem:[#allocation180_spill] sm:$0xff]  ;;  %v16714_v34 = vld [vmem:[#allocation207_spill] sm:$0xff] }
 0x2bf   :  { %v1621_v39 = vsel %vm1598_vm10, %v1588_v13, %v16708_v60  ;;  %v1622_v15 = vsel %vm1598_vm10, %v1589_v40, %v16711_v46  ;;  %v1525_v63 = vsel %vm1499_vm8, %v1492_v30, %v16712_v51  ;;  %v1557_v21 = vsel %vm1532_vm9, %v1524_v41, %v16713_v3  ;;  %2476 = vrot.lane.b32.xlu0 %v16714_v34, %s8887_s23  ;;  %v16715_v4 = vld [vmem:[#allocation18_spill] sm:$0xff]  ;;  %v16716_v61 = vld [vmem:[#allocation181_spill] sm:$0xff]  ;;  %v16717_v20 = vld [vmem:[#allocation36_spill] sm:$0xff] }
 0x2c0   :  { %v1654_v6 = vsel %vm1631_vm11, %v1621_v39, %v1350_v56  ;;  %v1655_v45 = vsel %vm1631_vm11, %v1622_v15, %v1352_v36  ;;  %v1461_v55 = vsel %vm1433_vm6, %v11233_v7, %v16715_v4  ;;  %v1558_v49 = vsel %vm1532_vm9, %v1525_v63, %v16716_v61  ;;  %v16718_v16 = vld [vmem:[#allocation199_spill] sm:$0xff]  ;;  %v16722_v43 = vld [vmem:[#allocation37_spill] sm:$0xff]  ;;  %v16723_v50 = vld [vmem:[#allocation136_spill] sm:$0xff]  ;;  %v1354_v5 = vpop.permute.xlu0 %1353 }
 0x2c1   :  { %7903 = vmatprep.mubr.msk.f32.mxu0 %vm2934_vm12, %v1654_v6  ;;  %v1590_v22 = vsel %vm1565_vm4, %v1557_v21, %v16717_v20  ;;  %2570 = vrot.lane.b32.xlu1 %v11772_v53, %s8888_s2  ;;  %v1805_v32 = vrot.slane %v16718_v16, 2  ;;  %v16719_v58 = vld [vmem:[#allocation19_spill] sm:$0xff]  ;;  %v1591_v24 = vsel %vm1565_vm4, %v1558_v49, %v16722_v43  ;;  %v16724_v27 = vld [vmem:[#allocation116_spill] sm:$0xff]  ;;  %v16725_v38 = vld [vmem:[#allocation158_spill] sm:$0xff] }
 0x2c2   :  { %7904 = vmatmul.mubr.msk.f32.gmra.mxu0 %vm2934_vm12, %v1655_v45  ;;  %v16720_v8 = vld [vmem:[#allocation143_spill] sm:$0xff]  ;;  %v1623_v35 = vsel %vm1598_vm10, %v1590_v22, %v16723_v50  ;;  %v1494_v47 = vsel %vm1466_vm7, %v1461_v55, %v16724_v27  ;;  %v16726_v29 = vld [vmem:[#allocation57_spill] sm:$0xff]  ;;  %v1356_v42 = vpop.permute.xlu1 %1355  ;;  %v16728_v1 = vld [vmem:[#allocation20_spill] sm:$0xff] }
 0x2c3   :  { %v1462_v31 = vsel %vm1433_vm6, %v16720_v8, %v16719_v58  ;;  %v16721_v25 = vld [vmem:[#allocation115_spill] sm:$0xff]  ;;  %v1624_v9 = vsel %vm1598_vm10, %v1591_v24, %v16726_v29  ;;  %v1656_v33 = vsel %vm1631_vm11, %v1623_v35, %v1354_v5  ;;  %2192 = vrot.lane.b32.xlu0 %v16714_v34, %s8884_s26  ;;  %v16729_v59 = vld [vmem:[#allocation182_spill] sm:$0xff]  ;;  %v16730_v2 = vld [vmem:[#allocation192_spill] sm:$0xff]  ;;  %v11832_v60 = vsel %vm526_vm3, %v1803_v26, %v1805_v32 }
 0x2c4   :  { %v1493_v7 = vsel %vm1466_vm7, %v1460_v11, %v16721_v25  ;;  %v16727_v11 = vld [vmem:[#allocation159_spill] sm:$0xff]  ;;  %v1657_v13 = vsel %vm1631_vm11, %v1624_v9, %v1356_v42  ;;  %7906 = vmatprep.mubr.msk.f32.mxu0 %vm2934_vm12, %v1656_v33  ;;  %v16731_v39 = vld [vmem:[#allocation90_spill] sm:$0xff]  ;;  %v16734_v41 = vld [vmem:[#allocation193_spill] sm:$0xff]  ;;  %v1358_v36 = vpop.permute.xlu0 %1357 }
 0x2c5   :  { %v1526_v23 = vsel %vm1499_vm8, %v1493_v7, %v16725_v38  ;;  %v1527_v18 = vsel %vm1499_vm8, %v1494_v47, %v16727_v11  ;;  %2286 = vrot.lane.b32.xlu1 %v11772_v53, %s8885_s27  ;;  %v16732_v56 = vld [vmem:[#allocation58_spill] sm:$0xff]  ;;  %v16735_v15 = vld [vmem:[#allocation60_spill] sm:$0xff]  ;;  %v16736_v51 = vld [vmem:[#allocation117_spill] sm:$0xff] }
 0x2c6   :  { %v1559_v44 = vsel %vm1532_vm9, %v1526_v23, %v16728_v1  ;;  %v1560_v19 = vsel %vm1532_vm9, %v1527_v18, %v16729_v59  ;;  %7907 = vmatmul.mubr.msk.f32.gmra.mxu0 %vm2934_vm12, %v1657_v13  ;;  %v1463_v48 = vsel %vm1433_vm6, %v16732_v56, %v16731_v39  ;;  %v16733_v30 = vld [vmem:[#allocation38_spill] sm:$0xff]  ;;  %v16737_v3 = vld [vmem:[#allocation160_spill] sm:$0xff]  ;;  %v1360_v4 = vpop.permute.xlu1 %1359  ;;  %v16739_v55 = vld [vmem:[#allocation161_spill] sm:$0xff] }
 0x2c7   :  { %v1592_v40 = vsel %vm1565_vm4, %v1559_v44, %v16730_v2  ;;  %v1495_v52 = vsel %vm1466_vm7, %v1462_v31, %v16733_v30  ;;  %v1593_v46 = vsel %vm1565_vm4, %v1560_v19, %v16734_v41  ;;  %v1496_v63 = vsel %vm1466_vm7, %v1463_v48, %v16736_v51  ;;  %v16738_v21 = vld [vmem:[#allocation150_spill] sm:$0xff]  ;;  %v16740_v49 = vld [vmem:[#allocation21_spill] sm:$0xff]  ;;  %2572 = vrot.lane.b32.xlu0 %v11832_v60, %s8888_s2  ;;  %v16741_v16 = vld [vmem:[#allocation91_spill] sm:$0xff] }
 0x2c8   :  { %v1625_v6 = vsel %vm1598_vm10, %v1592_v40, %v16735_v15  ;;  %v1528_v26 = vsel %vm1499_vm8, %v1495_v52, %v16737_v3  ;;  %v1626_v45 = vsel %vm1598_vm10, %v1593_v46, %v16738_v21  ;;  %v1529_v61 = vsel %vm1499_vm8, %v1496_v63, %v16739_v55  ;;  %v16742_v32 = vld [vmem:[#allocation144_spill] sm:$0xff]  ;;  %v16743_v8 = vld [vmem:[#allocation22_spill] sm:$0xff]  ;;  %v16746_v24 = vld [vmem:[#allocation59_spill] sm:$0xff]  ;;  %v1362_v29 = vpop.permute.xlu0 %1361 }
 0x2c9   :  { %v1658_v34 = vsel %vm1631_vm11, %v1625_v6, %v1358_v36  ;;  %v1561_v20 = vsel %vm1532_vm9, %v1528_v26, %v16740_v49  ;;  %v1659_v22 = vsel %vm1631_vm11, %v1626_v45, %v1360_v4  ;;  %v1464_v58 = vsel %vm1433_vm6, %v16742_v32, %v16741_v16  ;;  %v16744_v25 = vld [vmem:[#allocation40_spill] sm:$0xff]  ;;  %2288 = vrot.lane.b32.xlu1 %v11832_v60, %s8885_s27  ;;  %v16747_v35 = vld [vmem:[#allocation39_spill] sm:$0xff]  ;;  %v16748_v27 = vld [vmem:[#allocation194_spill] sm:$0xff] }
 0x2ca   :  { %7909 = vmatprep.mubr.msk.f32.mxu0 %vm2934_vm12, %v1658_v34  ;;  %v1562_v31 = vsel %vm1532_vm9, %v1529_v61, %v16743_v8  ;;  %v1594_v7 = vsel %vm1565_vm4, %v1561_v20, %v16744_v25  ;;  %v16745_v43 = vld [vmem:[#allocation92_spill] sm:$0xff]  ;;  %v1497_v5 = vsel %vm1466_vm7, %v1464_v58, %v16747_v35  ;;  %v16749_v38 = vld [vmem:[#allocation63_spill] sm:$0xff]  ;;  %v16750_v9 = vld [vmem:[#allocation118_spill] sm:$0xff]  ;;  %v1364_v13 = vpop.permute.xlu1 %1363  ;;  %v16761_v8 = vmov 0.0  }
 0x2cb   :  { %7910 = vmatmul.mubr.msk.f32.gmra.mxu0 %vm2934_vm12, %v1659_v22  ;;  %v1465_v50 = vsel %vm1433_vm6, %v16746_v24, %v16745_v43  ;;  %v1595_v47 = vsel %vm1565_vm4, %v1562_v31, %v16748_v27  ;;  %v1627_v23 = vsel %vm1598_vm10, %v1594_v7, %v16749_v38  ;;  %v16751_v42 = vld [vmem:[#allocation162_spill] sm:$0xff]  ;;  %v16752_v18 = vld [vmem:[#allocation153_spill] sm:$0xff]  ;;  %v16753_v59 = vld [vmem:[#allocation163_spill] sm:$0xff]  ;;  %3586 = vst.msk [vmem:[#allocation3 + $0x28] sm:$0x3] %vm3582_vm13, %v16761_v8 }
 0x2cc   :  { %v1498_v33 = vsel %vm1466_vm7, %v1465_v50, %v16750_v9  ;;  %v1530_v11 = vsel %vm1499_vm8, %v1497_v5, %v16751_v42  ;;  %v1628_v1 = vsel %vm1598_vm10, %v1595_v47, %v16752_v18  ;;  %v1660_v44 = vsel %vm1631_vm11, %v1627_v23, %v1362_v29  ;;  %v16754_v2 = vld [vmem:[#allocation23_spill] sm:$0xff]  ;;  %v16756_v48 = vld [vmem:[#allocation24_spill] sm:$0xff]  ;;  %v16757_v52 = vld [vmem:[#allocation41_spill] sm:$0xff]  ;;  %v1366_v26 = vpop.permute.xlu0 %1365  ;;  %3583 = vst.msk [vmem:[#allocation3 + $0x10] sm:$0x3] %vm3582_vm13, %v16761_v8 }
 0x2cd   :  { %v1531_v19 = vsel %vm1499_vm8, %v1498_v33, %v16753_v59  ;;  %v1563_v40 = vsel %vm1532_vm9, %v1530_v11, %v16754_v2  ;;  %v1661_v39 = vsel %vm1631_vm11, %v1628_v1, %v1364_v13  ;;  %v16755_v56 = vld [vmem:[#allocation203_spill] sm:$0xff]  ;;  %7912 = vmatprep.mubr.msk.f32.mxu0 %vm2934_vm12, %v1660_v44  ;;  %v11896_v46 = vld [vmem:[#allocation2 + $0x200] sm:$0xff]  ;;  %v8762_v21 = vld [vmem:[#allocation2 + $0x208] sm:$0x3]  ;;  %3589 = vst.msk [vmem:[#allocation3 + $0x40] sm:$0x3] %vm3582_vm13, %v16761_v8 }
 0x2ce   :  { %2382 = vrot.lane.b32.xlu0 %v16755_v56, %s8886_s28  ;;  %v1564_v30 = vsel %vm1532_vm9, %v1531_v19, %v16756_v48  ;;  %v1596_v41 = vsel %vm1565_vm4, %v1563_v40, %v16757_v52  ;;  %2384 = vrot.lane.b32.xlu1 %v11896_v46, %s8886_s28  ;;  %v11901_v15 = vld [vmem:[#allocation2 + $0x1f8] sm:$0xff]  ;;  %v1808_v36 = vrot.slane %v11896_v46, 2  ;;  %v1810_v45 = vrot.slane %v8762_v21, 2  ;;  %v1368_v55 = vpop.permute.xlu1 %1367  ;;  %v16759_v49 = vld [vmem:[#allocation209_spill] sm:$0xff]  ;;  %3592 = vst.msk [vmem:[#allocation3 + $0x58] sm:$0x3] %vm3582_vm13, %v16761_v8 }
 0x2cf   :  { %7913 = vmatmul.mubr.msk.f32.gmra.mxu0 %vm2934_vm12, %v1661_v39  ;;  %v1807_v6 = vrot.slane %v11901_v15, 2  ;;  %v16758_v51 = vld [vmem:[#allocation43_spill] sm:$0xff]  ;;  %v1629_v3 = vsel %vm1598_vm10, %v1596_v41, %v11371_v10  ;;  %3595 = vst.msk [vmem:[#allocation3 + $0x70] sm:$0x3] %vm3582_vm13, %v16761_v8  ;;  %3598 = vst.msk [vmem:[#allocation3 + $0x88] sm:$0x3] %vm3582_vm13, %v16761_v8 }
 0x2d0   :  { %v1597_v63 = vsel %vm1565_vm4, %v1564_v30, %v16758_v51  ;;  %v1662_v4 = vsel %vm1631_vm11, %v1629_v3, %v1366_v26  ;;  %v16760_v20 = vld [vmem:[#allocation211_spill] sm:$0xff]  ;;  %v11922_v22 = vpop.permute.xlu0 %1898  ;;  %3601 = vst.msk [vmem:[#allocation3 + $0xa0] sm:$0x3] %vm3582_vm13, %v16761_v8  ;;  %3604 = vst.msk [vmem:[#allocation3 + $0xb8] sm:$0x3] %vm3582_vm13, %v16761_v8  ;;  %v12041_v35 = vld [vmem:[#allocation2 + $0x210] sm:$0xff] }
 0x2d1   :  { %v1630_v34 = vsel %vm1598_vm10, %v1597_v63, %v11382_v17  ;;  %7915 = vmatprep.mubr.msk.f32.mxu0 %vm2934_vm12, %v1662_v4  ;;  %v11920_v10 = vsel %vm526_vm3, %v1807_v6, %v1808_v36  ;;  %v11925_v17 = vsel %vm526_vm3, %v1808_v36, %v1810_v45  ;;  %3607 = vst.msk [vmem:[#allocation3 + $0xd0] sm:$0x3] %vm3582_vm13, %v16761_v8  ;;  %3610 = vst.msk [vmem:[#allocation3 + $0xe8] sm:$0x3] %vm3582_vm13, %v16761_v8  ;;  %v12045_v5 = vld [vmem:[#allocation2 + $0x218] sm:$0xff]  ;;  %v16762_v33 = vld [vmem:[#allocation213_spill] sm:$0xff] }
 0x2d2   :  { %v1663_v61 = vsel %vm1631_vm11, %v1630_v34, %v1368_v55  ;;  %2478 = vrot.lane.b32.xlu0 %v16759_v49, %s8887_s23  ;;  %2480 = vrot.lane.b32.xlu1 %v16760_v20, %s8887_s23  ;;  %v11927_v16 = vpop.permute.xlu1 %1900  ;;  %3613 = vst.msk [vmem:[#allocation3 + $0x100] sm:$0x3] %vm3582_vm13, %v16761_v8  ;;  %3616 = vst.msk [vmem:[#allocation3 + $0x118] sm:$0x3] %vm3582_vm13, %v16761_v8  ;;  %v1812_v27 = vrot.slane %v12041_v35, 2  ;;  %v1813_v47 = vrot.slane %v12045_v5, 2 }
 0x2d3   :  { %7916 = vmatmul.mubr.msk.f32.gmra.mxu0 %vm2934_vm12, %v1663_v61  ;;  %3619 = vst.msk [vmem:[#allocation3 + $0x130] sm:$0x3] %vm3582_vm13, %v16761_v8  ;;  %3622 = vst.msk [vmem:[#allocation3 + $0x148] sm:$0x3] %vm3582_vm13, %v16761_v8  ;;  %v8765_v23 = vld [vmem:[#allocation2 + $0x220] sm:$0x3] }
 0x2d4   :  { %v11933_v32 = vpop.permute.xlu0 %1902  ;;  %3625 = vst.msk [vmem:[#allocation3 + $0x160] sm:$0x3] %vm3582_vm13, %v16761_v8  ;;  %3628 = vst.msk [vmem:[#allocation3 + $0x178] sm:$0x3] %vm3582_vm13, %v16761_v8  ;;  %v1815_v29 = vrot.slane %v8765_v23, 2  ;;  %v16763_v42 = vld [vmem:[#allocation215_spill] sm:$0xff]  ;;  %v1814_v11 = vsel %vm526_vm3, %v1812_v27, %v1813_v47 }
 0x2d5   :  { %3631 = vst.msk [vmem:[#allocation3 + $0x190] sm:$0x3] %vm3582_vm13, %v16761_v8  ;;  %3634 = vst.msk [vmem:[#allocation3 + $0x1a8] sm:$0x3] %vm3582_vm13, %v16761_v8  ;;  %v12101_v41 = vld [vmem:[#allocation2 + $0x228] sm:$0xff]  ;;  %v12105_v6 = vld [vmem:[#allocation2 + $0x230] sm:$0xff] }
 0x2d6   :  { %2574 = vrot.lane.b32.xlu0 %v11920_v10, %s8888_s2  ;;  %2576 = vrot.lane.b32.xlu1 %v11925_v17, %s8888_s2  ;;  %v11935_v58 = vpop.permute.xlu1 %1904  ;;  %3637 = vst.msk [vmem:[#allocation3 + $0x1c0] sm:$0x3] %vm3582_vm13, %v16761_v8  ;;  %3640 = vst.msk [vmem:[#allocation3 + $0x1d8] sm:$0x3] %vm3582_vm13, %v16761_v8  ;;  %v1816_v1 = vsel %vm526_vm3, %v1813_v47, %v1815_v29  ;;  %v1817_v36 = vrot.slane %v12101_v41, 2  ;;  %v1818_v51 = vrot.slane %v12105_v6, 2 }
 0x2d7   :  { %3643 = vst.msk [vmem:[#allocation3 + $0x1f0] sm:$0x3] %vm3582_vm13, %v16761_v8  ;;  %3646 = vst.msk [vmem:[#allocation3 + $0x208] sm:$0x3] %vm3582_vm13, %v16761_v8  ;;  %v8768_v3 = vld [vmem:[#allocation2 + $0x238] sm:$0x3] }
 0x2d8   :  { %3649 = vst.msk [vmem:[#allocation3 + $0x220] sm:$0x3] %vm3582_vm13, %v16761_v8  ;;  %3652 = vst.msk [vmem:[#allocation3 + $0x238] sm:$0x3] %vm3582_vm13, %v16761_v8  ;;  %v1820_v26 = vrot.slane %v8768_v3, 2  ;;  %v16773_v45 = vld [vmem:[#allocation217_spill] sm:$0xff]  ;;  %v1819_v4 = vsel %vm526_vm3, %v1817_v36, %v1818_v51 }
 0x2d9   :  { %3655 = vst.msk [vmem:[#allocation3 + $0x250] sm:$0x3] %vm3582_vm13, %v16761_v8  ;;  %3658 = vst.msk [vmem:[#allocation3 + $0x268] sm:$0x3] %vm3582_vm13, %v16761_v8  ;;  %v16774_v34 = vld [vmem:[#allocation219_spill] sm:$0xff]  ;;  %v12149_v36 = vld [vmem:[#allocation2 + $0x248] sm:$0xff] }
 0x2da   :  { %2002 = vrot.lane.b32.xlu0 %v11772_v53, %s8882_s24  ;;  %2004 = vrot.lane.b32.xlu1 %v11832_v60, %s8882_s24  ;;  %3661 = vst.msk [vmem:[#allocation3 + $0x280] sm:$0x3] %vm3582_vm13, %v16761_v8  ;;  %3664 = vst.msk [vmem:[#allocation3 + $0x298] sm:$0x3] %vm3582_vm13, %v16761_v8  ;;  %v12013_v53 = vpop.permute.xlu0 %1906  ;;  %v12015_v60 = vpop.permute.xlu1 %1908  ;;  %v1821_v61 = vsel %vm526_vm3, %v1818_v51, %v1820_v26  ;;  %v1823_v3 = vrot.slane %v12149_v36, 2  ;;  %v16784_v28 = vld [vmem:[#allocation127_spill] sm:$0xff] }
 0x2db   :  { %3667 = vst.msk [vmem:[#allocation3 + $0x2b0] sm:$0x3] %vm3582_vm13, %v16761_v8  ;;  %3670 = vst.msk [vmem:[#allocation3 + $0x2c8] sm:$0x3] %vm3582_vm13, %v16761_v8 }
 0x2dc   :  { %3673 = vst.msk [vmem:[#allocation3 + $0x2e0] sm:$0x3] %vm3582_vm13, %v16761_v8  ;;  %3676 = vst.msk [vmem:[#allocation3 + $0x2f8] sm:$0x3] %vm3582_vm13, %v16761_v8 }
 0x2dd   :  { %3679 = vst.msk [vmem:[#allocation3 + $0x310] sm:$0x3] %vm3582_vm13, %v16761_v8  ;;  %3682 = vst.msk [vmem:[#allocation3 + $0x328] sm:$0x3] %vm3582_vm13, %v16761_v8 }
 0x2de   :  { %3685 = vst.msk [vmem:[#allocation3 + $0x340] sm:$0x3] %vm3582_vm13, %v16761_v8  ;;  %3688 = vst.msk [vmem:[#allocation3 + $0x358] sm:$0x3] %vm3582_vm13, %v16761_v8  ;;  %2098 = vrot.lane.b32.xlu0 %v11901_v15, %s8883_s25  ;;  %2100 = vrot.lane.b32.xlu1 %v11896_v46, %s8883_s25  ;;  %v12021_v31 = vpop.permute.xlu0 %1910  ;;  %v12023_v25 = vpop.permute.xlu1 %1912 }
 0x2e2   :  { %2194 = vrot.lane.b32.xlu0 %v16759_v49, %s8884_s26  ;;  %2196 = vrot.lane.b32.xlu1 %v16760_v20, %s8884_s26  ;;  %v12029_v7 = vpop.permute.xlu0 %1914  ;;  %v12031_v43 = vpop.permute.xlu1 %1916 }
 0x2e6   :  { %2290 = vrot.lane.b32.xlu0 %v11920_v10, %s8885_s27  ;;  %2292 = vrot.lane.b32.xlu1 %v11925_v17, %s8885_s27  ;;  %v12037_v24 = vpop.permute.xlu0 %1918  ;;  %v12039_v50 = vpop.permute.xlu1 %1920 }
 0x2ea   :  { %2386 = vrot.lane.b32.xlu0 %v12041_v35, %s8886_s28  ;;  %2388 = vrot.lane.b32.xlu1 %v12045_v5, %s8886_s28  ;;  %v12051_v38 = vpop.permute.xlu0 %1922  ;;  %v12053_v9 = vpop.permute.xlu1 %1924 }
 0x2ee   :  { %2482 = vrot.lane.b32.xlu0 %v16762_v33, %s8887_s23  ;;  %2484 = vrot.lane.b32.xlu1 %v16763_v42, %s8887_s23  ;;  %v12060_v18 = vpop.permute.xlu0 %1926  ;;  %v12063_v44 = vpop.permute.xlu1 %1928 }
 0x2f2   :  { %2578 = vrot.lane.b32.xlu0 %v1814_v11, %s8888_s2  ;;  %2580 = vrot.lane.b32.xlu1 %v1816_v1, %s8888_s2  ;;  %v12067_v13 = vpop.permute.xlu0 %1930  ;;  %v12069_v59 = vpop.permute.xlu1 %1932 }
 0x2f6   :  { %2006 = vrot.lane.b32.xlu0 %v11920_v10, %s8882_s24  ;;  %2008 = vrot.lane.b32.xlu1 %v11925_v17, %s8882_s24  ;;  %v12075_v19 = vpop.permute.xlu0 %1934  ;;  %v12077_v2 = vpop.permute.xlu1 %1936 }
 0x2f7   :  { %16764 = vst [vmem:[#allocation67_spill] sm:$0xff] %v12077_v2 }
 0x2fa   :  { %2102 = vrot.lane.b32.xlu0 %v12041_v35, %s8883_s25  ;;  %2104 = vrot.lane.b32.xlu1 %v12045_v5, %s8883_s25  ;;  %v12083_v40 = vpop.permute.xlu0 %1938  ;;  %v12085_v39 = vpop.permute.xlu1 %1940 }
 0x2fb   :  { %16765 = vst [vmem:[#allocation68_spill] sm:$0xff] %v12083_v40  ;;  %16766 = vst [vmem:[#allocation69_spill] sm:$0xff] %v12085_v39 }
 0x2fe   :  { %2198 = vrot.lane.b32.xlu0 %v16762_v33, %s8884_s26  ;;  %2200 = vrot.lane.b32.xlu1 %v16763_v42, %s8884_s26  ;;  %v12091_v56 = vpop.permute.xlu0 %1942  ;;  %v12093_v48 = vpop.permute.xlu1 %1944 }
 0x2ff   :  { %16767 = vst [vmem:[#allocation70_spill] sm:$0xff] %v12091_v56  ;;  %16768 = vst [vmem:[#allocation71_spill] sm:$0xff] %v12093_v48  ;;  %v8772_v48 = vld [vmem:[#allocation2 + $0x1b0] sm:$0xff] }
 0x302   :  { %2294 = vrot.lane.b32.xlu0 %v1814_v11, %s8885_s27  ;;  %2296 = vrot.lane.b32.xlu1 %v1816_v1, %s8885_s27  ;;  %v12097_v30 = vpop.permute.xlu0 %1946  ;;  %v12099_v52 = vpop.permute.xlu1 %1948 }
 0x303   :  { %16769 = vst [vmem:[#allocation72_spill] sm:$0xff] %v12097_v30  ;;  %16770 = vst [vmem:[#allocation73_spill] sm:$0xff] %v12099_v52 }
 0x306   :  { %2390 = vrot.lane.b32.xlu0 %v12101_v41, %s8886_s28  ;;  %2392 = vrot.lane.b32.xlu1 %v12105_v6, %s8886_s28  ;;  %v12111_v63 = vpop.permute.xlu0 %1950  ;;  %v12113_v21 = vpop.permute.xlu1 %1952 }
 0x307   :  { %16771 = vst [vmem:[#allocation74_spill] sm:$0xff] %v12111_v63  ;;  %16772 = vst [vmem:[#allocation75_spill] sm:$0xff] %v12113_v21 }
 0x30a   :  { %2486 = vrot.lane.b32.xlu0 %v16773_v45, %s8887_s23  ;;  %2488 = vrot.lane.b32.xlu1 %v16774_v34, %s8887_s23  ;;  %v12120_v55 = vpop.permute.xlu0 %1954  ;;  %v12123_v49 = vpop.permute.xlu1 %1956 }
 0x30b   :  { %16775 = vst [vmem:[#allocation76_spill] sm:$0xff] %v12120_v55  ;;  %16776 = vst [vmem:[#allocation77_spill] sm:$0xff] %v12123_v49  ;;  %v16780_v49 = vld [vmem:[#allocation223_spill] sm:$0xff] }
 0x30e   :  { %2582 = vrot.lane.b32.xlu0 %v1819_v4, %s8888_s2  ;;  %2584 = vrot.lane.b32.xlu1 %v1821_v61, %s8888_s2  ;;  %v12127_v20 = vpop.permute.xlu0 %1958  ;;  %v12129_v10 = vpop.permute.xlu1 %1960 }
 0x30f   :  { %16777 = vst [vmem:[#allocation78_spill] sm:$0xff] %v12127_v20  ;;  %16778 = vst [vmem:[#allocation79_spill] sm:$0xff] %v12129_v10  ;;  %v16779_v20 = vld [vmem:[#allocation221_spill] sm:$0xff] }
 0x312   :  { %2010 = vrot.lane.b32.xlu0 %v1814_v11, %s8882_s24  ;;  %2012 = vrot.lane.b32.xlu1 %v1816_v1, %s8882_s24  ;;  %v1995_v17 = vpop.permute.xlu0 %1994  ;;  %v1997_v27 = vpop.permute.xlu1 %1996  ;;  %v12145_v1 = vld [vmem:[#allocation2 + $0x240] sm:$0xff] }
 0x313   :  { %v1822_v51 = vrot.slane %v12145_v1, 2 }
 0x315   :  { %v12160_v55 = vsel %vm526_vm3, %v1822_v51, %v1823_v3  ;;  %v2666_v51 = vsel %vm50_vm0, %v8772_v48, %v11922_v22 }
 0x316   :  { %2106 = vrot.lane.b32.xlu0 %v12101_v41, %s8883_s25  ;;  %2108 = vrot.lane.b32.xlu1 %v12105_v6, %s8883_s25  ;;  %v2091_v47 = vpop.permute.xlu0 %2090  ;;  %v2093_v23 = vpop.permute.xlu1 %2092 }
 0x31a   :  { %2202 = vrot.lane.b32.xlu0 %v16773_v45, %s8884_s26  ;;  %2204 = vrot.lane.b32.xlu1 %v16774_v34, %s8884_s26  ;;  %v2187_v29 = vpop.permute.xlu0 %2186  ;;  %v2189_v33 = vpop.permute.xlu1 %2188  ;;  %v8771_v45 = vld [vmem:[#allocation2 + $0x250] sm:$0x3] }
 0x31b   :  { %v1825_v34 = vrot.slane %v8771_v45, 2 }
 0x31d   :  { %v12163_v63 = vsel %vm526_vm3, %v1823_v3, %v1825_v34  ;;  %v2698_v3 = vsel %vm1433_vm6, %v2666_v51, %v1995_v17  ;;  %v8773_v17 = vld [vmem:[#allocation2 + $0x1b8] sm:$0xff] }
 0x31e   :  { %2298 = vrot.lane.b32.xlu0 %v1819_v4, %s8885_s27  ;;  %2300 = vrot.lane.b32.xlu1 %v1821_v61, %s8885_s27  ;;  %v2283_v42 = vpop.permute.xlu0 %2282  ;;  %v12143_v11 = vpop.permute.xlu1 %1998  ;;  %v2730_v56 = vsel %vm1466_vm7, %v2698_v3, %v2091_v47  ;;  %v2667_v47 = vsel %vm50_vm0, %v8773_v17, %v11927_v16  ;;  %v12202_v51 = vld [vmem:[#allocation2 + $0x258] sm:$0xff] }
 0x31f   :  { %v2762_v40 = vsel %vm1499_vm8, %v2730_v56, %v2187_v29 }
 0x320   :  { %v2794_v8 = vsel %vm1532_vm9, %v2762_v40, %v2283_v42  ;;  %v2699_v40 = vsel %vm1433_vm6, %v2667_v47, %v1997_v27  ;;  %v16781_v47 = vld [vmem:[#allocation225_spill] sm:$0xff] }
 0x322   :  { %2394 = vrot.lane.b32.xlu0 %v12145_v1, %s8886_s28  ;;  %2396 = vrot.lane.b32.xlu1 %v12149_v36, %s8886_s28  ;;  %v2285_v26 = vpop.permute.xlu0 %2284  ;;  %v2379_v10 = vpop.permute.xlu1 %2378 }
 0x323   :  { %v2826_v22 = vsel %vm1565_vm4, %v2794_v8, %v2379_v10  ;;  %v2731_v8 = vsel %vm1466_vm7, %v2699_v40, %v2093_v23 }
 0x324   :  { %v2763_v10 = vsel %vm1499_vm8, %v2731_v8, %v2189_v33  ;;  %v12207_v33 = vld [vmem:[#allocation2 + $0x260] sm:$0xff] }
 0x325   :  { %v2795_v16 = vsel %vm1532_vm9, %v2763_v10, %v2285_v26  ;;  %v1827_v26 = vrot.slane %v12202_v51, 2  ;;  %v16782_v10 = vld [vmem:[#allocation44_spill] sm:$0xff] }
 0x326   :  { %2490 = vrot.lane.b32.xlu0 %v16779_v20, %s8887_s23  ;;  %2492 = vrot.lane.b32.xlu1 %v16780_v49, %s8887_s23  ;;  %v2001_v21 = vpop.permute.xlu0 %2000  ;;  %v2095_v52 = vpop.permute.xlu1 %2094 }
 0x32a   :  { %2586 = vrot.lane.b32.xlu0 %v12160_v55, %s8888_s2  ;;  %2588 = vrot.lane.b32.xlu1 %v12163_v63, %s8888_s2  ;;  %v2381_v45 = vpop.permute.xlu0 %2380 }
 0x32b   :  { %v2475_v30 = vpop.permute.xlu1 %2474 }
 0x32e   :  { %2014 = vrot.lane.b32.xlu0 %v1819_v4, %s8882_s24  ;;  %2016 = vrot.lane.b32.xlu1 %v1821_v61, %s8882_s24  ;;  %v2097_v34 = vpop.permute.xlu0 %2096  ;;  %v2858_v4 = vsel %vm1598_vm10, %v2826_v22, %v2475_v30  ;;  %v8776_v22 = vld [vmem:[#allocation2 + $0x268] sm:$0x3] }
 0x32f   :  { %v2191_v39 = vpop.permute.xlu1 %2190 }
 0x332   :  { %2110 = vrot.lane.b32.xlu0 %v12145_v1, %s8883_s25  ;;  %2112 = vrot.lane.b32.xlu1 %v12149_v36, %s8883_s25  ;;  %v2477_v48 = vpop.permute.xlu0 %2476 }
 0x333   :  { %v2571_v61 = vpop.permute.xlu1 %2570 }
 0x334   :  { %v2890_v56 = vsel %vm1631_vm11, %v2858_v4, %v2571_v61  ;;  %v8777_v61 = vld [vmem:[#allocation2 + $0x1c8] sm:$0xff] }
 0x335   :  { %7918 = vmatprep.mubr.msk.f32.mxu0 %vm2934_vm12, %v2890_v56  ;;  %v2668_v17 = vsel %vm50_vm0, %v8777_v61, %v11933_v32  ;;  %v8778_v56 = vld [vmem:[#allocation2 + $0x1d0] sm:$0xff] }
 0x336   :  { %2206 = vrot.lane.b32.xlu0 %v16779_v20, %s8884_s26  ;;  %2208 = vrot.lane.b32.xlu1 %v16780_v49, %s8884_s26  ;;  %v2193_v30 = vpop.permute.xlu0 %2192  ;;  %v2827_v20 = vsel %vm1565_vm4, %v2795_v16, %v2381_v45  ;;  %v1828_v45 = vrot.slane %v12207_v33, 2  ;;  %v2669_v40 = vsel %vm50_vm0, %v8778_v56, %v11935_v58  ;;  %v2700_v8 = vsel %vm1433_vm6, %v2668_v17, %v12143_v11  ;;  %v12263_v56 = vld [vmem:[%s16007_s3] ss:$0 sm:$0xff] }
 0x337   :  { %v2287_v29 = vpop.permute.xlu1 %2286  ;;  %v2859_v49 = vsel %vm1598_vm10, %v2827_v20, %v2477_v48  ;;  %v1830_v48 = vrot.slane %v8776_v22, 2  ;;  %v2701_v20 = vsel %vm1433_vm6, %v2669_v40, %v2001_v21  ;;  %v2732_v32 = vsel %vm1466_vm7, %v2700_v8, %v2095_v52 }
 0x338   :  { %v12224_v16 = vsel %vm526_vm3, %v1827_v26, %v1828_v45  ;;  %v2764_v58 = vsel %vm1499_vm8, %v2732_v32, %v2191_v39 }
 0x339   :  { %v2796_v61 = vsel %vm1532_vm9, %v2764_v58, %v2287_v29 }
 0x33a   :  { %2302 = vrot.lane.b32.xlu0 %v12160_v55, %s8885_s27  ;;  %2304 = vrot.lane.b32.xlu1 %v12163_v63, %s8885_s27  ;;  %v2573_v27 = vpop.permute.xlu0 %2572 }
 0x33b   :  { %v2891_v42 = vsel %vm1631_vm11, %v2859_v49, %v2573_v27  ;;  %v2289_v23 = vpop.permute.xlu1 %2288  ;;  %v12229_v27 = vsel %vm526_vm3, %v1828_v45, %v1830_v48 }
 0x33c   :  { %7919 = vmatmul.mubr.msk.f32.gmra.mxu0 %vm2934_vm12, %v2891_v42  ;;  %v2733_v42 = vsel %vm1466_vm7, %v2701_v20, %v2097_v34 }
 0x33d   :  { %v2765_v11 = vsel %vm1499_vm8, %v2733_v42, %v2193_v30  ;;  %v12271_v42 = vld [vmem:[#allocation2 + $0x270] sm:$0xff] }
 0x33e   :  { %2398 = vrot.lane.b32.xlu0 %v12202_v51, %s8886_s28  ;;  %2400 = vrot.lane.b32.xlu1 %v12207_v33, %s8886_s28  ;;  %v2797_v21 = vsel %vm1532_vm9, %v2765_v11, %v2289_v23  ;;  %v1832_v11 = vrot.slane %v12271_v42, 2 }
 0x340   :  { %v2383_v3 = vpop.permute.xlu0 %2382  ;;  %v2385_v4 = vpop.permute.xlu1 %2384 }
 0x341   :  { %v2828_v52 = vsel %vm1565_vm4, %v2796_v61, %v2383_v3  ;;  %v2829_v26 = vsel %vm1565_vm4, %v2797_v21, %v2385_v4  ;;  %v8781_v21 = vld [vmem:[#allocation2 + $0x280] sm:$0x3] }
 0x342   :  { %2494 = vrot.lane.b32.xlu0 %v16781_v47, %s8887_s23  ;;  %2496 = vrot.lane.b32.xlu1 %v16782_v10, %s8887_s23 }
 0x344   :  { %v2479_v49 = vpop.permute.xlu0 %2478  ;;  %v2481_v22 = vpop.permute.xlu1 %2480 }
 0x345   :  { %v2860_v34 = vsel %vm1598_vm10, %v2828_v52, %v2479_v49  ;;  %v2861_v45 = vsel %vm1598_vm10, %v2829_v26, %v2481_v22  ;;  %v12275_v22 = vld [vmem:[#allocation2 + $0x278] sm:$0xff]  ;;  %v1835_v52 = vrot.slane %v8781_v21, 2  ;;  %v8783_v21 = vld [vmem:[#allocation2 + $0x1e8] sm:$0xff] }
 0x346   :  { %2590 = vrot.lane.b32.xlu0 %v12224_v16, %s8888_s2  ;;  %2592 = vrot.lane.b32.xlu1 %v12229_v27, %s8888_s2  ;;  %v1833_v61 = vrot.slane %v12275_v22, 2 }
 0x348   :  { %v2575_v39 = vpop.permute.xlu0 %2574  ;;  %v2577_v29 = vpop.permute.xlu1 %2576 }
 0x349   :  { %v2892_v30 = vsel %vm1631_vm11, %v2860_v34, %v2575_v39  ;;  %v2893_v48 = vsel %vm1631_vm11, %v2861_v45, %v2577_v29  ;;  %v8782_v29 = vld [vmem:[#allocation2 + $0x1e0] sm:$0xff] }
 0x34a   :  { %2018 = vrot.lane.b32.xlu0 %v12160_v55, %s8882_s24  ;;  %7921 = vmatprep.mubr.msk.f32.mxu0 %vm2934_vm12, %v2892_v30 }
 0x34b   :  { %2020 = vrot.lane.b32.xlu1 %v12163_v63, %s8882_s24  ;;  %7922 = vmatmul.mubr.msk.f32.gmra.mxu0 %vm2934_vm12, %v2893_v48  ;;  %v2670_v48 = vsel %vm50_vm0, %v8782_v29, %v12013_v53  ;;  %v12295_v53 = vsel %vm526_vm3, %v1832_v11, %v1833_v61 }
 0x34c   :  { %v2003_v23 = vpop.permute.xlu0 %2002  ;;  %v2005_v3 = vpop.permute.xlu1 %2004 }
 0x34e   :  { %2114 = vrot.lane.b32.xlu0 %v12202_v51, %s8883_s25 }
 0x34f   :  { %2116 = vrot.lane.b32.xlu1 %v12207_v33, %s8883_s25 }
 0x350   :  { %v2099_v4 = vpop.permute.xlu0 %2098  ;;  %v2101_v17 = vpop.permute.xlu1 %2100 }
 0x352   :  { %2210 = vrot.lane.b32.xlu0 %v16781_v47, %s8884_s26 }
 0x353   :  { %2212 = vrot.lane.b32.xlu1 %v16782_v10, %s8884_s26 }
 0x354   :  { %v2195_v55 = vpop.permute.xlu0 %2194  ;;  %v2197_v63 = vpop.permute.xlu1 %2196 }
 0x355   :  { %v7872_v40 = vpop.f32.mrf.mxu0 }
 0x356   :  { %2306 = vrot.lane.b32.xlu0 %v12224_v16, %s8885_s27  ;;  %v3203_v8 = vadd.f32 %v7872_v40, %v12263_v56 }
 0x357   :  { %2308 = vrot.lane.b32.xlu1 %v12229_v27, %s8885_s27  ;;  %v3197_v20 = vpop.f32.mrf.mxu0 }
 0x358   :  { %v2291_v47 = vpop.permute.xlu0 %2290  ;;  %v2293_v32 = vpop.permute.xlu1 %2292  ;;  %v3517_v10 = vmax.f32 %v3203_v8, 0.0  ;;  %v3198_v49 = vadd.f32 %v12263_v56, %v3197_v20  ;;  %v16783_v20 = vld [vmem:[#allocation48_spill] sm:$0xff] }
 0x359   :  { %v7875_v58 = vpop.f32.mrf.mxu0 }
 0x35a   :  { %2402 = vrot.lane.b32.xlu0 %v12271_v42, %s8886_s28  ;;  %3691 = vst.msk [vmem:[#allocation3 + $0x21] sm:$0xff] %vm1565_vm4, %v3517_v10  ;;  %v3516_v26 = vmax.f32 %v3198_v49, 0.0  ;;  %v3213_v34 = vadd.f32 %v7875_v58, %v12263_v56  ;;  %v2671_v10 = vsel %vm50_vm0, %v8783_v21, %v12015_v60  ;;  %v2702_v49 = vsel %vm1433_vm6, %v2670_v48, %v2003_v23 }
 0x35b   :  { %2404 = vrot.lane.b32.xlu1 %v12275_v22, %s8886_s28  ;;  %v3207_v45 = vpop.f32.mrf.mxu0 }
 0x35c   :  { %v2387_v39 = vpop.permute.xlu0 %2386  ;;  %v2389_v30 = vpop.permute.xlu1 %2388  ;;  %3690 = vst.msk [vmem:[#allocation3 + $0x19] sm:$0xff] %vm1565_vm4, %v3516_v26  ;;  %v3519_v40 = vmax.f32 %v3213_v34, 0.0  ;;  %v3208_v8 = vadd.f32 %v12263_v56, %v3207_v45  ;;  %v12298_v26 = vsel %vm526_vm3, %v1833_v61, %v1835_v52  ;;  %v2703_v34 = vsel %vm1433_vm6, %v2671_v10, %v2005_v3 }
 0x35d   :  { %v7878_v58 = vpop.f32.mrf.mxu0  ;;  %v2734_v45 = vsel %vm1466_vm7, %v2702_v49, %v2099_v4  ;;  %v2735_v48 = vsel %vm1466_vm7, %v2703_v34, %v2101_v17 }
 0x35e   :  { %2498 = vrot.lane.b32.xlu0 %v16783_v20, %s8887_s23  ;;  %3693 = vst.msk [vmem:[#allocation3 + $0x39] sm:$0xff] %vm1565_vm4, %v3519_v40  ;;  %v3518_v29 = vmax.f32 %v3208_v8, 0.0  ;;  %v3223_v60 = vadd.f32 %v7878_v58, %v12263_v56  ;;  %v2766_v21 = vsel %vm1499_vm8, %v2734_v45, %v2195_v55  ;;  %v2767_v12 = vsel %vm1499_vm8, %v2735_v48, %v2197_v63 }
 0x35f   :  { %2500 = vrot.lane.b32.xlu1 %v16784_v28, %s8887_s23  ;;  %v3217_v2 = vpop.f32.mrf.mxu0  ;;  %v2798_v61 = vsel %vm1532_vm9, %v2766_v21, %v2291_v47  ;;  %v2799_v52 = vsel %vm1532_vm9, %v2767_v12, %v2293_v32 }
 0x360   :  { %v2483_v23 = vpop.permute.xlu0 %2482  ;;  %v2485_v11 = vpop.permute.xlu1 %2484  ;;  %3692 = vst.msk [vmem:[#allocation3 + $0x31] sm:$0xff] %vm1565_vm4, %v3518_v29  ;;  %v3521_v3 = vmax.f32 %v3223_v60, 0.0  ;;  %v3218_v4 = vadd.f32 %v12263_v56, %v3217_v2  ;;  %v2830_v17 = vsel %vm1565_vm4, %v2798_v61, %v2387_v39  ;;  %v2831_v55 = vsel %vm1565_vm4, %v2799_v52, %v2389_v30 }
 0x361   :  { %v7881_v40 = vpop.f32.mrf.mxu0  ;;  %v2862_v63 = vsel %vm1598_vm10, %v2830_v17, %v2483_v23  ;;  %v2863_v10 = vsel %vm1598_vm10, %v2831_v55, %v2485_v11 }
 0x362   :  { %2594 = vrot.lane.b32.xlu0 %v12295_v53, %s8888_s2  ;;  %3695 = vst.msk [vmem:[#allocation3 + $0x51] sm:$0xff] %vm1565_vm4, %v3521_v3  ;;  %v3520_v47 = vmax.f32 %v3218_v4, 0.0  ;;  %v3233_v2 = vadd.f32 %v7881_v40, %v12263_v56 }
 0x363   :  { %2596 = vrot.lane.b32.xlu1 %v12298_v26, %s8888_s2  ;;  %v3227_v32 = vpop.f32.mrf.mxu0 }
 0x364   :  { %v2579_v8 = vpop.permute.xlu0 %2578  ;;  %v2581_v39 = vpop.permute.xlu1 %2580  ;;  %3694 = vst.msk [vmem:[#allocation3 + $0x49] sm:$0xff] %vm1565_vm4, %v3520_v47  ;;  %v3523_v49 = vmax.f32 %v3233_v2, 0.0  ;;  %v3228_v58 = vadd.f32 %v12263_v56, %v3227_v32 }
 0x365   :  { %v2894_v12 = vsel %vm1631_vm11, %v2862_v63, %v2579_v8  ;;  %v2895_v30 = vsel %vm1631_vm11, %v2863_v10, %v2581_v39  ;;  %v7884_v34 = vpop.f32.mrf.mxu0 }
 0x366   :  { %2022 = vrot.lane.b32.xlu0 %v12224_v16, %s8882_s24  ;;  %7924 = vmatprep.mubr.msk.f32.mxu0 %vm2934_vm12, %v2894_v12  ;;  %3697 = vst.msk [vmem:[#allocation3 + $0x69] sm:$0xff] %vm1565_vm4, %v3523_v49  ;;  %v3522_v45 = vmax.f32 %v3228_v58, 0.0  ;;  %v3243_v29 = vadd.f32 %v7884_v34, %v12263_v56 }
 0x367   :  { %2024 = vrot.lane.b32.xlu1 %v12229_v27, %s8882_s24  ;;  %7925 = vmatmul.mubr.msk.f32.gmra.mxu0 %vm2934_vm12, %v2895_v30  ;;  %v3237_v23 = vpop.f32.mrf.mxu0 }
 0x368   :  { %v12333_v60 = vpop.permute.xlu0 %2006  ;;  %v12335_v48 = vpop.permute.xlu1 %2008  ;;  %3696 = vst.msk [vmem:[#allocation3 + $0x61] sm:$0xff] %vm1565_vm4, %v3522_v45  ;;  %v3525_v16 = vmax.f32 %v3243_v29, 0.0  ;;  %v3238_v21 = vadd.f32 %v12263_v56, %v3237_v23  ;;  %v12363_v29 = vld [vmem:[#allocation2 + $0x288] sm:$0xff] }
 0x369   :  { %v7887_v27 = vpop.f32.mrf.mxu0 }
 0x36a   :  { %2118 = vrot.lane.b32.xlu0 %v12271_v42, %s8883_s25  ;;  %3699 = vst.msk [vmem:[#allocation3 + $0x81] sm:$0xff] %vm1565_vm4, %v3525_v16  ;;  %v3524_v11 = vmax.f32 %v3238_v21, 0.0  ;;  %v3253_v61 = vadd.f32 %v7887_v27, %v12263_v56  ;;  %v12367_v16 = vld [vmem:[#allocation2 + $0x290] sm:$0xff]  ;;  %v1837_v21 = vrot.slane %v12363_v29, 2 }
 0x36b   :  { %2120 = vrot.lane.b32.xlu1 %v12275_v22, %s8883_s25  ;;  %v3247_v4 = vpop.f32.mrf.mxu0  ;;  %v1838_v27 = vrot.slane %v12367_v16, 2 }
 0x36c   :  { %v2103_v3 = vpop.permute.xlu0 %2102  ;;  %v2105_v52 = vpop.permute.xlu1 %2104  ;;  %3698 = vst.msk [vmem:[#allocation3 + $0x79] sm:$0xff] %vm1565_vm4, %v3524_v11  ;;  %v3527_v17 = vmax.f32 %v3253_v61, 0.0  ;;  %v3248_v40 = vadd.f32 %v12263_v56, %v3247_v4  ;;  %v8786_v11 = vld [vmem:[#allocation2 + $0x298] sm:$0x3] }
 0x36d   :  { %v7890_v55 = vpop.f32.mrf.mxu0  ;;  %v1840_v61 = vrot.slane %v8786_v11, 2 }
 0x36e   :  { %2214 = vrot.lane.b32.xlu0 %v16783_v20, %s8884_s26  ;;  %3701 = vst.msk [vmem:[#allocation3 + $0x99] sm:$0xff] %vm1565_vm4, %v3527_v17  ;;  %v3526_v63 = vmax.f32 %v3248_v40, 0.0  ;;  %v3263_v47 = vadd.f32 %v7890_v55, %v12263_v56 }
 0x36f   :  { %2216 = vrot.lane.b32.xlu1 %v16784_v28, %s8884_s26  ;;  %v3257_v8 = vpop.f32.mrf.mxu0 }
 0x370   :  { %v2199_v2 = vpop.permute.xlu0 %2198  ;;  %v2201_v10 = vpop.permute.xlu1 %2200  ;;  %3700 = vst.msk [vmem:[#allocation3 + $0x91] sm:$0xff] %vm1565_vm4, %v3526_v63  ;;  %v3529_v12 = vmax.f32 %v3263_v47, 0.0  ;;  %v3258_v32 = vadd.f32 %v12263_v56, %v3257_v8  ;;  %v2672_v47 = vsel %vm50_vm0, %v11901_v15, %v12021_v31  ;;  %v12390_v15 = vsel %vm526_vm3, %v1837_v21, %v1838_v27 }
 0x371   :  { %v7893_v20 = vpop.f32.mrf.mxu0  ;;  %v12393_v31 = vsel %vm526_vm3, %v1838_v27, %v1840_v61 }
 0x372   :  { %2310 = vrot.lane.b32.xlu0 %v12295_v53, %s8885_s27  ;;  %3703 = vst.msk [vmem:[#allocation3 + $0xb1] sm:$0xff] %vm1565_vm4, %v3529_v12  ;;  %v3528_v28 = vmax.f32 %v3258_v32, 0.0  ;;  %v3273_v39 = vadd.f32 %v7893_v20, %v12263_v56  ;;  %v16785_v32 = vld [vmem:[#allocation53_spill] sm:$0xff]  ;;  %v2673_v20 = vsel %vm50_vm0, %v11896_v46, %v12023_v25 }
 0x373   :  { %2312 = vrot.lane.b32.xlu1 %v12298_v26, %s8885_s27  ;;  %v3267_v58 = vpop.f32.mrf.mxu0 }
 0x374   :  { %v2295_v49 = vpop.permute.xlu0 %2294  ;;  %v2297_v30 = vpop.permute.xlu1 %2296  ;;  %3702 = vst.msk [vmem:[#allocation3 + $0xa9] sm:$0xff] %vm1565_vm4, %v3528_v28  ;;  %v3531_v34 = vmax.f32 %v3273_v39, 0.0  ;;  %v3268_v45 = vadd.f32 %v12263_v56, %v3267_v58  ;;  %v2704_v28 = vsel %vm1433_vm6, %v2672_v47, %v12333_v60  ;;  %v16786_v58 = vld [vmem:[#allocation55_spill] sm:$0xff] }
 0x375   :  { %v7896_v23 = vpop.f32.mrf.mxu0 }
 0x376   :  { %2406 = vrot.lane.b32.xlu0 %v12363_v29, %s8886_s28  ;;  %3705 = vst.msk [vmem:[#allocation3 + $0xc9] sm:$0xff] %vm1565_vm4, %v3531_v34  ;;  %v3530_v4 = vmax.f32 %v3268_v45, 0.0  ;;  %v3283_v17 = vadd.f32 %v7896_v23, %v12263_v56  ;;  %v2705_v34 = vsel %vm1433_vm6, %v2673_v20, %v12335_v48  ;;  %v2736_v45 = vsel %vm1466_vm7, %v2704_v28, %v2103_v3 }
 0x377   :  { %2408 = vrot.lane.b32.xlu1 %v12367_v16, %s8886_s28  ;;  %v3277_v55 = vpop.f32.mrf.mxu0  ;;  %v2737_v23 = vsel %vm1466_vm7, %v2705_v34, %v2105_v52  ;;  %v2768_v11 = vsel %vm1499_vm8, %v2736_v45, %v2199_v2 }
 0x378   :  { %v2391_v40 = vpop.permute.xlu0 %2390  ;;  %v2393_v63 = vpop.permute.xlu1 %2392  ;;  %3704 = vst.msk [vmem:[#allocation3 + $0xc1] sm:$0xff] %vm1565_vm4, %v3530_v4  ;;  %v3533_v8 = vmax.f32 %v3283_v17, 0.0  ;;  %v3278_v12 = vadd.f32 %v12263_v56, %v3277_v55  ;;  %v2769_v27 = vsel %vm1499_vm8, %v2737_v23, %v2201_v10  ;;  %v2800_v61 = vsel %vm1532_vm9, %v2768_v11, %v2295_v49 }
 0x379   :  { %v7899_v39 = vpop.f32.mrf.mxu0  ;;  %v2801_v17 = vsel %vm1532_vm9, %v2769_v27, %v2297_v30  ;;  %v2832_v52 = vsel %vm1565_vm4, %v2800_v61, %v2391_v40 }
 0x37a   :  { %2502 = vrot.lane.b32.xlu0 %v16785_v32, %s8887_s23  ;;  %3707 = vst.msk [vmem:[#allocation3 + $0xe1] sm:$0xff] %vm1565_vm4, %v3533_v8  ;;  %v3532_v46 = vmax.f32 %v3278_v12, 0.0  ;;  %v3293_v25 = vadd.f32 %v7899_v39, %v12263_v56  ;;  %v2833_v2 = vsel %vm1565_vm4, %v2801_v17, %v2393_v63 }
 0x37b   :  { %2504 = vrot.lane.b32.xlu1 %v16786_v58, %s8887_s23  ;;  %v3287_v21 = vpop.f32.mrf.mxu0 }
 0x37c   :  { %v2487_v60 = vpop.permute.xlu0 %2486  ;;  %v2489_v4 = vpop.permute.xlu1 %2488  ;;  %3706 = vst.msk [vmem:[#allocation3 + $0xd9] sm:$0xff] %vm1565_vm4, %v3532_v46  ;;  %v3535_v48 = vmax.f32 %v3293_v25, 0.0  ;;  %v3288_v3 = vadd.f32 %v12263_v56, %v3287_v21 }
 0x37d   :  { %v2864_v10 = vsel %vm1598_vm10, %v2832_v52, %v2487_v60  ;;  %v2865_v12 = vsel %vm1598_vm10, %v2833_v2, %v2489_v4 }
 0x37e   :  { %2598 = vrot.lane.b32.xlu0 %v12390_v15, %s8888_s2  ;;  %v7902_v55 = vpop.f32.mrf.mxu0  ;;  %3709 = vst.msk [vmem:[#allocation3 + $0xf9] sm:$0xff] %vm1565_vm4, %v3535_v48  ;;  %v3534_v49 = vmax.f32 %v3288_v3, 0.0 }
 0x37f   :  { %2600 = vrot.lane.b32.xlu1 %v12393_v31, %s8888_s2  ;;  %v3303_v47 = vadd.f32 %v7902_v55, %v12263_v56 }
 0x380   :  { %v2583_v8 = vpop.permute.xlu0 %2582  ;;  %v3297_v20 = vpop.f32.mrf.mxu0  ;;  %3708 = vst.msk [vmem:[#allocation3 + $0xf1] sm:$0xff] %vm1565_vm4, %v3534_v49 }
 0x381   :  { %v2896_v30 = vsel %vm1631_vm11, %v2864_v10, %v2583_v8  ;;  %v2585_v40 = vpop.permute.xlu1 %2584  ;;  %v3537_v28 = vmax.f32 %v3303_v47, 0.0  ;;  %v3298_v39 = vadd.f32 %v12263_v56, %v3297_v20 }
 0x382   :  { %v2897_v63 = vsel %vm1631_vm11, %v2865_v12, %v2585_v40  ;;  %2026 = vrot.lane.b32.xlu0 %v12295_v53, %s8882_s24  ;;  %7927 = vmatprep.mubr.msk.f32.mxu0 %vm2934_vm12, %v2896_v30  ;;  %v7905_v34 = vpop.f32.mrf.mxu0 }
 0x383   :  { %2028 = vrot.lane.b32.xlu1 %v12298_v26, %s8882_s24  ;;  %7928 = vmatmul.mubr.msk.f32.gmra.mxu0 %vm2934_vm12, %v2897_v63  ;;  %3711 = vst.msk [vmem:[#allocation3 + $0x111] sm:$0xff] %vm1565_vm4, %v3537_v28  ;;  %v3536_v45 = vmax.f32 %v3298_v39, 0.0  ;;  %v3313_v46 = vadd.f32 %v7905_v34, %v12263_v56  ;;  %v12459_v34 = vld [vmem:[#allocation2 + $0x2a0] sm:$0xff] }
 0x384   :  { %v12429_v25 = vpop.permute.xlu0 %2010  ;;  %v3307_v60 = vpop.f32.mrf.mxu0 }
 0x385   :  { %v12431_v23 = vpop.permute.xlu1 %2012  ;;  %3710 = vst.msk [vmem:[#allocation3 + $0x109] sm:$0xff] %vm1565_vm4, %v3536_v45  ;;  %v3539_v53 = vmax.f32 %v3313_v46, 0.0  ;;  %v3308_v11 = vadd.f32 %v12263_v56, %v3307_v60  ;;  %v12463_v46 = vld [vmem:[#allocation2 + $0x2a8] sm:$0xff]  ;;  %v1842_v60 = vrot.slane %v12459_v34, 2 }
 0x386   :  { %2122 = vrot.lane.b32.xlu0 %v12363_v29, %s8883_s25  ;;  %v7908_v26 = vpop.f32.mrf.mxu0 }
 0x387   :  { %2124 = vrot.lane.b32.xlu1 %v12367_v16, %s8883_s25  ;;  %3713 = vst.msk [vmem:[#allocation3 + $0x129] sm:$0xff] %vm1565_vm4, %v3539_v53  ;;  %v3538_v21 = vmax.f32 %v3308_v11, 0.0  ;;  %v3323_v4 = vadd.f32 %v7908_v26, %v12263_v56  ;;  %v1843_v53 = vrot.slane %v12463_v46, 2 }
 0x388   :  { %v2107_v27 = vpop.permute.xlu0 %2106  ;;  %v3317_v61 = vpop.f32.mrf.mxu0 }
 0x389   :  { %v2109_v48 = vpop.permute.xlu1 %2108  ;;  %3712 = vst.msk [vmem:[#allocation3 + $0x121] sm:$0xff] %vm1565_vm4, %v3538_v21  ;;  %v3541_v3 = vmax.f32 %v3323_v4, 0.0  ;;  %v3318_v17 = vadd.f32 %v12263_v56, %v3317_v61  ;;  %v8789_v4 = vld [vmem:[#allocation2 + $0x2b0] sm:$0x3] }
 0x38a   :  { %2218 = vrot.lane.b32.xlu0 %v16785_v32, %s8884_s26  ;;  %v1845_v61 = vrot.slane %v8789_v4, 2 }
 0x38b   :  { %v7911_v52 = vpop.f32.mrf.mxu0  ;;  %2220 = vrot.lane.b32.xlu1 %v16786_v58, %s8884_s26  ;;  %3715 = vst.msk [vmem:[#allocation3 + $0x141] sm:$0xff] %vm1565_vm4, %v3541_v3  ;;  %v3540_v55 = vmax.f32 %v3318_v17, 0.0 }
 0x38c   :  { %v3333_v2 = vadd.f32 %v7911_v52, %v12263_v56  ;;  %v2203_v10 = vpop.permute.xlu0 %2202  ;;  %v2674_v52 = vsel %vm50_vm0, %v12041_v35, %v12029_v7  ;;  %v12486_v7 = vsel %vm526_vm3, %v1842_v60, %v1843_v53 }
 0x38d   :  { %v3327_v49 = vpop.f32.mrf.mxu0  ;;  %v2205_v47 = vpop.permute.xlu1 %2204  ;;  %3714 = vst.msk [vmem:[#allocation3 + $0x139] sm:$0xff] %vm1565_vm4, %v3540_v55 }
 0x38e   :  { %v3543_v8 = vmax.f32 %v3333_v2, 0.0  ;;  %v3328_v12 = vadd.f32 %v12263_v56, %v3327_v49  ;;  %2314 = vrot.lane.b32.xlu0 %v12390_v15, %s8885_s27  ;;  %v16787_v49 = vld [vmem:[#allocation147_spill] sm:$0xff] }
 0x38f   :  { %v7914_v32 = vpop.f32.mrf.mxu0  ;;  %2316 = vrot.lane.b32.xlu1 %v12393_v31, %s8885_s27 }
 0x390   :  { %3717 = vst.msk [vmem:[#allocation3 + $0x159] sm:$0xff] %vm1565_vm4, %v3543_v8  ;;  %v3542_v58 = vmax.f32 %v3328_v12, 0.0  ;;  %v3343_v30 = vadd.f32 %v7914_v32, %v12263_v56  ;;  %v2299_v20 = vpop.permute.xlu0 %2298  ;;  %v2675_v8 = vsel %vm50_vm0, %v12045_v5, %v12031_v43  ;;  %v2706_v12 = vsel %vm1433_vm6, %v2674_v52, %v12429_v25  ;;  %v16788_v32 = vld [vmem:[#allocation61_spill] sm:$0xff]  ;;  %v12533_v52 = vld [vmem:[#allocation2 + $0x2c0] sm:$0xff] }
 0x391   :  { %v3337_v40 = vpop.f32.mrf.mxu0  ;;  %v2301_v28 = vpop.permute.xlu1 %2300  ;;  %v2707_v35 = vsel %vm1433_vm6, %v2675_v8, %v12431_v23  ;;  %v12493_v43 = vsel %vm526_vm3, %v1843_v53, %v1845_v61  ;;  %v8792_v8 = vld [vmem:[#allocation2 + $0x2c8] sm:$0x3] }
 0x392   :  { %3716 = vst.msk [vmem:[#allocation3 + $0x151] sm:$0xff] %vm1565_vm4, %v3542_v58  ;;  %v3545_v39 = vmax.f32 %v3343_v30, 0.0  ;;  %v3338_v63 = vadd.f32 %v12263_v56, %v3337_v40  ;;  %2410 = vrot.lane.b32.xlu0 %v12459_v34, %s8886_s28  ;;  %v2738_v58 = vsel %vm1466_vm7, %v2706_v12, %v2107_v27  ;;  %v2739_v5 = vsel %vm1466_vm7, %v2707_v35, %v2109_v48  ;;  %v222_v35 = vld [vmem:[%s16005_s0 + $0x1f0] sm:$0xff] }
 0x393   :  { %v7917_v45 = vpop.f32.mrf.mxu0  ;;  %2412 = vrot.lane.b32.xlu1 %v12463_v46, %s8886_s28  ;;  %v2770_v25 = vsel %vm1499_vm8, %v2738_v58, %v2203_v10  ;;  %v1850_v12 = vrot.slane %v8792_v8, 2  ;;  %v2676_v58 = vsel %vm50_vm0, %v12101_v41, %v12037_v24  ;;  %287 = vst.msk [vmem:[#allocation2 + $0x331] sm:$0xff] %vm50_vm0, %v222_v35  ;;  %v8794_v8 = vld [vmem:[#allocation2 + $0x2d8] sm:$0xff] }
 0x394   :  { %3719 = vst.msk [vmem:[#allocation3 + $0x171] sm:$0xff] %vm1565_vm4, %v3545_v39  ;;  %v3544_v11 = vmax.f32 %v3338_v63, 0.0  ;;  %v3353_v26 = vadd.f32 %v7917_v45, %v12263_v56  ;;  %v2395_v21 = vpop.permute.xlu0 %2394  ;;  %v2771_v63 = vsel %vm1499_vm8, %v2739_v5, %v2205_v47  ;;  %v2802_v45 = vsel %vm1532_vm9, %v2770_v25, %v2299_v20 }
 0x395   :  { %v3347_v3 = vpop.f32.mrf.mxu0  ;;  %v2397_v17 = vpop.permute.xlu1 %2396  ;;  %v2803_v23 = vsel %vm1532_vm9, %v2771_v63, %v2301_v28  ;;  %v2834_v27 = vsel %vm1565_vm4, %v2802_v45, %v2395_v21  ;;  %v2677_v5 = vsel %vm50_vm0, %v12105_v6, %v12039_v50 }
 0x396   :  { %3718 = vst.msk [vmem:[#allocation3 + $0x169] sm:$0xff] %vm1565_vm4, %v3544_v11  ;;  %v3547_v55 = vmax.f32 %v3353_v26, 0.0  ;;  %v3348_v2 = vadd.f32 %v12263_v56, %v3347_v3  ;;  %2506 = vrot.lane.b32.xlu0 %v16787_v49, %s8887_s23  ;;  %v2835_v48 = vsel %vm1565_vm4, %v2803_v23, %v2397_v17  ;;  %v12529_v17 = vld [vmem:[#allocation2 + $0x2b8] sm:$0xff] }
 0x397   :  { %2508 = vrot.lane.b32.xlu1 %v16788_v32, %s8887_s23 }
 0x398   :  { %3721 = vst.msk [vmem:[#allocation3 + $0x189] sm:$0xff] %vm1565_vm4, %v3547_v55  ;;  %v3546_v30 = vmax.f32 %v3348_v2, 0.0  ;;  %v2491_v40 = vpop.permute.xlu0 %2490  ;;  %v1847_v55 = vrot.slane %v12529_v17, 2  ;;  %v1848_v2 = vrot.slane %v12533_v52, 2 }
 0x399   :  { %v2493_v39 = vpop.permute.xlu1 %2492  ;;  %v2866_v10 = vsel %vm1598_vm10, %v2834_v27, %v2491_v40  ;;  %v223_v40 = vld [vmem:[%s16005_s0 + $0x1f8] sm:$0xff] }
 0x39a   :  { %3720 = vst.msk [vmem:[#allocation3 + $0x181] sm:$0xff] %vm1565_vm4, %v3546_v30  ;;  %2602 = vrot.lane.b32.xlu0 %v12486_v7, %s8888_s2  ;;  %v2867_v47 = vsel %vm1598_vm10, %v2835_v48, %v2493_v39  ;;  %v16789_v30 = vld [vmem:[#allocation62_spill] sm:$0xff]  ;;  %v16790_v39 = vld [vmem:[#allocation64_spill] sm:$0xff]  ;;  %v12558_v24 = vsel %vm526_vm3, %v1847_v55, %v1848_v2  ;;  %v12564_v23 = vsel %vm526_vm3, %v1848_v2, %v1850_v12 }
 0x39b   :  { %2604 = vrot.lane.b32.xlu1 %v12493_v43, %s8888_s2  ;;  %288 = vst.msk [vmem:[#allocation2 + $0x339] sm:$0xff] %vm50_vm0, %v223_v40 }
 0x39c   :  { %v2587_v60 = vpop.permute.xlu0 %2586 }
 0x39d   :  { %v2898_v20 = vsel %vm1631_vm11, %v2866_v10, %v2587_v60  ;;  %v2589_v53 = vpop.permute.xlu1 %2588 }
 0x39e   :  { %v2899_v11 = vsel %vm1631_vm11, %v2867_v47, %v2589_v53  ;;  %2030 = vrot.lane.b32.xlu0 %v12390_v15, %s8882_s24  ;;  %7930 = vmatprep.mubr.msk.f32.mxu0 %vm2934_vm12, %v2898_v20 }
 0x39f   :  { %2032 = vrot.lane.b32.xlu1 %v12393_v31, %s8882_s24  ;;  %7931 = vmatmul.mubr.msk.f32.gmra.mxu0 %vm2934_vm12, %v2899_v11 }
 0x3a0   :  { %v2015_v28 = vpop.permute.xlu0 %2014 }
 0x3a1   :  { %v2017_v26 = vpop.permute.xlu1 %2016  ;;  %v2708_v25 = vsel %vm1433_vm6, %v2676_v58, %v2015_v28  ;;  %v8795_v58 = vld [vmem:[#allocation2 + $0x2e0] sm:$0x3] }
 0x3a2   :  { %2126 = vrot.lane.b32.xlu0 %v12459_v34, %s8883_s25  ;;  %v2709_v41 = vsel %vm1433_vm6, %v2677_v5, %v2017_v26  ;;  %v2678_v5 = vsel %vm50_vm0, %v12145_v1, %v12051_v38 }
 0x3a3   :  { %2128 = vrot.lane.b32.xlu1 %v12463_v46, %s8883_s25 }
 0x3a4   :  { %v2111_v21 = vpop.permute.xlu0 %2110 }
 0x3a5   :  { %v2113_v4 = vpop.permute.xlu1 %2112  ;;  %v2740_v63 = vsel %vm1466_vm7, %v2708_v25, %v2111_v21  ;;  %v2679_v25 = vsel %vm50_vm0, %v12149_v36, %v12053_v9 }
 0x3a6   :  { %2222 = vrot.lane.b32.xlu0 %v16787_v49, %s8884_s26  ;;  %v2741_v50 = vsel %vm1466_vm7, %v2709_v41, %v2113_v4 }
 0x3a7   :  { %2224 = vrot.lane.b32.xlu1 %v16788_v32, %s8884_s26 }
 0x3a8   :  { %v2207_v15 = vpop.permute.xlu0 %2206 }
 0x3a9   :  { %v2209_v31 = vpop.permute.xlu1 %2208  ;;  %v2772_v6 = vsel %vm1499_vm8, %v2740_v63, %v2207_v15 }
 0x3aa   :  { %2318 = vrot.lane.b32.xlu0 %v12486_v7, %s8885_s27  ;;  %v2773_v48 = vsel %vm1499_vm8, %v2741_v50, %v2209_v31 }
 0x3ab   :  { %2320 = vrot.lane.b32.xlu1 %v12493_v43, %s8885_s27 }
 0x3ac   :  { %v2303_v61 = vpop.permute.xlu0 %2302 }
 0x3ad   :  { %v2305_v3 = vpop.permute.xlu1 %2304  ;;  %v2804_v10 = vsel %vm1532_vm9, %v2772_v6, %v2303_v61 }
 0x3ae   :  { %2414 = vrot.lane.b32.xlu0 %v12529_v17, %s8886_s28  ;;  %v2805_v60 = vsel %vm1532_vm9, %v2773_v48, %v2305_v3 }
 0x3af   :  { %2416 = vrot.lane.b32.xlu1 %v12533_v52, %s8886_s28 }
 0x3b0   :  { %v2399_v49 = vpop.permute.xlu0 %2398 }
 0x3b1   :  { %v2401_v32 = vpop.permute.xlu1 %2400  ;;  %v2836_v47 = vsel %vm1565_vm4, %v2804_v10, %v2399_v49  ;;  %v8793_v49 = vld [vmem:[#allocation2 + $0x2d0] sm:$0xff] }
 0x3b2   :  { %2510 = vrot.lane.b32.xlu0 %v16789_v30, %s8887_s23  ;;  %v2837_v20 = vsel %vm1565_vm4, %v2805_v60, %v2401_v32  ;;  %v1852_v12 = vrot.slane %v8793_v49, 2  ;;  %v1853_v32 = vrot.slane %v8794_v8, 2 }
 0x3b3   :  { %2512 = vrot.lane.b32.xlu1 %v16790_v39, %s8887_s23 }
 0x3b4   :  { %v2495_v45 = vpop.permute.xlu0 %2494  ;;  %v12613_v41 = vsel %vm526_vm3, %v1852_v12, %v1853_v32  ;;  %v2680_v12 = vsel %vm50_vm0, %v12202_v51, %v12060_v18 }
 0x3b5   :  { %v2497_v27 = vpop.permute.xlu1 %2496  ;;  %v2868_v53 = vsel %vm1598_vm10, %v2836_v47, %v2495_v45 }
 0x3b6   :  { %2606 = vrot.lane.b32.xlu0 %v12558_v24, %s8888_s2  ;;  %v2869_v28 = vsel %vm1598_vm10, %v2837_v20, %v2497_v27 }
 0x3b7   :  { %2608 = vrot.lane.b32.xlu1 %v12564_v23, %s8888_s2 }
 0x3b8   :  { %v2591_v11 = vpop.permute.xlu0 %2590 }
 0x3b9   :  { %v2900_v26 = vsel %vm1631_vm11, %v2868_v53, %v2591_v11  ;;  %v2593_v21 = vpop.permute.xlu1 %2592 }
 0x3ba   :  { %v2901_v4 = vsel %vm1631_vm11, %v2869_v28, %v2593_v21  ;;  %2034 = vrot.lane.b32.xlu0 %v12486_v7, %s8882_s24  ;;  %7933 = vmatprep.mubr.msk.f32.mxu0 %vm2934_vm12, %v2900_v26 }
 0x3bb   :  { %2036 = vrot.lane.b32.xlu1 %v12493_v43, %s8882_s24  ;;  %7934 = vmatmul.mubr.msk.f32.gmra.mxu0 %vm2934_vm12, %v2901_v4 }
 0x3bc   :  { %v2019_v15 = vpop.permute.xlu0 %2018 }
 0x3bd   :  { %v2021_v31 = vpop.permute.xlu1 %2020 }
 0x3be   :  { %2130 = vrot.lane.b32.xlu0 %v12529_v17, %s8883_s25  ;;  %v2711_v63 = vsel %vm1433_vm6, %v2679_v25, %v2021_v31 }
 0x3bf   :  { %2132 = vrot.lane.b32.xlu1 %v12533_v52, %s8883_s25 }
 0x3c0   :  { %v2115_v61 = vpop.permute.xlu0 %2114 }
 0x3c1   :  { %v2117_v3 = vpop.permute.xlu1 %2116 }
 0x3c2   :  { %2226 = vrot.lane.b32.xlu0 %v16789_v30, %s8884_s26  ;;  %v1855_v30 = vrot.slane %v8795_v58, 2  ;;  %v2743_v50 = vsel %vm1466_vm7, %v2711_v63, %v2117_v3 }
 0x3c3   :  { %2228 = vrot.lane.b32.xlu1 %v16790_v39, %s8884_s26  ;;  %v2710_v39 = vsel %vm1433_vm6, %v2678_v5, %v2019_v15 }
 0x3c4   :  { %v2211_v7 = vpop.permute.xlu0 %2210  ;;  %v2742_v45 = vsel %vm1466_vm7, %v2710_v39, %v2115_v61  ;;  %v12618_v1 = vsel %vm526_vm3, %v1853_v32, %v1855_v30  ;;  %v2681_v32 = vsel %vm50_vm0, %v12207_v33, %v12063_v44 }
 0x3c5   :  { %v2213_v43 = vpop.permute.xlu1 %2212  ;;  %v2774_v9 = vsel %vm1499_vm8, %v2742_v45, %v2211_v7  ;;  %v8796_v7 = vld [vmem:[#allocation2 + $0x2e8] sm:$0xff] }
 0x3c6   :  { %2322 = vrot.lane.b32.xlu0 %v12558_v24, %s8885_s27  ;;  %v2775_v6 = vsel %vm1499_vm8, %v2743_v50, %v2213_v43  ;;  %v8797_v43 = vld [vmem:[#allocation2 + $0x2f0] sm:$0xff] }
 0x3c7   :  { %2324 = vrot.lane.b32.xlu1 %v12564_v23, %s8885_s27 }
 0x3c8   :  { %v2307_v55 = vpop.permute.xlu0 %2306 }
 0x3c9   :  { %v2309_v2 = vpop.permute.xlu1 %2308  ;;  %v2806_v27 = vsel %vm1532_vm9, %v2774_v9, %v2307_v55  ;;  %v1858_v55 = vrot.slane %v8797_v43, 2 }
 0x3ca   :  { %2418 = vrot.lane.b32.xlu0 %v8793_v49, %s8886_s28  ;;  %v2807_v48 = vsel %vm1532_vm9, %v2775_v6, %v2309_v2 }
 0x3cb   :  { %2420 = vrot.lane.b32.xlu1 %v8794_v8, %s8886_s28 }
 0x3cc   :  { %v2403_v35 = vpop.permute.xlu0 %2402 }
 0x3cd   :  { %v2405_v40 = vpop.permute.xlu1 %2404  ;;  %v2838_v10 = vsel %vm1565_vm4, %v2806_v27, %v2403_v35 }
 0x3ce   :  { %2514 = vrot.lane.b32.xlu0 %v11365_v62, %s8887_s23  ;;  %v2839_v60 = vsel %vm1565_vm4, %v2807_v48, %v2405_v40 }
 0x3cf   :  { %2516 = vrot.lane.b32.xlu1 %v11374_v14, %s8887_s23 }
 0x3d0   :  { %v2499_v38 = vpop.permute.xlu0 %2498 }
 0x3d1   :  { %v2501_v36 = vpop.permute.xlu1 %2500  ;;  %v2870_v47 = vsel %vm1598_vm10, %v2838_v10, %v2499_v38 }
 0x3d2   :  { %2610 = vrot.lane.b32.xlu0 %v12613_v41, %s8888_s2  ;;  %v2871_v53 = vsel %vm1598_vm10, %v2839_v60, %v2501_v36 }
 0x3d3   :  { %2612 = vrot.lane.b32.xlu1 %v12618_v1, %s8888_s2 }
 0x3d4   :  { %v2595_v20 = vpop.permute.xlu0 %2594 }
 0x3d5   :  { %v2902_v11 = vsel %vm1631_vm11, %v2870_v47, %v2595_v20  ;;  %v2597_v28 = vpop.permute.xlu1 %2596 }
 0x3d6   :  { %v2903_v26 = vsel %vm1631_vm11, %v2871_v53, %v2597_v28  ;;  %2038 = vrot.lane.b32.xlu0 %v12558_v24, %s8882_s24  ;;  %7936 = vmatprep.mubr.msk.f32.mxu0 %vm2934_vm12, %v2902_v11 }
 0x3d7   :  { %2040 = vrot.lane.b32.xlu1 %v12564_v23, %s8882_s24  ;;  %7937 = vmatmul.mubr.msk.f32.gmra.mxu0 %vm2934_vm12, %v2903_v26 }
 0x3d8   :  { %v2023_v21 = vpop.permute.xlu0 %2022 }
 0x3d9   :  { %v2025_v4 = vpop.permute.xlu1 %2024  ;;  %v2712_v35 = vsel %vm1433_vm6, %v2680_v12, %v2023_v21 }
 0x3da   :  { %2134 = vrot.lane.b32.xlu0 %v8793_v49, %s8883_s25  ;;  %v2713_v30 = vsel %vm1433_vm6, %v2681_v32, %v2025_v4 }
 0x3db   :  { %2136 = vrot.lane.b32.xlu1 %v8794_v8, %s8883_s25 }
 0x3dc   :  { %v2119_v15 = vpop.permute.xlu0 %2118 }
 0x3dd   :  { %v2121_v31 = vpop.permute.xlu1 %2120  ;;  %v2744_v40 = vsel %vm1466_vm7, %v2712_v35, %v2119_v15  ;;  %v8799_v15 = vld [vmem:[#allocation2 + $0x300] sm:$0xff] }
 0x3de   :  { %2230 = vrot.lane.b32.xlu0 %v11365_v62, %s8884_s26  ;;  %v1857_v62 = vrot.slane %v8796_v7, 2  ;;  %v2745_v5 = vsel %vm1466_vm7, %v2713_v30, %v2121_v31  ;;  %v8800_v31 = vld [vmem:[#allocation2 + $0x308] sm:$0xff] }
 0x3df   :  { %2232 = vrot.lane.b32.xlu1 %v11374_v14, %s8884_s26  ;;  %v8798_v14 = vld [vmem:[#allocation2 + $0x2f8] sm:$0x3] }
 0x3e0   :  { %v2215_v24 = vpop.permute.xlu0 %2214  ;;  %v1860_v49 = vrot.slane %v8798_v14, 2  ;;  %v12665_v58 = vsel %vm526_vm3, %v1857_v62, %v1858_v55  ;;  %v2682_v62 = vsel %vm50_vm0, %v12271_v42, %v12067_v13 }
 0x3e1   :  { %v2217_v61 = vpop.permute.xlu1 %2216  ;;  %v2776_v44 = vsel %vm1499_vm8, %v2744_v40, %v2215_v24  ;;  %v1862_v24 = vrot.slane %v8799_v15, 2 }
 0x3e2   :  { %2326 = vrot.lane.b32.xlu0 %v12613_v41, %s8885_s27  ;;  %v12670_v51 = vsel %vm526_vm3, %v1858_v55, %v1860_v49  ;;  %v2777_v25 = vsel %vm1499_vm8, %v2745_v5, %v2217_v61  ;;  %v1863_v61 = vrot.slane %v8800_v31, 2  ;;  %v2683_v55 = vsel %vm50_vm0, %v12275_v22, %v12069_v59 }
 0x3e3   :  { %2328 = vrot.lane.b32.xlu1 %v12618_v1, %s8885_s27 }
 0x3e4   :  { %v2311_v23 = vpop.permute.xlu0 %2310  ;;  %v12721_v14 = vsel %vm526_vm3, %v1862_v24, %v1863_v61 }
 0x3e5   :  { %v2313_v3 = vpop.permute.xlu1 %2312  ;;  %v2808_v39 = vsel %vm1532_vm9, %v2776_v44, %v2311_v23 }
 0x3e6   :  { %2422 = vrot.lane.b32.xlu0 %v8796_v7, %s8886_s28  ;;  %v2809_v63 = vsel %vm1532_vm9, %v2777_v25, %v2313_v3  ;;  %v8801_v3 = vld [vmem:[#allocation2 + $0x310] sm:$0x3] }
 0x3e7   :  { %2424 = vrot.lane.b32.xlu1 %v8797_v43, %s8886_s28 }
 0x3e8   :  { %v2407_v2 = vpop.permute.xlu0 %2406 }
 0x3e9   :  { %v2409_v8 = vpop.permute.xlu1 %2408  ;;  %v2840_v45 = vsel %vm1565_vm4, %v2808_v39, %v2407_v2 }
 0x3ea   :  { %2518 = vrot.lane.b32.xlu0 %v11395_v0, %s8887_s23  ;;  %v2841_v38 = vsel %vm1565_vm4, %v2809_v63, %v2409_v8 }
 0x3eb   :  { %2520 = vrot.lane.b32.xlu1 %v11402_v37, %s8887_s23 }
 0x3ec   :  { %v2503_v18 = vpop.permute.xlu0 %2502 }
 0x3ed   :  { %v2505_v33 = vpop.permute.xlu1 %2504  ;;  %v2872_v50 = vsel %vm1598_vm10, %v2840_v45, %v2503_v18 }
 0x3ee   :  { %2614 = vrot.lane.b32.xlu0 %v12665_v58, %s8888_s2  ;;  %v2873_v36 = vsel %vm1598_vm10, %v2841_v38, %v2505_v33 }
 0x3ef   :  { %2616 = vrot.lane.b32.xlu1 %v12670_v51, %s8888_s2 }
 0x3f0   :  { %v2599_v9 = vpop.permute.xlu0 %2598 }
 0x3f1   :  { %v2904_v6 = vsel %vm1631_vm11, %v2872_v50, %v2599_v9  ;;  %v2601_v27 = vpop.permute.xlu1 %2600 }
 0x3f2   :  { %v2905_v48 = vsel %vm1631_vm11, %v2873_v36, %v2601_v27  ;;  %2042 = vrot.lane.b32.xlu0 %v12613_v41, %s8882_s24  ;;  %7939 = vmatprep.mubr.msk.f32.mxu0 %vm2934_vm12, %v2904_v6 }
 0x3f3   :  { %2044 = vrot.lane.b32.xlu1 %v12618_v1, %s8882_s24  ;;  %7940 = vmatmul.mubr.msk.f32.gmra.mxu0 %vm2934_vm12, %v2905_v48 }
 0x3f4   :  { %v2027_v10 = vpop.permute.xlu0 %2026 }
 0x3f5   :  { %v2029_v60 = vpop.permute.xlu1 %2028  ;;  %v2714_v2 = vsel %vm1433_vm6, %v2682_v62, %v2027_v10 }
 0x3f6   :  { %2138 = vrot.lane.b32.xlu0 %v8796_v7, %s8883_s25  ;;  %v1865_v7 = vrot.slane %v8801_v3, 2  ;;  %v2715_v49 = vsel %vm1433_vm6, %v2683_v55, %v2029_v60 }
 0x3f7   :  { %2140 = vrot.lane.b32.xlu1 %v8797_v43, %s8883_s25 }
 0x3f8   :  { %v2123_v47 = vpop.permute.xlu0 %2122  ;;  %v12726_v42 = vsel %vm526_vm3, %v1863_v61, %v1865_v7 }
 0x3f9   :  { %v2125_v20 = vpop.permute.xlu1 %2124  ;;  %v2746_v8 = vsel %vm1466_vm7, %v2714_v2, %v2123_v47 }
 0x3fa   :  { %2234 = vrot.lane.b32.xlu0 %v11395_v0, %s8884_s26  ;;  %v2747_v12 = vsel %vm1466_vm7, %v2715_v49, %v2125_v20  ;;  %v8802_v20 = vld [vmem:[#allocation2 + $0x318] sm:$0xff] }
 0x3fb   :  { %2236 = vrot.lane.b32.xlu1 %v11402_v37, %s8884_s26 }
 0x3fc   :  { %v2219_v41 = vpop.permute.xlu0 %2218  ;;  %v7920_v1 = vpop.f32.mrf.mxu0 }
 0x3fd   :  { %v2221_v53 = vpop.permute.xlu1 %2220  ;;  %v3363_v11 = vadd.f32 %v7920_v1, %v12263_v56  ;;  %v2778_v59 = vsel %vm1499_vm8, %v2746_v8, %v2219_v41  ;;  %v8803_v41 = vld [vmem:[#allocation2 + $0x320] sm:$0xff] }
 0x3fe   :  { %2330 = vrot.lane.b32.xlu0 %v12665_v58, %s8885_s27  ;;  %v3357_v26 = vpop.f32.mrf.mxu0  ;;  %v2779_v32 = vsel %vm1499_vm8, %v2747_v12, %v2221_v53  ;;  %v1868_v53 = vrot.slane %v8803_v41, 2 }
 0x3ff   :  { %2332 = vrot.lane.b32.xlu1 %v12670_v51, %s8885_s27  ;;  %v3549_v21 = vmax.f32 %v3363_v11, 0.0  ;;  %v3358_v4 = vadd.f32 %v12263_v56, %v3357_v26  ;;  %v2684_v26 = vsel %vm50_vm0, %v12363_v29, %v12075_v19 }
 0x400   :  { %v2315_v28 = vpop.permute.xlu0 %2314 }
 0x401   :  { %v2317_v0 = vpop.permute.xlu1 %2316  ;;  %3723 = vst.msk [vmem:[#allocation3 + $0x1d1] sm:$0xff] %vm1565_vm4, %v3549_v21  ;;  %v3548_v37 = vmax.f32 %v3358_v4, 0.0  ;;  %v2810_v35 = vsel %vm1532_vm9, %v2778_v59, %v2315_v28  ;;  %v16791_v21 = vld [vmem:[#allocation65_spill] sm:$0xff]  ;;  %v16792_v4 = vld [vmem:[#allocation67_spill] sm:$0xff] }
 0x402   :  { %2426 = vrot.lane.b32.xlu0 %v8799_v15, %s8886_s28  ;;  %v2811_v30 = vsel %vm1532_vm9, %v2779_v32, %v2317_v0  ;;  %v2685_v0 = vsel %vm50_vm0, %v12367_v16, %v16792_v4  ;;  %v12876_v4 = vld [vmem:[%s16008_s4 + $0x48] sm:$0xff] }
 0x403   :  { %2428 = vrot.lane.b32.xlu1 %v8800_v31, %s8886_s28  ;;  %3722 = vst.msk [vmem:[#allocation3 + $0x1c9] sm:$0xff] %vm1565_vm4, %v3548_v37  ;;  %v16793_v37 = vld [vmem:[#allocation66_spill] sm:$0xff] }
 0x404   :  { %v2411_v23 = vpop.permute.xlu0 %2410 }
 0x405   :  { %v2413_v43 = vpop.permute.xlu1 %2412  ;;  %v2842_v40 = vsel %vm1565_vm4, %v2810_v35, %v2411_v23 }
 0x406   :  { %2522 = vrot.lane.b32.xlu0 %v11425_v57, %s8887_s23  ;;  %v2843_v5 = vsel %vm1565_vm4, %v2811_v30, %v2413_v43 }
 0x407   :  { %2524 = vrot.lane.b32.xlu1 %v11432_v54, %s8887_s23 }
 0x408   :  { %v2507_v13 = vpop.permute.xlu0 %2506 }
 0x409   :  { %v2509_v22 = vpop.permute.xlu1 %2508  ;;  %v2874_v44 = vsel %vm1598_vm10, %v2842_v40, %v2507_v13  ;;  %v12799_v13 = vld [vmem:[%s16007_s3] ss:$0 sm:$0xff] }
 0x40a   :  { %2618 = vrot.lane.b32.xlu0 %v12721_v14, %s8888_s2  ;;  %v2875_v39 = vsel %vm1598_vm10, %v2843_v5, %v2509_v22 }
 0x40b   :  { %v7923_v18 = vpop.f32.mrf.mxu0  ;;  %2620 = vrot.lane.b32.xlu1 %v12726_v42, %s8888_s2 }
 0x40c   :  { %v3373_v33 = vadd.f32 %v7923_v18, %v12263_v56  ;;  %v2603_v25 = vpop.permute.xlu0 %2602 }
 0x40d   :  { %v2906_v63 = vsel %vm1631_vm11, %v2874_v44, %v2603_v25  ;;  %v3367_v45 = vpop.f32.mrf.mxu0  ;;  %v2605_v38 = vpop.permute.xlu1 %2604 }
 0x40e   :  { %v3551_v50 = vmax.f32 %v3373_v33, 0.0  ;;  %v3368_v9 = vadd.f32 %v12263_v56, %v3367_v45  ;;  %v2907_v36 = vsel %vm1631_vm11, %v2875_v39, %v2605_v38  ;;  %2046 = vrot.lane.b32.xlu0 %v12665_v58, %s8882_s24  ;;  %7942 = vmatprep.mubr.msk.f32.mxu0 %vm2934_vm12, %v2906_v63  ;;  %v6398_v45 = vld [vmem:[%s16008_s4 + $0x70] sm:$0xff] }
 0x40f   :  { %2048 = vrot.lane.b32.xlu1 %v12670_v51, %s8882_s24  ;;  %7943 = vmatmul.mubr.msk.f32.gmra.mxu0 %vm2934_vm12, %v2907_v36 }
 0x410   :  { %3725 = vst.msk [vmem:[#allocation3 + $0x1e9] sm:$0xff] %vm1565_vm4, %v3551_v50  ;;  %v3550_v6 = vmax.f32 %v3368_v9, 0.0  ;;  %v2031_v27 = vpop.permute.xlu0 %2030  ;;  %v12827_v50 = vld [vmem:[#allocation2 + $0x330] sm:$0xff]  ;;  %v12829_v9 = vld [vmem:[#allocation2 + $0x338] sm:$0xff] }
 0x411   :  { %v2033_v48 = vpop.permute.xlu1 %2032 }
 0x412   :  { %3724 = vst.msk [vmem:[#allocation3 + $0x1e1] sm:$0xff] %vm1565_vm4, %v3550_v6  ;;  %2142 = vrot.lane.b32.xlu0 %v8799_v15, %s8883_s25  ;;  %v2716_v15 = vsel %vm1433_vm6, %v2684_v26, %v2031_v27  ;;  %v2717_v24 = vsel %vm1433_vm6, %v2685_v0, %v2033_v48  ;;  %v393_v6 = vld [vmem:[#allocation2 + $0x340] sm:$0x3]  ;;  %v1875_v27 = vrot.slane %v12827_v50, 1  ;;  %v1876_v48 = vrot.slane %v12829_v9, 1  ;;  %v16796_v0 = vld [vmem:[#allocation69_spill] sm:$0xff] }
 0x413   :  { %2144 = vrot.lane.b32.xlu1 %v8800_v31, %s8883_s25  ;;  %v16795_v26 = vld [vmem:[#allocation68_spill] sm:$0xff] }
 0x414   :  { %v2127_v56 = vpop.permute.xlu0 %2126 }
 0x415   :  { %v2129_v58 = vpop.permute.xlu1 %2128  ;;  %v2748_v61 = vsel %vm1466_vm7, %v2716_v15, %v2127_v56  ;;  %v2687_v15 = vsel %vm50_vm0, %v12463_v46, %v16796_v0  ;;  %v12896_v46 = vld [vmem:[%s16008_s4 + $0x40] sm:$0xff] }
 0x416   :  { %2238 = vrot.lane.b32.xlu0 %v11425_v57, %s8884_s26  ;;  %v1867_v57 = vrot.slane %v8802_v20, 2  ;;  %v2749_v23 = vsel %vm1466_vm7, %v2717_v24, %v2129_v58  ;;  %v1878_v58 = vrot.slane %v393_v6, 1 }
 0x417   :  { %2240 = vrot.lane.b32.xlu1 %v11432_v54, %s8884_s26  ;;  %v8804_v54 = vld [vmem:[#allocation2 + $0x328] sm:$0x3] }
 0x418   :  { %v2223_v51 = vpop.permute.xlu0 %2222  ;;  %v1870_v11 = vrot.slane %v8804_v54, 2  ;;  %v12777_v31 = vsel %vm526_vm3, %v1867_v57, %v1868_v53  ;;  %v12857_v57 = vsel %vm445_vm2, %v1875_v27, %v1876_v48  ;;  %v1883_v54 = vrot.slane %v393_v6, 2  ;;  %v394_v6 = vld [vmem:[#allocation2 + $0x348] sm:$0xff]  ;;  %v12989_v27 = vld [vmem:[#allocation2 + $0x350] sm:$0xff] }
 0x419   :  { %v2225_v10 = vpop.permute.xlu1 %2224  ;;  %v2780_v16 = vsel %vm1499_vm8, %v2748_v61, %v2223_v51  ;;  %v6397_v51 = vld [vmem:[%s16008_s4 + $0x68] sm:$0xff] }
 0x41a   :  { %2334 = vrot.lane.b32.xlu0 %v12721_v14, %s8885_s27  ;;  %v12782_v29 = vsel %vm526_vm3, %v1868_v53, %v1870_v11  ;;  %v2781_v7 = vsel %vm1499_vm8, %v2749_v23, %v2225_v10  ;;  %v6394_v11 = vld [vmem:[%s16008_s4 + $0x50] sm:$0xff] }
 0x41b   :  { %2336 = vrot.lane.b32.xlu1 %v12726_v42, %s8885_s27 }
 0x41c   :  { %v2319_v60 = vpop.permute.xlu0 %2318 }
 0x41d   :  { %v2321_v47 = vpop.permute.xlu1 %2320  ;;  %v2812_v43 = vsel %vm1532_vm9, %v2780_v16, %v2319_v60  ;;  %v6396_v60 = vld [vmem:[%s16008_s4 + $0x60] sm:$0xff] }
 0x41e   :  { %2430 = vrot.lane.b32.xlu0 %v8802_v20, %s8886_s28  ;;  %v2813_v62 = vsel %vm1532_vm9, %v2781_v7, %v2321_v47  ;;  %v6395_v47 = vld [vmem:[%s16008_s4 + $0x58] sm:$0xff] }
 0x41f   :  { %2432 = vrot.lane.b32.xlu1 %v8803_v41, %s8886_s28 }
 0x420   :  { %v2415_v1 = vpop.permute.xlu0 %2414 }
 0x421   :  { %v2417_v28 = vpop.permute.xlu1 %2416  ;;  %v2844_v55 = vsel %vm1565_vm4, %v2812_v43, %v2415_v1  ;;  %v12860_v1 = vsel %vm445_vm2, %v1876_v48, %v1878_v58  ;;  %v12995_v48 = vld [vmem:[%s16008_s4 + $0x8] sm:$0xff]  ;;  %v396_v58 = vld [vmem:[#allocation2 + $0x358] sm:$0x3] }
 0x422   :  { %2526 = vrot.lane.b32.xlu0 %v16791_v21, %s8887_s23  ;;  %v2845_v49 = vsel %vm1565_vm4, %v2813_v62, %v2417_v28 }
 0x423   :  { %2528 = vrot.lane.b32.xlu1 %v16793_v37, %s8887_s23 }
 0x424   :  { %v2511_v19 = vpop.permute.xlu0 %2510 }
 0x425   :  { %v2513_v3 = vpop.permute.xlu1 %2512  ;;  %v2876_v8 = vsel %vm1598_vm10, %v2844_v55, %v2511_v19  ;;  %v12910_v55 = vld [vmem:[%s16008_s4 + $0x38] sm:$0xff] }
 0x426   :  { %2622 = vrot.lane.b32.xlu0 %v12777_v31, %s8888_s2  ;;  %v2877_v22 = vsel %vm1598_vm10, %v2845_v49, %v2513_v3 }
 0x427   :  { %v7926_v2 = vpop.f32.mrf.mxu0  ;;  %2624 = vrot.lane.b32.xlu1 %v12782_v29, %s8888_s2 }
 0x428   :  { %v3383_v12 = vadd.f32 %v12799_v13, %v7926_v2  ;;  %v2607_v59 = vpop.permute.xlu0 %2606 }
 0x429   :  { %v2908_v32 = vsel %vm1631_vm11, %v2876_v8, %v2607_v59  ;;  %v3377_v35 = vpop.f32.mrf.mxu0  ;;  %v2609_v30 = vpop.permute.xlu1 %2608 }
 0x42a   :  { %v3553_v40 = vmax.f32 %v3383_v12, 0.0  ;;  %v3378_v18 = vadd.f32 %v12799_v13, %v3377_v35  ;;  %v2909_v5 = vsel %vm1631_vm11, %v2877_v22, %v2609_v30  ;;  %2050 = vrot.lane.b32.xlu0 %v12721_v14, %s8882_s24  ;;  %7945 = vmatprep.mubr.msk.f32.mxu0 %vm2934_vm12, %v2908_v32  ;;  %v6399_v14 = vld [vmem:[%s16008_s4 + $0x78] sm:$0xff] }
 0x42b   :  { %2052 = vrot.lane.b32.xlu1 %v12726_v42, %s8882_s24  ;;  %7946 = vmatmul.mubr.msk.f32.gmra.mxu0 %vm2934_vm12, %v2909_v5  ;;  %v16794_v42 = vmov 0.0  }
 0x42c   :  { %3727 = vst.msk [vmem:[#allocation3 + $0x201] sm:$0xff] %vm1565_vm4, %v3553_v40  ;;  %v3552_v44 = vmax.f32 %v3378_v18, 0.0  ;;  %v2035_v33 = vpop.permute.xlu0 %2034  ;;  %8050 = vmatpush1.msra.mxu1 %v6399_v14  ;;  %6612 = vmatpush1.msra.mxu0 %v6399_v14 }
 0x42d   :  { %v2037_v25 = vpop.permute.xlu1 %2036  ;;  %8024 = vmatprep.subr.mxu1 %v16794_v42  ;;  %6613 = vmatprep.subr.mxu0 %v16794_v42 }
 0x42e   :  { %3726 = vst.msk [vmem:[#allocation3 + $0x1f9] sm:$0xff] %vm1565_vm4, %v3552_v44  ;;  %2146 = vrot.lane.b32.xlu0 %v8802_v20, %s8883_s25  ;;  %8051 = vmatpush1.msra.mxu1 %v6398_v45  ;;  %v1880_v20 = vrot.slane %v12827_v50, 2  ;;  %v2719_v24 = vsel %vm1433_vm6, %v2687_v15, %v2037_v25  ;;  %v12933_v25 = vld [vmem:[%s16008_s4 + $0x30] sm:$0xff] }
 0x42f   :  { %2148 = vrot.lane.b32.xlu1 %v8803_v41, %s8883_s25  ;;  %8025 = vmatprep.subr.mxu1 %v16794_v42  ;;  %v1881_v41 = vrot.slane %v12829_v9, 2 }
 0x430   :  { %v2131_v39 = vpop.permute.xlu0 %2130  ;;  %6614 = vmatpush1.msra.mxu0 %v6398_v45  ;;  %8052 = vmatpush1.msra.mxu1 %v6397_v51 }
 0x431   :  { %v2133_v63 = vpop.permute.xlu1 %2132  ;;  %6615 = vmatprep.subr.mxu0 %v16794_v42  ;;  %8026 = vmatprep.subr.mxu1 %v16794_v42  ;;  %v12890_v23 = vsel %vm526_vm3, %v1881_v41, %v1883_v54  ;;  %v3780_v54 = vld [vmem:[#allocation3 + $0xd0] sm:$0x3] }
 0x432   :  { %2242 = vrot.lane.b32.xlu0 %v16791_v21, %s8884_s26  ;;  %8053 = vmatpush1.msra.mxu1 %v6396_v60  ;;  %v2686_v21 = vsel %vm50_vm0, %v12459_v34, %v16795_v26  ;;  %v12885_v34 = vsel %vm526_vm3, %v1880_v20, %v1881_v41  ;;  %v2751_v16 = vsel %vm1466_vm7, %v2719_v24, %v2133_v63  ;;  %v13015_v20 = vld [vmem:[#allocation3 + $0xc8] sm:$0xff]  ;;  %v13045_v24 = vld [vmem:[%s16008_s4 + $0xc0] sm:$0xff] }
 0x433   :  { %2244 = vrot.lane.b32.xlu1 %v16793_v37, %s8884_s26  ;;  %8027 = vmatprep.subr.mxu1 %v16794_v42  ;;  %v2718_v37 = vsel %vm1433_vm6, %v2686_v21, %v2035_v33  ;;  %v13033_v26 = vld [vmem:[%s16008_s4 + $0xc8] sm:$0xff]  ;;  %v1893_v21 = vrot.slane %v394_v6, 2 }
 0x434   :  { %v2227_v38 = vpop.permute.xlu0 %2226  ;;  %6616 = vmatpush1.msra.mxu0 %v6397_v51  ;;  %8054 = vmatpush1.msra.mxu1 %v6395_v47  ;;  %v2750_v61 = vsel %vm1466_vm7, %v2718_v37, %v2131_v39  ;;  %v13008_v51 = vld [vmem:[%s16008_s4] sm:$0xff] }
 0x435   :  { %v2229_v36 = vpop.permute.xlu1 %2228  ;;  %6617 = vmatprep.subr.mxu0 %v16794_v42  ;;  %8028 = vmatprep.subr.mxu1 %v16794_v42  ;;  %v2782_v3 = vsel %vm1499_vm8, %v2750_v61, %v2227_v38  ;;  %v12969_v38 = vld [vmem:[%s16008_s4 + $0x18] sm:$0xff] }
 0x436   :  { %2338 = vrot.lane.b32.xlu0 %v12777_v31, %s8885_s27  ;;  %8055 = vmatpush1.msra.mxu1 %v6394_v11  ;;  %v2783_v43 = vsel %vm1499_vm8, %v2751_v16, %v2229_v36  ;;  %v16797_v16 = vld [vmem:[#allocation70_spill] sm:$0xff] }
 0x437   :  { %2340 = vrot.lane.b32.xlu1 %v12782_v29, %s8885_s27  ;;  %8029 = vmatprep.subr.mxu1 %v16794_v42 }
 0x438   :  { %v2323_v56 = vpop.permute.xlu0 %2322  ;;  %6618 = vmatpush1.msra.mxu0 %v6396_v60  ;;  %8056 = vmatpush1.msra.mxu1 %v12876_v4  ;;  %v1889_v60 = vrot.slane %v12989_v27, 1 }
 0x439   :  { %v2325_v10 = vpop.permute.xlu1 %2324  ;;  %6619 = vmatprep.subr.mxu0 %v16794_v42  ;;  %v2814_v62 = vsel %vm1532_vm9, %v2782_v3, %v2323_v56  ;;  %8030 = vmatprep.subr.mxu1 %v16794_v42  ;;  %v2688_v3 = vsel %vm50_vm0, %v12529_v17, %v16797_v16 }
 0x43a   :  { %2434 = vrot.lane.b32.xlu0 %v12827_v50, %s8886_s28  ;;  %v2815_v2 = vsel %vm1532_vm9, %v2783_v43, %v2325_v10  ;;  %8057 = vmatpush1.msra.mxu1 %v12896_v46  ;;  %v1888_v10 = vrot.slane %v394_v6, 1 }
 0x43b   :  { %2436 = vrot.lane.b32.xlu1 %v12829_v9, %s8886_s28  ;;  %8031 = vmatprep.subr.mxu1 %v16794_v42 }
 0x43c   :  { %v2419_v53 = vpop.permute.xlu0 %2418  ;;  %6620 = vmatpush1.msra.mxu0 %v6395_v47  ;;  %8058 = vmatpush1.msra.mxu1 %v12910_v55  ;;  %v13013_v47 = vld [vmem:[#allocation3 + $0xc0] sm:$0xff]  ;;  %v1890_v0 = vsel %vm445_vm2, %v1888_v10, %v1889_v60 }
 0x43d   :  { %v2421_v28 = vpop.permute.xlu1 %2420  ;;  %v2846_v49 = vsel %vm1565_vm4, %v2814_v62, %v2419_v53  ;;  %6621 = vmatprep.subr.mxu0 %v16794_v42  ;;  %8032 = vmatprep.subr.mxu1 %v16794_v42  ;;  %v13022_v53 = vld [vmem:[%s16008_s4 + $0xd0] sm:$0xff] }
 0x43e   :  { %2530 = vrot.lane.b32.xlu0 %v12857_v57, %s8887_s23  ;;  %v2847_v12 = vsel %vm1565_vm4, %v2815_v2, %v2421_v28  ;;  %6622 = vmatpush1.msra.mxu0 %v6394_v11  ;;  %v3950_v11 = vrot.slane %v13013_v47, 1  ;;  %v3951_v28 = vrot.slane %v13015_v20, 1 }
 0x43f   :  { %2532 = vrot.lane.b32.xlu1 %v12860_v1, %s8887_s23  ;;  %8059 = vmatpush1.msra.mxu1 %v12933_v25 }
 0x440   :  { %v2515_v19 = vpop.permute.xlu0 %2514  ;;  %6623 = vmatprep.subr.mxu0 %v16794_v42  ;;  %8033 = vmatprep.subr.mxu1 %v16794_v42  ;;  %v13060_v62 = vsel %vm445_vm2, %v3950_v11, %v3951_v28 }
 0x441   :  { %v2517_v7 = vpop.permute.xlu1 %2516  ;;  %v2878_v59 = vsel %vm1598_vm10, %v2846_v49, %v2515_v19  ;;  %6624 = vmatpush1.msra.mxu0 %v12876_v4  ;;  %v1894_v4 = vrot.slane %v12989_v27, 2  ;;  %v3953_v19 = vrot.slane %v3780_v54, 1 }
 0x442   :  { %2626 = vrot.lane.b32.xlu0 %v12885_v34, %s8888_s2  ;;  %v2879_v35 = vsel %vm1598_vm10, %v2847_v12, %v2517_v7  ;;  %6625 = vmatprep.subr.mxu0 %v16794_v42  ;;  %v16798_v7 = vld [vmem:[#allocation71_spill] sm:$0xff] }
 0x443   :  { %v7929_v8 = vpop.f32.mrf.mxu0  ;;  %2628 = vrot.lane.b32.xlu1 %v12890_v23, %s8888_s2  ;;  %6626 = vmatpush1.msra.mxu0 %v12896_v46  ;;  %v4031_v46 = vrot.slane %v13015_v20, 2  ;;  %v2689_v43 = vsel %vm50_vm0, %v12533_v52, %v16798_v7  ;;  %v1895_v17 = vsel %vm526_vm3, %v1893_v21, %v1894_v4  ;;  %v13073_v52 = vsel %vm445_vm2, %v3951_v28, %v3953_v19 }
 0x444   :  { %v3393_v22 = vadd.f32 %v12799_v13, %v7929_v8  ;;  %v2611_v32 = vpop.permute.xlu0 %2610  ;;  %6627 = vmatprep.subr.mxu0 %v16794_v42 }
 0x445   :  { %v2910_v30 = vsel %vm1631_vm11, %v2878_v59, %v2611_v32  ;;  %v3387_v40 = vpop.f32.mrf.mxu0  ;;  %v2613_v18 = vpop.permute.xlu1 %2612  ;;  %6628 = vmatpush1.msra.mxu0 %v12910_v55  ;;  %v13066_v55 = vld [vmem:[%s16008_s4 + $0xb8] sm:$0xff]  ;;  %v13085_v32 = vld [vmem:[%s16008_s4 + $0xb0] sm:$0xff] }
 0x446   :  { %v3555_v5 = vmax.f32 %v3393_v22, 0.0  ;;  %v3388_v44 = vadd.f32 %v12799_v13, %v3387_v40  ;;  %v2911_v33 = vsel %vm1631_vm11, %v2879_v35, %v2613_v18  ;;  %2054 = vrot.lane.b32.xlu0 %v12777_v31, %s8882_s24  ;;  %7948 = vmatprep.mubr.msk.f32.mxu0 %vm2934_vm12, %v2910_v30  ;;  %v12945_v31 = vld [vmem:[%s16008_s4 + $0x28] sm:$0xff]  ;;  %v4033_v22 = vrot.slane %v3780_v54, 2 }
 0x447   :  { %2056 = vrot.lane.b32.xlu1 %v12782_v29, %s8882_s24  ;;  %7949 = vmatmul.mubr.msk.f32.gmra.mxu0 %vm2934_vm12, %v2911_v33  ;;  %v12958_v29 = vld [vmem:[%s16008_s4 + $0x20] sm:$0xff] }
 0x448   :  { %3729 = vst.msk [vmem:[#allocation3 + $0x219] sm:$0xff] %vm1565_vm4, %v3555_v5  ;;  %v3554_v39 = vmax.f32 %v3388_v44, 0.0  ;;  %v12939_v14 = vpop.permute.xlu0 %2038  ;;  %8060 = vmatpush1.msra.mxu1 %v12945_v31  ;;  %6629 = vmatprep.subr.mxu0 %v16794_v42  ;;  %v13095_v5 = vld [vmem:[#allocation3 + $0xd8] sm:$0xff] }
 0x449   :  { %v12947_v63 = vpop.permute.xlu1 %2040  ;;  %8034 = vmatprep.subr.mxu1 %v16794_v42  ;;  %6630 = vmatpush1.msra.mxu0 %v12933_v25  ;;  %v2720_v2 = vsel %vm1433_vm6, %v2688_v3, %v12939_v14  ;;  %v13104_v25 = vsel %vm526_vm3, %v4031_v46, %v4033_v22  ;;  %v13112_v14 = vld [vmem:[%s16008_s4 + $0xa8] sm:$0xff] }
 0x44a   :  { %3728 = vst.msk [vmem:[#allocation3 + $0x211] sm:$0xff] %vm1565_vm4, %v3554_v39  ;;  %2150 = vrot.lane.b32.xlu0 %v12827_v50, %s8883_s25  ;;  %8061 = vmatpush1.msra.mxu1 %v12958_v29  ;;  %v2721_v49 = vsel %vm1433_vm6, %v2689_v43, %v12947_v63  ;;  %v13106_v39 = vld [vmem:[#allocation3 + $0xe0] sm:$0xff]  ;;  %v13178_v43 = vld [vmem:[%s16008_s4 + $0x90] sm:$0xff] }
 0x44b   :  { %2152 = vrot.lane.b32.xlu1 %v12829_v9, %s8883_s25  ;;  %8035 = vmatprep.subr.mxu1 %v16794_v42  ;;  %v12982_v9 = vld [vmem:[%s16008_s4 + $0x10] sm:$0xff]  ;;  %v4036_v54 = vrot.slane %v13106_v39, 2  ;;  %v3956_v16 = vrot.slane %v13106_v39, 1  ;;  %s8891_s25 = smov 72  }
 0x44c   :  { %v12963_v45 = vpop.permute.xlu0 %2134  ;;  %8062 = vmatpush1.msra.mxu1 %v12969_v38  ;;  %6631 = vmatprep.subr.mxu0 %v16794_v42 }
 0x44d   :  { %v12972_v50 = vpop.permute.xlu1 %2136  ;;  %8036 = vmatprep.subr.mxu1 %v16794_v42  ;;  %v2752_v8 = vsel %vm1466_vm7, %v2720_v2, %v12963_v45  ;;  %6632 = vmatpush1.msra.mxu0 %v12945_v31 }
 0x44e   :  { %2246 = vrot.lane.b32.xlu0 %v12857_v57, %s8884_s26  ;;  %8063 = vmatpush1.msra.mxu1 %v12982_v9  ;;  %v1891_v57 = vrot.slane %v396_v58, 1  ;;  %v2753_v35 = vsel %vm1466_vm7, %v2721_v49, %v12972_v50  ;;  %v8093_v50 = vpack.i.bf16 %v13073_v52, %v13060_v62  ;;  %v13191_v49 = vld [vmem:[%s16008_s4 + $0x88] sm:$0xff] }
 0x44f   :  { %2248 = vrot.lane.b32.xlu1 %v12860_v1, %s8884_s26  ;;  %8037 = vmatprep.subr.mxu1 %v16794_v42 }
 0x450   :  { %v12987_v36 = vpop.permute.xlu0 %2230  ;;  %8064 = vmatpush1.msra.mxu1 %v12995_v48  ;;  %v1892_v37 = vsel %vm445_vm2, %v1889_v60, %v1891_v57  ;;  %6633 = vmatprep.subr.mxu0 %v16794_v42 }
 0x451   :  { %v12998_v56 = vpop.permute.xlu1 %2232  ;;  %8038 = vmatprep.subr.mxu1 %v16794_v42  ;;  %v2784_v30 = vsel %vm1499_vm8, %v2752_v8, %v12987_v36  ;;  %6634 = vmatpush1.msra.mxu0 %v12958_v29  ;;  %v13144_v29 = vld [vmem:[#allocation3 + $0xf0] sm:$0xff] }
 0x452   :  { %2342 = vrot.lane.b32.xlu0 %v12885_v34, %s8885_s27  ;;  %8065 = vmatpush1.msra.mxu1 %v13008_v51  ;;  %v1896_v34 = vrot.slane %v396_v58, 2  ;;  %v2785_v44 = vsel %vm1499_vm8, %v2753_v35, %v12998_v56  ;;  %v4035_v58 = vrot.slane %v13095_v5, 2  ;;  %v3960_v3 = vrot.slane %v13144_v29, 1 }
 0x453   :  { %2344 = vrot.lane.b32.xlu1 %v12890_v23, %s8885_s27  ;;  %8039 = vmatprep.subr.mxu1 %v16794_v42  ;;  %v4030_v23 = vrot.slane %v13013_v47, 2  ;;  %s8890_s27 = smov 120   ;;  %v4040_v35 = vrot.slane %v13144_v29, 2 }
 0x454   :  { %v2327_v41 = vpop.permute.xlu0 %2326  ;;  %8066 = vmatpush2.msra.mxu1 %v13022_v53  ;;  %v1897_v59 = vsel %vm526_vm3, %v1894_v4, %v1896_v34  ;;  %v13140_v4 = vld [vmem:[%s16008_s4 + $0xa0] sm:$0xff]  ;;  %v3783_v34 = vld [vmem:[#allocation3 + $0xe8] sm:$0x3]  ;;  %6635 = vmatprep.subr.mxu0 %v16794_v42 }
 0x455   :  { %v2329_v1 = vpop.permute.xlu1 %2328  ;;  %8040 = vmatprep.subr.mxu1 %v16794_v42  ;;  %v13093_v18 = vsel %vm526_vm3, %v4030_v23, %v4031_v46  ;;  %v2816_v33 = vsel %vm1532_vm9, %v2784_v30, %v2327_v41  ;;  %v13163_v23 = vsel %vm526_vm3, %v4035_v58, %v4036_v54  ;;  %v3955_v46 = vrot.slane %v13095_v5, 1  ;;  %6636 = vmatpush1.msra.mxu0 %v12969_v38  ;;  %v16799_v58 = vld [vmem:[#allocation72_spill] sm:$0xff] }
 0x456   :  { %2438 = vrot.lane.b32.xlu0 %v394_v6, %s8886_s28  ;;  %8067 = vmatpush2.msra.mxu1 %v13033_v26  ;;  %v2817_v31 = vsel %vm1532_vm9, %v2785_v44, %v2329_v1  ;;  %v8098_v1 = vpack.i.bf16 %v13104_v25, %v13093_v18  ;;  %v3958_v38 = vrot.slane %v3783_v34, 1 }
 0x457   :  { %2440 = vrot.lane.b32.xlu1 %v12989_v27, %s8886_s28  ;;  %8041 = vmatprep.subr.mxu1 %v16794_v42 }
 0x458   :  { %v2423_v15 = vpop.permute.xlu0 %2422  ;;  %8068 = vmatpush2.msra.mxu1 %v13045_v24  ;;  %6637 = vmatprep.subr.mxu0 %v16794_v42 }
 0x459   :  { %v2425_v61 = vpop.permute.xlu1 %2424  ;;  %8042 = vmatprep.subr.mxu1 %v16794_v42  ;;  %v2848_v63 = vsel %vm1565_vm4, %v2816_v33, %v2423_v15  ;;  %6638 = vmatpush1.msra.mxu0 %v12982_v9 }
 0x45a   :  { %2534 = vrot.lane.b32.xlu0 %v1890_v0, %s8887_s23  ;;  %8069 = vmatpush2.msra.mxu1 %v13066_v55  ;;  %v2849_v36 = vsel %vm1565_vm4, %v2817_v31, %v2425_v61  ;;  %v13146_v0 = vld [vmem:[#allocation3 + $0xf8] sm:$0xff] }
 0x45b   :  { %2536 = vrot.lane.b32.xlu1 %v1892_v37, %s8887_s23  ;;  %8043 = vmatprep.subr.mxu1 %v16794_v42  ;;  %v13155_v61 = vld [vmem:[%s16008_s4 + $0x98] sm:$0xff]  ;;  %v3961_v7 = vrot.slane %v13146_v0, 1  ;;  %v4041_v30 = vrot.slane %v13146_v0, 2 }
 0x45c   :  { %v2519_v12 = vpop.permute.xlu0 %2518  ;;  %8070 = vmatpush2.msra.mxu1 %v13085_v32  ;;  %6639 = vmatprep.subr.mxu0 %v16794_v42 }
 0x45d   :  { %v2521_v40 = vpop.permute.xlu1 %2520  ;;  %v2880_v6 = vsel %vm1598_vm10, %v2848_v63, %v2519_v12  ;;  %8044 = vmatprep.subr.mxu1 %v16794_v42  ;;  %v13195_v12 = vsel %vm445_vm2, %v3955_v46, %v3956_v16  ;;  %v13204_v22 = vsel %vm445_vm2, %v3960_v3, %v3961_v7  ;;  %6640 = vmatpush1.msra.mxu0 %v12995_v48  ;;  %v4038_v63 = vrot.slane %v3783_v34, 2 }
 0x45e   :  { %2630 = vrot.lane.b32.xlu0 %v1895_v17, %s8888_s2  ;;  %v2881_v10 = vsel %vm1598_vm10, %v2849_v36, %v2521_v40  ;;  %8071 = vmatpush2.msra.mxu1 %v13112_v14  ;;  %v8103_v17 = vpack.i.bf16 %v13106_v39, %v13095_v5  ;;  %v13212_v40 = vld [vmem:[%s16008_s4 + $0x80] sm:$0xff]  ;;  %s8893_s4 = smov 96   ;;  %v13225_v31 = vsel %vm526_vm3, %v4040_v35, %v4041_v30 }
 0x45f   :  { %v7932_v45 = vpop.f32.mrf.mxu0  ;;  %2632 = vrot.lane.b32.xlu1 %v1897_v59, %s8888_s2  ;;  %8045 = vmatprep.subr.mxu1 %v16794_v42  ;;  %v13198_v59 = vsel %vm445_vm2, %v3956_v16, %v3958_v38  ;;  %v13235_v36 = vsel %vm526_vm3, %v4036_v54, %v4038_v63 }
 0x460   :  { %v3403_v27 = vadd.f32 %v12799_v13, %v7932_v45  ;;  %v2615_v56 = vpop.permute.xlu0 %2614  ;;  %8072 = vmatpush2.msra.mxu1 %v13140_v4  ;;  %v8108_v44 = vpack.i.bf16 %v13198_v59, %v13195_v12  ;;  %6641 = vmatprep.subr.mxu0 %v16794_v42 }
 0x461   :  { %v2912_v60 = vsel %vm1631_vm11, %v2880_v6, %v2615_v56  ;;  %v3397_v41 = vpop.f32.mrf.mxu0  ;;  %v2617_v57 = vpop.permute.xlu1 %2616  ;;  %8046 = vmatprep.subr.mxu1 %v16794_v42  ;;  %6642 = vmatpush1.msra.mxu0 %v13008_v51 }
 0x462   :  { %v3557_v11 = vmax.f32 %v3403_v27, 0.0  ;;  %v3398_v28 = vadd.f32 %v12799_v13, %v3397_v41  ;;  %v2913_v21 = vsel %vm1631_vm11, %v2881_v10, %v2617_v57  ;;  %8094 = vrot.lane.b32.xlu0 %v8093_v50, %s8886_s28  ;;  %7951 = vmatprep.mubr.msk.f32.mxu0 %vm2934_vm12, %v2912_v60  ;;  %v3786_v50 = vld [vmem:[#allocation3 + $0x100] sm:$0x3]  ;;  %v16800_v41 = vld [vmem:[#allocation73_spill] sm:$0xff] }
 0x463   :  { %8099 = vrot.lane.b32.xlu1 %v8098_v1, %s8889_s18  ;;  %7952 = vmatmul.mubr.msk.f32.gmra.mxu0 %vm2934_vm12, %v2913_v21  ;;  %v3963_v51 = vrot.slane %v3786_v50, 1  ;;  %v4043_v27 = vrot.slane %v3786_v50, 2 }
 0x464   :  { %3731 = vst.msk [vmem:[#allocation3 + $0x231] sm:$0xff] %vm1565_vm4, %v3557_v11  ;;  %v3556_v15 = vmax.f32 %v3398_v28, 0.0  ;;  %v13149_v37 = vpop.permute.xlu0 %2042  ;;  %8073 = vmatpush2.msra.mxu1 %v13155_v61  ;;  %6653 = vmatprep.subr.mxu0 %v16794_v42 }
 0x465   :  { %v13158_v19 = vpop.permute.xlu1 %2044  ;;  %8047 = vmatprep.subr.mxu1 %v16794_v42  ;;  %6654 = vmatpush2.msra.mxu0 %v13022_v53  ;;  %v13246_v56 = vsel %vm445_vm2, %v3961_v7, %v3963_v51  ;;  %v8806_v53 = vld [vmem:[#allocation2 + $0x2d0] sm:$0xff]  ;;  %v13254_v60 = vsel %vm526_vm3, %v4041_v30, %v4043_v27 }
 0x466   :  { %3730 = vst.msk [vmem:[#allocation3 + $0x229] sm:$0xff] %vm1565_vm4, %v3556_v15  ;;  %4512 = vrot.lane.b32.xlu0 %v13163_v23, %s8890_s27  ;;  %8074 = vmatpush2.msra.mxu1 %v13178_v43  ;;  %v2690_v10 = vsel %vm50_vm0, %v8806_v53, %v16799_v58  ;;  %v8118_v15 = vpack.i.bf16 %v13235_v36, %v13163_v23  ;;  %v13283_v7 = vld [vmem:[#allocation3 + $0x110] sm:$0xff] }
 0x467   :  { %4608 = vrot.lane.b32.xlu1 %v13144_v29, %s8884_s26  ;;  %8048 = vmatprep.subr.mxu1 %v16794_v42  ;;  %v2722_v1 = vsel %vm1433_vm6, %v2690_v10, %v13149_v37 }
 0x468   :  { %v13183_v2 = vpop.permute.xlu0 %2138  ;;  %8075 = vmatpush2.msra.mxu1 %v13191_v49  ;;  %6655 = vmatprep.subr.mxu0 %v16794_v42 }
 0x469   :  { %v2141_v8 = vpop.permute.xlu1 %2140  ;;  %8049 = vmatprep.subr.mxu1 %v16794_v42  ;;  %6656 = vmatpush2.msra.mxu0 %v13033_v26  ;;  %v8807_v26 = vld [vmem:[#allocation2 + $0x2d8] sm:$0xff]  ;;  %v2754_v54 = vsel %vm1466_vm7, %v2722_v1, %v13183_v2  ;;  %v8138_v1 = vpack.i.bf16 %v13254_v60, %v13225_v31 }
 0x46a   :  { %8104 = vrot.lane.b32.xlu0 %v8103_v17, %s8891_s25  ;;  %8076 = vmatpush2.msra.mxu1 %v13212_v40  ;;  %v2691_v57 = vsel %vm50_vm0, %v8807_v26, %v16800_v41 }
 0x46b   :  { %4704 = vrot.lane.b32.xlu1 %v13204_v22, %s8892_s16  ;;  %6657 = vmatprep.subr.mxu0 %v16794_v42 }
 0x46c   :  { %v2235_v9 = vpop.permute.xlu0 %2234  ;;  %6658 = vmatpush2.msra.mxu0 %v13045_v24  ;;  %v2723_v24 = vsel %vm1433_vm6, %v2691_v57, %v13158_v19  ;;  %v13277_v19 = vld [vmem:[#allocation3 + $0x108] sm:$0xff] }
 0x46d   :  { %v2237_v33 = vpop.permute.xlu1 %2236  ;;  %6659 = vmatprep.subr.mxu0 %v16794_v42  ;;  %v2755_v28 = vsel %vm1466_vm7, %v2723_v24, %v2141_v8  ;;  %v2786_v21 = vsel %vm1499_vm8, %v2754_v54, %v2235_v9  ;;  %v4045_v27 = vrot.slane %v13277_v19, 2  ;;  %v8808_v54 = vld [vmem:[#allocation2 + $0x2e8] sm:$0xff] }
 0x46e   :  { %8109 = vrot.lane.b32.xlu0 %v8108_v44, %s8893_s4  ;;  %6660 = vmatpush2.msra.mxu0 %v13066_v55  ;;  %v2787_v55 = vsel %vm1499_vm8, %v2755_v28, %v2237_v33 }
 0x46f   :  { %4800 = vrot.lane.b32.xlu1 %v13225_v31, %s8894_s17  ;;  %6661 = vmatprep.subr.mxu0 %v16794_v42 }
 0x470   :  { %v2331_v45 = vpop.permute.xlu0 %2330  ;;  %6662 = vmatpush2.msra.mxu0 %v13085_v32 }
 0x471   :  { %v2333_v48 = vpop.permute.xlu1 %2332  ;;  %v2818_v34 = vsel %vm1532_vm9, %v2786_v21, %v2331_v45  ;;  %6663 = vmatprep.subr.mxu0 %v16794_v42  ;;  %v3966_v45 = vrot.slane %v13283_v7, 1  ;;  %v8809_v21 = vld [vmem:[#allocation2 + $0x2f0] sm:$0xff] }
 0x472   :  { %4514 = vrot.lane.b32.xlu0 %v13235_v36, %s8890_s27  ;;  %v2819_v46 = vsel %vm1532_vm9, %v2787_v55, %v2333_v48  ;;  %6664 = vmatpush2.msra.mxu0 %v13112_v14  ;;  %v8123_v48 = vpack.i.bf16 %v13146_v0, %v13144_v29  ;;  %v8128_v29 = vpack.i.bf16 %v13246_v56, %v13204_v22  ;;  %v3789_v22 = vld [vmem:[#allocation3 + $0x118] sm:$0x3] }
 0x473   :  { %4610 = vrot.lane.b32.xlu1 %v13146_v0, %s8884_s26  ;;  %6665 = vmatprep.subr.mxu0 %v16794_v42  ;;  %v4048_v10 = vrot.slane %v3789_v22, 2 }
 0x474   :  { %v2427_v6 = vpop.permute.xlu0 %2426  ;;  %6666 = vmatpush2.msra.mxu0 %v13140_v4 }
 0x475   :  { %v2429_v39 = vpop.permute.xlu1 %2428  ;;  %v2850_v16 = vsel %vm1565_vm4, %v2818_v34, %v2427_v6  ;;  %6667 = vmatprep.subr.mxu0 %v16794_v42  ;;  %v13352_v34 = vld [vmem:[#allocation3 + $0x120] sm:$0xff] }
 0x476   :  { %4706 = vrot.lane.b32.xlu0 %v13246_v56, %s8892_s16  ;;  %v2851_v32 = vsel %vm1565_vm4, %v2819_v46, %v2429_v39  ;;  %6668 = vmatpush2.msra.mxu0 %v13155_v61  ;;  %v4046_v39 = vrot.slane %v13283_v7, 2  ;;  %v13354_v46 = vld [vmem:[#allocation3 + $0x128] sm:$0xff] }
 0x477   :  { %4802 = vrot.lane.b32.xlu1 %v13254_v60, %s8894_s17  ;;  %6669 = vmatprep.subr.mxu0 %v16794_v42 }
 0x478   :  { %v2523_v11 = vpop.permute.xlu0 %2522  ;;  %6670 = vmatpush2.msra.mxu0 %v13178_v43  ;;  %v13325_v53 = vsel %vm526_vm3, %v4045_v27, %v4046_v39 }
 0x479   :  { %v2525_v37 = vpop.permute.xlu1 %2524  ;;  %v2882_v38 = vsel %vm1598_vm10, %v2850_v16, %v2523_v11  ;;  %6671 = vmatprep.subr.mxu0 %v16794_v42  ;;  %v16801_v11 = vld [vmem:[#allocation74_spill] sm:$0xff] }
 0x47a   :  { %8114 = vrot.lane.b32.xlu0 %v8108_v44, %s8886_s28  ;;  %v2883_v8 = vsel %vm1598_vm10, %v2851_v32, %v2525_v37  ;;  %v3965_v44 = vrot.slane %v13277_v19, 1  ;;  %6672 = vmatpush2.msra.mxu0 %v13191_v49  ;;  %v3968_v49 = vrot.slane %v3789_v22, 1  ;;  %v2692_v28 = vsel %vm50_vm0, %v8808_v54, %v16801_v11 }
 0x47b   :  { %v7935_v3 = vpop.f32.mrf.mxu0  ;;  %8119 = vrot.lane.b32.xlu1 %v8118_v15, %s8889_s18  ;;  %6673 = vmatprep.subr.mxu0 %v16794_v42  ;;  %v16802_v15 = vld [vmem:[#allocation75_spill] sm:$0xff] }
 0x47c   :  { %v3413_v2 = vadd.f32 %v12799_v13, %v7935_v3  ;;  %v2619_v17 = vpop.permute.xlu0 %2618  ;;  %v13311_v6 = vsel %vm445_vm2, %v3965_v44, %v3966_v45  ;;  %6674 = vmatpush2.msra.mxu0 %v13212_v40  ;;  %v3969_v41 = vsel %vm445_vm2, %v3966_v45, %v3968_v49  ;;  %v13339_v40 = vsel %vm526_vm3, %v4046_v39, %v4048_v10  ;;  %v3792_v10 = vld [vmem:[#allocation3 + $0x130] sm:$0x3] }
 0x47d   :  { %v2914_v35 = vsel %vm1631_vm11, %v2882_v38, %v2619_v17  ;;  %v3407_v30 = vpop.f32.mrf.mxu0  ;;  %v2621_v9 = vpop.permute.xlu1 %2620  ;;  %7966 = vmatprep.subr.mxu0 %v16794_v42  ;;  %v2693_v37 = vsel %vm50_vm0, %v8809_v21, %v16802_v15  ;;  %v4050_v39 = vrot.slane %v13352_v34, 2  ;;  %v13410_v15 = vld [vmem:[#allocation3 + $0x138] sm:$0xff] }
 0x47e   :  { %v3559_v14 = vmax.f32 %v3413_v2, 0.0  ;;  %v3408_v33 = vadd.f32 %v12799_v13, %v3407_v30  ;;  %v2915_v63 = vsel %vm1631_vm11, %v2883_v8, %v2621_v9  ;;  %4516 = vrot.lane.b32.xlu0 %v13225_v31, %s8890_s27  ;;  %7954 = vmatprep.mubr.msk.f32.mxu0 %vm2934_vm12, %v2914_v35  ;;  %v3970_v8 = vrot.slane %v13352_v34, 1 }
 0x47f   :  { %4612 = vrot.lane.b32.xlu1 %v13277_v19, %s8884_s26  ;;  %7955 = vmatmul.mubr.msk.f32.gmra.mxu0 %vm2934_vm12, %v2915_v63  ;;  %v3971_v35 = vrot.slane %v13354_v46, 1 }
 0x480   :  { %3733 = vst.msk [vmem:[#allocation3 + $0x249] sm:$0xff] %vm1565_vm4, %v3559_v14  ;;  %v3558_v4 = vmax.f32 %v3408_v33, 0.0  ;;  %v2047_v50 = vpop.permute.xlu0 %2046 }
 0x481   :  { %v2049_v51 = vpop.permute.xlu1 %2048  ;;  %v2724_v55 = vsel %vm1433_vm6, %v2692_v28, %v2047_v50  ;;  %v8158_v28 = vpack.i.bf16 %v13339_v40, %v13325_v53 }
 0x482   :  { %3732 = vst.msk [vmem:[#allocation3 + $0x241] sm:$0xff] %vm1565_vm4, %v3558_v4  ;;  %8124 = vrot.lane.b32.xlu0 %v8123_v48, %s8891_s25  ;;  %v2725_v31 = vsel %vm1433_vm6, %v2693_v37, %v2049_v51  ;;  %v8143_v4 = vpack.i.bf16 %v13283_v7, %v13277_v19  ;;  %v3972_v19 = vsel %vm445_vm2, %v3970_v8, %v3971_v35  ;;  %v13412_v37 = vld [vmem:[#allocation3 + $0x140] sm:$0xff] }
 0x483   :  { %4708 = vrot.lane.b32.xlu1 %v13311_v6, %s8892_s16 }
 0x484   :  { %v2143_v0 = vpop.permute.xlu0 %2142 }
 0x485   :  { %v2145_v61 = vpop.permute.xlu1 %2144 }
 0x486   :  { %8129 = vrot.lane.b32.xlu0 %v8128_v29, %s8893_s4  ;;  %v2757_v3 = vsel %vm1466_vm7, %v2725_v31, %v2145_v61 }
 0x487   :  { %4804 = vrot.lane.b32.xlu1 %v13325_v53, %s8894_s17 }
 0x488   :  { %v2239_v43 = vpop.permute.xlu0 %2238 }
 0x489   :  { %v2241_v56 = vpop.permute.xlu1 %2240 }
 0x48a   :  { %4518 = vrot.lane.b32.xlu0 %v13254_v60, %s8890_s27  ;;  %v2756_v60 = vsel %vm1466_vm7, %v2724_v55, %v2143_v0  ;;  %v2789_v2 = vsel %vm1499_vm8, %v2757_v3, %v2241_v56 }
 0x48b   :  { %4614 = vrot.lane.b32.xlu1 %v13283_v7, %s8884_s26  ;;  %v2788_v32 = vsel %vm1499_vm8, %v2756_v60, %v2239_v43  ;;  %v8148_v7 = vpack.i.bf16 %v3969_v41, %v13311_v6  ;;  %v3973_v6 = vrot.slane %v3792_v10, 1  ;;  %v8810_v60 = vld [vmem:[#allocation2 + $0x300] sm:$0xff] }
 0x48c   :  { %v2335_v58 = vpop.permute.xlu0 %2334 }
 0x48d   :  { %v2337_v26 = vpop.permute.xlu1 %2336  ;;  %v2820_v17 = vsel %vm1532_vm9, %v2788_v32, %v2335_v58  ;;  %v8811_v32 = vld [vmem:[#allocation2 + $0x308] sm:$0xff] }
 0x48e   :  { %4710 = vrot.lane.b32.xlu0 %v3969_v41, %s8892_s16  ;;  %v2821_v30 = vsel %vm1532_vm9, %v2789_v2, %v2337_v26 }
 0x48f   :  { %4806 = vrot.lane.b32.xlu1 %v13339_v40, %s8894_s17 }
 0x490   :  { %v2431_v57 = vpop.permute.xlu0 %2430 }
 0x491   :  { %v2433_v24 = vpop.permute.xlu1 %2432  ;;  %v2852_v9 = vsel %vm1565_vm4, %v2820_v17, %v2431_v57  ;;  %v4053_v57 = vrot.slane %v3792_v10, 2 }
 0x492   :  { %8134 = vrot.lane.b32.xlu0 %v8128_v29, %s8886_s28  ;;  %v2853_v14 = vsel %vm1565_vm4, %v2821_v30, %v2433_v24  ;;  %v4051_v29 = vrot.slane %v13354_v46, 2  ;;  %v3974_v24 = vsel %vm445_vm2, %v3971_v35, %v3973_v6 }
 0x493   :  { %8139 = vrot.lane.b32.xlu1 %v8138_v1, %s8889_s18 }
 0x494   :  { %v2527_v16 = vpop.permute.xlu0 %2526  ;;  %v13402_v54 = vsel %vm526_vm3, %v4051_v29, %v4053_v57  ;;  %v3795_v57 = vld [vmem:[#allocation3 + $0x148] sm:$0x3] }
 0x495   :  { %v2529_v38 = vpop.permute.xlu1 %2528  ;;  %v2884_v33 = vsel %vm1598_vm10, %v2852_v9, %v2527_v16  ;;  %v16803_v16 = vld [vmem:[#allocation76_spill] sm:$0xff]  ;;  %v8163_v9 = vpack.i.bf16 %v13354_v46, %v13352_v34 }
 0x496   :  { %4520 = vrot.lane.b32.xlu0 %v13325_v53, %s8890_s27  ;;  %v2885_v50 = vsel %vm1598_vm10, %v2853_v14, %v2529_v38  ;;  %v2694_v3 = vsel %vm50_vm0, %v8810_v60, %v16803_v16  ;;  %v3975_v53 = vrot.slane %v13410_v15, 1  ;;  %v16804_v38 = vld [vmem:[#allocation77_spill] sm:$0xff] }
 0x497   :  { %v7938_v44 = vpop.f32.mrf.mxu0  ;;  %4616 = vrot.lane.b32.xlu1 %v13352_v34, %s8884_s26  ;;  %v2695_v2 = vsel %vm50_vm0, %v8811_v32, %v16804_v38 }
 0x498   :  { %v3423_v63 = vadd.f32 %v12799_v13, %v7938_v44  ;;  %v2623_v45 = vpop.permute.xlu0 %2622 }
 0x499   :  { %v2916_v48 = vsel %vm1631_vm11, %v2884_v33, %v2623_v45  ;;  %v3417_v51 = vpop.f32.mrf.mxu0  ;;  %v2625_v27 = vpop.permute.xlu1 %2624 }
 0x49a   :  { %v3561_v0 = vmax.f32 %v3423_v63, 0.0  ;;  %v3418_v61 = vadd.f32 %v12799_v13, %v3417_v51  ;;  %v2917_v43 = vsel %vm1631_vm11, %v2885_v50, %v2625_v27  ;;  %8144 = vrot.lane.b32.xlu0 %v8143_v4, %s8891_s25  ;;  %7957 = vmatprep.mubr.msk.f32.mxu0 %vm2934_vm12, %v2916_v48  ;;  %v13391_v13 = vsel %vm526_vm3, %v4050_v39, %v4051_v29 }
 0x49b   :  { %4712 = vrot.lane.b32.xlu1 %v3972_v19, %s8892_s16  ;;  %7958 = vmatmul.mubr.msk.f32.gmra.mxu0 %vm2934_vm12, %v2917_v43  ;;  %v4055_v63 = vrot.slane %v13410_v15, 2  ;;  %v4056_v48 = vrot.slane %v13412_v37, 2  ;;  %v8168_v27 = vpack.i.bf16 %v3974_v24, %v3972_v19  ;;  %v8178_v16 = vpack.i.bf16 %v13402_v54, %v13391_v13 }
 0x49c   :  { %3735 = vst.msk [vmem:[#allocation3 + $0x261] sm:$0xff] %vm1565_vm4, %v3561_v0  ;;  %v3560_v22 = vmax.f32 %v3418_v61, 0.0  ;;  %v2051_v56 = vpop.permute.xlu0 %2050  ;;  %v13448_v0 = vld [vmem:[%s16007_s3] ss:$0 sm:$0xff] }
 0x49d   :  { %v2053_v49 = vpop.permute.xlu1 %2052  ;;  %v2726_v17 = vsel %vm1433_vm6, %v2694_v3, %v2051_v56 }
 0x49e   :  { %3734 = vst.msk [vmem:[#allocation3 + $0x259] sm:$0xff] %vm1565_vm4, %v3560_v22  ;;  %8149 = vrot.lane.b32.xlu0 %v8148_v7, %s8893_s4  ;;  %v2727_v8 = vsel %vm1433_vm6, %v2695_v2, %v2053_v49 }
 0x49f   :  { %4808 = vrot.lane.b32.xlu1 %v13391_v13, %s8894_s17 }
 0x4a0   :  { %v2147_v58 = vpop.permute.xlu0 %2146 }
 0x4a1   :  { %v2149_v26 = vpop.permute.xlu1 %2148  ;;  %v2758_v35 = vsel %vm1466_vm7, %v2726_v17, %v2147_v58 }
 0x4a2   :  { %4522 = vrot.lane.b32.xlu0 %v13339_v40, %s8890_s27  ;;  %v3976_v40 = vrot.slane %v13412_v37, 1  ;;  %v2759_v44 = vsel %vm1466_vm7, %v2727_v8, %v2149_v26  ;;  %v13458_v26 = vsel %vm526_vm3, %v4055_v63, %v4056_v48  ;;  %v8814_v63 = vld [vmem:[#allocation2 + $0x320] sm:$0xff] }
 0x4a3   :  { %4618 = vrot.lane.b32.xlu1 %v13354_v46, %s8884_s26 }
 0x4a4   :  { %v2243_v41 = vpop.permute.xlu0 %2242  ;;  %v13436_v50 = vsel %vm445_vm2, %v3975_v53, %v3976_v40  ;;  %v13480_v53 = vld [vmem:[#allocation3 + $0x150] sm:$0xff] }
 0x4a5   :  { %v2245_v1 = vpop.permute.xlu1 %2244  ;;  %v2790_v14 = vsel %vm1499_vm8, %v2758_v35, %v2243_v41  ;;  %v3980_v2 = vrot.slane %v13480_v53, 1  ;;  %v8813_v35 = vld [vmem:[#allocation2 + $0x318] sm:$0xff] }
 0x4a6   :  { %4714 = vrot.lane.b32.xlu0 %v3974_v24, %s8892_s16  ;;  %v2791_v45 = vsel %vm1499_vm8, %v2759_v44, %v2245_v1  ;;  %v3978_v24 = vrot.slane %v3795_v57, 1 }
 0x4a7   :  { %4810 = vrot.lane.b32.xlu1 %v13402_v54, %s8894_s17 }
 0x4a8   :  { %v2339_v11 = vpop.permute.xlu0 %2338 }
 0x4a9   :  { %v2341_v21 = vpop.permute.xlu1 %2340  ;;  %v2822_v4 = vsel %vm1532_vm9, %v2790_v14, %v2339_v11  ;;  %v4060_v14 = vrot.slane %v13480_v53, 2 }
 0x4aa   :  { %8154 = vrot.lane.b32.xlu0 %v8148_v7, %s8886_s28  ;;  %v2823_v34 = vsel %vm1532_vm9, %v2791_v45, %v2341_v21  ;;  %v16806_v45 = vld [vmem:[#allocation79_spill] sm:$0xff] }
 0x4ab   :  { %8159 = vrot.lane.b32.xlu1 %v8158_v28, %s8889_s18  ;;  %v4058_v28 = vrot.slane %v3795_v57, 2 }
 0x4ac   :  { %v2435_v55 = vpop.permute.xlu0 %2434 }
 0x4ad   :  { %v2437_v31 = vpop.permute.xlu1 %2436  ;;  %v2854_v46 = vsel %vm1565_vm4, %v2822_v4, %v2435_v55  ;;  %v3979_v55 = vsel %vm445_vm2, %v3976_v40, %v3978_v24  ;;  %v13482_v40 = vld [vmem:[#allocation3 + $0x158] sm:$0xff]  ;;  %v2697_v4 = vsel %vm50_vm0, %v8814_v63, %v16806_v45 }
 0x4ae   :  { %4524 = vrot.lane.b32.xlu0 %v13391_v13, %s8890_s27  ;;  %v2855_v39 = vsel %vm1565_vm4, %v2823_v34, %v2437_v31  ;;  %v13472_v31 = vsel %vm526_vm3, %v4056_v48, %v4058_v28  ;;  %v3981_v17 = vrot.slane %v13482_v40, 1  ;;  %v8188_v34 = vpack.i.bf16 %v3979_v55, %v13436_v50 }
 0x4af   :  { %4620 = vrot.lane.b32.xlu1 %v13410_v15, %s8884_s26  ;;  %v8203_v45 = vpack.i.bf16 %v13482_v40, %v13480_v53 }
 0x4b0   :  { %v2531_v30 = vpop.permute.xlu0 %2530  ;;  %v13496_v44 = vsel %vm445_vm2, %v3980_v2, %v3981_v17 }
 0x4b1   :  { %v2533_v33 = vpop.permute.xlu1 %2532  ;;  %v2886_v29 = vsel %vm1598_vm10, %v2854_v46, %v2531_v30  ;;  %v16805_v30 = vld [vmem:[#allocation78_spill] sm:$0xff] }
 0x4b2   :  { %8164 = vrot.lane.b32.xlu0 %v8163_v9, %s8891_s25  ;;  %v2887_v7 = vsel %vm1598_vm10, %v2855_v39, %v2533_v33  ;;  %v2696_v9 = vsel %vm50_vm0, %v8813_v35, %v16805_v30  ;;  %v4061_v33 = vrot.slane %v13482_v40, 2  ;;  %vm5093_vm0 = vcmask 523264  }
 0x4b3   :  { %v7941_v51 = vpop.f32.mrf.mxu0  ;;  %4716 = vrot.lane.b32.xlu1 %v13436_v50, %s8892_s16 }
 0x4b4   :  { %v3433_v61 = vadd.f32 %v13448_v0, %v7941_v51  ;;  %v2627_v43 = vpop.permute.xlu0 %2626 }
 0x4b5   :  { %v2918_v22 = vsel %vm1631_vm11, %v2886_v29, %v2627_v43  ;;  %v3427_v56 = vpop.f32.mrf.mxu0  ;;  %v2629_v49 = vpop.permute.xlu1 %2628  ;;  %v13514_v43 = vsel %vm526_vm3, %v4060_v14, %v4061_v33 }
 0x4b6   :  { %v3563_v58 = vmax.f32 %v3433_v61, 0.0  ;;  %v3428_v19 = vadd.f32 %v13448_v0, %v3427_v56  ;;  %v2919_v10 = vsel %vm1631_vm11, %v2887_v7, %v2629_v49  ;;  %8169 = vrot.lane.b32.xlu0 %v8168_v27, %s8893_s4  ;;  %7960 = vmatprep.mubr.msk.f32.mxu0 %vm2934_vm12, %v2918_v22 }
 0x4b7   :  { %4812 = vrot.lane.b32.xlu1 %v13458_v26, %s8894_s17  ;;  %7961 = vmatmul.mubr.msk.f32.gmra.mxu0 %vm2934_vm12, %v2919_v10  ;;  %v3798_v10 = vld [vmem:[#allocation3 + $0x160] sm:$0x3] }
 0x4b8   :  { %3737 = vst.msk [vmem:[#allocation3 + $0x279] sm:$0xff] %vm1565_vm4, %v3563_v58  ;;  %v3562_v6 = vmax.f32 %v3428_v19, 0.0  ;;  %v2055_v41 = vpop.permute.xlu0 %2054 }
 0x4b9   :  { %v2057_v1 = vpop.permute.xlu1 %2056 }
 0x4ba   :  { %3736 = vst.msk [vmem:[#allocation3 + $0x271] sm:$0xff] %vm1565_vm4, %v3562_v6  ;;  %4526 = vrot.lane.b32.xlu0 %v13402_v54, %s8890_s27  ;;  %v8183_v54 = vpack.i.bf16 %v13412_v37, %v13410_v15  ;;  %v2728_v15 = vsel %vm1433_vm6, %v2696_v9, %v2055_v41 }
 0x4bb   :  { %4622 = vrot.lane.b32.xlu1 %v13412_v37, %s8884_s26  ;;  %v2729_v37 = vsel %vm1433_vm6, %v2697_v4, %v2057_v1 }
 0x4bc   :  { %v2151_v11 = vpop.permute.xlu0 %2150 }
 0x4bd   :  { %v2153_v21 = vpop.permute.xlu1 %2152  ;;  %v2760_v48 = vsel %vm1466_vm7, %v2728_v15, %v2151_v11 }
 0x4be   :  { %4718 = vrot.lane.b32.xlu0 %v3979_v55, %s8892_s16  ;;  %v2761_v51 = vsel %vm1466_vm7, %v2729_v37, %v2153_v21  ;;  %v3983_v21 = vrot.slane %v3798_v10, 1  ;;  %vm4962_vm7 = vcmask 785408  }
 0x4bf   :  { %4814 = vrot.lane.b32.xlu1 %v13472_v31, %s8894_s17 }
 0x4c0   :  { %v2247_v60 = vpop.permute.xlu0 %2246 }
 0x4c1   :  { %v2249_v3 = vpop.permute.xlu1 %2248 }
 0x4c2   :  { %8174 = vrot.lane.b32.xlu0 %v8168_v27, %s8886_s28  ;;  %v2792_v27 = vsel %vm1499_vm8, %v2760_v48, %v2247_v60  ;;  %v2793_v29 = vsel %vm1499_vm8, %v2761_v51, %v2249_v3 }
 0x4c3   :  { %8179 = vrot.lane.b32.xlu1 %v8178_v16, %s8889_s18  ;;  %v4063_v16 = vrot.slane %v3798_v10, 2 }
 0x4c4   :  { %v2343_v32 = vpop.permute.xlu0 %2342 }
 0x4c5   :  { %v2345_v38 = vpop.permute.xlu1 %2344  ;;  %v2824_v61 = vsel %vm1532_vm9, %v2792_v27, %v2343_v32  ;;  %v3984_v32 = vsel %vm445_vm2, %v3981_v17, %v3983_v21 }
 0x4c6   :  { %4528 = vrot.lane.b32.xlu0 %v13458_v26, %s8890_s27  ;;  %v2825_v7 = vsel %vm1532_vm9, %v2793_v29, %v2345_v38  ;;  %v13538_v38 = vsel %vm526_vm3, %v4061_v33, %v4063_v16  ;;  %vm4995_vm9 = vcmask 982016  }
 0x4c7   :  { %4624 = vrot.lane.b32.xlu1 %v13480_v53, %s8884_s26 }
 0x4c8   :  { %v2439_v13 = vpop.permute.xlu0 %2438 }
 0x4c9   :  { %v2441_v8 = vpop.permute.xlu1 %2440  ;;  %v2856_v22 = vsel %vm1565_vm4, %v2824_v61, %v2439_v13  ;;  %v13542_v13 = vld [vmem:[#allocation3 + $0x168] sm:$0xff] }
 0x4ca   :  { %8184 = vrot.lane.b32.xlu0 %v8183_v54, %s8891_s25  ;;  %v2857_v56 = vsel %vm1565_vm4, %v2825_v7, %v2441_v8  ;;  %v13544_v54 = vld [vmem:[#allocation3 + $0x170] sm:$0xff]  ;;  %v8198_v8 = vpack.i.bf16 %v13472_v31, %v13458_v26  ;;  %v3985_v30 = vrot.slane %v13542_v13, 1 }
 0x4cb   :  { %4720 = vrot.lane.b32.xlu1 %v13496_v44, %s8892_s16  ;;  %v3986_v9 = vrot.slane %v13544_v54, 1  ;;  %v4066_v29 = vrot.slane %v13544_v54, 2 }
 0x4cc   :  { %v2535_v46 = vpop.permute.xlu0 %2534 }
 0x4cd   :  { %v2537_v39 = vpop.permute.xlu1 %2536  ;;  %v2888_v49 = vsel %vm1598_vm10, %v2856_v22, %v2535_v46  ;;  %v13563_v15 = vsel %vm445_vm2, %v3985_v30, %v3986_v9 }
 0x4ce   :  { %8189 = vrot.lane.b32.xlu0 %v8188_v34, %s8893_s4  ;;  %v2889_v6 = vsel %vm1598_vm10, %v2857_v56, %v2537_v39 }
 0x4cf   :  { %v7944_v50 = vpop.f32.mrf.mxu0  ;;  %4816 = vrot.lane.b32.xlu1 %v13514_v43, %s8894_s17 }
 0x4d0   :  { %v3443_v58 = vadd.f32 %v13448_v0, %v7944_v50  ;;  %v2631_v19 = vpop.permute.xlu0 %2630  ;;  %v8208_v50 = vpack.i.bf16 %v3984_v32, %v13496_v44 }
 0x4d1   :  { %v2920_v41 = vsel %vm1631_vm11, %v2888_v49, %v2631_v19  ;;  %v3437_v57 = vpop.f32.mrf.mxu0  ;;  %v2633_v1 = vpop.permute.xlu1 %2632 }
 0x4d2   :  { %v3565_v24 = vmax.f32 %v3443_v58, 0.0  ;;  %v3438_v11 = vadd.f32 %v13448_v0, %v3437_v57  ;;  %v2921_v28 = vsel %vm1631_vm11, %v2889_v6, %v2633_v1  ;;  %4530 = vrot.lane.b32.xlu0 %v13472_v31, %s8890_s27  ;;  %7963 = vmatprep.mubr.msk.f32.mxu0 %vm2934_vm12, %v2920_v41  ;;  %v3801_v1 = vld [vmem:[#allocation3 + $0x178] sm:$0x3] }
 0x4d3   :  { %4626 = vrot.lane.b32.xlu1 %v13482_v40, %s8884_s26  ;;  %7964 = vmatmul.mubr.msk.f32.gmra.mxu0 %vm2934_vm12, %v2921_v28  ;;  %v4065_v40 = vrot.slane %v13542_v13, 2 }
 0x4d4   :  { %3739 = vst.msk [vmem:[#allocation3 + $0x291] sm:$0xff] %vm1565_vm4, %v3565_v24  ;;  %v3564_v55 = vmax.f32 %v3438_v11, 0.0  ;;  %v8095_v60 = vpop.permute.xlu0 %8094 }
 0x4d5   :  { %v8100_v3 = vpop.permute.xlu1 %8099  ;;  %v8096_v17 = vunpack.i.l.bf16 %v8095_v60  ;;  %v8097_v31 = vunpack.i.h.bf16 %v8095_v60  ;;  %v3988_v60 = vrot.slane %v3801_v1, 1 }
 0x4d6   :  { %3738 = vst.msk [vmem:[#allocation3 + $0x289] sm:$0xff] %vm1565_vm4, %v3564_v55  ;;  %4722 = vrot.lane.b32.xlu0 %v3984_v32, %s8892_s16  ;;  %v8101_v33 = vunpack.i.l.bf16 %v8100_v3  ;;  %v8102_v51 = vunpack.i.h.bf16 %v8100_v3  ;;  %v4068_v32 = vrot.slane %v3801_v1, 2 }
 0x4d7   :  { %4818 = vrot.lane.b32.xlu1 %v13538_v38, %s8894_s17  ;;  %v4880_v4 = vsel %vm1565_vm4, %v13013_v47, %v8096_v17  ;;  %v4881_v61 = vsel %vm1565_vm4, %v13015_v20, %v8097_v31  ;;  %v13584_v20 = vsel %vm526_vm3, %v4065_v40, %v4066_v29  ;;  %v13618_v31 = vld [vmem:[#allocation3 + $0x188] sm:$0xff] }
 0x4d8   :  { %v4513_v2 = vpop.permute.xlu0 %4512  ;;  %v4913_v37 = vsel %vm4896_vm14, %v4880_v4, %v8101_v33  ;;  %v4914_v10 = vsel %vm4896_vm14, %v4881_v61, %v8102_v51 }
 0x4d9   :  { %v4609_v35 = vpop.permute.xlu1 %4608 }
 0x4da   :  { %8194 = vrot.lane.b32.xlu0 %v8188_v34, %s8886_s28  ;;  %v5044_v53 = vsel %vm1499_vm8, %v4513_v2, %v4609_v35  ;;  %v3989_v35 = vsel %vm445_vm2, %v3986_v9, %v3988_v60  ;;  %v3804_v60 = vld [vmem:[#allocation3 + $0x190] sm:$0x3] }
 0x4db   :  { %8199 = vrot.lane.b32.xlu1 %v8198_v8, %s8889_s18 }
 0x4dc   :  { %v8105_v14 = vpop.permute.xlu0 %8104 }
 0x4dd   :  { %v4705_v63 = vpop.permute.xlu1 %4704  ;;  %v8106_v26 = vunpack.i.l.bf16 %v8105_v14  ;;  %v8107_v7 = vunpack.i.h.bf16 %v8105_v14  ;;  %v13606_v14 = vsel %vm526_vm3, %v4066_v29, %v4068_v32 }
 0x4de   :  { %4532 = vrot.lane.b32.xlu0 %v13514_v43, %s8890_s27  ;;  %v5077_v48 = vsel %vm5060_vm15, %v5044_v53, %v4705_v63 }
 0x4df   :  { %4628 = vrot.lane.b32.xlu1 %v13542_v13, %s8884_s26  ;;  %v4946_v39 = vsel %vm4929_vm1, %v4913_v37, %v8106_v26  ;;  %v4947_v6 = vsel %vm4929_vm1, %v4914_v10, %v8107_v7  ;;  %v13616_v26 = vld [vmem:[#allocation3 + $0x180] sm:$0xff] }
 0x4e0   :  { %v8110_v47 = vpop.permute.xlu0 %8109  ;;  %v4078_v51 = vrot.slane %v13616_v26, 2 }
 0x4e1   :  { %v8111_v34 = vunpack.i.l.bf16 %v8110_v47  ;;  %v4801_v46 = vpop.permute.xlu1 %4800  ;;  %v8112_v56 = vunpack.i.h.bf16 %v8110_v47 }
 0x4e2   :  { %8204 = vrot.lane.b32.xlu0 %v8203_v45, %s8891_s25  ;;  %v5110_v27 = vsel %vm5093_vm0, %v5077_v48, %v4801_v46  ;;  %v8218_v45 = vpack.i.bf16 %v13538_v38, %v13514_v43  ;;  %v4073_v43 = vrot.slane %v13616_v26, 1 }
 0x4e3   :  { %4724 = vrot.lane.b32.xlu1 %v13563_v15, %s8892_s16  ;;  %7708 = vmatprep.mubr.msk.f32.mxu1 %vm6418_vm5, %v5110_v27  ;;  %v4979_v22 = vsel %vm4962_vm7, %v4946_v39, %v8111_v34  ;;  %v4980_v57 = vsel %vm4962_vm7, %v4947_v6, %v8112_v56  ;;  %v8228_v6 = vpack.i.bf16 %v3989_v35, %v13563_v15 }
 0x4e4   :  { %v4515_v49 = vpop.permute.xlu0 %4514  ;;  %v5012_v58 = vsel %vm4995_vm9, %v4979_v22, %v4513_v2  ;;  %v4079_v22 = vrot.slane %v13618_v31, 2 }
 0x4e5   :  { %v4611_v19 = vpop.permute.xlu1 %4610  ;;  %6756 = vmatmul.mubr.f32.vlgmr.msra.gmra.mxu1 %v5012_v58  ;;  %v5013_v55 = vsel %vm4995_vm9, %v4980_v57, %v4515_v49 }
 0x4e6   :  { %8209 = vrot.lane.b32.xlu0 %v8208_v50, %s8893_s4  ;;  %v5045_v44 = vsel %vm1499_vm8, %v4515_v49, %v4611_v19  ;;  %v8815_v19 = vld [vmem:[#allocation3 + $0xe0] sm:$0xff] }
 0x4e7   :  { %4820 = vrot.lane.b32.xlu1 %v13584_v20, %s8894_s17 }
 0x4e8   :  { %v4707_v41 = vpop.permute.xlu0 %4706 }
 0x4e9   :  { %v5078_v24 = vsel %vm5060_vm15, %v5045_v44, %v4707_v41  ;;  %v4803_v11 = vpop.permute.xlu1 %4802 }
 0x4ea   :  { %v5111_v28 = vsel %vm5093_vm0, %v5078_v24, %v4803_v11  ;;  %4534 = vrot.lane.b32.xlu0 %v13538_v38, %s8890_s27  ;;  %v4074_v38 = vrot.slane %v13618_v31, 1  ;;  %v4080_v11 = vsel %vm526_vm3, %v4078_v51, %v4079_v22 }
 0x4eb   :  { %v7947_v21 = vpop.f32.mrf.mxu0  ;;  %4630 = vrot.lane.b32.xlu1 %v13544_v54, %s8884_s26  ;;  %7709 = vmatprep.mubr.msk.f32.mxu1 %vm6418_vm5, %v5111_v28 }
 0x4ec   :  { %v3453_v16 = vadd.f32 %v13448_v0, %v7947_v21  ;;  %v8115_v3 = vpop.permute.xlu0 %8114  ;;  %6761 = vmatmul.mubr.f32.gmra.mxu1 %v5013_v55  ;;  %v13638_v49 = vsel %vm445_vm2, %v4073_v43, %v4074_v38 }
 0x4ed   :  { %v3447_v2 = vpop.f32.mrf.mxu0  ;;  %v8120_v8 = vpop.permute.xlu1 %8119  ;;  %v8116_v9 = vunpack.i.l.bf16 %v8115_v3  ;;  %v8117_v34 = vunpack.i.h.bf16 %v8115_v3 }
 0x4ee   :  { %v3567_v17 = vmax.f32 %v3453_v16, 0.0  ;;  %v3448_v30 = vadd.f32 %v13448_v0, %v3447_v2  ;;  %4726 = vrot.lane.b32.xlu0 %v3989_v35, %s8892_s16  ;;  %v8121_v47 = vunpack.i.l.bf16 %v8120_v8 }
 0x4ef   :  { %4822 = vrot.lane.b32.xlu1 %v13606_v14, %s8894_s17  ;;  %v4882_v37 = vsel %vm1565_vm4, %v13095_v5, %v8116_v9  ;;  %v8223_v5 = vpack.i.bf16 %v13544_v54, %v13542_v13  ;;  %v4883_v13 = vsel %vm1565_vm4, %v8815_v19, %v8117_v34 }
 0x4f0   :  { %3741 = vst.msk [vmem:[#allocation3 + $0x2a9] sm:$0xff] %vm1565_vm4, %v3567_v17  ;;  %v3566_v33 = vmax.f32 %v3448_v30, 0.0  ;;  %v4517_v63 = vpop.permute.xlu0 %4516  ;;  %v4915_v39 = vsel %vm4896_vm14, %v4882_v37, %v8121_v47  ;;  %v4081_v17 = vrot.slane %v3804_v60, 2  ;;  %v3805_v37 = vld [vmem:[#allocation3 + $0x198] sm:$0xff] }
 0x4f1   :  { %v4613_v4 = vpop.permute.xlu1 %4612 }
 0x4f2   :  { %3740 = vst.msk [vmem:[#allocation3 + $0x2a1] sm:$0xff] %vm1565_vm4, %v3566_v33  ;;  %8214 = vrot.lane.b32.xlu0 %v8208_v50, %s8886_s28  ;;  %v5046_v46 = vsel %vm1499_vm8, %v4517_v63, %v4613_v4  ;;  %v8122_v50 = vunpack.i.h.bf16 %v8120_v8  ;;  %v4076_v8 = vrot.slane %v3804_v60, 1 }
 0x4f3   :  { %8219 = vrot.lane.b32.xlu1 %v8218_v45, %s8889_s18 }
 0x4f4   :  { %v8125_v53 = vpop.permute.xlu0 %8124  ;;  %v4916_v24 = vsel %vm4896_vm14, %v4883_v13, %v8122_v50  ;;  %v13666_v33 = vsel %vm445_vm2, %v4074_v38, %v4076_v8 }
 0x4f5   :  { %v4709_v40 = vpop.permute.xlu1 %4708  ;;  %v8126_v48 = vunpack.i.l.bf16 %v8125_v53  ;;  %v8127_v54 = vunpack.i.h.bf16 %v8125_v53  ;;  %v8238_v53 = vpack.i.bf16 %v13606_v14, %v13584_v20 }
 0x4f6   :  { %4536 = vrot.lane.b32.xlu0 %v13584_v20, %s8890_s27  ;;  %v5079_v29 = vsel %vm5060_vm15, %v5046_v46, %v4709_v40 }
 0x4f7   :  { %4632 = vrot.lane.b32.xlu1 %v13616_v26, %s8884_s26  ;;  %v4948_v58 = vsel %vm4929_vm1, %v4915_v39, %v8126_v48  ;;  %v4949_v28 = vsel %vm4929_vm1, %v4916_v24, %v8127_v54  ;;  %v13678_v48 = vld [vmem:[#allocation3 + $0x1a0] sm:$0xff]  ;;  %v8816_v39 = vld [vmem:[#allocation3 + $0xf0] sm:$0xff] }
 0x4f8   :  { %v8130_v27 = vpop.permute.xlu0 %8129  ;;  %v4087_v20 = vrot.slane %v13678_v48, 1  ;;  %v4092_v13 = vrot.slane %v13678_v48, 2 }
 0x4f9   :  { %v8131_v61 = vunpack.i.l.bf16 %v8130_v27  ;;  %v4805_v7 = vpop.permute.xlu1 %4804  ;;  %v8132_v44 = vunpack.i.h.bf16 %v8130_v27  ;;  %v4086_v27 = vrot.slane %v3805_v37, 1 }
 0x4fa   :  { %v5112_v56 = vsel %vm5093_vm0, %v5079_v29, %v4805_v7  ;;  %8224 = vrot.lane.b32.xlu0 %v8223_v5, %s8891_s25 }
 0x4fb   :  { %4728 = vrot.lane.b32.xlu1 %v13638_v49, %s8892_s16  ;;  %7710 = vmatprep.mubr.msk.f32.mxu1 %vm6418_vm5, %v5112_v56  ;;  %v4981_v10 = vsel %vm4962_vm7, %v4948_v58, %v8131_v61  ;;  %v4982_v15 = vsel %vm4962_vm7, %v4949_v28, %v8132_v44  ;;  %v4091_v56 = vrot.slane %v3805_v37, 2  ;;  %v4088_v19 = vsel %vm445_vm2, %v4086_v27, %v4087_v20  ;;  %v3807_v28 = vld [vmem:[#allocation3 + $0x1a8] sm:$0x3] }
 0x4fc   :  { %v4519_v41 = vpop.permute.xlu0 %4518  ;;  %v5014_v57 = vsel %vm4995_vm9, %v4981_v10, %v4517_v63  ;;  %v13671_v63 = vsel %vm526_vm3, %v4079_v22, %v4081_v17  ;;  %v8243_v22 = vpack.i.bf16 %v13618_v31, %v13616_v26  ;;  %v4089_v17 = vrot.slane %v3807_v28, 1 }
 0x4fd   :  { %v4615_v1 = vpop.permute.xlu1 %4614  ;;  %6766 = vmatmul.mubr.f32.gmra.mxu1 %v5014_v57  ;;  %v5015_v2 = vsel %vm4995_vm9, %v4982_v15, %v4519_v41 }
 0x4fe   :  { %8229 = vrot.lane.b32.xlu0 %v8228_v6, %s8893_s4  ;;  %v5047_v21 = vsel %vm1499_vm8, %v4519_v41, %v4615_v1 }
 0x4ff   :  { %4824 = vrot.lane.b32.xlu1 %v4080_v11, %s8894_s17 }
 0x500   :  { %v4711_v55 = vpop.permute.xlu0 %4710 }
 0x501   :  { %v5080_v16 = vsel %vm5060_vm15, %v5047_v21, %v4711_v55  ;;  %v4807_v3 = vpop.permute.xlu1 %4806  ;;  %v13705_v21 = vld [vmem:[#allocation3 + $0x1b0] sm:$0xff]  ;;  %v8248_v55 = vpack.i.bf16 %v13666_v33, %v13638_v49 }
 0x502   :  { %v5113_v32 = vsel %vm5093_vm0, %v5080_v16, %v4807_v3  ;;  %4538 = vrot.lane.b32.xlu0 %v13606_v14, %s8890_s27  ;;  %v4093_v3 = vsel %vm526_vm3, %v4091_v56, %v4092_v13 }
 0x503   :  { %4634 = vrot.lane.b32.xlu1 %v13618_v31, %s8884_s26  ;;  %7711 = vmatprep.mubr.msk.f32.mxu1 %vm6418_vm5, %v5113_v32  ;;  %v8817_v31 = vld [vmem:[#allocation3 + $0xf8] sm:$0xff] }
 0x504   :  { %v8135_v35 = vpop.permute.xlu0 %8134  ;;  %6771 = vmatmul.mubr.f32.gmra.mxu1 %v5015_v2  ;;  %v13711_v32 = vld [vmem:[#allocation3 + $0x1b8] sm:$0xff]  ;;  %v3810_v2 = vld [vmem:[#allocation3 + $0x1c0] sm:$0x3] }
 0x505   :  { %v13663_v30 = vpop.permute.xlu1 %8139  ;;  %v8136_v43 = vunpack.i.l.bf16 %v8135_v35  ;;  %v8137_v7 = vunpack.i.h.bf16 %v8135_v35 }
 0x506   :  { %4730 = vrot.lane.b32.xlu0 %v13666_v33, %s8892_s16  ;;  %v8141_v14 = vunpack.i.l.bf16 %v13663_v30  ;;  %v8142_v41 = vunpack.i.h.bf16 %v13663_v30  ;;  %v4094_v30 = vrot.slane %v3807_v28, 2  ;;  %v5175_v33 = vrot.slane %v13711_v32, 1 }
 0x507   :  { %v7950_v45 = vpop.f32.mrf.mxu0  ;;  %4826 = vrot.lane.b32.xlu1 %v13671_v63, %s8894_s17  ;;  %v4884_v29 = vsel %vm1565_vm4, %v8816_v39, %v8136_v43  ;;  %v4885_v1 = vsel %vm1565_vm4, %v8817_v31, %v8137_v7  ;;  %v5257_v43 = vrot.slane %v3810_v2, 2  ;;  %v13742_v7 = vld [vmem:[#allocation3 + $0x1c8] sm:$0xff] }
 0x508   :  { %v3463_v4 = vadd.f32 %v13448_v0, %v7950_v45  ;;  %v4521_v9 = vpop.permute.xlu0 %4520  ;;  %v4917_v54 = vsel %vm4896_vm14, %v4884_v29, %v8141_v14  ;;  %v4918_v35 = vsel %vm4896_vm14, %v4885_v1, %v8142_v41  ;;  %v5174_v45 = vrot.slane %v13705_v21, 1 }
 0x509   :  { %v3457_v47 = vpop.f32.mrf.mxu0  ;;  %v4617_v40 = vpop.permute.xlu1 %4616  ;;  %v4095_v29 = vsel %vm526_vm3, %v4092_v13, %v4094_v30 }
 0x50a   :  { %v3569_v38 = vmax.f32 %v3463_v4, 0.0  ;;  %v3458_v34 = vadd.f32 %v13448_v0, %v3457_v47  ;;  %8234 = vrot.lane.b32.xlu0 %v8228_v6, %s8886_s28  ;;  %v5048_v50 = vsel %vm1499_vm8, %v4521_v9, %v4617_v40  ;;  %v5177_v4 = vrot.slane %v3810_v2, 1 }
 0x50b   :  { %8239 = vrot.lane.b32.xlu1 %v8238_v53, %s8889_s18  ;;  %v5176_v14 = vsel %vm445_vm2, %v5174_v45, %v5175_v33 }
 0x50c   :  { %3743 = vst.msk [vmem:[#allocation3 + $0x2c1] sm:$0xff] %vm1565_vm4, %v3569_v38  ;;  %v3568_v46 = vmax.f32 %v3458_v34, 0.0  ;;  %v8145_v51 = vpop.permute.xlu0 %8144 }
 0x50d   :  { %v4713_v5 = vpop.permute.xlu1 %4712  ;;  %v8146_v61 = vunpack.i.l.bf16 %v8145_v51  ;;  %v8147_v24 = vunpack.i.h.bf16 %v8145_v51  ;;  %v4090_v51 = vsel %vm445_vm2, %v4087_v20, %v4089_v17 }
 0x50e   :  { %3742 = vst.msk [vmem:[#allocation3 + $0x2b9] sm:$0xff] %vm1565_vm4, %v3568_v46  ;;  %4540 = vrot.lane.b32.xlu0 %v4080_v11, %s8890_s27  ;;  %v5081_v10 = vsel %vm5060_vm15, %v5048_v50, %v4713_v5  ;;  %v5178_v5 = vsel %vm445_vm2, %v5175_v33, %v5177_v4 }
 0x50f   :  { %4636 = vrot.lane.b32.xlu1 %v3805_v37, %s8884_s26  ;;  %v4950_v26 = vsel %vm4929_vm1, %v4917_v54, %v8146_v61  ;;  %v4951_v49 = vsel %vm4929_vm1, %v4918_v35, %v8147_v24  ;;  %v5255_v37 = vrot.slane %v13711_v32, 2  ;;  %v13749_v54 = vld [vmem:[#allocation3 + $0x1d8] sm:$0x3] }
 0x510   :  { %v8150_v58 = vpop.permute.xlu0 %8149  ;;  %v5182_v24 = vrot.slane %v13749_v54, 1 }
 0x511   :  { %v8151_v6 = vunpack.i.l.bf16 %v8150_v58  ;;  %v4809_v44 = vpop.permute.xlu1 %4808  ;;  %v8152_v15 = vunpack.i.h.bf16 %v8150_v58  ;;  %v5258_v20 = vsel %vm526_vm3, %v5255_v37, %v5257_v43 }
 0x512   :  { %v5114_v57 = vsel %vm5093_vm0, %v5081_v10, %v4809_v44  ;;  %8244 = vrot.lane.b32.xlu0 %v8243_v22, %s8891_s25  ;;  %v13744_v22 = vld [vmem:[#allocation3 + $0x1d0] sm:$0xff]  ;;  %v13755_v44 = vld [vmem:[#allocation3 + $0x1e8] sm:$0xff] }
 0x513   :  { %4732 = vrot.lane.b32.xlu1 %v4088_v19, %s8892_s16  ;;  %7712 = vmatprep.mubr.msk.f32.mxu1 %vm6418_vm5, %v5114_v57  ;;  %v4983_v11 = vsel %vm4962_vm7, %v4950_v26, %v8151_v6  ;;  %v4984_v40 = vsel %vm4962_vm7, %v4951_v49, %v8152_v15  ;;  %v5259_v19 = vrot.slane %v13742_v7, 2  ;;  %v5260_v13 = vrot.slane %v13744_v22, 2  ;;  %v13753_v6 = vld [vmem:[#allocation3 + $0x1e0] sm:$0xff] }
 0x514   :  { %v4523_v60 = vpop.permute.xlu0 %4522  ;;  %v5016_v16 = vsel %vm4995_vm9, %v4983_v11, %v4521_v9  ;;  %v5254_v9 = vrot.slane %v13705_v21, 2  ;;  %v5179_v57 = vrot.slane %v13742_v7, 1  ;;  %v5180_v26 = vrot.slane %v13744_v22, 1 }
 0x515   :  { %v4619_v8 = vpop.permute.xlu1 %4618  ;;  %6776 = vmatmul.mubr.f32.gmra.mxu1 %v5016_v16  ;;  %v5017_v27 = vsel %vm4995_vm9, %v4984_v40, %v4523_v60  ;;  %v13766_v15 = vsel %vm526_vm3, %v5259_v19, %v5260_v13  ;;  %v5185_v16 = vrot.slane %v13755_v44, 1  ;;  %v8263_v45 = vpack.i.bf16 %v13744_v22, %v13742_v7 }
 0x516   :  { %8249 = vrot.lane.b32.xlu0 %v8248_v55, %s8893_s4  ;;  %v5049_v53 = vsel %vm1499_vm8, %v4523_v60, %v4619_v8  ;;  %v5184_v60 = vrot.slane %v13753_v6, 1  ;;  %v5181_v49 = vsel %vm445_vm2, %v5179_v57, %v5180_v26 }
 0x517   :  { %4828 = vrot.lane.b32.xlu1 %v4093_v3, %s8894_s17  ;;  %v8818_v3 = vld [vmem:[#allocation3 + $0x108] sm:$0xff] }
 0x518   :  { %v4715_v47 = vpop.permute.xlu0 %4714 }
 0x519   :  { %v5082_v38 = vsel %vm5060_vm15, %v5049_v53, %v4715_v47  ;;  %v4811_v34 = vpop.permute.xlu1 %4810  ;;  %v5183_v53 = vsel %vm445_vm2, %v5180_v26, %v5182_v24  ;;  %v5264_v47 = vrot.slane %v13753_v6, 2 }
 0x51a   :  { %v5115_v46 = vsel %vm5093_vm0, %v5082_v38, %v4811_v34  ;;  %4542 = vrot.lane.b32.xlu0 %v13671_v63, %s8890_s27  ;;  %v5256_v63 = vsel %vm526_vm3, %v5254_v9, %v5255_v37  ;;  %v5265_v34 = vrot.slane %v13755_v44, 2 }
 0x51b   :  { %4638 = vrot.lane.b32.xlu1 %v13678_v48, %s8884_s26  ;;  %7713 = vmatprep.mubr.msk.f32.mxu1 %vm6418_vm5, %v5115_v46  ;;  %v8253_v48 = vpack.i.bf16 %v5178_v5, %v5176_v14  ;;  %v8258_v50 = vpack.i.bf16 %v5258_v20, %v5256_v63  ;;  %v8819_v5 = vld [vmem:[#allocation3 + $0x110] sm:$0xff] }
 0x51c   :  { %v13734_v39 = vpop.permute.xlu0 %8154  ;;  %6781 = vmatmul.mubr.f32.gmra.mxu1 %v5017_v27  ;;  %v13794_v27 = vsel %vm445_vm2, %v5184_v60, %v5185_v16 }
 0x51d   :  { %v13739_v61 = vpop.permute.xlu1 %8159  ;;  %v8156_v10 = vunpack.i.l.bf16 %v13734_v39  ;;  %v8157_v30 = vunpack.i.h.bf16 %v13734_v39 }
 0x51e   :  { %4734 = vrot.lane.b32.xlu0 %v4090_v51, %s8892_s16  ;;  %v8161_v11 = vunpack.i.l.bf16 %v13739_v61  ;;  %v8162_v46 = vunpack.i.h.bf16 %v13739_v61 }
 0x51f   :  { %4830 = vrot.lane.b32.xlu1 %v4095_v29, %s8894_s17  ;;  %v4886_v2 = vsel %vm1565_vm4, %v8818_v3, %v8156_v10  ;;  %v4887_v39 = vsel %vm1565_vm4, %v8819_v5, %v8157_v30  ;;  %v13806_v10 = vsel %vm526_vm3, %v5264_v47, %v5265_v34 }
 0x520   :  { %v4525_v56 = vpop.permute.xlu0 %4524  ;;  %v4919_v40 = vsel %vm4896_vm14, %v4886_v2, %v8161_v11  ;;  %v4920_v19 = vsel %vm4896_vm14, %v4887_v39, %v8162_v46 }
 0x521   :  { %v4621_v58 = vpop.permute.xlu1 %4620 }
 0x522   :  { %8254 = vrot.lane.b32.xlu0 %v8253_v48, %s8886_s28  ;;  %v5050_v33 = vsel %vm1499_vm8, %v4525_v56, %v4621_v58 }
 0x523   :  { %v7953_v41 = vpop.f32.mrf.mxu0  ;;  %8259 = vrot.lane.b32.xlu1 %v8258_v50, %s8889_s18  ;;  %v8268_v50 = vpack.i.bf16 %v5183_v53, %v5181_v49  ;;  %v13836_v49 = vld [vmem:[#allocation3 + $0x200] sm:$0xff] }
 0x524   :  { %v3473_v31 = vadd.f32 %v13448_v0, %v7953_v41  ;;  %v8165_v1 = vpop.permute.xlu0 %8164  ;;  %v5262_v41 = vrot.slane %v13749_v54, 2 }
 0x525   :  { %v3467_v28 = vpop.f32.mrf.mxu0  ;;  %v4717_v55 = vpop.permute.xlu1 %4716  ;;  %v8166_v35 = vunpack.i.l.bf16 %v8165_v1  ;;  %v8167_v29 = vunpack.i.h.bf16 %v8165_v1  ;;  %v3816_v1 = vld [vmem:[#allocation3 + $0x1f0] sm:$0x3] }
 0x526   :  { %v3571_v8 = vmax.f32 %v3473_v31, 0.0  ;;  %v3468_v17 = vadd.f32 %v13448_v0, %v3467_v28  ;;  %5744 = vrot.lane.b32.xlu0 %v13766_v15, %s8890_s27  ;;  %v5083_v37 = vsel %vm5060_vm15, %v5050_v33, %v4717_v55  ;;  %v5263_v28 = vsel %vm526_vm3, %v5260_v13, %v5262_v41 }
 0x527   :  { %5840 = vrot.lane.b32.xlu1 %v13753_v6, %s8884_s26  ;;  %v4952_v14 = vsel %vm4929_vm1, %v4919_v40, %v8166_v35  ;;  %v4953_v57 = vsel %vm4929_vm1, %v4920_v19, %v8167_v29  ;;  %v5187_v60 = vrot.slane %v3816_v1, 1  ;;  %v5267_v2 = vrot.slane %v3816_v1, 2  ;;  %v8820_v40 = vld [vmem:[#allocation3 + $0x120] sm:$0xff] }
 0x528   :  { %3745 = vst.msk [vmem:[#allocation3 + $0x2d9] sm:$0xff] %vm1565_vm4, %v3571_v8  ;;  %v3570_v4 = vmax.f32 %v3468_v17, 0.0  ;;  %v8170_v9 = vpop.permute.xlu0 %8169  ;;  %v8278_v17 = vpack.i.bf16 %v5263_v28, %v13766_v15  ;;  %v5270_v29 = vrot.slane %v13836_v49, 2 }
 0x529   :  { %v8171_v43 = vunpack.i.l.bf16 %v8170_v9  ;;  %v4813_v38 = vpop.permute.xlu1 %4812  ;;  %v8172_v20 = vunpack.i.h.bf16 %v8170_v9  ;;  %v5188_v22 = vsel %vm445_vm2, %v5185_v16, %v5187_v60  ;;  %v13829_v13 = vsel %vm526_vm3, %v5265_v34, %v5267_v2 }
 0x52a   :  { %3744 = vst.msk [vmem:[#allocation3 + $0x2d1] sm:$0xff] %vm1565_vm4, %v3570_v4  ;;  %v5116_v51 = vsel %vm5093_vm0, %v5083_v37, %v4813_v38  ;;  %8264 = vrot.lane.b32.xlu0 %v8263_v45, %s8891_s25  ;;  %v13834_v45 = vld [vmem:[#allocation3 + $0x1f8] sm:$0xff]  ;;  %v5190_v9 = vrot.slane %v13836_v49, 1  ;;  %v8283_v34 = vpack.i.bf16 %v13755_v44, %v13753_v6  ;;  %v8288_v1 = vpack.i.bf16 %v5188_v22, %v13794_v27 }
 0x52b   :  { %5936 = vrot.lane.b32.xlu1 %v13794_v27, %s8892_s16  ;;  %7714 = vmatprep.mubr.msk.f32.mxu1 %vm6418_vm5, %v5116_v51  ;;  %v4985_v63 = vsel %vm4962_vm7, %v4952_v14, %v8171_v43  ;;  %v4986_v31 = vsel %vm4962_vm7, %v4953_v57, %v8172_v20  ;;  %v5189_v4 = vrot.slane %v13834_v45, 1  ;;  %v5269_v46 = vrot.slane %v13834_v45, 2  ;;  %v8821_v57 = vld [vmem:[#allocation3 + $0x128] sm:$0xff] }
 0x52c   :  { %v4527_v61 = vpop.permute.xlu0 %4526  ;;  %v5018_v48 = vsel %vm4995_vm9, %v4985_v63, %v4525_v56 }
 0x52d   :  { %v4623_v58 = vpop.permute.xlu1 %4622  ;;  %6786 = vmatmul.mubr.f32.gmra.mxu1 %v5018_v48  ;;  %v5019_v54 = vsel %vm4995_vm9, %v4986_v31, %v4527_v61  ;;  %v13855_v39 = vsel %vm445_vm2, %v5189_v4, %v5190_v9  ;;  %v13876_v60 = vsel %vm526_vm3, %v5269_v46, %v5270_v29  ;;  %v13904_v46 = vld [vmem:[#allocation3 + $0x210] sm:$0xff] }
 0x52e   :  { %8269 = vrot.lane.b32.xlu0 %v8268_v50, %s8893_s4  ;;  %v5051_v26 = vsel %vm1499_vm8, %v4527_v61, %v4623_v58 }
 0x52f   :  { %6032 = vrot.lane.b32.xlu1 %v13806_v10, %s8894_s17 }
 0x530   :  { %v4719_v56 = vpop.permute.xlu0 %4718 }
 0x531   :  { %v5084_v24 = vsel %vm5060_vm15, %v5051_v26, %v4719_v56  ;;  %v4815_v11 = vpop.permute.xlu1 %4814 }
 0x532   :  { %v5117_v55 = vsel %vm5093_vm0, %v5084_v24, %v4815_v11  ;;  %5746 = vrot.lane.b32.xlu0 %v5263_v28, %s8890_s27 }
 0x533   :  { %5842 = vrot.lane.b32.xlu1 %v13755_v44, %s8884_s26  ;;  %7715 = vmatprep.mubr.msk.f32.mxu1 %vm6418_vm5, %v5117_v55 }
 0x534   :  { %v8175_v3 = vpop.permute.xlu0 %8174  ;;  %6791 = vmatmul.mubr.f32.gmra.mxu1 %v5019_v54 }
 0x535   :  { %v8180_v8 = vpop.permute.xlu1 %8179  ;;  %v8176_v33 = vunpack.i.l.bf16 %v8175_v3  ;;  %v8177_v43 = vunpack.i.h.bf16 %v8175_v3 }
 0x536   :  { %5938 = vrot.lane.b32.xlu0 %v5188_v22, %s8892_s16  ;;  %v8181_v53 = vunpack.i.l.bf16 %v8180_v8  ;;  %v8182_v63 = vunpack.i.h.bf16 %v8180_v8  ;;  %v3819_v22 = vld [vmem:[#allocation3 + $0x208] sm:$0x3] }
 0x537   :  { %6034 = vrot.lane.b32.xlu1 %v13829_v13, %s8894_s17  ;;  %v4888_v15 = vsel %vm1565_vm4, %v8820_v40, %v8176_v33  ;;  %v4889_v26 = vsel %vm1565_vm4, %v8821_v57, %v8177_v43  ;;  %v8298_v43 = vpack.i.bf16 %v13829_v13, %v13806_v10 }
 0x538   :  { %v4529_v35 = vpop.permute.xlu0 %4528  ;;  %v4921_v20 = vsel %vm4896_vm14, %v4888_v15, %v8181_v53  ;;  %v4922_v54 = vsel %vm4896_vm14, %v4889_v26, %v8182_v63  ;;  %v5272_v53 = vrot.slane %v3819_v22, 2 }
 0x539   :  { %v4625_v30 = vpop.permute.xlu1 %4624 }
 0x53a   :  { %8274 = vrot.lane.b32.xlu0 %v8268_v50, %s8886_s28  ;;  %v5052_v51 = vsel %vm1499_vm8, %v4529_v35, %v4625_v30  ;;  %v13896_v15 = vsel %vm526_vm3, %v5270_v29, %v5272_v53  ;;  %v8822_v29 = vld [vmem:[#allocation3 + $0x138] sm:$0xff] }
 0x53b   :  { %8279 = vrot.lane.b32.xlu1 %v8278_v17, %s8889_s18 }
 0x53c   :  { %v8185_v16 = vpop.permute.xlu0 %8184 }
 0x53d   :  { %v4721_v47 = vpop.permute.xlu1 %4720  ;;  %v8186_v37 = vunpack.i.l.bf16 %v8185_v16  ;;  %v8187_v56 = vunpack.i.h.bf16 %v8185_v16  ;;  %v5192_v16 = vrot.slane %v3819_v22, 1 }
 0x53e   :  { %5748 = vrot.lane.b32.xlu0 %v13806_v10, %s8890_s27  ;;  %v5085_v61 = vsel %vm5060_vm15, %v5052_v51, %v4721_v47  ;;  %v5194_v10 = vrot.slane %v13904_v46, 1 }
 0x53f   :  { %v7956_v38 = vpop.f32.mrf.mxu0  ;;  %5844 = vrot.lane.b32.xlu1 %v13834_v45, %s8884_s26  ;;  %v4954_v41 = vsel %vm4929_vm1, %v4921_v20, %v8186_v37  ;;  %v4955_v27 = vsel %vm4929_vm1, %v4922_v54, %v8187_v56  ;;  %v5193_v40 = vsel %vm445_vm2, %v5190_v9, %v5192_v16  ;;  %v13906_v9 = vld [vmem:[#allocation3 + $0x218] sm:$0xff] }
 0x540   :  { %v3483_v14 = vadd.f32 %v13448_v0, %v7956_v38  ;;  %v8190_v5 = vpop.permute.xlu0 %8189  ;;  %v5275_v26 = vrot.slane %v13906_v9, 2 }
 0x541   :  { %v8191_v6 = vunpack.i.l.bf16 %v8190_v5  ;;  %v3477_v44 = vpop.f32.mrf.mxu0  ;;  %v4817_v48 = vpop.permute.xlu1 %4816 }
 0x542   :  { %v3573_v50 = vmax.f32 %v3483_v14, 0.0  ;;  %v3478_v58 = vadd.f32 %v13448_v0, %v3477_v44  ;;  %v5118_v19 = vsel %vm5093_vm0, %v5085_v61, %v4817_v48  ;;  %8284 = vrot.lane.b32.xlu0 %v8283_v34, %s8891_s25  ;;  %v8192_v0 = vunpack.i.h.bf16 %v8190_v5 }
 0x543   :  { %5940 = vrot.lane.b32.xlu1 %v13855_v39, %s8892_s16  ;;  %7716 = vmatprep.mubr.msk.f32.mxu1 %vm6418_vm5, %v5118_v19  ;;  %v4987_v31 = vsel %vm4962_vm7, %v4954_v41, %v8191_v6  ;;  %v8303_v48 = vpack.i.bf16 %v13836_v49, %v13834_v45 }
 0x544   :  { %3747 = vst.msk [vmem:[#allocation3 + $0x2f1] sm:$0xff] %vm1565_vm4, %v3573_v50  ;;  %v3572_v24 = vmax.f32 %v3478_v58, 0.0  ;;  %v4531_v11 = vpop.permute.xlu0 %4530  ;;  %v5020_v28 = vsel %vm4995_vm9, %v4987_v31, %v4529_v35  ;;  %v4988_v8 = vsel %vm4962_vm7, %v4955_v27, %v8192_v0  ;;  %v5274_v50 = vrot.slane %v13904_v46, 2  ;;  %v13937_v27 = vld [vmem:[%s16007_s3] ss:$0 sm:$0xff] }
 0x545   :  { %v4627_v55 = vpop.permute.xlu1 %4626  ;;  %6796 = vmatmul.mubr.f32.gmra.mxu1 %v5020_v28  ;;  %v5021_v33 = vsel %vm4995_vm9, %v4988_v8, %v4531_v11 }
 0x546   :  { %3746 = vst.msk [vmem:[#allocation3 + $0x2e9] sm:$0xff] %vm1565_vm4, %v3572_v24  ;;  %8289 = vrot.lane.b32.xlu0 %v8288_v1, %s8893_s4  ;;  %v5053_v3 = vsel %vm1499_vm8, %v4531_v11, %v4627_v55  ;;  %v8308_v55 = vpack.i.bf16 %v5193_v40, %v13855_v39  ;;  %v13945_v39 = vsel %vm526_vm3, %v5274_v50, %v5275_v26  ;;  %v13973_v50 = vld [vmem:[#allocation3 + $0x228] sm:$0xff] }
 0x547   :  { %6036 = vrot.lane.b32.xlu1 %v13876_v60, %s8894_s17 }
 0x548   :  { %v4723_v2 = vpop.permute.xlu0 %4722 }
 0x549   :  { %v5086_v35 = vsel %vm5060_vm15, %v5053_v3, %v4723_v2  ;;  %v4819_v17 = vpop.permute.xlu1 %4818 }
 0x54a   :  { %v5119_v30 = vsel %vm5093_vm0, %v5086_v35, %v4819_v17  ;;  %5750 = vrot.lane.b32.xlu0 %v13829_v13, %s8890_s27  ;;  %v5195_v13 = vrot.slane %v13906_v9, 1 }
 0x54b   :  { %5846 = vrot.lane.b32.xlu1 %v13836_v49, %s8884_s26  ;;  %7717 = vmatprep.mubr.msk.f32.mxu1 %vm6418_vm5, %v5119_v30  ;;  %v8823_v49 = vld [vmem:[#allocation3 + $0x140] sm:$0xff] }
 0x54c   :  { %v8195_v4 = vpop.permute.xlu0 %8194  ;;  %6801 = vmatmul.mubr.f32.gmra.mxu1 %v5021_v33 }
 0x54d   :  { %v8200_v47 = vpop.permute.xlu1 %8199  ;;  %v8196_v34 = vunpack.i.l.bf16 %v8195_v4  ;;  %v8197_v61 = vunpack.i.h.bf16 %v8195_v4 }
 0x54e   :  { %5942 = vrot.lane.b32.xlu0 %v5193_v40, %s8892_s16  ;;  %v8201_v14 = vunpack.i.l.bf16 %v8200_v47  ;;  %v8202_v56 = vunpack.i.h.bf16 %v8200_v47 }
 0x54f   :  { %6038 = vrot.lane.b32.xlu1 %v13896_v15, %s8894_s17  ;;  %v4890_v63 = vsel %vm1565_vm4, %v8822_v29, %v8196_v34  ;;  %v4891_v0 = vsel %vm1565_vm4, %v8823_v49, %v8197_v61 }
 0x550   :  { %v4533_v37 = vpop.permute.xlu0 %4532  ;;  %v4923_v58 = vsel %vm4896_vm14, %v4890_v63, %v8201_v14  ;;  %v4924_v17 = vsel %vm4896_vm14, %v4891_v0, %v8202_v56  ;;  %v8323_v0 = vpack.i.bf16 %v13906_v9, %v13904_v46 }
 0x551   :  { %v4629_v38 = vpop.permute.xlu1 %4628 }
 0x552   :  { %8294 = vrot.lane.b32.xlu0 %v8288_v1, %s8886_s28  ;;  %v5054_v6 = vsel %vm1499_vm8, %v4533_v37, %v4629_v38  ;;  %v13925_v1 = vsel %vm445_vm2, %v5194_v10, %v5195_v13 }
 0x553   :  { %8299 = vrot.lane.b32.xlu1 %v8298_v43, %s8889_s18 }
 0x554   :  { %v8205_v51 = vpop.permute.xlu0 %8204 }
 0x555   :  { %v4725_v5 = vpop.permute.xlu1 %4724  ;;  %v8206_v20 = vunpack.i.l.bf16 %v8205_v51  ;;  %v8207_v24 = vunpack.i.h.bf16 %v8205_v51 }
 0x556   :  { %5752 = vrot.lane.b32.xlu0 %v13876_v60, %s8890_s27  ;;  %v5087_v19 = vsel %vm5060_vm15, %v5054_v6, %v4725_v5  ;;  %v8318_v6 = vpack.i.bf16 %v13896_v15, %v13876_v60  ;;  %v5199_v60 = vrot.slane %v13973_v50, 1 }
 0x557   :  { %5848 = vrot.lane.b32.xlu1 %v13904_v46, %s8884_s26  ;;  %v4956_v45 = vsel %vm4929_vm1, %v4923_v58, %v8206_v20  ;;  %v4957_v16 = vsel %vm4929_vm1, %v4924_v17, %v8207_v24  ;;  %v5279_v24 = vrot.slane %v13973_v50, 2 }
 0x558   :  { %v8210_v44 = vpop.permute.xlu0 %8209 }
 0x559   :  { %v8211_v41 = vunpack.i.l.bf16 %v8210_v44  ;;  %v4821_v57 = vpop.permute.xlu1 %4820  ;;  %v8212_v54 = vunpack.i.h.bf16 %v8210_v44 }
 0x55a   :  { %v5120_v31 = vsel %vm5093_vm0, %v5087_v19, %v4821_v57  ;;  %8304 = vrot.lane.b32.xlu0 %v8303_v48, %s8891_s25  ;;  %v8825_v57 = vld [vmem:[#allocation3 + $0x150] sm:$0xff] }
 0x55b   :  { %v7959_v11 = vpop.f32.mrf.mxu0  ;;  %5944 = vrot.lane.b32.xlu1 %v13925_v1, %s8892_s16  ;;  %7718 = vmatprep.mubr.msk.f32.mxu1 %vm6418_vm5, %v5120_v31  ;;  %v4989_v28 = vsel %vm4962_vm7, %v4956_v45, %v8211_v41  ;;  %v4990_v40 = vsel %vm4962_vm7, %v4957_v16, %v8212_v54 }
 0x55c   :  { %v3493_v3 = vadd.f32 %v13937_v27, %v7959_v11  ;;  %v4535_v2 = vpop.permute.xlu0 %4534  ;;  %v5022_v8 = vsel %vm4995_vm9, %v4989_v28, %v4533_v37  ;;  %v3822_v37 = vld [vmem:[#allocation3 + $0x220] sm:$0x3] }
 0x55d   :  { %v3487_v22 = vpop.f32.mrf.mxu0  ;;  %v4631_v35 = vpop.permute.xlu1 %4630  ;;  %6806 = vmatmul.mubr.f32.gmra.mxu1 %v5022_v8  ;;  %v5023_v51 = vsel %vm4995_vm9, %v4990_v40, %v4535_v2  ;;  %v5197_v14 = vrot.slane %v3822_v37, 1  ;;  %v5277_v29 = vrot.slane %v3822_v37, 2 }
 0x55e   :  { %v3575_v30 = vmax.f32 %v3493_v3, 0.0  ;;  %v3488_v33 = vadd.f32 %v13937_v27, %v3487_v22  ;;  %8309 = vrot.lane.b32.xlu0 %v8308_v55, %s8893_s4  ;;  %v5055_v53 = vsel %vm1499_vm8, %v4535_v2, %v4631_v35 }
 0x55f   :  { %6040 = vrot.lane.b32.xlu1 %v13945_v39, %s8894_s17  ;;  %v5198_v20 = vsel %vm445_vm2, %v5195_v13, %v5197_v14  ;;  %v13965_v10 = vsel %vm526_vm3, %v5275_v26, %v5277_v29  ;;  %v13975_v13 = vld [vmem:[#allocation3 + $0x230] sm:$0xff] }
 0x560   :  { %3749 = vst.msk [vmem:[#allocation3 + $0x309] sm:$0xff] %vm1565_vm4, %v3575_v30  ;;  %v3574_v4 = vmax.f32 %v3488_v33, 0.0  ;;  %v4727_v47 = vpop.permute.xlu0 %4726  ;;  %v5280_v3 = vrot.slane %v13975_v13, 2  ;;  %v8328_v33 = vpack.i.bf16 %v5198_v20, %v13925_v1 }
 0x561   :  { %v5088_v43 = vsel %vm5060_vm15, %v5055_v53, %v4727_v47  ;;  %v4823_v38 = vpop.permute.xlu1 %4822 }
 0x562   :  { %3748 = vst.msk [vmem:[#allocation3 + $0x301] sm:$0xff] %vm1565_vm4, %v3574_v4  ;;  %v5121_v34 = vsel %vm5093_vm0, %v5088_v43, %v4823_v38  ;;  %5754 = vrot.lane.b32.xlu0 %v13896_v15, %s8890_s27  ;;  %v5200_v15 = vrot.slane %v13975_v13, 1  ;;  %v14007_v37 = vsel %vm526_vm3, %v5279_v24, %v5280_v3  ;;  %v14039_v24 = vld [vmem:[#allocation3 + $0x248] sm:$0xff] }
 0x563   :  { %5850 = vrot.lane.b32.xlu1 %v13906_v9, %s8884_s26  ;;  %7719 = vmatprep.mubr.msk.f32.mxu1 %vm6418_vm5, %v5121_v34  ;;  %v8826_v9 = vld [vmem:[#allocation3 + $0x158] sm:$0xff] }
 0x564   :  { %v8215_v5 = vpop.permute.xlu0 %8214  ;;  %6811 = vmatmul.mubr.f32.gmra.mxu1 %v5023_v51  ;;  %v13994_v22 = vsel %vm445_vm2, %v5199_v60, %v5200_v15 }
 0x565   :  { %v8220_v63 = vpop.permute.xlu1 %8219  ;;  %v8216_v48 = vunpack.i.l.bf16 %v8215_v5  ;;  %v8217_v31 = vunpack.i.h.bf16 %v8215_v5  ;;  %v3825_v5 = vld [vmem:[#allocation3 + $0x238] sm:$0x3] }
 0x566   :  { %5946 = vrot.lane.b32.xlu0 %v5198_v20, %s8892_s16  ;;  %v8221_v19 = vunpack.i.l.bf16 %v8220_v63  ;;  %v8222_v2 = vunpack.i.h.bf16 %v8220_v63 }
 0x567   :  { %6042 = vrot.lane.b32.xlu1 %v13965_v10, %s8894_s17  ;;  %v4892_v26 = vsel %vm1565_vm4, %v8825_v57, %v8216_v48  ;;  %v4893_v35 = vsel %vm1565_vm4, %v8826_v9, %v8217_v31  ;;  %v5282_v57 = vrot.slane %v3825_v5, 2 }
 0x568   :  { %v4537_v61 = vpop.permute.xlu0 %4536  ;;  %v4925_v11 = vsel %vm4896_vm14, %v4892_v26, %v8221_v19  ;;  %v4926_v40 = vsel %vm4896_vm14, %v4893_v35, %v8222_v2  ;;  %v8343_v35 = vpack.i.bf16 %v13975_v13, %v13973_v50 }
 0x569   :  { %v4633_v44 = vpop.permute.xlu1 %4632  ;;  %v14029_v60 = vsel %vm526_vm3, %v5280_v3, %v5282_v57 }
 0x56a   :  { %8314 = vrot.lane.b32.xlu0 %v8308_v55, %s8886_s28  ;;  %v5056_v45 = vsel %vm1499_vm8, %v4537_v61, %v4633_v44 }
 0x56b   :  { %8319 = vrot.lane.b32.xlu1 %v8318_v6, %s8889_s18 }
 0x56c   :  { %v8225_v58 = vpop.permute.xlu0 %8224 }
 0x56d   :  { %v4729_v41 = vpop.permute.xlu1 %4728  ;;  %v8226_v56 = vunpack.i.l.bf16 %v8225_v58  ;;  %v8227_v17 = vunpack.i.h.bf16 %v8225_v58  ;;  %v5202_v58 = vrot.slane %v3825_v5, 1 }
 0x56e   :  { %5756 = vrot.lane.b32.xlu0 %v13945_v39, %s8890_s27  ;;  %v5089_v28 = vsel %vm5060_vm15, %v5056_v45, %v4729_v41  ;;  %v8338_v45 = vpack.i.bf16 %v13965_v10, %v13945_v39 }
 0x56f   :  { %5852 = vrot.lane.b32.xlu1 %v13973_v50, %s8884_s26  ;;  %v4958_v46 = vsel %vm4929_vm1, %v4925_v11, %v8226_v56  ;;  %v4959_v38 = vsel %vm4929_vm1, %v4926_v40, %v8227_v17  ;;  %v5203_v56 = vsel %vm445_vm2, %v5200_v15, %v5202_v58  ;;  %v14037_v15 = vld [vmem:[#allocation3 + $0x240] sm:$0xff]  ;;  %v3828_v58 = vld [vmem:[#allocation3 + $0x250] sm:$0x3] }
 0x570   :  { %v8230_v49 = vpop.permute.xlu0 %8229  ;;  %v5204_v39 = vrot.slane %v14037_v15, 1  ;;  %v5284_v17 = vrot.slane %v14037_v15, 2 }
 0x571   :  { %v8231_v55 = vunpack.i.l.bf16 %v8230_v49  ;;  %v4825_v54 = vpop.permute.xlu1 %4824  ;;  %v8232_v16 = vunpack.i.h.bf16 %v8230_v49 }
 0x572   :  { %v5122_v8 = vsel %vm5093_vm0, %v5089_v28, %v4825_v54  ;;  %8324 = vrot.lane.b32.xlu0 %v8323_v0, %s8891_s25  ;;  %v8827_v54 = vld [vmem:[#allocation3 + $0x168] sm:$0xff] }
 0x573   :  { %5948 = vrot.lane.b32.xlu1 %v13994_v22, %s8892_s16  ;;  %7720 = vmatprep.mubr.msk.f32.mxu1 %vm6418_vm5, %v5122_v8  ;;  %v4991_v30 = vsel %vm4962_vm7, %v4958_v46, %v8231_v55  ;;  %v4992_v14 = vsel %vm4962_vm7, %v4959_v38, %v8232_v16 }
 0x574   :  { %v4539_v4 = vpop.permute.xlu0 %4538  ;;  %v5024_v53 = vsel %vm4995_vm9, %v4991_v30, %v4537_v61 }
 0x575   :  { %v4635_v47 = vpop.permute.xlu1 %4634  ;;  %6816 = vmatmul.mubr.f32.gmra.mxu1 %v5024_v53  ;;  %v5025_v48 = vsel %vm4995_vm9, %v4992_v14, %v4539_v4  ;;  %v5285_v53 = vrot.slane %v14039_v24, 2 }
 0x576   :  { %8329 = vrot.lane.b32.xlu0 %v8328_v33, %s8893_s4  ;;  %v5057_v1 = vsel %vm1499_vm8, %v4539_v4, %v4635_v47 }
 0x577   :  { %v7962_v43 = vpop.f32.mrf.mxu0  ;;  %6044 = vrot.lane.b32.xlu1 %v14007_v37, %s8894_s17 }
 0x578   :  { %v3503_v34 = vadd.f32 %v13937_v27, %v7962_v43  ;;  %v4731_v51 = vpop.permute.xlu0 %4730 }
 0x579   :  { %v5090_v29 = vsel %vm5060_vm15, %v5057_v1, %v4731_v51  ;;  %v3497_v63 = vpop.f32.mrf.mxu0  ;;  %v4827_v20 = vpop.permute.xlu1 %4826  ;;  %v8348_v51 = vpack.i.bf16 %v5203_v56, %v13994_v22 }
 0x57a   :  { %v3577_v61 = vmax.f32 %v3503_v34, 0.0  ;;  %v3498_v6 = vadd.f32 %v13937_v27, %v3497_v63  ;;  %v5123_v44 = vsel %vm5093_vm0, %v5090_v29, %v4827_v20  ;;  %5758 = vrot.lane.b32.xlu0 %v13965_v10, %s8890_s27  ;;  %v5205_v10 = vrot.slane %v14039_v24, 1 }
 0x57b   :  { %5854 = vrot.lane.b32.xlu1 %v13975_v13, %s8884_s26  ;;  %7721 = vmatprep.mubr.msk.f32.mxu1 %vm6418_vm5, %v5123_v44  ;;  %v8828_v13 = vld [vmem:[#allocation3 + $0x170] sm:$0xff] }
 0x57c   :  { %3751 = vst.msk [vmem:[#allocation3 + $0x321] sm:$0xff] %vm1565_vm4, %v3577_v61  ;;  %v3576_v19 = vmax.f32 %v3498_v6, 0.0  ;;  %v8235_v41 = vpop.permute.xlu0 %8234  ;;  %6821 = vmatmul.mubr.f32.gmra.mxu1 %v5025_v48  ;;  %v14058_v43 = vsel %vm445_vm2, %v5204_v39, %v5205_v10  ;;  %v14071_v61 = vsel %vm526_vm3, %v5284_v17, %v5285_v53 }
 0x57d   :  { %v8240_v26 = vpop.permute.xlu1 %8239  ;;  %v8236_v0 = vunpack.i.l.bf16 %v8235_v41  ;;  %v8237_v8 = vunpack.i.h.bf16 %v8235_v41 }
 0x57e   :  { %3750 = vst.msk [vmem:[#allocation3 + $0x319] sm:$0xff] %vm1565_vm4, %v3576_v19  ;;  %5950 = vrot.lane.b32.xlu0 %v5203_v56, %s8892_s16  ;;  %v8241_v28 = vunpack.i.l.bf16 %v8240_v26  ;;  %v8242_v47 = vunpack.i.h.bf16 %v8240_v26 }
 0x57f   :  { %6046 = vrot.lane.b32.xlu1 %v14029_v60, %s8894_s17  ;;  %v4894_v3 = vsel %vm1565_vm4, %v8827_v54, %v8236_v0  ;;  %v4895_v38 = vsel %vm1565_vm4, %v8828_v13, %v8237_v8  ;;  %v5287_v0 = vrot.slane %v3828_v58, 2 }
 0x580   :  { %v4541_v31 = vpop.permute.xlu0 %4540  ;;  %v4927_v30 = vsel %vm4896_vm14, %v4894_v3, %v8241_v28  ;;  %v4928_v20 = vsel %vm4896_vm14, %v4895_v38, %v8242_v47 }
 0x581   :  { %v4637_v49 = vpop.permute.xlu1 %4636 }
 0x582   :  { %8334 = vrot.lane.b32.xlu0 %v8328_v33, %s8886_s28  ;;  %v5058_v46 = vsel %vm1499_vm8, %v4541_v31, %v4637_v49 }
 0x583   :  { %8339 = vrot.lane.b32.xlu1 %v8338_v45, %s8889_s18 }
 0x584   :  { %v8245_v11 = vpop.permute.xlu0 %8244 }
 0x585   :  { %v4733_v55 = vpop.permute.xlu1 %4732  ;;  %v8246_v2 = vunpack.i.l.bf16 %v8245_v11  ;;  %v8247_v1 = vunpack.i.h.bf16 %v8245_v11 }
 0x586   :  { %5760 = vrot.lane.b32.xlu0 %v14007_v37, %s8890_s27  ;;  %v5091_v33 = vsel %vm5060_vm15, %v5058_v46, %v4733_v55  ;;  %v8358_v46 = vpack.i.bf16 %v14029_v60, %v14007_v37 }
 0x587   :  { %5856 = vrot.lane.b32.xlu1 %v14037_v15, %s8884_s26  ;;  %v4960_v50 = vsel %vm4929_vm1, %v4927_v30, %v8246_v2  ;;  %v4961_v6 = vsel %vm4929_vm1, %v4928_v20, %v8247_v1  ;;  %v14091_v2 = vsel %vm526_vm3, %v5285_v53, %v5287_v0 }
 0x588   :  { %v8250_v9 = vpop.permute.xlu0 %8249 }
 0x589   :  { %v8251_v16 = vunpack.i.l.bf16 %v8250_v9  ;;  %v4829_v4 = vpop.permute.xlu1 %4828  ;;  %v8252_v14 = vunpack.i.h.bf16 %v8250_v9 }
 0x58a   :  { %v5124_v40 = vsel %vm5093_vm0, %v5091_v33, %v4829_v4  ;;  %8344 = vrot.lane.b32.xlu0 %v8343_v35, %s8891_s25  ;;  %v14103_v35 = vld [vmem:[#allocation3 + $0x260] sm:$0xff] }
 0x58b   :  { %5952 = vrot.lane.b32.xlu1 %v14058_v43, %s8892_s16  ;;  %7722 = vmatprep.mubr.msk.f32.mxu1 %vm6418_vm5, %v5124_v40  ;;  %v4993_v34 = vsel %vm4962_vm7, %v4960_v50, %v8251_v16  ;;  %v4994_v48 = vsel %vm4962_vm7, %v4961_v6, %v8252_v14  ;;  %v8363_v50 = vpack.i.bf16 %v14039_v24, %v14037_v15 }
 0x58c   :  { %v4543_v5 = vpop.permute.xlu0 %4542  ;;  %v5026_v29 = vsel %vm4995_vm9, %v4993_v34, %v4541_v31  ;;  %v5207_v31 = vrot.slane %v3828_v58, 1 }
 0x58d   :  { %v4639_v63 = vpop.permute.xlu1 %4638  ;;  %6826 = vmatmul.mubr.f32.gmra.mxu1 %v5026_v29  ;;  %v5027_v56 = vsel %vm4995_vm9, %v4994_v48, %v4543_v5 }
 0x58e   :  { %8349 = vrot.lane.b32.xlu0 %v8348_v51, %s8893_s4  ;;  %v5059_v22 = vsel %vm1499_vm8, %v4543_v5, %v4639_v63  ;;  %v5208_v55 = vsel %vm445_vm2, %v5205_v10, %v5207_v31 }
 0x58f   :  { %6048 = vrot.lane.b32.xlu1 %v14071_v61, %s8894_s17  ;;  %v8368_v6 = vpack.i.bf16 %v5208_v55, %v14058_v43 }
 0x590   :  { %v4735_v44 = vpop.permute.xlu0 %4734 }
 0x591   :  { %v5092_v19 = vsel %vm5060_vm15, %v5059_v22, %v4735_v44  ;;  %v4831_v41 = vpop.permute.xlu1 %4830 }
 0x592   :  { %v5125_v57 = vsel %vm5093_vm0, %v5092_v19, %v4831_v41  ;;  %5762 = vrot.lane.b32.xlu0 %v14029_v60, %s8890_s27  ;;  %v5210_v60 = vrot.slane %v14103_v35, 1 }
 0x593   :  { %v7965_v26 = vpop.f32.mrf.mxu0  ;;  %5858 = vrot.lane.b32.xlu1 %v14039_v24, %s8884_s26  ;;  %7723 = vmatprep.mubr.msk.f32.mxu1 %vm6418_vm5, %v5125_v57 }
 0x594   :  { %v3513_v45 = vadd.f32 %v13937_v27, %v7965_v26  ;;  %v8255_v49 = vpop.permute.xlu0 %8254  ;;  %6831 = vmatmul.mubr.f32.gmra.mxu1 %v5027_v56 }
 0x595   :  { %v3507_v11 = vpop.f32.mrf.mxu0  ;;  %v8260_v28 = vpop.permute.xlu1 %8259  ;;  %v8256_v10 = vunpack.i.l.bf16 %v8255_v49  ;;  %v8257_v53 = vunpack.i.h.bf16 %v8255_v49  ;;  %v3831_v49 = vld [vmem:[#allocation3 + $0x268] sm:$0x3] }
 0x596   :  { %v3579_v54 = vmax.f32 %v3513_v45, 0.0  ;;  %v3508_v3 = vadd.f32 %v13937_v27, %v3507_v11  ;;  %5954 = vrot.lane.b32.xlu0 %v5208_v55, %s8892_s16  ;;  %v14101_v27 = vld [vmem:[#allocation3 + $0x258] sm:$0xff]  ;;  %v8261_v30 = vunpack.i.l.bf16 %v8260_v28  ;;  %v8262_v14 = vunpack.i.h.bf16 %v8260_v28 }
 0x597   :  { %6050 = vrot.lane.b32.xlu1 %v14091_v2, %s8894_s17  ;;  %v6128_v16 = vsel %vm1565_vm4, %v13705_v21, %v8256_v10  ;;  %v5209_v37 = vrot.slane %v14101_v27, 1  ;;  %v5289_v21 = vrot.slane %v14101_v27, 2  ;;  %v6129_v24 = vsel %vm1565_vm4, %v13711_v32, %v8257_v53  ;;  %v14138_v32 = vld [vmem:[%s16009_s5] ss:$0 sm:$0xff] }
 0x598   :  { %3753 = vst.msk [vmem:[#allocation3 + $0x339] sm:$0xff] %vm1565_vm4, %v3579_v54  ;;  %v3578_v39 = vmax.f32 %v3508_v3, 0.0  ;;  %v5745_v8 = vpop.permute.xlu0 %5744  ;;  %v6160_v13 = vsel %vm4896_vm14, %v6128_v16, %v8261_v30  ;;  %v6161_v41 = vsel %vm4896_vm14, %v6129_v24, %v8262_v14  ;;  %v5212_v3 = vrot.slane %v3831_v49, 1 }
 0x599   :  { %v5841_v9 = vpop.permute.xlu1 %5840  ;;  %v14123_v29 = vsel %vm445_vm2, %v5209_v37, %v5210_v60  ;;  %v8378_v53 = vpack.i.bf16 %v14091_v2, %v14071_v61 }
 0x59a   :  { %3752 = vst.msk [vmem:[#allocation3 + $0x331] sm:$0xff] %vm1565_vm4, %v3578_v39  ;;  %8354 = vrot.lane.b32.xlu0 %v8348_v51, %s8886_s28  ;;  %v6288_v47 = vsel %vm1499_vm8, %v5745_v8, %v5841_v9  ;;  %v5290_v51 = vrot.slane %v14103_v35, 2  ;;  %v14160_v30 = vsel %vm445_vm2, %v5210_v60, %v5212_v3  ;;  %v14218_v3 = vld [vmem:[#allocation3 + $0x8] sm:$0xff] }
 0x59b   :  { %8359 = vrot.lane.b32.xlu1 %v8358_v46, %s8889_s18  ;;  %v5292_v46 = vrot.slane %v3831_v49, 2 }
 0x59c   :  { %v8265_v17 = vpop.permute.xlu0 %8264  ;;  %v14142_v57 = vsel %vm526_vm3, %v5289_v21, %v5290_v51 }
 0x59d   :  { %v5937_v33 = vpop.permute.xlu1 %5936  ;;  %v8266_v4 = vunpack.i.l.bf16 %v8265_v17  ;;  %v8267_v63 = vunpack.i.h.bf16 %v8265_v17  ;;  %v14165_v16 = vsel %vm526_vm3, %v5290_v51, %v5292_v46 }
 0x59e   :  { %5764 = vrot.lane.b32.xlu0 %v14071_v61, %s8890_s27  ;;  %v6320_v38 = vsel %vm5060_vm15, %v6288_v47, %v5937_v33 }
 0x59f   :  { %5860 = vrot.lane.b32.xlu1 %v14101_v27, %s8884_s26  ;;  %v6192_v15 = vsel %vm4929_vm1, %v6160_v13, %v8266_v4  ;;  %v6193_v26 = vsel %vm4929_vm1, %v6161_v41, %v8267_v63  ;;  %v14181_v13 = vld [vmem:[#allocation3 + $0x270] sm:$0xff] }
 0x5a0   :  { %v8270_v40 = vpop.permute.xlu0 %8269  ;;  %v5214_v14 = vrot.slane %v14181_v13, 1 }
 0x5a1   :  { %v8271_v1 = vunpack.i.l.bf16 %v8270_v40  ;;  %v6033_v34 = vpop.permute.xlu1 %6032  ;;  %v8272_v22 = vunpack.i.h.bf16 %v8270_v40 }
 0x5a2   :  { %v6352_v5 = vsel %vm5093_vm0, %v6320_v38, %v6033_v34  ;;  %8364 = vrot.lane.b32.xlu0 %v8363_v50, %s8891_s25  ;;  %v14183_v38 = vld [vmem:[#allocation3 + $0x278] sm:$0xff] }
 0x5a3   :  { %5956 = vrot.lane.b32.xlu1 %v14123_v29, %s8892_s16  ;;  %7724 = vmatprep.mubr.msk.f32.mxu1 %vm6418_vm5, %v6352_v5  ;;  %v6224_v20 = vsel %vm4962_vm7, %v6192_v15, %v8271_v1  ;;  %v6225_v45 = vsel %vm4962_vm7, %v6193_v26, %v8272_v22  ;;  %v5215_v5 = vrot.slane %v14183_v38, 1 }
 0x5a4   :  { %v5747_v44 = vpop.permute.xlu0 %5746  ;;  %v6256_v48 = vsel %vm4995_vm9, %v6224_v20, %v5745_v8  ;;  %v8383_v20 = vpack.i.bf16 %v14103_v35, %v14101_v27 }
 0x5a5   :  { %v5843_v58 = vpop.permute.xlu1 %5842  ;;  %v6757_v19 = vpop.f32.mrf.mxu1  ;;  %6836 = vmatmul.mubr.f32.gmra.mxu1 %v6256_v48  ;;  %v6257_v54 = vsel %vm4995_vm9, %v6225_v45, %v5747_v44  ;;  %v8388_v45 = vpack.i.bf16 %v14160_v30, %v14123_v29 }
 0x5a6   :  { %8369 = vrot.lane.b32.xlu0 %v8368_v6, %s8893_s4  ;;  %v6289_v56 = vsel %vm1499_vm8, %v5747_v44, %v5843_v58  ;;  %v6758_v0 = vadd.f32 %v14138_v32, %v6757_v19  ;;  %v5295_v58 = vrot.slane %v14183_v38, 2 }
 0x5a7   :  { %6052 = vrot.lane.b32.xlu1 %v14142_v57, %s8894_s17  ;;  %v6759_v43 = vpop.f32.mrf.mxu1 }
 0x5a8   :  { %v5939_v31 = vpop.permute.xlu0 %5938  ;;  %v7012_v9 = vmax.f32 %v6758_v0, 0.0  ;;  %v14205_v43 = vsel %vm445_vm2, %v5214_v14, %v5215_v5 }
 0x5a9   :  { %v6321_v11 = vsel %vm5060_vm15, %v6289_v56, %v5939_v31  ;;  %v6035_v28 = vpop.permute.xlu1 %6034 }
 0x5aa   :  { %v6353_v55 = vsel %vm5093_vm0, %v6321_v11, %v6035_v28  ;;  %5766 = vrot.lane.b32.xlu0 %v14091_v2, %s8890_s27  ;;  %v14172_v47 = vsel %vm1631_vm11, %v7012_v9, -inf }
 0x5ab   :  { %5862 = vrot.lane.b32.xlu1 %v14103_v35, %s8884_s26  ;;  %7725 = vmatprep.mubr.msk.f32.mxu1 %vm6418_vm5, %v6353_v55  ;;  %v8829_v35 = vld [vmem:[#allocation3 + $0x1d0] sm:$0xff] }
 0x5ac   :  { %v8275_v39 = vpop.permute.xlu0 %8274  ;;  %v6762_v8 = vpop.f32.mrf.mxu1  ;;  %6841 = vmatmul.mubr.f32.gmra.mxu1 %v6257_v54  ;;  %v14216_v54 = vld [vmem:[#allocation3] sm:$0xff] }
 0x5ad   :  { %v6763_v10 = vadd.f32 %v14138_v32, %v6762_v8  ;;  %v8280_v17 = vpop.permute.xlu1 %8279  ;;  %v8276_v50 = vunpack.i.l.bf16 %v8275_v39  ;;  %v8277_v15 = vunpack.i.h.bf16 %v8275_v39 }
 0x5ae   :  { %5958 = vrot.lane.b32.xlu0 %v14160_v30, %s8892_s16  ;;  %v6764_v33 = vpop.f32.mrf.mxu1  ;;  %v8281_v2 = vunpack.i.l.bf16 %v8280_v17  ;;  %v8282_v19 = vunpack.i.h.bf16 %v8280_v17 }
 0x5af   :  { %v7013_v4 = vmax.f32 %v6763_v10, 0.0  ;;  %6054 = vrot.lane.b32.xlu1 %v14165_v16, %s8894_s17  ;;  %v6130_v34 = vsel %vm1565_vm4, %v13742_v7, %v8276_v50  ;;  %v5294_v7 = vrot.slane %v14181_v13, 2  ;;  %v6131_v26 = vsel %vm1565_vm4, %v8829_v35, %v8277_v15 }
 0x5b0   :  { %v5749_v37 = vpop.permute.xlu0 %5748  ;;  %v6163_v39 = vsel %vm4896_vm14, %v6131_v26, %v8282_v19  ;;  %v3911_v50 = vrot.slane %v14218_v3, 1  ;;  %v14265_v19 = vld [vmem:[#allocation3 + $0x20] sm:$0xff] }
 0x5b1   :  { %v14175_v60 = vsel %vm1631_vm11, %v7013_v4, -inf  ;;  %v5845_v40 = vpop.permute.xlu1 %5844  ;;  %v14224_v46 = vsel %vm526_vm3, %v5294_v7, %v5295_v58 }
 0x5b2   :  { %v7065_v21 = vmax.f32 %v14175_v60, %v14172_v47  ;;  %8374 = vrot.lane.b32.xlu0 %v8368_v6, %s8886_s28  ;;  %v6290_v24 = vsel %vm1499_vm8, %v5749_v37, %v5845_v40  ;;  %v6162_v6 = vsel %vm4896_vm14, %v6130_v34, %v8281_v2  ;;  %v3910_v40 = vrot.slane %v14216_v54, 1 }
 0x5b3   :  { %8379 = vrot.lane.b32.xlu1 %v8378_v53, %s8889_s18  ;;  %v3834_v53 = vld [vmem:[#allocation3 + $0x280] sm:$0x3]  ;;  %v3991_v34 = vrot.slane %v14218_v3, 2 }
 0x5b4   :  { %v8285_v61 = vpop.permute.xlu0 %8284 }
 0x5b5   :  { %v5941_v1 = vpop.permute.xlu1 %5940  ;;  %v8286_v51 = vunpack.i.l.bf16 %v8285_v61  ;;  %v8287_v56 = vunpack.i.h.bf16 %v8285_v61 }
 0x5b6   :  { %5768 = vrot.lane.b32.xlu0 %v14142_v57, %s8890_s27  ;;  %v6322_v22 = vsel %vm5060_vm15, %v6290_v24, %v5941_v1  ;;  %v3990_v1 = vrot.slane %v14216_v54, 2 }
 0x5b7   :  { %5864 = vrot.lane.b32.xlu1 %v14181_v13, %s8884_s26  ;;  %v6194_v27 = vsel %vm4929_vm1, %v6162_v6, %v8286_v51  ;;  %v6195_v10 = vsel %vm4929_vm1, %v6163_v39, %v8287_v56  ;;  %v5297_v6 = vrot.slane %v3834_v53, 2  ;;  %v8830_v39 = vld [vmem:[#allocation3 + $0x1e0] sm:$0xff] }
 0x5b8   :  { %v8290_v63 = vpop.permute.xlu0 %8289 }
 0x5b9   :  { %v8291_v44 = vunpack.i.l.bf16 %v8290_v63  ;;  %v6037_v48 = vpop.permute.xlu1 %6036  ;;  %v8292_v49 = vunpack.i.h.bf16 %v8290_v63  ;;  %v5217_v63 = vrot.slane %v3834_v53, 1 }
 0x5ba   :  { %v6354_v41 = vsel %vm5093_vm0, %v6322_v22, %v6037_v48  ;;  %8384 = vrot.lane.b32.xlu0 %v8383_v20, %s8891_s25  ;;  %v3912_v22 = vsel %vm445_vm2, %v3910_v40, %v3911_v50  ;;  %v14263_v48 = vld [vmem:[#allocation3 + $0x18] sm:$0xff] }
 0x5bb   :  { %5960 = vrot.lane.b32.xlu1 %v14205_v43, %s8892_s16  ;;  %7726 = vmatprep.mubr.msk.f32.mxu1 %vm6418_vm5, %v6354_v41  ;;  %v6226_v31 = vsel %vm4962_vm7, %v6194_v27, %v8291_v44  ;;  %v3992_v44 = vsel %vm526_vm3, %v3990_v1, %v3991_v34  ;;  %v14270_v27 = vsel %vm526_vm3, %v5295_v58, %v5297_v6  ;;  %v14313_v6 = vld [vmem:[#allocation3 + $0x290] sm:$0xff] }
 0x5bc   :  { %v5751_v0 = vpop.permute.xlu0 %5750  ;;  %v6258_v11 = vsel %vm4995_vm9, %v6226_v31, %v5749_v37  ;;  %v6227_v37 = vsel %vm4962_vm7, %v6195_v10, %v8292_v49  ;;  %v8398_v56 = vpack.i.bf16 %v14142_v57, %v3992_v44  ;;  %v3995_v49 = vrot.slane %v14263_v48, 2  ;;  %v14294_v10 = vld [vmem:[#allocation3 + $0x30] sm:$0xff] }
 0x5bd   :  { %v5847_v28 = vpop.permute.xlu1 %5846  ;;  %v6767_v55 = vpop.f32.mrf.mxu1  ;;  %6846 = vmatmul.mubr.f32.gmra.mxu1 %v6258_v11  ;;  %v6259_v24 = vsel %vm4995_vm9, %v6227_v37, %v5751_v0 }
 0x5be   :  { %v6768_v8 = vadd.f32 %v14138_v32, %v6767_v55  ;;  %8389 = vrot.lane.b32.xlu0 %v8388_v45, %s8893_s4  ;;  %v6291_v17 = vsel %vm1499_vm8, %v5751_v0, %v5847_v28  ;;  %v3996_v0 = vrot.slane %v14265_v19, 2 }
 0x5bf   :  { %6056 = vrot.lane.b32.xlu1 %v14224_v46, %s8894_s17  ;;  %v6769_v9 = vpop.f32.mrf.mxu1 }
 0x5c0   :  { %v7014_v33 = vmax.f32 %v6768_v8, 0.0  ;;  %v5943_v4 = vpop.permute.xlu0 %5942  ;;  %v14289_v55 = vsel %vm526_vm3, %v3995_v49, %v3996_v0  ;;  %v3756_v49 = vld [vmem:[#allocation3 + $0x10] sm:$0x3] }
 0x5c1   :  { %v6323_v61 = vsel %vm5060_vm15, %v6291_v17, %v5943_v4  ;;  %v6039_v2 = vpop.permute.xlu1 %6038  ;;  %v3915_v4 = vrot.slane %v14263_v48, 1 }
 0x5c2   :  { %v7092_v51 = vsel %vm1631_vm11, %v7014_v33, -inf  ;;  %v6355_v14 = vsel %vm5093_vm0, %v6323_v61, %v6039_v2  ;;  %5770 = vrot.lane.b32.xlu0 %v14165_v16, %s8890_s27  ;;  %v14298_v33 = vld [vmem:[#allocation3 + $0x38] sm:$0xff] }
 0x5c3   :  { %v14243_v15 = vmax.f32 %v7092_v51, %v7065_v21  ;;  %5866 = vrot.lane.b32.xlu1 %v14183_v38, %s8884_s26  ;;  %7727 = vmatprep.mubr.msk.f32.mxu1 %vm6418_vm5, %v6355_v14  ;;  %v14258_v21 = vsel %vm445_vm2, %v5215_v5, %v5217_v63  ;;  %v8393_v5 = vpack.i.bf16 %v14123_v29, %v3912_v22  ;;  %v3920_v51 = vrot.slane %v14294_v10, 1  ;;  %v14309_v63 = vld [vmem:[#allocation3 + $0x288] sm:$0xff] }
 0x5c4   :  { %v8295_v20 = vpop.permute.xlu0 %8294  ;;  %v6772_v7 = vpop.f32.mrf.mxu1  ;;  %6851 = vmatmul.mubr.f32.gmra.mxu1 %v6259_v24  ;;  %v3916_v22 = vrot.slane %v14265_v19, 1 }
 0x5c5   :  { %v6773_v47 = vadd.f32 %v14138_v32, %v6772_v7  ;;  %v14253_v60 = vpop.permute.xlu1 %8299  ;;  %v8296_v11 = vunpack.i.l.bf16 %v8295_v20  ;;  %v8297_v17 = vunpack.i.h.bf16 %v8295_v20  ;;  %v3921_v7 = vrot.slane %v14298_v33, 1 }
 0x5c6   :  { %5962 = vrot.lane.b32.xlu0 %v14258_v21, %s8892_s16  ;;  %v6774_v41 = vpop.f32.mrf.mxu1  ;;  %v8301_v28 = vunpack.i.l.bf16 %v14253_v60  ;;  %v8302_v14 = vunpack.i.h.bf16 %v14253_v60 }
 0x5c7   :  { %v7015_v35 = vmax.f32 %v6773_v47, 0.0  ;;  %6058 = vrot.lane.b32.xlu1 %v14270_v27, %s8894_s17  ;;  %v6132_v8 = vsel %vm1565_vm4, %v8830_v39, %v8296_v11  ;;  %v8831_v47 = vld [vmem:[#allocation3 + $0x1e8] sm:$0xff] }
 0x5c8   :  { %v5753_v26 = vpop.permute.xlu0 %5752  ;;  %v6164_v40 = vsel %vm4896_vm14, %v6132_v8, %v8301_v28  ;;  %v6133_v44 = vsel %vm1565_vm4, %v8831_v47, %v8297_v17  ;;  %v4000_v17 = vrot.slane %v14294_v10, 2 }
 0x5c9   :  { %v14277_v31 = vsel %vm1631_vm11, %v7015_v35, -inf  ;;  %v5849_v45 = vpop.permute.xlu1 %5848  ;;  %v6165_v39 = vsel %vm4896_vm14, %v6133_v44, %v8302_v14 }
 0x5ca   :  { %v7069_v58 = vmax.f32 %v14277_v31, %v14243_v15  ;;  %8394 = vrot.lane.b32.xlu0 %v8393_v5, %s8886_s28  ;;  %v6292_v37 = vsel %vm1499_vm8, %v5753_v26, %v5849_v45  ;;  %v8403_v45 = vpack.i.bf16 %v14181_v13, %v14263_v48  ;;  %v3917_v13 = vsel %vm445_vm2, %v3915_v4, %v3916_v22 }
 0x5cb   :  { %8399 = vrot.lane.b32.xlu1 %v8398_v56, %s8889_s18  ;;  %v14345_v4 = vpack.i.bf16 %v14205_v43, %v3917_v13  ;;  %v5300_v43 = vrot.slane %v14313_v6, 2 }
 0x5cc   :  { %v8305_v29 = vpop.permute.xlu0 %8304 }
 0x5cd   :  { %v5945_v57 = vpop.permute.xlu1 %5944  ;;  %v8306_v9 = vunpack.i.l.bf16 %v8305_v29  ;;  %v8307_v41 = vunpack.i.h.bf16 %v8305_v29  ;;  %v5219_v29 = vrot.slane %v14309_v63, 1 }
 0x5ce   :  { %4480 = vrot.lane.b32.xlu0 %v14289_v55, %s8890_s27  ;;  %v6324_v61 = vsel %vm5060_vm15, %v6292_v37, %v5945_v57  ;;  %v5220_v57 = vrot.slane %v14313_v6, 1  ;;  %v4001_v37 = vrot.slane %v14298_v33, 2 }
 0x5cf   :  { %4576 = vrot.lane.b32.xlu1 %v14294_v10, %s8884_s26  ;;  %v6196_v20 = vsel %vm4929_vm1, %v6164_v40, %v8306_v9  ;;  %v6197_v9 = vsel %vm4929_vm1, %v6165_v39, %v8307_v41  ;;  %v5299_v41 = vrot.slane %v14309_v63, 2  ;;  %v3759_v39 = vld [vmem:[#allocation3 + $0x28] sm:$0x3] }
 0x5d0   :  { %v8310_v53 = vpop.permute.xlu0 %8309  ;;  %v14375_v15 = vsel %vm526_vm3, %v4000_v17, %v4001_v37  ;;  %v3998_v17 = vrot.slane %v3759_v39, 2 }
 0x5d1   :  { %v8311_v2 = vunpack.i.l.bf16 %v8310_v53  ;;  %v6041_v1 = vpop.permute.xlu1 %6040  ;;  %v8312_v35 = vunpack.i.h.bf16 %v8310_v53  ;;  %v3913_v53 = vrot.slane %v3756_v49, 1 }
 0x5d2   :  { %v6356_v24 = vsel %vm5093_vm0, %v6324_v61, %v6041_v1  ;;  %5772 = vrot.lane.b32.xlu0 %v14224_v46, %s8890_s27 }
 0x5d3   :  { %5868 = vrot.lane.b32.xlu1 %v14309_v63, %s8884_s26  ;;  %7728 = vmatprep.mubr.msk.f32.mxu1 %vm6418_vm5, %v6356_v24  ;;  %v6228_v60 = vsel %vm4962_vm7, %v6196_v20, %v8311_v2  ;;  %v6229_v1 = vsel %vm4962_vm7, %v6197_v9, %v8312_v35  ;;  %v14351_v20 = vsel %vm445_vm2, %v5219_v29, %v5220_v57 }
 0x5d4   :  { %v5755_v5 = vpop.permute.xlu0 %5754  ;;  %v6260_v56 = vsel %vm4995_vm9, %v6228_v60, %v5753_v26  ;;  %v14332_v26 = vsel %vm445_vm2, %v3920_v51, %v3921_v7  ;;  %v3993_v51 = vrot.slane %v3756_v49, 2  ;;  %v3914_v49 = vsel %vm445_vm2, %v3911_v50, %v3913_v53 }
 0x5d5   :  { %v5851_v11 = vpop.permute.xlu1 %5850  ;;  %v6777_v28 = vpop.f32.mrf.mxu1  ;;  %6856 = vmatmul.mubr.f32.gmra.mxu1 %v6260_v56  ;;  %v6261_v35 = vsel %vm4995_vm9, %v6229_v1, %v5755_v5  ;;  %v14385_v50 = vsel %vm526_vm3, %v5299_v41, %v5300_v43  ;;  %v8413_v29 = vpack.i.bf16 %v14160_v30, %v3914_v49  ;;  %v8833_v49 = vld [vmem:[#allocation3 + $0x200] sm:$0xff] }
 0x5d6   :  { %v6778_v8 = vadd.f32 %v14138_v32, %v6777_v28  ;;  %8404 = vrot.lane.b32.xlu0 %v8403_v45, %s8891_s25  ;;  %v6293_v40 = vsel %vm1499_vm8, %v5755_v5, %v5851_v11  ;;  %v3994_v31 = vsel %vm526_vm3, %v3991_v34, %v3993_v51 }
 0x5d7   :  { %4672 = vrot.lane.b32.xlu1 %v14332_v26, %s8892_s16  ;;  %v6779_v48 = vpop.f32.mrf.mxu1  ;;  %v8418_v3 = vpack.i.bf16 %v14165_v16, %v3994_v31  ;;  %v14401_v16 = vsel %vm526_vm3, %v3996_v0, %v3998_v17 }
 0x5d8   :  { %v7016_v61 = vmax.f32 %v6778_v8, 0.0  ;;  %v5947_v2 = vpop.permute.xlu0 %5946 }
 0x5d9   :  { %v6325_v14 = vsel %vm5060_vm15, %v6293_v40, %v5947_v2  ;;  %v6043_v24 = vpop.permute.xlu1 %6042 }
 0x5da   :  { %v7096_v47 = vsel %vm1631_vm11, %v7016_v61, -inf  ;;  %v6357_v44 = vsel %vm5093_vm0, %v6325_v14, %v6043_v24  ;;  %5964 = vrot.lane.b32.xlu0 %v14351_v20, %s8892_s16  ;;  %v8832_v61 = vld [vmem:[#allocation3 + $0x1f8] sm:$0xff] }
 0x5db   :  { %v14362_v60 = vmax.f32 %v7096_v47, %v7069_v58  ;;  %8409 = vrot.lane.b32.xlu1 %v14345_v4, %s8893_s4  ;;  %7729 = vmatprep.mubr.msk.f32.mxu1 %vm6418_vm5, %v6357_v44 }
 0x5dc   :  { %v8315_v56 = vpop.permute.xlu0 %8314  ;;  %v6782_v45 = vpop.f32.mrf.mxu1  ;;  %6861 = vmatmul.mubr.f32.gmra.mxu1 %v6261_v35 }
 0x5dd   :  { %v6783_v11 = vadd.f32 %v14138_v32, %v6782_v45  ;;  %v8320_v28 = vpop.permute.xlu1 %8319  ;;  %v8316_v48 = vunpack.i.l.bf16 %v8315_v56  ;;  %v8317_v51 = vunpack.i.h.bf16 %v8315_v56 }
 0x5de   :  { %4768 = vrot.lane.b32.xlu0 %v14375_v15, %s8894_s17  ;;  %v6784_v58 = vpop.f32.mrf.mxu1  ;;  %v8321_v40 = vunpack.i.l.bf16 %v8320_v28  ;;  %v8322_v35 = vunpack.i.h.bf16 %v8320_v28 }
 0x5df   :  { %v7017_v5 = vmax.f32 %v6783_v11, 0.0  ;;  %6060 = vrot.lane.b32.xlu1 %v14385_v50, %s8894_s17  ;;  %v6134_v2 = vsel %vm1565_vm4, %v8832_v61, %v8316_v48  ;;  %v6135_v11 = vsel %vm1565_vm4, %v8833_v49, %v8317_v51 }
 0x5e0   :  { %v5757_v8 = vpop.permute.xlu0 %5756  ;;  %v6166_v47 = vsel %vm4896_vm14, %v6134_v2, %v8321_v40  ;;  %v6167_v40 = vsel %vm4896_vm14, %v6135_v11, %v8322_v35 }
 0x5e1   :  { %v14392_v34 = vsel %vm1631_vm11, %v7017_v5, -inf  ;;  %v5853_v13 = vpop.permute.xlu1 %5852 }
 0x5e2   :  { %v7073_v9 = vmax.f32 %v14392_v34, %v14362_v60  ;;  %8414 = vrot.lane.b32.xlu0 %v8413_v29, %s8886_s28  ;;  %v6294_v14 = vsel %vm1499_vm8, %v5757_v8, %v5853_v13  ;;  %v3762_v60 = vld [vmem:[#allocation3 + $0x40] sm:$0x3]  ;;  %v3837_v13 = vld [vmem:[#allocation3 + $0x298] sm:$0x3] }
 0x5e3   :  { %8419 = vrot.lane.b32.xlu1 %v8418_v3, %s8889_s18  ;;  %v8423_v3 = vpack.i.bf16 %v14183_v38, %v14265_v19  ;;  %v3923_v34 = vrot.slane %v3762_v60, 1  ;;  %v4003_v35 = vrot.slane %v3762_v60, 2 }
 0x5e4   :  { %v8325_v53 = vpop.permute.xlu0 %8324 }
 0x5e5   :  { %v5949_v30 = vpop.permute.xlu1 %5948  ;;  %v8326_v1 = vunpack.i.l.bf16 %v8325_v53  ;;  %v8327_v31 = vunpack.i.h.bf16 %v8325_v53  ;;  %v3918_v53 = vrot.slane %v3759_v39, 1  ;;  %v14429_v61 = vsel %vm445_vm2, %v3921_v7, %v3923_v34 }
 0x5e6   :  { %4482 = vrot.lane.b32.xlu0 %v14401_v16, %s8890_s27  ;;  %v6326_v44 = vsel %vm5060_vm15, %v6294_v14, %v5949_v30 }
 0x5e7   :  { %4578 = vrot.lane.b32.xlu1 %v14298_v33, %s8884_s26  ;;  %v6198_v56 = vsel %vm4929_vm1, %v6166_v47, %v8326_v1  ;;  %v6199_v2 = vsel %vm4929_vm1, %v6167_v40, %v8327_v31  ;;  %v3919_v39 = vsel %vm445_vm2, %v3916_v22, %v3918_v53 }
 0x5e8   :  { %v8330_v24 = vpop.permute.xlu0 %8329  ;;  %v14440_v7 = vpack.i.bf16 %v14258_v21, %v3919_v39 }
 0x5e9   :  { %v8331_v0 = vunpack.i.l.bf16 %v8330_v24  ;;  %v6045_v41 = vpop.permute.xlu1 %6044  ;;  %v8332_v5 = vunpack.i.h.bf16 %v8330_v24 }
 0x5ea   :  { %v6358_v45 = vsel %vm5093_vm0, %v6326_v44, %v6045_v41  ;;  %5774 = vrot.lane.b32.xlu0 %v14270_v27, %s8890_s27 }
 0x5eb   :  { %5870 = vrot.lane.b32.xlu1 %v14313_v6, %s8884_s26  ;;  %7730 = vmatprep.mubr.msk.f32.mxu1 %vm6418_vm5, %v6358_v45  ;;  %v6230_v58 = vsel %vm4962_vm7, %v6198_v56, %v8331_v0  ;;  %v6231_v24 = vsel %vm4962_vm7, %v6199_v2, %v8332_v5  ;;  %v5302_v56 = vrot.slane %v3837_v13, 2 }
 0x5ec   :  { %v5759_v28 = vpop.permute.xlu0 %5758  ;;  %v6262_v29 = vsel %vm4995_vm9, %v6230_v58, %v5757_v8  ;;  %v5222_v8 = vrot.slane %v3837_v13, 1 }
 0x5ed   :  { %v5855_v48 = vpop.permute.xlu1 %5854  ;;  %v6787_v17 = vpop.f32.mrf.mxu1  ;;  %6866 = vmatmul.mubr.f32.gmra.mxu1 %v6262_v29  ;;  %v6263_v21 = vsel %vm4995_vm9, %v6231_v24, %v5759_v28  ;;  %v14469_v60 = vsel %vm526_vm3, %v5300_v43, %v5302_v56 }
 0x5ee   :  { %v6788_v30 = vadd.f32 %v14138_v32, %v6787_v17  ;;  %8424 = vrot.lane.b32.xlu0 %v8423_v3, %s8891_s25  ;;  %v6295_v1 = vsel %vm1499_vm8, %v5759_v28, %v5855_v48  ;;  %v14446_v0 = vsel %vm445_vm2, %v5220_v57, %v5222_v8  ;;  %v8438_v28 = vpack.i.bf16 %v14224_v46, %v14289_v55  ;;  %v8834_v17 = vld [vmem:[#allocation3 + $0x210] sm:$0xff]  ;;  %v14486_v55 = vld [vmem:[#allocation3 + $0x48] sm:$0xff] }
 0x5ef   :  { %4674 = vrot.lane.b32.xlu1 %v14429_v61, %s8892_s16  ;;  %v6789_v38 = vpop.f32.mrf.mxu1 }
 0x5f0   :  { %v7018_v51 = vmax.f32 %v6788_v30, 0.0  ;;  %v5951_v14 = vpop.permute.xlu0 %5950  ;;  %v14490_v30 = vld [vmem:[#allocation3 + $0x50] sm:$0xff] }
 0x5f1   :  { %v6327_v47 = vsel %vm5060_vm15, %v6295_v1, %v5951_v14  ;;  %v6047_v44 = vpop.permute.xlu1 %6046 }
 0x5f2   :  { %v7100_v19 = vsel %vm1631_vm11, %v7018_v51, -inf  ;;  %v6359_v22 = vsel %vm5093_vm0, %v6327_v47, %v6047_v44  ;;  %5966 = vrot.lane.b32.xlu0 %v14446_v0, %s8892_s16  ;;  %v3925_v51 = vrot.slane %v14486_v55, 1  ;;  %v14499_v47 = vld [vmem:[#allocation3 + $0x2a0] sm:$0xff] }
 0x5f3   :  { %v14452_v41 = vmax.f32 %v7100_v19, %v7073_v9  ;;  %8429 = vrot.lane.b32.xlu1 %v14440_v7, %s8893_s4  ;;  %7731 = vmatprep.mubr.msk.f32.mxu1 %vm6418_vm5, %v6359_v22  ;;  %v14462_v9 = vsel %vm526_vm3, %v4001_v37, %v4003_v35  ;;  %v3926_v19 = vrot.slane %v14490_v30, 1  ;;  %v14503_v22 = vld [vmem:[#allocation3 + $0x2a8] sm:$0xff] }
 0x5f4   :  { %v8335_v45 = vpop.permute.xlu0 %8334  ;;  %v6792_v57 = vpop.f32.mrf.mxu1  ;;  %6871 = vmatmul.mubr.f32.gmra.mxu1 %v6263_v21  ;;  %v8835_v21 = vld [vmem:[#allocation3 + $0x218] sm:$0xff] }
 0x5f5   :  { %v6793_v49 = vadd.f32 %v14138_v32, %v6792_v57  ;;  %v8340_v11 = vpop.permute.xlu1 %8339  ;;  %v8336_v3 = vunpack.i.l.bf16 %v8335_v45  ;;  %v8337_v40 = vunpack.i.h.bf16 %v8335_v45 }
 0x5f6   :  { %4770 = vrot.lane.b32.xlu0 %v14462_v9, %s8894_s17  ;;  %v6794_v31 = vpop.f32.mrf.mxu1  ;;  %v8341_v13 = vunpack.i.l.bf16 %v8340_v11  ;;  %v8342_v14 = vunpack.i.h.bf16 %v8340_v11 }
 0x5f7   :  { %v7019_v58 = vmax.f32 %v6793_v49, 0.0  ;;  %6062 = vrot.lane.b32.xlu1 %v14469_v60, %s8894_s17  ;;  %v6136_v53 = vsel %vm1565_vm4, %v8834_v17, %v8336_v3  ;;  %v6137_v35 = vsel %vm1565_vm4, %v8835_v21, %v8337_v40  ;;  %v8443_v31 = vpack.i.bf16 %v14309_v63, %v14294_v10 }
 0x5f8   :  { %v5761_v5 = vpop.permute.xlu0 %5760  ;;  %v6168_v8 = vsel %vm4896_vm14, %v6136_v53, %v8341_v13  ;;  %v5225_v3 = vrot.slane %v14503_v22, 1  ;;  %v4005_v40 = vrot.slane %v14486_v55, 2 }
 0x5f9   :  { %v14476_v37 = vsel %vm1631_vm11, %v7019_v58, -inf  ;;  %v5857_v29 = vpop.permute.xlu1 %5856 }
 0x5fa   :  { %v7077_v34 = vmax.f32 %v14476_v37, %v14452_v41  ;;  %8434 = vrot.lane.b32.xlu0 %v14345_v4, %s8886_s28  ;;  %v6296_v4 = vsel %vm1499_vm8, %v5761_v5, %v5857_v29  ;;  %v5224_v29 = vrot.slane %v14499_v47, 1 }
 0x5fb   :  { %8439 = vrot.lane.b32.xlu1 %v8438_v28, %s8889_s18 }
 0x5fc   :  { %v8345_v43 = vpop.permute.xlu0 %8344 }
 0x5fd   :  { %v5953_v48 = vpop.permute.xlu1 %5952  ;;  %v8346_v46 = vunpack.i.l.bf16 %v8345_v43  ;;  %v8347_v45 = vunpack.i.h.bf16 %v8345_v43  ;;  %v6169_v43 = vsel %vm4896_vm14, %v6137_v35, %v8342_v14 }
 0x5fe   :  { %4484 = vrot.lane.b32.xlu0 %v14375_v15, %s8890_s27  ;;  %v6328_v2 = vsel %vm5060_vm15, %v6296_v4, %v5953_v48  ;;  %v14531_v4 = vpack.i.bf16 %v14351_v20, %v14332_v26  ;;  %v5304_v26 = vrot.slane %v14499_v47, 2  ;;  %v5305_v20 = vrot.slane %v14503_v22, 2 }
 0x5ff   :  { %4580 = vrot.lane.b32.xlu1 %v14486_v55, %s8884_s26  ;;  %v6200_v44 = vsel %vm4929_vm1, %v6168_v8, %v8346_v46  ;;  %v6201_v63 = vsel %vm4929_vm1, %v6169_v43, %v8347_v45 }
 0x600   :  { %v8350_v38 = vpop.permute.xlu0 %8349  ;;  %v14566_v37 = vsel %vm526_vm3, %v5304_v26, %v5305_v20  ;;  %v8837_v26 = vld [vmem:[#allocation3 + $0x230] sm:$0xff] }
 0x601   :  { %v8351_v39 = vunpack.i.l.bf16 %v8350_v38  ;;  %v6049_v1 = vpop.permute.xlu1 %6048  ;;  %v8352_v56 = vunpack.i.h.bf16 %v8350_v38 }
 0x602   :  { %v6360_v24 = vsel %vm5093_vm0, %v6328_v2, %v6049_v1  ;;  %5776 = vrot.lane.b32.xlu0 %v14385_v50, %s8890_s27  ;;  %v14537_v2 = vsel %vm445_vm2, %v5224_v29, %v5225_v3 }
 0x603   :  { %5872 = vrot.lane.b32.xlu1 %v14499_v47, %s8884_s26  ;;  %7732 = vmatprep.mubr.msk.f32.mxu1 %vm6418_vm5, %v6360_v24  ;;  %v6232_v57 = vsel %vm4962_vm7, %v6200_v44, %v8351_v39  ;;  %v6233_v46 = vsel %vm4962_vm7, %v6201_v63, %v8352_v56  ;;  %v4006_v39 = vrot.slane %v14490_v30, 2 }
 0x604   :  { %v5763_v49 = vpop.permute.xlu0 %5762  ;;  %v6264_v11 = vsel %vm4995_vm9, %v6232_v57, %v5761_v5  ;;  %v14521_v5 = vsel %vm445_vm2, %v3925_v51, %v3926_v19 }
 0x605   :  { %v5859_v58 = vpop.permute.xlu1 %5858  ;;  %v6797_v28 = vpop.f32.mrf.mxu1  ;;  %6876 = vmatmul.mubr.f32.gmra.mxu1 %v6264_v11  ;;  %v6265_v24 = vsel %vm4995_vm9, %v6233_v46, %v5763_v49  ;;  %v14559_v57 = vsel %vm526_vm3, %v4005_v40, %v4006_v39 }
 0x606   :  { %v6798_v13 = vadd.f32 %v14138_v32, %v6797_v28  ;;  %8444 = vrot.lane.b32.xlu0 %v8443_v31, %s8891_s25  ;;  %v6297_v48 = vsel %vm1499_vm8, %v5763_v49, %v5859_v58  ;;  %v8458_v49 = vpack.i.bf16 %v14270_v27, %v14401_v16 }
 0x607   :  { %4676 = vrot.lane.b32.xlu1 %v14521_v5, %s8892_s16  ;;  %v6799_v10 = vpop.f32.mrf.mxu1 }
 0x608   :  { %v7020_v17 = vmax.f32 %v6798_v13, 0.0  ;;  %v5955_v53 = vpop.permute.xlu0 %5954  ;;  %v8836_v10 = vld [vmem:[#allocation3 + $0x228] sm:$0xff] }
 0x609   :  { %v6329_v38 = vsel %vm5060_vm15, %v6297_v48, %v5955_v53  ;;  %v6051_v8 = vpop.permute.xlu1 %6050 }
 0x60a   :  { %v7104_v1 = vsel %vm1631_vm11, %v7020_v17, -inf  ;;  %v6361_v51 = vsel %vm5093_vm0, %v6329_v38, %v6051_v8  ;;  %5968 = vrot.lane.b32.xlu0 %v14537_v2, %s8892_s16  ;;  %v3765_v38 = vld [vmem:[#allocation3 + $0x58] sm:$0x3] }
 0x60b   :  { %v14549_v14 = vmax.f32 %v7104_v1, %v7077_v34  ;;  %8449 = vrot.lane.b32.xlu1 %v14531_v4, %s8893_s4  ;;  %7733 = vmatprep.mubr.msk.f32.mxu1 %vm6418_vm5, %v6361_v51 }
 0x60c   :  { %v8355_v44 = vpop.permute.xlu0 %8354  ;;  %v6802_v21 = vpop.f32.mrf.mxu1  ;;  %6881 = vmatmul.mubr.f32.gmra.mxu1 %v6265_v24 }
 0x60d   :  { %v6803_v35 = vadd.f32 %v14138_v32, %v6802_v21  ;;  %v8360_v45 = vpop.permute.xlu1 %8359  ;;  %v8356_v58 = vunpack.i.l.bf16 %v8355_v44  ;;  %v8357_v27 = vunpack.i.h.bf16 %v8355_v44 }
 0x60e   :  { %4772 = vrot.lane.b32.xlu0 %v14559_v57, %s8894_s17  ;;  %v6804_v41 = vpop.f32.mrf.mxu1  ;;  %v8361_v43 = vunpack.i.l.bf16 %v8360_v45  ;;  %v8362_v8 = vunpack.i.h.bf16 %v8360_v45 }
 0x60f   :  { %v7021_v34 = vmax.f32 %v6803_v35, 0.0  ;;  %6064 = vrot.lane.b32.xlu1 %v14566_v37, %s8894_s17  ;;  %v6138_v63 = vsel %vm1565_vm4, %v8836_v10, %v8356_v58  ;;  %v8463_v41 = vpack.i.bf16 %v14313_v6, %v14298_v33 }
 0x610   :  { %v5765_v56 = vpop.permute.xlu0 %5764 }
 0x611   :  { %v7106_v11 = vsel %vm1631_vm11, %v7021_v34, -inf  ;;  %v5861_v31 = vpop.permute.xlu1 %5860  ;;  %v3928_v34 = vrot.slane %v3765_v38, 1 }
 0x612   :  { %v7081_v28 = vmax.f32 %v7106_v11, %v14549_v14  ;;  %8454 = vrot.lane.b32.xlu0 %v14440_v7, %s8886_s28  ;;  %v6298_v16 = vsel %vm1499_vm8, %v5765_v56, %v5861_v31  ;;  %v6170_v7 = vsel %vm4896_vm14, %v6138_v63, %v8361_v43  ;;  %v6139_v14 = vsel %vm1565_vm4, %v8837_v26, %v8357_v27 }
 0x613   :  { %8459 = vrot.lane.b32.xlu1 %v8458_v49, %s8889_s18  ;;  %v3840_v49 = vld [vmem:[#allocation3 + $0x2b0] sm:$0x3]  ;;  %v6171_v58 = vsel %vm4896_vm14, %v6139_v14, %v8362_v8  ;;  %v14603_v43 = vsel %vm445_vm2, %v3926_v19, %v3928_v34  ;;  %v14612_v27 = vpack.i.bf16 %v14446_v0, %v14429_v61  ;;  %v4008_v0 = vrot.slane %v3765_v38, 2  ;;  %v8838_v34 = vld [vmem:[#allocation3 + $0x240] sm:$0xff] }
 0x614   :  { %v8365_v29 = vpop.permute.xlu0 %8364  ;;  %v5227_v6 = vrot.slane %v3840_v49, 1  ;;  %v5307_v8 = vrot.slane %v3840_v49, 2 }
 0x615   :  { %v5957_v13 = vpop.permute.xlu1 %5956  ;;  %v8366_v48 = vunpack.i.l.bf16 %v8365_v29  ;;  %v8367_v24 = vunpack.i.h.bf16 %v8365_v29 }
 0x616   :  { %4486 = vrot.lane.b32.xlu0 %v14462_v9, %s8890_s27  ;;  %v6330_v53 = vsel %vm5060_vm15, %v6298_v16, %v5957_v13  ;;  %v14641_v38 = vsel %vm526_vm3, %v5305_v20, %v5307_v8 }
 0x617   :  { %4582 = vrot.lane.b32.xlu1 %v14490_v30, %s8884_s26  ;;  %v6202_v51 = vsel %vm4929_vm1, %v6170_v7, %v8366_v48 }
 0x618   :  { %v8370_v17 = vpop.permute.xlu0 %8369 }
 0x619   :  { %v8371_v46 = vunpack.i.l.bf16 %v8370_v17  ;;  %v6053_v40 = vpop.permute.xlu1 %6052  ;;  %v8372_v21 = vunpack.i.h.bf16 %v8370_v17  ;;  %v14618_v17 = vsel %vm445_vm2, %v5225_v3, %v5227_v6 }
 0x61a   :  { %v6362_v1 = vsel %vm5093_vm0, %v6330_v53, %v6053_v40  ;;  %5778 = vrot.lane.b32.xlu0 %v14469_v60, %s8890_s27 }
 0x61b   :  { %5874 = vrot.lane.b32.xlu1 %v14503_v22, %s8884_s26  ;;  %7734 = vmatprep.mubr.msk.f32.mxu1 %vm6418_vm5, %v6362_v1  ;;  %v6234_v44 = vsel %vm4962_vm7, %v6202_v51, %v8371_v46 }
 0x61c   :  { %v5767_v35 = vpop.permute.xlu0 %5766  ;;  %v6266_v45 = vsel %vm4995_vm9, %v6234_v44, %v5765_v56  ;;  %v6203_v56 = vsel %vm4929_vm1, %v6171_v58, %v8367_v24  ;;  %v8478_v24 = vpack.i.bf16 %v14385_v50, %v14375_v15  ;;  %v14658_v50 = vld [vmem:[#allocation3 + $0x60] sm:$0xff] }
 0x61d   :  { %v5863_v11 = vpop.permute.xlu1 %5862  ;;  %v6807_v31 = vpop.f32.mrf.mxu1  ;;  %6886 = vmatmul.mubr.f32.gmra.mxu1 %v6266_v45  ;;  %v6235_v48 = vsel %vm4962_vm7, %v6203_v56, %v8372_v21 }
 0x61e   :  { %v6808_v29 = vadd.f32 %v14138_v32, %v6807_v31  ;;  %8464 = vrot.lane.b32.xlu0 %v8463_v41, %s8891_s25  ;;  %v6299_v13 = vsel %vm1499_vm8, %v5767_v35, %v5863_v11  ;;  %v6267_v61 = vsel %vm4995_vm9, %v6235_v48, %v5767_v35  ;;  %v14662_v31 = vld [vmem:[#allocation3 + $0x68] sm:$0xff]  ;;  %v14671_v48 = vld [vmem:[#allocation3 + $0x2b8] sm:$0xff] }
 0x61f   :  { %4678 = vrot.lane.b32.xlu1 %v14603_v43, %s8892_s16  ;;  %v6809_v33 = vpop.f32.mrf.mxu1 }
 0x620   :  { %v7022_v10 = vmax.f32 %v6808_v29, 0.0  ;;  %v5959_v63 = vpop.permute.xlu0 %5958 }
 0x621   :  { %v6331_v19 = vsel %vm5060_vm15, %v6299_v13, %v5959_v63  ;;  %v6055_v16 = vpop.permute.xlu1 %6054  ;;  %v3930_v13 = vrot.slane %v14658_v50, 1 }
 0x622   :  { %v7108_v7 = vsel %vm1631_vm11, %v7022_v10, -inf  ;;  %v6363_v53 = vsel %vm5093_vm0, %v6331_v19, %v6055_v16  ;;  %5970 = vrot.lane.b32.xlu0 %v14618_v17, %s8892_s16  ;;  %v3931_v16 = vrot.slane %v14662_v31, 1 }
 0x623   :  { %v14624_v46 = vmax.f32 %v7081_v28, %v7108_v7  ;;  %8469 = vrot.lane.b32.xlu1 %v14612_v27, %s8893_s4  ;;  %7735 = vmatprep.mubr.msk.f32.mxu1 %vm6418_vm5, %v6363_v53  ;;  %v14634_v28 = vsel %vm526_vm3, %v4006_v39, %v4008_v0  ;;  %v14675_v7 = vld [vmem:[#allocation3 + $0x2c0] sm:$0xff]  ;;  %v8839_v53 = vld [vmem:[#allocation3 + $0x248] sm:$0xff] }
 0x624   :  { %v8375_v40 = vpop.permute.xlu0 %8374  ;;  %v6812_v3 = vpop.f32.mrf.mxu1  ;;  %6891 = vmatmul.mubr.f32.gmra.mxu1 %v6267_v61 }
 0x625   :  { %v6813_v1 = vadd.f32 %v14138_v32, %v6812_v3  ;;  %v8380_v51 = vpop.permute.xlu1 %8379  ;;  %v8376_v21 = vunpack.i.l.bf16 %v8375_v40  ;;  %v8377_v11 = vunpack.i.h.bf16 %v8375_v40 }
 0x626   :  { %4774 = vrot.lane.b32.xlu0 %v14634_v28, %s8894_s17  ;;  %v6814_v26 = vpop.f32.mrf.mxu1  ;;  %v8381_v45 = vunpack.i.l.bf16 %v8380_v51  ;;  %v8382_v10 = vunpack.i.h.bf16 %v8380_v51  ;;  %v8483_v51 = vpack.i.bf16 %v14499_v47, %v14486_v55  ;;  %v14698_v55 = vsel %vm445_vm2, %v3930_v13, %v3931_v16 }
 0x627   :  { %v7023_v14 = vmax.f32 %v6813_v1, 0.0  ;;  %6066 = vrot.lane.b32.xlu1 %v14641_v38, %s8894_s17  ;;  %v6140_v49 = vsel %vm1565_vm4, %v8838_v34, %v8376_v21  ;;  %v6141_v61 = vsel %vm1565_vm4, %v8839_v53, %v8377_v11  ;;  %v4010_v11 = vrot.slane %v14658_v50, 2 }
 0x628   :  { %v5769_v32 = vpop.permute.xlu0 %5768  ;;  %v6172_v29 = vsel %vm4896_vm14, %v6140_v49, %v8381_v45  ;;  %v6173_v21 = vsel %vm4896_vm14, %v6141_v61, %v8382_v10 }
 0x629   :  { %v14648_v39 = vsel %vm1631_vm11, %v7023_v14, -inf  ;;  %v5865_v44 = vpop.permute.xlu1 %5864 }
 0x62a   :  { %v7097_v35 = vmax.f32 %v14624_v46, %v14648_v39  ;;  %8474 = vrot.lane.b32.xlu0 %v14531_v4, %s8886_s28  ;;  %v6300_v4 = vsel %vm1499_vm8, %v5769_v32, %v5865_v44  ;;  %v5230_v44 = vrot.slane %v14675_v7, 1 }
 0x62b   :  { %8479 = vrot.lane.b32.xlu1 %v8478_v24, %s8889_s18  ;;  %v5229_v24 = vrot.slane %v14671_v48, 1 }
 0x62c   :  { %v8385_v20 = vpop.permute.xlu0 %8384 }
 0x62d   :  { %v5961_v41 = vpop.permute.xlu1 %5960  ;;  %v8386_v15 = vunpack.i.l.bf16 %v8385_v20  ;;  %v8387_v0 = vunpack.i.h.bf16 %v8385_v20  ;;  %v14691_v20 = vld [vmem:[%s16009_s5] ss:$0 sm:$0xff] }
 0x62e   :  { %4488 = vrot.lane.b32.xlu0 %v14559_v57, %s8890_s27  ;;  %v6332_v33 = vsel %vm5060_vm15, %v6300_v4, %v5961_v41  ;;  %v14708_v4 = vpack.i.bf16 %v14537_v2, %v14521_v5  ;;  %v5309_v5 = vrot.slane %v14671_v48, 2  ;;  %v5310_v2 = vrot.slane %v14675_v7, 2 }
 0x62f   :  { %4584 = vrot.lane.b32.xlu1 %v14658_v50, %s8884_s26  ;;  %v6204_v19 = vsel %vm4929_vm1, %v6172_v29, %v8386_v15 }
 0x630   :  { %v8390_v58 = vpop.permute.xlu0 %8389  ;;  %v14743_v39 = vsel %vm526_vm3, %v5309_v5, %v5310_v2  ;;  %v8503_v5 = vpack.i.bf16 %v14503_v22, %v14490_v30 }
 0x631   :  { %v8391_v6 = vunpack.i.l.bf16 %v8390_v58  ;;  %v6057_v56 = vpop.permute.xlu1 %6056  ;;  %v8392_v3 = vunpack.i.h.bf16 %v8390_v58 }
 0x632   :  { %v6364_v63 = vsel %vm5093_vm0, %v6332_v33, %v6057_v56  ;;  %5780 = vrot.lane.b32.xlu0 %v14566_v37, %s8890_s27  ;;  %v14714_v33 = vsel %vm445_vm2, %v5229_v24, %v5230_v44 }
 0x633   :  { %5876 = vrot.lane.b32.xlu1 %v14671_v48, %s8884_s26  ;;  %7736 = vmatprep.mubr.msk.f32.mxu1 %vm6418_vm5, %v6364_v63  ;;  %v6236_v40 = vsel %vm4962_vm7, %v6204_v19, %v8391_v6  ;;  %v4011_v6 = vrot.slane %v14662_v31, 2 }
 0x634   :  { %v5771_v8 = vpop.permute.xlu0 %5770  ;;  %v6268_v1 = vsel %vm4995_vm9, %v6236_v40, %v5769_v32  ;;  %v6205_v32 = vsel %vm4929_vm1, %v6173_v21, %v8387_v0 }
 0x635   :  { %v5867_v26 = vpop.permute.xlu1 %5866  ;;  %v6817_v14 = vpop.f32.mrf.mxu1  ;;  %6896 = vmatmul.mubr.f32.gmra.mxu1 %v6268_v1  ;;  %v6237_v15 = vsel %vm4962_vm7, %v6205_v32, %v8392_v3  ;;  %v14736_v40 = vsel %vm526_vm3, %v4010_v11, %v4011_v6 }
 0x636   :  { %v6818_v45 = vadd.f32 %v14691_v20, %v6817_v14  ;;  %8484 = vrot.lane.b32.xlu0 %v8483_v51, %s8891_s25  ;;  %v6301_v41 = vsel %vm1499_vm8, %v5771_v8, %v5867_v26  ;;  %v6269_v63 = vsel %vm4995_vm9, %v6237_v15, %v5771_v8  ;;  %v8498_v8 = vpack.i.bf16 %v14469_v60, %v14462_v9  ;;  %v3768_v9 = vld [vmem:[#allocation3 + $0x70] sm:$0x3] }
 0x637   :  { %4680 = vrot.lane.b32.xlu1 %v14698_v55, %s8892_s16  ;;  %v6819_v47 = vpop.f32.mrf.mxu1 }
 0x638   :  { %v7024_v34 = vmax.f32 %v6818_v45, 0.0  ;;  %v5963_v49 = vpop.permute.xlu0 %5962  ;;  %v3843_v47 = vld [vmem:[#allocation3 + $0x2c8] sm:$0x3] }
 0x639   :  { %v6333_v58 = vsel %vm5060_vm15, %v6301_v41, %v5963_v49  ;;  %v6059_v29 = vpop.permute.xlu1 %6058  ;;  %v5232_v11 = vrot.slane %v3843_v47, 1 }
 0x63a   :  { %v7112_v56 = vsel %vm1631_vm11, %v7024_v34, -inf  ;;  %v6365_v13 = vsel %vm5093_vm0, %v6333_v58, %v6059_v29  ;;  %5972 = vrot.lane.b32.xlu0 %v14714_v33, %s8892_s16  ;;  %v8841_v58 = vld [vmem:[#allocation3 + $0x258] sm:$0xff] }
 0x63b   :  { %v14726_v10 = vmax.f32 %v7097_v35, %v7112_v56  ;;  %8489 = vrot.lane.b32.xlu1 %v14708_v4, %s8893_s4  ;;  %7737 = vmatprep.mubr.msk.f32.mxu1 %vm6418_vm5, %v6365_v13 }
 0x63c   :  { %v8395_v19 = vpop.permute.xlu0 %8394  ;;  %v6822_v53 = vpop.f32.mrf.mxu1  ;;  %6901 = vmatmul.mubr.f32.gmra.mxu1 %v6269_v63 }
 0x63d   :  { %v6823_v61 = vadd.f32 %v14691_v20, %v6822_v53  ;;  %v8400_v0 = vpop.permute.xlu1 %8399  ;;  %v8396_v21 = vunpack.i.l.bf16 %v8395_v19  ;;  %v8397_v60 = vunpack.i.h.bf16 %v8395_v19  ;;  %v14779_v53 = vsel %vm445_vm2, %v5230_v44, %v5232_v11 }
 0x63e   :  { %4776 = vrot.lane.b32.xlu0 %v14736_v40, %s8894_s17  ;;  %v6824_v46 = vpop.f32.mrf.mxu1  ;;  %v8401_v41 = vunpack.i.l.bf16 %v8400_v0  ;;  %v8402_v49 = vunpack.i.h.bf16 %v8400_v0 }
 0x63f   :  { %v7025_v35 = vmax.f32 %v6823_v61, 0.0  ;;  %6068 = vrot.lane.b32.xlu1 %v14743_v39, %s8894_s17  ;;  %v4864_v34 = vsel %vm1565_vm4, %v14216_v54, %v8396_v21  ;;  %v6142_v29 = vsel %vm1565_vm4, %v8841_v58, %v8397_v60 }
 0x640   :  { %v4481_v3 = vpop.permute.xlu0 %4480  ;;  %v4897_v61 = vsel %vm4896_vm14, %v4864_v34, %v8401_v41 }
 0x641   :  { %v7114_v1 = vsel %vm1631_vm11, %v7025_v35, -inf  ;;  %v4577_v51 = vpop.permute.xlu1 %4576 }
 0x642   :  { %v7113_v26 = vmax.f32 %v14726_v10, %v7114_v1  ;;  %8494 = vrot.lane.b32.xlu0 %v14612_v27, %s8886_s28  ;;  %v3933_v27 = vrot.slane %v3768_v9, 1  ;;  %v14769_v10 = vpack.i.bf16 %v14618_v17, %v14603_v43  ;;  %v6174_v43 = vsel %vm4896_vm14, %v6142_v29, %v8402_v49 }
 0x643   :  { %8499 = vrot.lane.b32.xlu1 %v8498_v8, %s8889_s18  ;;  %v5028_v17 = vsel %vm1499_vm8, %v4481_v3, %v4577_v51  ;;  %v5312_v29 = vrot.slane %v3843_v47, 2 }
 0x644   :  { %v5773_v14 = vpop.permute.xlu0 %5772  ;;  %v14774_v19 = vsel %vm445_vm2, %v3931_v16, %v3933_v27 }
 0x645   :  { %v5869_v24 = vpop.permute.xlu1 %5868 }
 0x646   :  { %4490 = vrot.lane.b32.xlu0 %v14634_v28, %s8890_s27  ;;  %v6302_v16 = vsel %vm1499_vm8, %v5773_v14, %v5869_v24 }
 0x647   :  { %4586 = vrot.lane.b32.xlu1 %v14662_v31, %s8884_s26 }
 0x648   :  { %v8405_v45 = vpop.permute.xlu0 %8404 }
 0x649   :  { %v4673_v32 = vpop.permute.xlu1 %4672  ;;  %v8406_v15 = vunpack.i.l.bf16 %v8405_v45  ;;  %v8407_v56 = vunpack.i.h.bf16 %v8405_v45 }
 0x64a   :  { %5782 = vrot.lane.b32.xlu0 %v14641_v38, %s8890_s27  ;;  %v5061_v35 = vsel %vm5060_vm15, %v5028_v17, %v4673_v32 }
 0x64b   :  { %5878 = vrot.lane.b32.xlu1 %v14675_v7, %s8884_s26  ;;  %v4930_v46 = vsel %vm4929_vm1, %v4897_v61, %v8406_v15  ;;  %v6206_v60 = vsel %vm4929_vm1, %v6174_v43, %v8407_v56  ;;  %v4013_v15 = vrot.slane %v3768_v9, 2  ;;  %v14845_v43 = vld [vmem:[#allocation3 + $0x2d8] sm:$0xff] }
 0x64c   :  { %v5965_v13 = vpop.permute.xlu0 %5964 }
 0x64d   :  { %v8410_v63 = vpop.permute.xlu1 %8409  ;;  %v6827_v54 = vpop.f32.mrf.mxu1  ;;  %v6334_v45 = vsel %vm5060_vm15, %v6302_v16, %v5965_v13 }
 0x64e   :  { %v8412_v0 = vunpack.i.h.bf16 %v8410_v63  ;;  %v8411_v30 = vunpack.i.l.bf16 %v8410_v63  ;;  %v6828_v22 = vadd.f32 %v14691_v20, %v6827_v54  ;;  %8504 = vrot.lane.b32.xlu0 %v8503_v5, %s8891_s25  ;;  %v14819_v5 = vsel %vm526_vm3, %v5310_v2, %v5312_v29 }
 0x64f   :  { %4682 = vrot.lane.b32.xlu1 %v14774_v19, %s8892_s16  ;;  %v6829_v44 = vpop.f32.mrf.mxu1  ;;  %v8518_v63 = vpack.i.bf16 %v14566_v37, %v14559_v57  ;;  %v14839_v57 = vld [vmem:[#allocation3 + $0x80] sm:$0xff] }
 0x650   :  { %v7026_v8 = vmax.f32 %v6828_v22, 0.0  ;;  %v4769_v1 = vpop.permute.xlu0 %4768  ;;  %v4963_v21 = vsel %vm4962_vm7, %v4930_v46, %v8411_v30  ;;  %v6238_v27 = vsel %vm4962_vm7, %v6206_v60, %v8412_v0  ;;  %v14837_v30 = vld [vmem:[#allocation3 + $0x78] sm:$0xff]  ;;  %v14843_v22 = vld [vmem:[#allocation3 + $0x2d0] sm:$0xff]  ;;  %v3936_v44 = vrot.slane %v14839_v57, 1 }
 0x651   :  { %v5094_v51 = vsel %vm5093_vm0, %v5061_v35, %v4769_v1  ;;  %v6061_v41 = vpop.permute.xlu1 %6060  ;;  %v4996_v24 = vsel %vm4995_vm9, %v4963_v21, %v4481_v3  ;;  %v6270_v58 = vsel %vm4995_vm9, %v6238_v27, %v5773_v14  ;;  %v3935_v46 = vrot.slane %v14837_v30, 1  ;;  %v8842_v21 = vld [vmem:[#allocation3 + $0x8] sm:$0xff] }
 0x652   :  { %v7116_v34 = vsel %vm1631_vm11, %v7026_v8, -inf  ;;  %v6366_v49 = vsel %vm5093_vm0, %v6334_v45, %v6061_v41  ;;  %5974 = vrot.lane.b32.xlu0 %v14779_v53, %s8892_s16  ;;  %7692 = vmatprep.mubr.msk.f32.mxu0 %vm6418_vm5, %v5094_v51  ;;  %v5234_v8 = vrot.slane %v14843_v22, 1  ;;  %v5235_v1 = vrot.slane %v14845_v43, 1  ;;  %v8843_v41 = vld [vmem:[#allocation3 + $0x260] sm:$0xff] }
 0x653   :  { %v14802_v32 = vmax.f32 %v7116_v34, %v7113_v26  ;;  %8509 = vrot.lane.b32.xlu1 %v14769_v10, %s8893_s4  ;;  %6676 = vmatmul.mubr.f32.vlgmr.msra.gmra.mxu0 %v4996_v24  ;;  %v14812_v26 = vsel %vm526_vm3, %v4011_v6, %v4013_v15  ;;  %v14861_v15 = vpack.i.bf16 %v14714_v33, %v14698_v55  ;;  %v4015_v29 = vrot.slane %v14837_v30, 2 }
 0x654   :  { %7738 = vmatprep.mubr.msk.f32.mxu1 %vm6418_vm5, %v6366_v49  ;;  %v8415_v3 = vpop.permute.xlu0 %8414  ;;  %v6832_v11 = vpop.f32.mrf.mxu1  ;;  %v8523_v49 = vpack.i.bf16 %v14671_v48, %v14658_v50  ;;  %v14875_v50 = vsel %vm445_vm2, %v5234_v8, %v5235_v1 }
 0x655   :  { %v6833_v56 = vadd.f32 %v14691_v20, %v6832_v11  ;;  %6906 = vmatmul.mubr.f32.gmra.mxu1 %v6270_v58  ;;  %v8420_v13 = vpop.permute.xlu1 %8419  ;;  %v8416_v37 = vunpack.i.l.bf16 %v8415_v3  ;;  %v14866_v58 = vsel %vm445_vm2, %v3935_v46, %v3936_v44 }
 0x656   :  { %4778 = vrot.lane.b32.xlu0 %v14812_v26, %s8894_s17  ;;  %v6834_v9 = vpop.f32.mrf.mxu1  ;;  %v8421_v35 = vunpack.i.l.bf16 %v8420_v13  ;;  %v8422_v45 = vunpack.i.h.bf16 %v8420_v13 }
 0x657   :  { %v7027_v14 = vmax.f32 %v6833_v56, 0.0  ;;  %6070 = vrot.lane.b32.xlu1 %v14819_v5, %s8894_s17  ;;  %v4865_v60 = vsel %vm1565_vm4, %v8842_v21, %v8416_v37  ;;  %v4016_v56 = vrot.slane %v14839_v57, 2 }
 0x658   :  { %v4483_v47 = vpop.permute.xlu0 %4482  ;;  %v4898_v13 = vsel %vm4896_vm14, %v4865_v60, %v8421_v35 }
 0x659   :  { %v14826_v6 = vsel %vm1631_vm11, %v7027_v14, -inf  ;;  %v4579_v54 = vpop.permute.xlu1 %4578 }
 0x65a   :  { %v7091_v61 = vmax.f32 %v14802_v32, %v14826_v6  ;;  %8514 = vrot.lane.b32.xlu0 %v14708_v4, %s8886_s28  ;;  %v8417_v4 = vunpack.i.h.bf16 %v8415_v3  ;;  %v5029_v55 = vsel %vm1499_vm8, %v4483_v47, %v4579_v54  ;;  %v8861_v6 = vld [vmem:[#allocation3 + $0xd8] sm:$0xff] }
 0x65b   :  { %8519 = vrot.lane.b32.xlu1 %v8518_v63, %s8889_s18 }
 0x65c   :  { %v14833_v2 = vpop.permute.xlu0 %5774  ;;  %v6143_v24 = vsel %vm1565_vm4, %v8843_v41, %v8417_v4  ;;  %v5315_v41 = vrot.slane %v14845_v43, 2 }
 0x65d   :  { %v5871_v0 = vpop.permute.xlu1 %5870  ;;  %v6175_v48 = vsel %vm4896_vm14, %v6143_v24, %v8422_v45 }
 0x65e   :  { %4492 = vrot.lane.b32.xlu0 %v14736_v40, %s8890_s27  ;;  %v6303_v33 = vsel %vm1499_vm8, %v14833_v2, %v5871_v0 }
 0x65f   :  { %4588 = vrot.lane.b32.xlu1 %v14837_v30, %s8884_s26 }
 0x660   :  { %v8425_v17 = vpop.permute.xlu0 %8424 }
 0x661   :  { %v4675_v16 = vpop.permute.xlu1 %4674  ;;  %v8426_v51 = vunpack.i.l.bf16 %v8425_v17  ;;  %v8427_v27 = vunpack.i.h.bf16 %v8425_v17 }
 0x662   :  { %5784 = vrot.lane.b32.xlu0 %v14743_v39, %s8890_s27  ;;  %v5062_v4 = vsel %vm5060_vm15, %v5029_v55, %v4675_v16  ;;  %v5314_v16 = vrot.slane %v14843_v22, 2 }
 0x663   :  { %5880 = vrot.lane.b32.xlu1 %v14843_v22, %s8884_s26  ;;  %v4931_v37 = vsel %vm4929_vm1, %v4898_v13, %v8426_v51  ;;  %v6207_v8 = vsel %vm4929_vm1, %v6175_v48, %v8427_v27  ;;  %v8538_v48 = vpack.i.bf16 %v14641_v38, %v14634_v28  ;;  %v14929_v28 = vld [vmem:[#allocation3 + $0x88] sm:$0x3] }
 0x664   :  { %v5967_v34 = vpop.permute.xlu0 %5966 }
 0x665   :  { %v8430_v3 = vpop.permute.xlu1 %8429  ;;  %v6837_v11 = vpop.f32.mrf.mxu1  ;;  %v6335_v17 = vsel %vm5060_vm15, %v6303_v33, %v5967_v34 }
 0x666   :  { %v8432_v9 = vunpack.i.h.bf16 %v8430_v3  ;;  %v8431_v14 = vunpack.i.l.bf16 %v8430_v3  ;;  %8524 = vrot.lane.b32.xlu0 %v8523_v49, %s8891_s25  ;;  %v6838_v54 = vadd.f32 %v14691_v20, %v6837_v11  ;;  %v14907_v11 = vsel %vm526_vm3, %v4015_v29, %v4016_v56 }
 0x667   :  { %4684 = vrot.lane.b32.xlu1 %v14866_v58, %s8892_s16  ;;  %v6839_v63 = vpop.f32.mrf.mxu1 }
 0x668   :  { %v4771_v46 = vpop.permute.xlu0 %4770  ;;  %v4964_v35 = vsel %vm4962_vm7, %v4931_v37, %v8431_v14  ;;  %v6239_v45 = vsel %vm4962_vm7, %v6207_v8, %v8432_v9  ;;  %v7028_v34 = vmax.f32 %v6838_v54, 0.0  ;;  %v14914_v9 = vsel %vm526_vm3, %v5314_v16, %v5315_v41  ;;  %v8845_v16 = vld [vmem:[#allocation3 + $0x270] sm:$0xff] }
 0x669   :  { %v5095_v21 = vsel %vm5093_vm0, %v5062_v4, %v4771_v46  ;;  %v6063_v0 = vpop.permute.xlu1 %6062  ;;  %v4997_v60 = vsel %vm4995_vm9, %v4964_v35, %v4483_v47  ;;  %v6271_v27 = vsel %vm4995_vm9, %v6239_v45, %v14833_v2  ;;  %v14931_v35 = vld [vmem:[#allocation3 + $0x2e0] sm:$0x3] }
 0x66a   :  { %v6367_v51 = vsel %vm5093_vm0, %v6335_v17, %v6063_v0  ;;  %5976 = vrot.lane.b32.xlu0 %v14875_v50, %s8892_s16  ;;  %7693 = vmatprep.mubr.msk.f32.mxu0 %vm6418_vm5, %v5095_v21  ;;  %v7129_v29 = vsel %vm1631_vm11, %v7028_v34, -inf  ;;  %v8844_v21 = vld [vmem:[#allocation3 + $0x18] sm:$0xff]  ;;  %v8543_v34 = vpack.i.bf16 %v14675_v7, %v14662_v31 }
 0x66b   :  { %8529 = vrot.lane.b32.xlu1 %v14861_v15, %s8893_s4  ;;  %6681 = vmatmul.mubr.f32.gmra.mxu0 %v4997_v60 }
 0x66c   :  { %7739 = vmatprep.mubr.msk.f32.mxu1 %vm6418_vm5, %v6367_v51  ;;  %v8435_v47 = vpop.permute.xlu0 %8434  ;;  %v6842_v24 = vpop.f32.mrf.mxu1  ;;  %v5237_v51 = vrot.slane %v14931_v35, 1 }
 0x66d   :  { %v6843_v49 = vadd.f32 %v14691_v20, %v6842_v24  ;;  %6911 = vmatmul.mubr.f32.gmra.mxu1 %v6271_v27  ;;  %v8440_v3 = vpop.permute.xlu1 %8439  ;;  %v8436_v17 = vunpack.i.l.bf16 %v8435_v47  ;;  %v8437_v38 = vunpack.i.h.bf16 %v8435_v47 }
 0x66e   :  { %4780 = vrot.lane.b32.xlu0 %v14907_v11, %s8894_s17  ;;  %v6844_v13 = vpop.f32.mrf.mxu1  ;;  %v8441_v54 = vunpack.i.l.bf16 %v8440_v3  ;;  %v8442_v60 = vunpack.i.h.bf16 %v8440_v3 }
 0x66f   :  { %v7029_v2 = vmax.f32 %v6843_v49, 0.0  ;;  %6072 = vrot.lane.b32.xlu1 %v14914_v9, %s8894_s17  ;;  %v4866_v0 = vsel %vm1565_vm4, %v8844_v21, %v8436_v17  ;;  %v6144_v47 = vsel %vm1565_vm4, %v8845_v16, %v8437_v38  ;;  %v14945_v49 = vpack.i.bf16 %v14779_v53, %v14774_v19 }
 0x670   :  { %v4485_v14 = vpop.permute.xlu0 %4484  ;;  %v6176_v19 = vsel %vm4896_vm14, %v6144_v47, %v8442_v60  ;;  %v4018_v47 = vrot.slane %v14929_v28, 2 }
 0x671   :  { %v7130_v55 = vsel %vm1631_vm11, %v7029_v2, -inf  ;;  %v4581_v33 = vpop.permute.xlu1 %4580 }
 0x672   :  { %v7134_v63 = vmax.f32 %v7129_v29, %v7130_v55  ;;  %8534 = vrot.lane.b32.xlu0 %v14769_v10, %s8886_s28  ;;  %v3938_v10 = vrot.slane %v14929_v28, 1  ;;  %v4899_v29 = vsel %vm4896_vm14, %v4866_v0, %v8441_v54  ;;  %v5030_v53 = vsel %vm1499_vm8, %v4485_v14, %v4581_v33 }
 0x673   :  { %8539 = vrot.lane.b32.xlu1 %v8538_v48, %s8889_s18  ;;  %v14955_v48 = vsel %vm445_vm2, %v5235_v1, %v5237_v51 }
 0x674   :  { %v5777_v37 = vpop.permute.xlu0 %5776  ;;  %v14950_v2 = vsel %vm445_vm2, %v3936_v44, %v3938_v10 }
 0x675   :  { %v5873_v4 = vpop.permute.xlu1 %5872 }
 0x676   :  { %4494 = vrot.lane.b32.xlu0 %v14812_v26, %s8890_s27  ;;  %v6304_v44 = vsel %vm1499_vm8, %v5777_v37, %v5873_v4 }
 0x677   :  { %4590 = vrot.lane.b32.xlu1 %v14839_v57, %s8884_s26 }
 0x678   :  { %v8445_v46 = vpop.permute.xlu0 %8444 }
 0x679   :  { %v4677_v8 = vpop.permute.xlu1 %4676  ;;  %v8446_v45 = vunpack.i.l.bf16 %v8445_v46  ;;  %v8447_v24 = vunpack.i.h.bf16 %v8445_v46 }
 0x67a   :  { %5786 = vrot.lane.b32.xlu0 %v14819_v5, %s8890_s27  ;;  %v5063_v38 = vsel %vm5060_vm15, %v5030_v53, %v4677_v8  ;;  %v15013_v53 = vld [vmem:[#allocation3 + $0x90] sm:$0xff] }
 0x67b   :  { %5882 = vrot.lane.b32.xlu1 %v14845_v43, %s8884_s26  ;;  %v4932_v1 = vsel %vm4929_vm1, %v4899_v29, %v8446_v45  ;;  %v6208_v21 = vsel %vm4929_vm1, %v6176_v19, %v8447_v24 }
 0x67c   :  { %v5969_v27 = vpop.permute.xlu0 %5968 }
 0x67d   :  { %v8450_v13 = vpop.permute.xlu1 %8449  ;;  %v6847_v3 = vpop.f32.mrf.mxu1  ;;  %v6336_v0 = vsel %vm5060_vm15, %v6304_v44, %v5969_v27  ;;  %v15021_v44 = vld [vmem:[#allocation3 + $0x2f0] sm:$0xff] }
 0x67e   :  { %v8452_v55 = vunpack.i.h.bf16 %v8450_v13  ;;  %v8451_v31 = vunpack.i.l.bf16 %v8450_v13  ;;  %v6848_v7 = vadd.f32 %v14691_v20, %v6847_v3  ;;  %8544 = vrot.lane.b32.xlu0 %v8543_v34, %s8891_s25  ;;  %v5317_v34 = vrot.slane %v14931_v35, 2 }
 0x67f   :  { %4686 = vrot.lane.b32.xlu1 %v14950_v2, %s8892_s16  ;;  %v6849_v17 = vpop.f32.mrf.mxu1 }
 0x680   :  { %v7030_v46 = vmax.f32 %v6848_v7, 0.0  ;;  %v4773_v54 = vpop.permute.xlu0 %4772  ;;  %v4965_v10 = vsel %vm4962_vm7, %v4932_v1, %v8451_v31  ;;  %v6240_v51 = vsel %vm4962_vm7, %v6208_v21, %v8452_v55  ;;  %v14997_v29 = vsel %vm526_vm3, %v5315_v41, %v5317_v34 }
 0x681   :  { %v5096_v33 = vsel %vm5093_vm0, %v5063_v38, %v4773_v54  ;;  %v6065_v60 = vpop.permute.xlu1 %6064  ;;  %v4998_v4 = vsel %vm4995_vm9, %v4965_v10, %v4485_v14  ;;  %v6272_v27 = vsel %vm4995_vm9, %v6240_v51, %v5777_v37  ;;  %v8558_v55 = vpack.i.bf16 %v14743_v39, %v14736_v40  ;;  %v15017_v40 = vld [vmem:[#allocation3 + $0x2e8] sm:$0xff]  ;;  %v15019_v39 = vld [vmem:[#allocation3 + $0x98] sm:$0xff] }
 0x682   :  { %v7131_v16 = vsel %vm1631_vm11, %v7030_v46, -inf  ;;  %v6368_v45 = vsel %vm5093_vm0, %v6336_v0, %v6065_v60  ;;  %5978 = vrot.lane.b32.xlu0 %v14955_v48, %s8892_s16  ;;  %7694 = vmatprep.mubr.msk.f32.mxu0 %vm6418_vm5, %v5096_v33  ;;  %v3940_v46 = vrot.slane %v15013_v53, 1  ;;  %v3941_v54 = vrot.slane %v15019_v39, 1  ;;  %v8846_v33 = vld [vmem:[#allocation3 + $0x20] sm:$0xff] }
 0x683   :  { %v14978_v8 = vmax.f32 %v7131_v16, %v7134_v63  ;;  %8549 = vrot.lane.b32.xlu1 %v14945_v49, %s8893_s4  ;;  %6686 = vmatmul.mubr.f32.gmra.mxu0 %v4998_v4  ;;  %v14990_v63 = vsel %vm526_vm3, %v4016_v56, %v4018_v47  ;;  %v5239_v10 = vrot.slane %v15017_v40, 1  ;;  %v5240_v21 = vrot.slane %v15021_v44, 1  ;;  %v8847_v16 = vld [vmem:[#allocation3 + $0x278] sm:$0xff] }
 0x684   :  { %7740 = vmatprep.mubr.msk.f32.mxu1 %vm6418_vm5, %v6368_v45  ;;  %v8455_v14 = vpop.permute.xlu0 %8454  ;;  %v6852_v24 = vpop.f32.mrf.mxu1  ;;  %v15040_v34 = vpack.i.bf16 %v14875_v50, %v14866_v58 }
 0x685   :  { %v6853_v13 = vadd.f32 %v14691_v20, %v6852_v24  ;;  %6916 = vmatmul.mubr.f32.gmra.mxu1 %v6272_v27  ;;  %v8460_v3 = vpop.permute.xlu1 %8459  ;;  %v8456_v17 = vunpack.i.l.bf16 %v8455_v14  ;;  %v8563_v24 = vpack.i.bf16 %v14843_v22, %v14837_v30  ;;  %v4020_v27 = vrot.slane %v15013_v53, 2 }
 0x686   :  { %4782 = vrot.lane.b32.xlu0 %v14990_v63, %s8894_s17  ;;  %v6854_v28 = vpop.f32.mrf.mxu1  ;;  %v8461_v0 = vunpack.i.l.bf16 %v8460_v3  ;;  %v8462_v4 = vunpack.i.h.bf16 %v8460_v3  ;;  %v4021_v30 = vrot.slane %v15019_v39, 2 }
 0x687   :  { %v7031_v37 = vmax.f32 %v6853_v13, 0.0  ;;  %6074 = vrot.lane.b32.xlu1 %v14997_v29, %s8894_s17  ;;  %v4867_v60 = vsel %vm1565_vm4, %v8846_v33, %v8456_v17  ;;  %v15045_v28 = vsel %vm445_vm2, %v3940_v46, %v3941_v54 }
 0x688   :  { %v4487_v35 = vpop.permute.xlu0 %4486  ;;  %v4900_v22 = vsel %vm4896_vm14, %v4867_v60, %v8461_v0 }
 0x689   :  { %v15004_v56 = vsel %vm1631_vm11, %v7031_v37, -inf  ;;  %v4583_v31 = vpop.permute.xlu1 %4582  ;;  %v15050_v37 = vsel %vm445_vm2, %v5239_v10, %v5240_v21 }
 0x68a   :  { %v7138_v7 = vmax.f32 %v15004_v56, %v14978_v8  ;;  %8554 = vrot.lane.b32.xlu0 %v14861_v15, %s8886_s28  ;;  %v8457_v15 = vunpack.i.h.bf16 %v8455_v14  ;;  %v15091_v8 = vsel %vm526_vm3, %v4020_v27, %v4021_v30 }
 0x68b   :  { %8559 = vrot.lane.b32.xlu1 %v8558_v55, %s8889_s18 }
 0x68c   :  { %v15011_v41 = vpop.permute.xlu0 %5778  ;;  %v6145_v45 = vsel %vm1565_vm4, %v8847_v16, %v8457_v15  ;;  %v5031_v15 = vsel %vm1499_vm8, %v4487_v35, %v4583_v31 }
 0x68d   :  { %v5875_v19 = vpop.permute.xlu1 %5874  ;;  %v6177_v50 = vsel %vm4896_vm14, %v6145_v45, %v8462_v4 }
 0x68e   :  { %4496 = vrot.lane.b32.xlu0 %v14907_v11, %s8890_s27 }
 0x68f   :  { %4592 = vrot.lane.b32.xlu1 %v15013_v53, %s8884_s26 }
 0x690   :  { %v8465_v1 = vpop.permute.xlu0 %8464 }
 0x691   :  { %v4679_v38 = vpop.permute.xlu1 %4678  ;;  %v8466_v51 = vunpack.i.l.bf16 %v8465_v1  ;;  %v8467_v47 = vunpack.i.h.bf16 %v8465_v1  ;;  %v6305_v1 = vsel %vm1499_vm8, %v15011_v41, %v5875_v19 }
 0x692   :  { %5788 = vrot.lane.b32.xlu0 %v14914_v9, %s8890_s27  ;;  %v5064_v0 = vsel %vm5060_vm15, %v5031_v15, %v4679_v38  ;;  %v5319_v38 = vrot.slane %v15017_v40, 2  ;;  %v8578_v15 = vpack.i.bf16 %v14819_v5, %v14812_v26  ;;  %v15113_v26 = vld [vmem:[#allocation3 + $0xa0] sm:$0x3] }
 0x693   :  { %5884 = vrot.lane.b32.xlu1 %v15017_v40, %s8884_s26  ;;  %v4933_v10 = vsel %vm4929_vm1, %v4900_v22, %v8466_v51 }
 0x694   :  { %v5971_v14 = vpop.permute.xlu0 %5970 }
 0x695   :  { %v8470_v13 = vpop.permute.xlu1 %8469  ;;  %v6857_v3 = vpop.f32.mrf.mxu1  ;;  %v6337_v4 = vsel %vm5060_vm15, %v6305_v1, %v5971_v14 }
 0x696   :  { %v8472_v55 = vunpack.i.h.bf16 %v8470_v13  ;;  %v8471_v17 = vunpack.i.l.bf16 %v8470_v13  ;;  %v6858_v58 = vadd.f32 %v14691_v20, %v6857_v3  ;;  %8564 = vrot.lane.b32.xlu0 %v8563_v24, %s8891_s25  ;;  %v6209_v24 = vsel %vm4929_vm1, %v6177_v50, %v8467_v47 }
 0x697   :  { %4688 = vrot.lane.b32.xlu1 %v15045_v28, %s8892_s16  ;;  %v6859_v46 = vpop.f32.mrf.mxu1  ;;  %v5320_v47 = vrot.slane %v15021_v44, 2 }
 0x698   :  { %v7032_v33 = vmax.f32 %v6858_v58, 0.0  ;;  %v4775_v60 = vpop.permute.xlu0 %4774  ;;  %v4966_v16 = vsel %vm4962_vm7, %v4933_v10, %v8471_v17  ;;  %v6241_v13 = vsel %vm4962_vm7, %v6209_v24, %v8472_v55 }
 0x699   :  { %v5097_v31 = vsel %vm5093_vm0, %v5064_v0, %v4775_v60  ;;  %v6067_v45 = vpop.permute.xlu1 %6066  ;;  %v4999_v19 = vsel %vm4995_vm9, %v4966_v16, %v4487_v35  ;;  %v6273_v55 = vsel %vm4995_vm9, %v6241_v13, %v15011_v41  ;;  %v15115_v16 = vld [vmem:[#allocation3 + $0x2f8] sm:$0x3] }
 0x69a   :  { %v7133_v3 = vsel %vm1631_vm11, %v7032_v33, -inf  ;;  %v6369_v51 = vsel %vm5093_vm0, %v6337_v4, %v6067_v45  ;;  %5980 = vrot.lane.b32.xlu0 %v15050_v37, %s8892_s16  ;;  %7695 = vmatprep.mubr.msk.f32.mxu0 %vm6418_vm5, %v5097_v31  ;;  %v8848_v31 = vld [vmem:[#allocation3 + $0x30] sm:$0xff] }
 0x69b   :  { %v15080_v14 = vmax.f32 %v7133_v3, %v7138_v7  ;;  %8569 = vrot.lane.b32.xlu1 %v15040_v34, %s8893_s4  ;;  %6691 = vmatmul.mubr.f32.gmra.mxu0 %v4999_v19  ;;  %v15098_v7 = vsel %vm526_vm3, %v5319_v38, %v5320_v47  ;;  %v5242_v3 = vrot.slane %v15115_v16, 1 }
 0x69c   :  { %7741 = vmatprep.mubr.msk.f32.mxu1 %vm6418_vm5, %v6369_v51  ;;  %v8475_v35 = vpop.permute.xlu0 %8474  ;;  %v6862_v22 = vpop.f32.mrf.mxu1  ;;  %v8849_v51 = vld [vmem:[#allocation3 + $0x288] sm:$0xff] }
 0x69d   :  { %v6863_v17 = vadd.f32 %v14691_v20, %v6862_v22  ;;  %6921 = vmatmul.mubr.f32.gmra.mxu1 %v6273_v55  ;;  %v8480_v58 = vpop.permute.xlu1 %8479  ;;  %v8476_v33 = vunpack.i.l.bf16 %v8475_v35  ;;  %v8477_v5 = vunpack.i.h.bf16 %v8475_v35  ;;  %v8583_v22 = vpack.i.bf16 %v14845_v43, %v14839_v57 }
 0x69e   :  { %4784 = vrot.lane.b32.xlu0 %v15091_v8, %s8894_s17  ;;  %v6864_v56 = vpop.f32.mrf.mxu1  ;;  %v8481_v4 = vunpack.i.l.bf16 %v8480_v58  ;;  %v8482_v19 = vunpack.i.h.bf16 %v8480_v58  ;;  %v15129_v55 = vpack.i.bf16 %v14955_v48, %v14950_v2 }
 0x69f   :  { %v7033_v50 = vmax.f32 %v6863_v17, 0.0  ;;  %6076 = vrot.lane.b32.xlu1 %v15098_v7, %s8894_s17  ;;  %v4868_v45 = vsel %vm1565_vm4, %v8848_v31, %v8476_v33  ;;  %v6146_v38 = vsel %vm1565_vm4, %v8849_v51, %v8477_v5 }
 0x6a0   :  { %v4489_v41 = vpop.permute.xlu0 %4488  ;;  %v6178_v2 = vsel %vm4896_vm14, %v6146_v38, %v8482_v19  ;;  %v4023_v38 = vrot.slane %v15113_v26, 2 }
 0x6a1   :  { %v7135_v27 = vsel %vm1631_vm11, %v7033_v50, -inf  ;;  %v4585_v1 = vpop.permute.xlu1 %4584  ;;  %v15139_v50 = vsel %vm445_vm2, %v5240_v21, %v5242_v3 }
 0x6a2   :  { %v7142_v46 = vmax.f32 %v7135_v27, %v15080_v14  ;;  %8574 = vrot.lane.b32.xlu0 %v14945_v49, %s8886_s28  ;;  %v3943_v49 = vrot.slane %v15113_v26, 1  ;;  %v5032_v48 = vsel %vm1499_vm8, %v4489_v41, %v4585_v1 }
 0x6a3   :  { %8579 = vrot.lane.b32.xlu1 %v8578_v15, %s8889_s18  ;;  %v4901_v15 = vsel %vm4896_vm14, %v4868_v45, %v8481_v4 }
 0x6a4   :  { %v5781_v10 = vpop.permute.xlu0 %5780  ;;  %v15134_v56 = vsel %vm445_vm2, %v3941_v54, %v3943_v49 }
 0x6a5   :  { %v5877_v0 = vpop.permute.xlu1 %5876 }
 0x6a6   :  { %4498 = vrot.lane.b32.xlu0 %v14990_v63, %s8890_s27  ;;  %v6306_v54 = vsel %vm1499_vm8, %v5781_v10, %v5877_v0 }
 0x6a7   :  { %4594 = vrot.lane.b32.xlu1 %v15019_v39, %s8884_s26 }
 0x6a8   :  { %v8485_v60 = vpop.permute.xlu0 %8484 }
 0x6a9   :  { %v4681_v24 = vpop.permute.xlu1 %4680  ;;  %v8486_v13 = vunpack.i.l.bf16 %v8485_v60  ;;  %v8487_v14 = vunpack.i.h.bf16 %v8485_v60 }
 0x6aa   :  { %5790 = vrot.lane.b32.xlu0 %v14997_v29, %s8890_s27  ;;  %v5065_v5 = vsel %vm5060_vm15, %v5032_v48, %v4681_v24  ;;  %v15197_v48 = vld [vmem:[#allocation3 + $0xa8] sm:$0xff] }
 0x6ab   :  { %5886 = vrot.lane.b32.xlu1 %v15021_v44, %s8884_s26  ;;  %v4934_v21 = vsel %vm4929_vm1, %v4901_v15, %v8486_v13  ;;  %v6210_v31 = vsel %vm4929_vm1, %v6178_v2, %v8487_v14 }
 0x6ac   :  { %v5973_v35 = vpop.permute.xlu0 %5972 }
 0x6ad   :  { %v8490_v17 = vpop.permute.xlu1 %8489  ;;  %v6867_v58 = vpop.f32.mrf.mxu1  ;;  %v6338_v45 = vsel %vm5060_vm15, %v6306_v54, %v5973_v35  ;;  %v15205_v54 = vld [vmem:[#allocation3 + $0x308] sm:$0xff] }
 0x6ae   :  { %v8492_v27 = vunpack.i.h.bf16 %v8490_v17  ;;  %v8491_v57 = vunpack.i.l.bf16 %v8490_v17  ;;  %v6868_v43 = vadd.f32 %v14691_v20, %v6867_v58  ;;  %8584 = vrot.lane.b32.xlu0 %v8583_v22, %s8891_s25  ;;  %v5322_v22 = vrot.slane %v15115_v16, 2 }
 0x6af   :  { %4690 = vrot.lane.b32.xlu1 %v15134_v56, %s8892_s16  ;;  %v6869_v33 = vpop.f32.mrf.mxu1 }
 0x6b0   :  { %v7034_v60 = vmax.f32 %v6868_v43, 0.0  ;;  %v4777_v4 = vpop.permute.xlu0 %4776  ;;  %v4967_v49 = vsel %vm4962_vm7, %v4934_v21, %v8491_v57  ;;  %v6242_v3 = vsel %vm4962_vm7, %v6210_v31, %v8492_v27  ;;  %v15181_v15 = vsel %vm526_vm3, %v5320_v47, %v5322_v22 }
 0x6b1   :  { %v5098_v1 = vsel %vm5093_vm0, %v5065_v5, %v4777_v4  ;;  %v6069_v19 = vpop.permute.xlu1 %6068  ;;  %v5000_v0 = vsel %vm4995_vm9, %v4967_v49, %v4489_v41  ;;  %v6274_v35 = vsel %vm4995_vm9, %v6242_v3, %v5781_v10  ;;  %v8598_v27 = vpack.i.bf16 %v14914_v9, %v14907_v11  ;;  %v15201_v11 = vld [vmem:[#allocation3 + $0x300] sm:$0xff]  ;;  %v15203_v9 = vld [vmem:[#allocation3 + $0xb0] sm:$0xff] }
 0x6b2   :  { %v7137_v51 = vsel %vm1631_vm11, %v7034_v60, -inf  ;;  %v6370_v13 = vsel %vm5093_vm0, %v6338_v45, %v6069_v19  ;;  %5982 = vrot.lane.b32.xlu0 %v15139_v50, %s8892_s16  ;;  %7696 = vmatprep.mubr.msk.f32.mxu0 %vm6418_vm5, %v5098_v1  ;;  %v3945_v60 = vrot.slane %v15197_v48, 1  ;;  %v3946_v4 = vrot.slane %v15203_v9, 1  ;;  %v8850_v1 = vld [vmem:[#allocation3 + $0x38] sm:$0xff] }
 0x6b3   :  { %v15162_v24 = vmax.f32 %v7137_v51, %v7142_v46  ;;  %8589 = vrot.lane.b32.xlu1 %v15129_v55, %s8893_s4  ;;  %6696 = vmatmul.mubr.f32.gmra.mxu0 %v5000_v0  ;;  %v15174_v46 = vsel %vm526_vm3, %v4021_v30, %v4023_v38  ;;  %v5244_v49 = vrot.slane %v15201_v11, 1  ;;  %v5245_v31 = vrot.slane %v15205_v54, 1  ;;  %v8851_v51 = vld [vmem:[#allocation3 + $0x290] sm:$0xff] }
 0x6b4   :  { %7742 = vmatprep.mubr.msk.f32.mxu1 %vm6418_vm5, %v6370_v13  ;;  %v8495_v41 = vpop.permute.xlu0 %8494  ;;  %v6872_v14 = vpop.f32.mrf.mxu1  ;;  %v15224_v22 = vpack.i.bf16 %v15050_v37, %v15045_v28 }
 0x6b5   :  { %v6873_v17 = vadd.f32 %v14691_v20, %v6872_v14  ;;  %6926 = vmatmul.mubr.f32.gmra.mxu1 %v6274_v35  ;;  %v8500_v58 = vpop.permute.xlu1 %8499  ;;  %v8496_v33 = vunpack.i.l.bf16 %v8495_v41  ;;  %v8603_v14 = vpack.i.bf16 %v15017_v40, %v15013_v53  ;;  %v4025_v35 = vrot.slane %v15197_v48, 2 }
 0x6b6   :  { %4786 = vrot.lane.b32.xlu0 %v15174_v46, %s8894_s17  ;;  %v6874_v26 = vpop.f32.mrf.mxu1  ;;  %v8501_v45 = vunpack.i.l.bf16 %v8500_v58  ;;  %v8502_v0 = vunpack.i.h.bf16 %v8500_v58  ;;  %v4026_v53 = vrot.slane %v15203_v9, 2 }
 0x6b7   :  { %v7035_v10 = vmax.f32 %v6873_v17, 0.0  ;;  %6078 = vrot.lane.b32.xlu1 %v15181_v15, %s8894_s17  ;;  %v4869_v19 = vsel %vm1565_vm4, %v8850_v1, %v8496_v33  ;;  %v15229_v26 = vsel %vm445_vm2, %v3945_v60, %v3946_v4 }
 0x6b8   :  { %v4491_v16 = vpop.permute.xlu0 %4490  ;;  %v4902_v40 = vsel %vm4896_vm14, %v4869_v19, %v8501_v45 }
 0x6b9   :  { %v15188_v30 = vsel %vm1631_vm11, %v7035_v10, -inf  ;;  %v4587_v57 = vpop.permute.xlu1 %4586  ;;  %v15234_v10 = vsel %vm445_vm2, %v5244_v49, %v5245_v31 }
 0x6ba   :  { %v7146_v43 = vmax.f32 %v15188_v30, %v15162_v24  ;;  %8594 = vrot.lane.b32.xlu0 %v15040_v34, %s8886_s28  ;;  %v8497_v34 = vunpack.i.h.bf16 %v8495_v41 }
 0x6bb   :  { %8599 = vrot.lane.b32.xlu1 %v8598_v27, %s8889_s18 }
 0x6bc   :  { %v15195_v47 = vpop.permute.xlu0 %5782  ;;  %v6147_v13 = vsel %vm1565_vm4, %v8851_v51, %v8497_v34  ;;  %v5033_v34 = vsel %vm1499_vm8, %v4491_v16, %v4587_v57 }
 0x6bd   :  { %v5879_v2 = vpop.permute.xlu1 %5878  ;;  %v6179_v37 = vsel %vm4896_vm14, %v6147_v13, %v8502_v0 }
 0x6be   :  { %4500 = vrot.lane.b32.xlu0 %v15091_v8, %s8890_s27 }
 0x6bf   :  { %4596 = vrot.lane.b32.xlu1 %v15197_v48, %s8884_s26 }
 0x6c0   :  { %v8505_v21 = vpop.permute.xlu0 %8504 }
 0x6c1   :  { %v4683_v5 = vpop.permute.xlu1 %4682  ;;  %v8506_v3 = vunpack.i.l.bf16 %v8505_v21  ;;  %v8507_v38 = vunpack.i.h.bf16 %v8505_v21  ;;  %v6307_v21 = vsel %vm1499_vm8, %v15195_v47, %v5879_v2 }
 0x6c2   :  { %5792 = vrot.lane.b32.xlu0 %v15098_v7, %s8890_s27  ;;  %v5066_v45 = vsel %vm5060_vm15, %v5033_v34, %v4683_v5  ;;  %v5324_v5 = vrot.slane %v15201_v11, 2  ;;  %v8618_v34 = vpack.i.bf16 %v14997_v29, %v14990_v63  ;;  %v15302_v63 = vld [vmem:[#allocation3 + $0xb8] sm:$0x3] }
 0x6c3   :  { %5888 = vrot.lane.b32.xlu1 %v15201_v11, %s8884_s26  ;;  %v4935_v49 = vsel %vm4929_vm1, %v4902_v40, %v8506_v3  ;;  %v6211_v51 = vsel %vm4929_vm1, %v6179_v37, %v8507_v38  ;;  %v5325_v38 = vrot.slane %v15205_v54, 2 }
 0x6c4   :  { %v5975_v41 = vpop.permute.xlu0 %5974 }
 0x6c5   :  { %v8510_v17 = vpop.permute.xlu1 %8509  ;;  %v6877_v58 = vpop.f32.mrf.mxu1  ;;  %v6339_v0 = vsel %vm5060_vm15, %v6307_v21, %v5975_v41 }
 0x6c6   :  { %v8512_v27 = vunpack.i.h.bf16 %v8510_v17  ;;  %v8511_v33 = vunpack.i.l.bf16 %v8510_v17  ;;  %v6878_v28 = vadd.f32 %v14691_v20, %v6877_v58  ;;  %8604 = vrot.lane.b32.xlu0 %v8603_v14, %s8891_s25 }
 0x6c7   :  { %4692 = vrot.lane.b32.xlu1 %v15229_v26, %s8892_s16  ;;  %v6879_v60 = vpop.f32.mrf.mxu1 }
 0x6c8   :  { %v7036_v1 = vmax.f32 %v6878_v28, 0.0  ;;  %v4779_v19 = vpop.permute.xlu0 %4778  ;;  %v4968_v20 = vsel %vm4962_vm7, %v4935_v49, %v8511_v33  ;;  %v6243_v14 = vsel %vm4962_vm7, %v6211_v51, %v8512_v27  ;;  %v15274_v27 = vld [vmem:[%s16009_s5] ss:$0 sm:$0xff] }
 0x6c9   :  { %v5099_v57 = vsel %vm5093_vm0, %v5066_v45, %v4779_v19  ;;  %v6071_v13 = vpop.permute.xlu1 %6070  ;;  %v5001_v2 = vsel %vm4995_vm9, %v4968_v20, %v4491_v16  ;;  %v6275_v40 = vsel %vm4995_vm9, %v6243_v14, %v15195_v47  ;;  %v15287_v47 = vsel %vm526_vm3, %v5324_v5, %v5325_v38  ;;  %v15304_v20 = vld [vmem:[#allocation3 + $0x310] sm:$0x3] }
 0x6ca   :  { %v7141_v17 = vsel %vm1631_vm11, %v7036_v1, -inf  ;;  %v6371_v3 = vsel %vm5093_vm0, %v6339_v0, %v6071_v13  ;;  %5984 = vrot.lane.b32.xlu0 %v15234_v10, %s8892_s16  ;;  %7697 = vmatprep.mubr.msk.f32.mxu0 %vm6418_vm5, %v5099_v57  ;;  %v8853_v57 = vld [vmem:[#allocation3 + $0x48] sm:$0xff] }
 0x6cb   :  { %v15264_v41 = vmax.f32 %v7141_v17, %v7146_v43  ;;  %8609 = vrot.lane.b32.xlu1 %v15224_v22, %s8893_s4  ;;  %6701 = vmatmul.mubr.f32.gmra.mxu0 %v5001_v2  ;;  %v15280_v43 = vsel %vm526_vm3, %v4025_v35, %v4026_v53  ;;  %v5247_v17 = vrot.slane %v15304_v20, 1 }
 0x6cc   :  { %7743 = vmatprep.mubr.msk.f32.mxu1 %vm6418_vm5, %v6371_v3  ;;  %v8515_v16 = vpop.permute.xlu0 %8514  ;;  %v6882_v58 = vpop.f32.mrf.mxu1  ;;  %v8854_v3 = vld [vmem:[#allocation3 + $0x2a0] sm:$0xff] }
 0x6cd   :  { %v6883_v24 = vadd.f32 %v15274_v27, %v6882_v58  ;;  %6931 = vmatmul.mubr.f32.gmra.mxu1 %v6275_v40  ;;  %v8520_v30 = vpop.permute.xlu1 %8519  ;;  %v8516_v1 = vunpack.i.l.bf16 %v8515_v16  ;;  %v8517_v29 = vunpack.i.h.bf16 %v8515_v16  ;;  %v8623_v58 = vpack.i.bf16 %v15021_v44, %v15019_v39 }
 0x6ce   :  { %4788 = vrot.lane.b32.xlu0 %v15280_v43, %s8894_s17  ;;  %v6884_v33 = vpop.f32.mrf.mxu1  ;;  %v8521_v0 = vunpack.i.l.bf16 %v8520_v30  ;;  %v8522_v2 = vunpack.i.h.bf16 %v8520_v30  ;;  %v15318_v40 = vpack.i.bf16 %v15139_v50, %v15134_v56 }
 0x6cf   :  { %v7037_v28 = vmax.f32 %v6883_v24, 0.0  ;;  %6080 = vrot.lane.b32.xlu1 %v15287_v47, %s8894_s17  ;;  %v4870_v13 = vsel %vm1565_vm4, %v8853_v57, %v8516_v1  ;;  %v6148_v5 = vsel %vm1565_vm4, %v8854_v3, %v8517_v29 }
 0x6d0   :  { %v4493_v37 = vpop.permute.xlu0 %4492  ;;  %v6180_v56 = vsel %vm4896_vm14, %v6148_v5, %v8522_v2  ;;  %v4028_v5 = vrot.slane %v15302_v63, 2 }
 0x6d1   :  { %v7143_v35 = vsel %vm1631_vm11, %v7037_v28, -inf  ;;  %v4589_v21 = vpop.permute.xlu1 %4588  ;;  %v15328_v28 = vsel %vm445_vm2, %v5245_v31, %v5247_v17 }
 0x6d2   :  { %v7150_v60 = vmax.f32 %v7143_v35, %v15264_v41  ;;  %8614 = vrot.lane.b32.xlu0 %v15129_v55, %s8886_s28  ;;  %v3948_v55 = vrot.slane %v15302_v63, 1  ;;  %v5034_v50 = vsel %vm1499_vm8, %v4493_v37, %v4589_v21 }
 0x6d3   :  { %8619 = vrot.lane.b32.xlu1 %v8618_v34, %s8889_s18  ;;  %v4903_v34 = vsel %vm4896_vm14, %v4870_v13, %v8521_v0 }
 0x6d4   :  { %v5785_v49 = vpop.permute.xlu0 %5784  ;;  %v15323_v33 = vsel %vm445_vm2, %v3946_v4, %v3948_v55 }
 0x6d5   :  { %v5881_v45 = vpop.permute.xlu1 %5880 }
 0x6d6   :  { %4502 = vrot.lane.b32.xlu0 %v15174_v46, %s8890_s27  ;;  %v6308_v4 = vsel %vm1499_vm8, %v5785_v49, %v5881_v45 }
 0x6d7   :  { %4598 = vrot.lane.b32.xlu1 %v15203_v9, %s8884_s26 }
 0x6d8   :  { %v8525_v19 = vpop.permute.xlu0 %8524 }
 0x6d9   :  { %v4685_v51 = vpop.permute.xlu1 %4684  ;;  %v8526_v14 = vunpack.i.l.bf16 %v8525_v19  ;;  %v8527_v41 = vunpack.i.h.bf16 %v8525_v19 }
 0x6da   :  { %5794 = vrot.lane.b32.xlu0 %v15181_v15, %s8890_s27  ;;  %v5067_v29 = vsel %vm5060_vm15, %v5034_v50, %v4685_v51  ;;  %v15385_v50 = vld [vmem:[#allocation3 + $0x318] sm:$0xff] }
 0x6db   :  { %5890 = vrot.lane.b32.xlu1 %v15205_v54, %s8884_s26  ;;  %v4936_v31 = vsel %vm4929_vm1, %v4903_v34, %v8526_v14  ;;  %v6212_v57 = vsel %vm4929_vm1, %v6180_v56, %v8527_v41 }
 0x6dc   :  { %v5977_v16 = vpop.permute.xlu0 %5976 }
 0x6dd   :  { %v8530_v24 = vpop.permute.xlu1 %8529  ;;  %v6887_v30 = vpop.f32.mrf.mxu1  ;;  %v6340_v13 = vsel %vm5060_vm15, %v6308_v4, %v5977_v16  ;;  %v15387_v4 = vld [vmem:[#allocation3 + $0x320] sm:$0xff] }
 0x6de   :  { %v8532_v35 = vunpack.i.h.bf16 %v8530_v24  ;;  %v8531_v39 = vunpack.i.l.bf16 %v8530_v24  ;;  %v6888_v44 = vadd.f32 %v15274_v27, %v6887_v30  ;;  %8624 = vrot.lane.b32.xlu0 %v8623_v58, %s8891_s25  ;;  %v5327_v58 = vrot.slane %v15304_v20, 2 }
 0x6df   :  { %4694 = vrot.lane.b32.xlu1 %v15323_v33, %s8892_s16  ;;  %v6889_v1 = vpop.f32.mrf.mxu1 }
 0x6e0   :  { %v7038_v19 = vmax.f32 %v6888_v44, 0.0  ;;  %v4781_v0 = vpop.permute.xlu0 %4780  ;;  %v4969_v55 = vsel %vm4962_vm7, %v4936_v31, %v8531_v39  ;;  %v6244_v17 = vsel %vm4962_vm7, %v6212_v57, %v8532_v35  ;;  %v15370_v34 = vsel %vm526_vm3, %v5325_v38, %v5327_v58 }
 0x6e1   :  { %v5100_v21 = vsel %vm5093_vm0, %v5067_v29, %v4781_v0  ;;  %v6073_v2 = vpop.permute.xlu1 %6072  ;;  %v5002_v45 = vsel %vm4995_vm9, %v4969_v55, %v4493_v37  ;;  %v6276_v16 = vsel %vm4995_vm9, %v6244_v17, %v5785_v49  ;;  %v8638_v35 = vpack.i.bf16 %v15098_v7, %v15091_v8  ;;  %v15389_v7 = vld [vmem:[#allocation3 + $0xc0] sm:$0xff]  ;;  %v8856_v55 = vld [vmem:[#allocation3 + $0x50] sm:$0xff] }
 0x6e2   :  { %v7145_v3 = vsel %vm1631_vm11, %v7038_v19, -inf  ;;  %v6372_v14 = vsel %vm5093_vm0, %v6340_v13, %v6073_v2  ;;  %5986 = vrot.lane.b32.xlu0 %v15328_v28, %s8892_s16  ;;  %7698 = vmatprep.mubr.msk.f32.mxu0 %vm6418_vm5, %v5100_v21  ;;  %v5249_v29 = vrot.slane %v15385_v50, 1  ;;  %v5250_v19 = vrot.slane %v15387_v4, 1  ;;  %v8857_v2 = vld [vmem:[#allocation3 + $0x2a8] sm:$0xff] }
 0x6e3   :  { %v15351_v51 = vmax.f32 %v7145_v3, %v7150_v60  ;;  %8629 = vrot.lane.b32.xlu1 %v15318_v40, %s8893_s4  ;;  %6706 = vmatmul.mubr.f32.gmra.mxu0 %v5002_v45  ;;  %v15363_v60 = vsel %vm526_vm3, %v4026_v53, %v4028_v5 }
 0x6e4   :  { %7744 = vmatprep.mubr.msk.f32.mxu1 %vm6418_vm5, %v6372_v14  ;;  %v8535_v37 = vpop.permute.xlu0 %8534  ;;  %v6892_v41 = vpop.f32.mrf.mxu1  ;;  %v8643_v14 = vpack.i.bf16 %v15201_v11, %v15197_v48 }
 0x6e5   :  { %v6893_v24 = vadd.f32 %v15274_v27, %v6892_v41  ;;  %6936 = vmatmul.mubr.f32.gmra.mxu1 %v6276_v16  ;;  %v8540_v30 = vpop.permute.xlu1 %8539  ;;  %v8536_v8 = vunpack.i.l.bf16 %v8535_v37  ;;  %v8537_v1 = vunpack.i.h.bf16 %v8535_v37  ;;  %v15410_v41 = vsel %vm445_vm2, %v5249_v29, %v5250_v19 }
 0x6e6   :  { %4790 = vrot.lane.b32.xlu0 %v15363_v60, %s8894_s17  ;;  %v6894_v63 = vpop.f32.mrf.mxu1  ;;  %v8541_v0 = vunpack.i.l.bf16 %v8540_v30  ;;  %v8542_v13 = vunpack.i.h.bf16 %v8540_v30 }
 0x6e7   :  { %v7039_v49 = vmax.f32 %v6893_v24, 0.0  ;;  %6082 = vrot.lane.b32.xlu1 %v15370_v34, %s8894_s17  ;;  %v4871_v57 = vsel %vm1565_vm4, %v8856_v55, %v8536_v8  ;;  %v6149_v45 = vsel %vm1565_vm4, %v8857_v2, %v8537_v1 }
 0x6e8   :  { %v4495_v20 = vpop.permute.xlu0 %4494  ;;  %v4904_v16 = vsel %vm4896_vm14, %v4871_v57, %v8541_v0  ;;  %v6181_v48 = vsel %vm4896_vm14, %v6149_v45, %v8542_v13  ;;  %v5330_v13 = vrot.slane %v15387_v4, 2 }
 0x6e9   :  { %v7147_v53 = vsel %vm1631_vm11, %v7039_v49, -inf  ;;  %v4591_v39 = vpop.permute.xlu1 %4590 }
 0x6ea   :  { %v7154_v44 = vmax.f32 %v7147_v53, %v15351_v51  ;;  %8634 = vrot.lane.b32.xlu0 %v15224_v22, %s8886_s28  ;;  %v15405_v51 = vpack.i.bf16 %v15234_v10, %v15229_v26  ;;  %v5035_v11 = vsel %vm1499_vm8, %v4495_v20, %v4591_v39 }
 0x6eb   :  { %8639 = vrot.lane.b32.xlu1 %v8638_v35, %s8889_s18 }
 0x6ec   :  { %v15381_v38 = vpop.permute.xlu0 %5786 }
 0x6ed   :  { %v5883_v56 = vpop.permute.xlu1 %5882 }
 0x6ee   :  { %4504 = vrot.lane.b32.xlu0 %v15280_v43, %s8890_s27  ;;  %v6309_v26 = vsel %vm1499_vm8, %v15381_v38, %v5883_v56 }
 0x6ef   :  { %4600 = vrot.lane.b32.xlu1 %v15389_v7, %s8884_s26 }
 0x6f0   :  { %v8545_v22 = vpop.permute.xlu0 %8544 }
 0x6f1   :  { %v4687_v31 = vpop.permute.xlu1 %4686  ;;  %v8546_v21 = vunpack.i.l.bf16 %v8545_v22  ;;  %v8547_v17 = vunpack.i.h.bf16 %v8545_v22 }
 0x6f2   :  { %5796 = vrot.lane.b32.xlu0 %v15287_v47, %s8890_s27  ;;  %v5068_v49 = vsel %vm5060_vm15, %v5035_v11, %v4687_v31  ;;  %v5329_v31 = vrot.slane %v15385_v50, 2 }
 0x6f3   :  { %5892 = vrot.lane.b32.xlu1 %v15385_v50, %s8884_s26  ;;  %v4937_v63 = vsel %vm4929_vm1, %v4904_v16, %v8546_v21  ;;  %v6213_v1 = vsel %vm4929_vm1, %v6181_v48, %v8547_v17 }
 0x6f4   :  { %v5979_v3 = vpop.permute.xlu0 %5978 }
 0x6f5   :  { %v8550_v5 = vpop.permute.xlu1 %8549  ;;  %v6897_v37 = vpop.f32.mrf.mxu1  ;;  %v6341_v22 = vsel %vm5060_vm15, %v6309_v26, %v5979_v3  ;;  %v15465_v26 = vld [vmem:[#allocation3 + $0xc8] sm:$0xff] }
 0x6f6   :  { %v8552_v58 = vunpack.i.h.bf16 %v8550_v5  ;;  %v8551_v24 = vunpack.i.l.bf16 %v8550_v5  ;;  %v6898_v30 = vadd.f32 %v15274_v27, %v6897_v37  ;;  %8644 = vrot.lane.b32.xlu0 %v8643_v14, %s8891_s25  ;;  %v15449_v14 = vsel %vm526_vm3, %v5329_v31, %v5330_v13 }
 0x6f7   :  { %4696 = vrot.lane.b32.xlu1 %v13060_v62, %s8892_s16  ;;  %v6899_v10 = vpop.f32.mrf.mxu1 }
 0x6f8   :  { %v7040_v35 = vmax.f32 %v6898_v30, 0.0  ;;  %v4783_v53 = vpop.permute.xlu0 %4782  ;;  %v4970_v8 = vsel %vm4962_vm7, %v4937_v63, %v8551_v24  ;;  %v6245_v0 = vsel %vm4962_vm7, %v6213_v1, %v8552_v58  ;;  %v8860_v1 = vld [vmem:[#allocation3 + $0x2b8] sm:$0xff] }
 0x6f9   :  { %v5101_v39 = vsel %vm5093_vm0, %v5068_v49, %v4783_v53  ;;  %v6075_v29 = vpop.permute.xlu1 %6074  ;;  %v5003_v56 = vsel %vm4995_vm9, %v4970_v8, %v4495_v20  ;;  %v6277_v45 = vsel %vm4995_vm9, %v6245_v0, %v15381_v38  ;;  %v8658_v38 = vpack.i.bf16 %v15181_v15, %v15174_v46  ;;  %v8859_v49 = vld [vmem:[#allocation3 + $0x60] sm:$0xff] }
 0x6fa   :  { %v7149_v55 = vsel %vm1631_vm11, %v7040_v35, -inf  ;;  %v6373_v57 = vsel %vm5093_vm0, %v6341_v22, %v6075_v29  ;;  %5988 = vrot.lane.b32.xlu0 %v15410_v41, %s8892_s16  ;;  %7699 = vmatprep.mubr.msk.f32.mxu0 %vm6418_vm5, %v5101_v39 }
 0x6fb   :  { %v15436_v21 = vmax.f32 %v7149_v55, %v7154_v44  ;;  %8649 = vrot.lane.b32.xlu1 %v15405_v51, %s8893_s4  ;;  %6711 = vmatmul.mubr.f32.gmra.mxu0 %v5003_v56  ;;  %v8663_v56 = vpack.i.bf16 %v15205_v54, %v15203_v9 }
 0x6fc   :  { %7745 = vmatprep.mubr.msk.f32.mxu1 %vm6418_vm5, %v6373_v57  ;;  %v8555_v20 = vpop.permute.xlu0 %8554  ;;  %v6902_v2 = vpop.f32.mrf.mxu1  ;;  %v15479_v57 = vpack.i.bf16 %v15328_v28, %v15323_v33 }
 0x6fd   :  { %v6903_v17 = vadd.f32 %v15274_v27, %v6902_v2  ;;  %6941 = vmatmul.mubr.f32.gmra.mxu1 %v6277_v45  ;;  %v8560_v3 = vpop.permute.xlu1 %8559  ;;  %v8556_v11 = vunpack.i.l.bf16 %v8555_v20  ;;  %v8557_v46 = vunpack.i.h.bf16 %v8555_v20 }
 0x6fe   :  { %4792 = vrot.lane.b32.xlu0 %v13093_v18, %s8894_s17  ;;  %v6904_v44 = vpop.f32.mrf.mxu1  ;;  %v8561_v63 = vunpack.i.l.bf16 %v8560_v3  ;;  %v8562_v53 = vunpack.i.h.bf16 %v8560_v3 }
 0x6ff   :  { %v7041_v5 = vmax.f32 %v6903_v17, 0.0  ;;  %6084 = vrot.lane.b32.xlu1 %v15449_v14, %s8894_s17  ;;  %v4872_v35 = vsel %vm1565_vm4, %v8859_v49, %v8556_v11  ;;  %v6150_v22 = vsel %vm1565_vm4, %v8860_v1, %v8557_v46 }
 0x700   :  { %v4497_v37 = vpop.permute.xlu0 %4496  ;;  %v4905_v31 = vsel %vm4896_vm14, %v4872_v35, %v8561_v63  ;;  %v6182_v45 = vsel %vm4896_vm14, %v6150_v22, %v8562_v53 }
 0x701   :  { %v15456_v16 = vsel %vm1631_vm11, %v7041_v5, -inf  ;;  %v4593_v58 = vpop.permute.xlu1 %4592 }
 0x702   :  { %v7158_v24 = vmax.f32 %v15456_v16, %v15436_v21  ;;  %8654 = vrot.lane.b32.xlu0 %v15318_v40, %s8886_s28  ;;  %v3855_v40 = vld [vmem:[#allocation3 + $0x328] sm:$0x3]  ;;  %v5036_v17 = vsel %vm1499_vm8, %v4497_v37, %v4593_v58 }
 0x703   :  { %8659 = vrot.lane.b32.xlu1 %v8658_v38, %s8889_s18  ;;  %v5252_v55 = vrot.slane %v3855_v40, 1  ;;  %v5332_v49 = vrot.slane %v3855_v40, 2 }
 0x704   :  { %v5789_v30 = vpop.permute.xlu0 %5788 }
 0x705   :  { %v5885_v48 = vpop.permute.xlu1 %5884  ;;  %v15490_v9 = vsel %vm445_vm2, %v5250_v19, %v5252_v55 }
 0x706   :  { %4506 = vrot.lane.b32.xlu0 %v15363_v60, %s8890_s27  ;;  %v6310_v33 = vsel %vm1499_vm8, %v5789_v30, %v5885_v48 }
 0x707   :  { %4602 = vrot.lane.b32.xlu1 %v15465_v26, %s8884_s26 }
 0x708   :  { %v8565_v15 = vpop.permute.xlu0 %8564 }
 0x709   :  { %v4689_v10 = vpop.permute.xlu1 %4688  ;;  %v8566_v8 = vunpack.i.l.bf16 %v8565_v15  ;;  %v8567_v39 = vunpack.i.h.bf16 %v8565_v15 }
 0x70a   :  { %5798 = vrot.lane.b32.xlu0 %v15370_v34, %s8890_s27  ;;  %v5069_v28 = vsel %vm5060_vm15, %v5036_v17, %v4689_v10  ;;  %v8862_v17 = vld [vmem:[#allocation3 + $0x68] sm:$0xff] }
 0x70b   :  { %5894 = vrot.lane.b32.xlu1 %v15387_v4, %s8884_s26  ;;  %v4938_v54 = vsel %vm4929_vm1, %v4905_v31, %v8566_v8  ;;  %v6214_v5 = vsel %vm4929_vm1, %v6182_v45, %v8567_v39  ;;  %v15516_v39 = vsel %vm526_vm3, %v5330_v13, %v5332_v49  ;;  %v15542_v45 = vld [vmem:[#allocation3 + $0x338] sm:$0xff] }
 0x70c   :  { %v5981_v29 = vpop.permute.xlu0 %5980 }
 0x70d   :  { %v8570_v0 = vpop.permute.xlu1 %8569  ;;  %v6342_v38 = vsel %vm5060_vm15, %v6310_v33, %v5981_v29 }
 0x70e   :  { %v8572_v20 = vunpack.i.h.bf16 %v8570_v0  ;;  %v8571_v2 = vunpack.i.l.bf16 %v8570_v0  ;;  %8664 = vrot.lane.b32.xlu0 %v8663_v56, %s8891_s25  ;;  %v8678_v0 = vpack.i.bf16 %v15287_v47, %v15280_v43 }
 0x70f   :  { %4698 = vrot.lane.b32.xlu1 %v13073_v52, %s8892_s16 }
 0x710   :  { %v4785_v3 = vpop.permute.xlu0 %4784  ;;  %v4971_v44 = vsel %vm4962_vm7, %v4938_v54, %v8571_v2  ;;  %v6246_v19 = vsel %vm4962_vm7, %v6214_v5, %v8572_v20 }
 0x711   :  { %v5102_v58 = vsel %vm5093_vm0, %v5069_v28, %v4785_v3  ;;  %v6077_v11 = vpop.permute.xlu1 %6076  ;;  %v5004_v46 = vsel %vm4995_vm9, %v4971_v44, %v4497_v37  ;;  %v6278_v37 = vsel %vm4995_vm9, %v6246_v19, %v5789_v30  ;;  %v5338_v28 = vrot.slane %v15542_v45, 1  ;;  %v8863_v3 = vld [vmem:[#allocation3 + $0x2c0] sm:$0xff] }
 0x712   :  { %v6374_v15 = vsel %vm5093_vm0, %v6342_v38, %v6077_v11  ;;  %5990 = vrot.lane.b32.xlu0 %v15490_v9, %s8892_s16  ;;  %7700 = vmatprep.mubr.msk.f32.mxu0 %vm6418_vm5, %v5102_v58  ;;  %v8683_v58 = vpack.i.bf16 %v15385_v50, %v15389_v7 }
 0x713   :  { %8669 = vrot.lane.b32.xlu1 %v15479_v57, %s8893_s4  ;;  %v6677_v48 = vpop.f32.mrf.mxu0  ;;  %6716 = vmatmul.mubr.f32.gmra.mxu0 %v5004_v46  ;;  %v8688_v46 = vpack.i.bf16 %v15410_v41, %v13060_v62 }
 0x714   :  { %v6678_v10 = vadd.f32 %v15274_v27, %v6677_v48  ;;  %7746 = vmatprep.mubr.msk.f32.mxu1 %vm6418_vm5, %v6374_v15  ;;  %v8575_v63 = vpop.permute.xlu0 %8574 }
 0x715   :  { %v6907_v35 = vpop.f32.mrf.mxu1  ;;  %6946 = vmatmul.mubr.f32.gmra.mxu1 %v6278_v37  ;;  %v8580_v53 = vpop.permute.xlu1 %8579  ;;  %v8576_v32 = vunpack.i.l.bf16 %v8575_v63  ;;  %v8577_v47 = vunpack.i.h.bf16 %v8575_v63 }
 0x716   :  { %v6996_v8 = vmax.f32 %v6678_v10, 0.0  ;;  %v6908_v1 = vadd.f32 %v15274_v27, %v6907_v35  ;;  %v6679_v22 = vpop.f32.mrf.mxu0  ;;  %4794 = vrot.lane.b32.xlu0 %v13104_v25, %s8894_s17  ;;  %v8581_v16 = vunpack.i.l.bf16 %v8580_v53  ;;  %v8582_v54 = vunpack.i.h.bf16 %v8580_v53 }
 0x717   :  { %v6909_v29 = vpop.f32.mrf.mxu1  ;;  %6086 = vrot.lane.b32.xlu1 %v15516_v39, %s8894_s17  ;;  %v6151_v44 = vsel %vm1565_vm4, %v8863_v3, %v8577_v47 }
 0x718   :  { %v7060_v30 = vsel %vm1631_vm11, %v6996_v8, -inf  ;;  %v7042_v40 = vmax.f32 %v6908_v1, 0.0  ;;  %v4499_v56 = vpop.permute.xlu0 %4498  ;;  %v6183_v10 = vsel %vm4896_vm14, %v6151_v44, %v8582_v54  ;;  %v8698_v54 = vpack.i.bf16 %v15370_v34, %v15363_v60  ;;  %v8864_v34 = vld [vmem:[#allocation3 + $0xe0] sm:$0xff] }
 0x719   :  { %v15526_v55 = vmax.f32 %v7091_v61, %v7060_v30  ;;  %v4595_v31 = vpop.permute.xlu1 %4594  ;;  %v15540_v61 = vld [vmem:[#allocation3 + $0x330] sm:$0xff] }
 0x71a   :  { %v7153_v13 = vsel %vm1631_vm11, %v7042_v40, -inf  ;;  %8674 = vrot.lane.b32.xlu0 %v15405_v51, %s8886_s28  ;;  %v5037_v63 = vsel %vm1499_vm8, %v4499_v56, %v4595_v31  ;;  %v5342_v30 = vrot.slane %v15540_v61, 2 }
 0x71b   :  { %v15534_v20 = vmax.f32 %v7153_v13, %v7158_v24  ;;  %8679 = vrot.lane.b32.xlu1 %v8678_v0, %s8889_s18  ;;  %v5337_v24 = vrot.slane %v15540_v61, 1  ;;  %v5343_v0 = vrot.slane %v15542_v45, 2 }
 0x71c   :  { %v5791_v2 = vpop.permute.xlu0 %5790 }
 0x71d   :  { %v5887_v43 = vpop.permute.xlu1 %5886  ;;  %v15565_v50 = vsel %vm445_vm2, %v5337_v24, %v5338_v28 }
 0x71e   :  { %4508 = vrot.lane.b32.xlu0 %v13093_v18, %s8890_s27  ;;  %v4873_v18 = vsel %vm1565_vm4, %v8862_v17, %v8576_v32  ;;  %v6311_v7 = vsel %vm1499_vm8, %v5791_v2, %v5887_v43 }
 0x71f   :  { %4604 = vrot.lane.b32.xlu1 %v8861_v6, %s8884_s26  ;;  %v4906_v19 = vsel %vm4896_vm14, %v4873_v18, %v8581_v16  ;;  %v15592_v16 = vsel %vm526_vm3, %v5342_v30, %v5343_v0 }
 0x720   :  { %v8585_v51 = vpop.permute.xlu0 %8584 }
 0x721   :  { %v4691_v21 = vpop.permute.xlu1 %4690  ;;  %v8586_v33 = vunpack.i.l.bf16 %v8585_v51  ;;  %v8587_v5 = vunpack.i.h.bf16 %v8585_v51 }
 0x722   :  { %5800 = vrot.lane.b32.xlu0 %v15449_v14, %s8890_s27  ;;  %v5070_v37 = vsel %vm5060_vm15, %v5037_v63, %v4691_v21 }
 0x723   :  { %5896 = vrot.lane.b32.xlu1 %v15540_v61, %s8884_s26  ;;  %v4939_v62 = vsel %vm4929_vm1, %v4906_v19, %v8586_v33  ;;  %v6215_v53 = vsel %vm4929_vm1, %v6183_v10, %v8587_v5 }
 0x724   :  { %v5983_v38 = vpop.permute.xlu0 %5982 }
 0x725   :  { %v8590_v11 = vpop.permute.xlu1 %8589  ;;  %v6343_v8 = vsel %vm5060_vm15, %v6311_v7, %v5983_v38 }
 0x726   :  { %v8592_v15 = vunpack.i.h.bf16 %v8590_v11  ;;  %v8591_v48 = vunpack.i.l.bf16 %v8590_v11  ;;  %8684 = vrot.lane.b32.xlu0 %v8683_v58, %s8891_s25 }
 0x727   :  { %4700 = vrot.lane.b32.xlu1 %v13195_v12, %s8892_s16 }
 0x728   :  { %v4787_v49 = vpop.permute.xlu0 %4786  ;;  %v4972_v35 = vsel %vm4962_vm7, %v4939_v62, %v8591_v48  ;;  %v6247_v29 = vsel %vm4962_vm7, %v6215_v53, %v8592_v15  ;;  %v8865_v15 = vld [vmem:[#allocation3 + $0x78] sm:$0xff] }
 0x729   :  { %v5103_v12 = vsel %vm5093_vm0, %v5070_v37, %v4787_v49  ;;  %v6079_v1 = vpop.permute.xlu1 %6078  ;;  %v5005_v22 = vsel %vm4995_vm9, %v4972_v35, %v4499_v56  ;;  %v6279_v43 = vsel %vm4995_vm9, %v6247_v29, %v5791_v2  ;;  %v8703_v49 = vpack.i.bf16 %v15387_v4, %v15465_v26 }
 0x72a   :  { %v6375_v40 = vsel %vm5093_vm0, %v6343_v8, %v6079_v1  ;;  %5992 = vrot.lane.b32.xlu0 %v15565_v50, %s8892_s16  ;;  %7701 = vmatprep.mubr.msk.f32.mxu0 %vm6418_vm5, %v5103_v12  ;;  %v8708_v8 = vpack.i.bf16 %v15490_v9, %v13073_v52 }
 0x72b   :  { %8689 = vrot.lane.b32.xlu1 %v8688_v46, %s8893_s4  ;;  %v6682_v31 = vpop.f32.mrf.mxu0  ;;  %6721 = vmatmul.mubr.f32.gmra.mxu0 %v5005_v22 }
 0x72c   :  { %v6683_v13 = vadd.f32 %v15274_v27, %v6682_v31  ;;  %7747 = vmatprep.mubr.msk.f32.mxu1 %vm6418_vm5, %v6375_v40  ;;  %v8595_v56 = vpop.permute.xlu0 %8594 }
 0x72d   :  { %v6912_v32 = vpop.f32.mrf.mxu1  ;;  %6951 = vmatmul.mubr.f32.gmra.mxu1 %v6279_v43  ;;  %v8600_v6 = vpop.permute.xlu1 %8599  ;;  %v8596_v60 = vunpack.i.l.bf16 %v8595_v56  ;;  %v8597_v58 = vunpack.i.h.bf16 %v8595_v56 }
 0x72e   :  { %v6997_v47 = vmax.f32 %v6683_v13, 0.0  ;;  %v6913_v51 = vadd.f32 %v15274_v27, %v6912_v32  ;;  %v6684_v21 = vpop.f32.mrf.mxu0  ;;  %4796 = vrot.lane.b32.xlu0 %v13163_v23, %s8894_s17  ;;  %v8601_v19 = vunpack.i.l.bf16 %v8600_v6  ;;  %v8602_v10 = vunpack.i.h.bf16 %v8600_v6 }
 0x72f   :  { %v6914_v24 = vpop.f32.mrf.mxu1  ;;  %6088 = vrot.lane.b32.xlu1 %v15592_v16, %s8894_s17  ;;  %v4874_v48 = vsel %vm1565_vm4, %v8865_v15, %v8596_v60  ;;  %v8718_v15 = vpack.i.bf16 %v15516_v39, %v15449_v14 }
 0x730   :  { %v15597_v2 = vsel %vm1631_vm11, %v6997_v47, -inf  ;;  %v7043_v17 = vmax.f32 %v6913_v51, 0.0  ;;  %v4501_v18 = vpop.permute.xlu0 %4500  ;;  %v4907_v12 = vsel %vm4896_vm14, %v4874_v48, %v8601_v19  ;;  %v3859_v48 = vld [vmem:[#allocation3 + $0x348] sm:$0xff] }
 0x731   :  { %v7107_v23 = vmax.f32 %v15526_v55, %v15597_v2  ;;  %v4597_v33 = vpop.permute.xlu1 %4596 }
 0x732   :  { %v15604_v3 = vsel %vm1631_vm11, %v7043_v17, -inf  ;;  %8694 = vrot.lane.b32.xlu0 %v15479_v57, %s8886_s28  ;;  %v3858_v57 = vld [vmem:[#allocation3 + $0x340] sm:$0x3]  ;;  %v5038_v30 = vsel %vm1499_vm8, %v4501_v18, %v4597_v33 }
 0x733   :  { %v7162_v44 = vmax.f32 %v15604_v3, %v15534_v20  ;;  %8699 = vrot.lane.b32.xlu1 %v8698_v54, %s8889_s18  ;;  %v5340_v53 = vrot.slane %v3858_v57, 1  ;;  %v5355_v20 = vrot.slane %v3859_v48, 2 }
 0x734   :  { %v5793_v5 = vpop.permute.xlu0 %5792 }
 0x735   :  { %v5889_v38 = vpop.permute.xlu1 %5888  ;;  %v15633_v4 = vsel %vm445_vm2, %v5338_v28, %v5340_v53 }
 0x736   :  { %4510 = vrot.lane.b32.xlu0 %v13104_v25, %s8890_s27  ;;  %v8866_v25 = vld [vmem:[#allocation3 + $0x2d0] sm:$0xff]  ;;  %v6312_v26 = vsel %vm1499_vm8, %v5793_v5, %v5889_v38 }
 0x737   :  { %4606 = vrot.lane.b32.xlu1 %v8864_v34, %s8884_s26  ;;  %v6152_v62 = vsel %vm1565_vm4, %v8866_v25, %v8597_v58 }
 0x738   :  { %v8605_v11 = vpop.permute.xlu0 %8604  ;;  %v6184_v29 = vsel %vm4896_vm14, %v6152_v62, %v8602_v10  ;;  %v15672_v10 = vld [vmem:[#allocation3 + $0x350] sm:$0xff] }
 0x739   :  { %v4693_v46 = vpop.permute.xlu1 %4692  ;;  %v8606_v63 = vunpack.i.l.bf16 %v8605_v11  ;;  %v8607_v7 = vunpack.i.h.bf16 %v8605_v11  ;;  %v5356_v62 = vrot.slane %v15672_v10, 2 }
 0x73a   :  { %5802 = vrot.lane.b32.xlu0 %v15516_v39, %s8890_s27  ;;  %v5071_v40 = vsel %vm5060_vm15, %v5038_v30, %v4693_v46  ;;  %v5351_v39 = vrot.slane %v15672_v10, 1 }
 0x73b   :  { %5898 = vrot.lane.b32.xlu1 %v15542_v45, %s8884_s26  ;;  %v4940_v52 = vsel %vm4929_vm1, %v4907_v12, %v8606_v63  ;;  %v6216_v56 = vsel %vm4929_vm1, %v6184_v29, %v8607_v7 }
 0x73c   :  { %v5985_v37 = vpop.permute.xlu0 %5984 }
 0x73d   :  { %v8610_v35 = vpop.permute.xlu1 %8609  ;;  %v6344_v43 = vsel %vm5060_vm15, %v6312_v26, %v5985_v37 }
 0x73e   :  { %v8612_v1 = vunpack.i.h.bf16 %v8610_v35  ;;  %v8611_v22 = vunpack.i.l.bf16 %v8610_v35  ;;  %8704 = vrot.lane.b32.xlu0 %v8703_v49, %s8891_s25  ;;  %v8867_v49 = vld [vmem:[#allocation3 + $0x80] sm:$0xff] }
 0x73f   :  { %4702 = vrot.lane.b32.xlu1 %v13198_v59, %s8892_s16 }
 0x740   :  { %v4789_v31 = vpop.permute.xlu0 %4788  ;;  %v4973_v13 = vsel %vm4962_vm7, %v4940_v52, %v8611_v22  ;;  %v6248_v28 = vsel %vm4962_vm7, %v6216_v56, %v8612_v1  ;;  %v5357_v1 = vsel %vm526_vm3, %v5355_v20, %v5356_v62  ;;  %v3861_v22 = vld [vmem:[#allocation3 + $0x358] sm:$0x3] }
 0x741   :  { %v5104_v59 = vsel %vm5093_vm0, %v5071_v40, %v4789_v31  ;;  %v6081_v32 = vpop.permute.xlu1 %6080  ;;  %v5006_v6 = vsel %vm4995_vm9, %v4973_v13, %v4501_v18  ;;  %v6280_v17 = vsel %vm4995_vm9, %v6248_v28, %v5793_v5  ;;  %v5345_v18 = vrot.slane %v3858_v57, 2 }
 0x742   :  { %v6376_v47 = vsel %vm5093_vm0, %v6344_v43, %v6081_v32  ;;  %5994 = vrot.lane.b32.xlu0 %v15633_v4, %s8892_s16  ;;  %7702 = vmatprep.mubr.msk.f32.mxu0 %vm6418_vm5, %v5104_v59  ;;  %v8713_v5 = vpack.i.bf16 %v15490_v9, %v15410_v41  ;;  %v5350_v9 = vrot.slane %v3859_v48, 1  ;;  %v5353_v56 = vrot.slane %v3861_v22, 1 }
 0x743   :  { %8709 = vrot.lane.b32.xlu1 %v8708_v8, %s8893_s4  ;;  %v6687_v51 = vpop.f32.mrf.mxu0  ;;  %6726 = vmatmul.mubr.f32.gmra.mxu0 %v5006_v6  ;;  %v15658_v58 = vsel %vm526_vm3, %v5343_v0, %v5345_v18  ;;  %v8868_v8 = vld [vmem:[#allocation3 + $0x2d8] sm:$0xff] }
 0x744   :  { %v6688_v21 = vadd.f32 %v15274_v27, %v6687_v51  ;;  %7748 = vmatprep.mubr.msk.f32.mxu1 %vm6418_vm5, %v6376_v47  ;;  %v8615_v24 = vpop.permute.xlu0 %8614 }
 0x745   :  { %v6917_v54 = vpop.f32.mrf.mxu1  ;;  %6956 = vmatmul.mubr.f32.gmra.mxu1 %v6280_v17  ;;  %v8620_v33 = vpop.permute.xlu1 %8619  ;;  %v8616_v2 = vunpack.i.l.bf16 %v8615_v24  ;;  %v8617_v25 = vunpack.i.h.bf16 %v8615_v24 }
 0x746   :  { %v6998_v38 = vmax.f32 %v6688_v21, 0.0  ;;  %v6918_v60 = vadd.f32 %v15274_v27, %v6917_v54  ;;  %v6689_v34 = vpop.f32.mrf.mxu0  ;;  %4798 = vrot.lane.b32.xlu0 %v13235_v36, %s8894_s17  ;;  %v8621_v37 = vunpack.i.l.bf16 %v8620_v33  ;;  %v8622_v35 = vunpack.i.h.bf16 %v8620_v33 }
 0x747   :  { %v6919_v11 = vpop.f32.mrf.mxu1  ;;  %6090 = vrot.lane.b32.xlu1 %v15658_v58, %s8894_s17  ;;  %v5354_v54 = vsel %vm445_vm2, %v5351_v39, %v5353_v56  ;;  %v5358_v33 = vrot.slane %v3861_v22, 2 }
 0x748   :  { %v7062_v46 = vsel %vm1631_vm11, %v6998_v38, -inf  ;;  %v7044_v19 = vmax.f32 %v6918_v60, 0.0  ;;  %v4503_v57 = vpop.permute.xlu0 %4502 }
 0x749   :  { %v15670_v36 = vmax.f32 %v7107_v23, %v7062_v46  ;;  %v4599_v0 = vpop.permute.xlu1 %4598  ;;  %v8723_v23 = vpack.i.bf16 %v15542_v45, %v15540_v61  ;;  %v6153_v61 = vsel %vm1565_vm4, %v8868_v8, %v8617_v25 }
 0x74a   :  { %v7157_v63 = vsel %vm1631_vm11, %v7044_v19, -inf  ;;  %8714 = vrot.lane.b32.xlu0 %v8713_v5, %s8886_s28  ;;  %v6185_v40 = vsel %vm4896_vm14, %v6153_v61, %v8622_v35  ;;  %v5039_v31 = vsel %vm1499_vm8, %v4503_v57, %v4599_v0 }
 0x74b   :  { %v15679_v41 = vmax.f32 %v7157_v63, %v7162_v44  ;;  %8719 = vrot.lane.b32.xlu1 %v8718_v15, %s8889_s18  ;;  %v5352_v44 = vsel %vm445_vm2, %v5350_v9, %v5351_v39  ;;  %v5359_v15 = vsel %vm526_vm3, %v5356_v62, %v5358_v33  ;;  %v8869_v62 = vld [vmem:[#allocation3 + $0x2e8] sm:$0xff]  ;;  %vm8895_vm2 = vmmov 0  }
 0x74c   :  { %v5795_v14 = vpop.permute.xlu0 %5794  ;;  %vm7198_vm3 = vcmask 1040384  }
 0x74d   :  { %v5891_v55 = vpop.permute.xlu1 %5890 }
 0x74e   :  { %5804 = vrot.lane.b32.xlu0 %v15592_v16, %s8890_s27  ;;  %v4875_v16 = vsel %vm1565_vm4, %v8867_v49, %v8616_v2  ;;  %v6313_v43 = vsel %vm1499_vm8, %v5795_v14, %v5891_v55 }
 0x74f   :  { %5900 = vrot.lane.b32.xlu1 %v3859_v48, %s8884_s26  ;;  %v4908_v30 = vsel %vm4896_vm14, %v4875_v16, %v8621_v37  ;;  %v8870_v37 = vld [vmem:[#allocation3 + $0x90] sm:$0xff] }
 0x750   :  { %v8625_v3 = vpop.permute.xlu0 %8624 }
 0x751   :  { %v4695_v7 = vpop.permute.xlu1 %4694  ;;  %v8626_v53 = vunpack.i.l.bf16 %v8625_v3  ;;  %v8627_v45 = vunpack.i.h.bf16 %v8625_v3 }
 0x752   :  { %8724 = vrot.lane.b32.xlu0 %v8723_v23, %s8891_s25  ;;  %v5072_v59 = vsel %vm5060_vm15, %v5039_v31, %v4695_v7 }
 0x753   :  { %5996 = vrot.lane.b32.xlu1 %v5352_v44, %s8892_s16  ;;  %v4941_v13 = vsel %vm4929_vm1, %v4908_v30, %v8626_v53  ;;  %v6217_v28 = vsel %vm4929_vm1, %v6185_v40, %v8627_v45 }
 0x754   :  { %v5987_v12 = vpop.permute.xlu0 %5986 }
 0x755   :  { %v8630_v29 = vpop.permute.xlu1 %8629 }
 0x756   :  { %v8632_v52 = vunpack.i.h.bf16 %v8630_v29  ;;  %v8631_v26 = vunpack.i.l.bf16 %v8630_v29  ;;  %5708 = vrot.lane.b32.xlu0 %v15565_v50, %s8893_s4  ;;  %v6345_v50 = vsel %vm5060_vm15, %v6313_v43, %v5987_v12 }
 0x757   :  { %6092 = vrot.lane.b32.xlu1 %v5357_v1, %s8894_s17 }
 0x758   :  { %v4791_v32 = vpop.permute.xlu0 %4790  ;;  %v4974_v6 = vsel %vm4962_vm7, %v4941_v13, %v8631_v26  ;;  %v6249_v24 = vsel %vm4962_vm7, %v6217_v28, %v8632_v52 }
 0x759   :  { %v5105_v47 = vsel %vm5093_vm0, %v5072_v59, %v4791_v32  ;;  %v6083_v51 = vpop.permute.xlu1 %6082  ;;  %v5007_v21 = vsel %vm4995_vm9, %v4974_v6, %v4503_v57  ;;  %v6281_v34 = vsel %vm4995_vm9, %v6249_v24, %v5795_v14  ;;  %v15752_v24 = vld [vmem:[%s16009_s5] ss:$0 sm:$0xff] }
 0x75a   :  { %v6377_v17 = vsel %vm5093_vm0, %v6345_v50, %v6083_v51  ;;  %5806 = vrot.lane.b32.xlu0 %v15658_v58, %s8890_s27  ;;  %7703 = vmatprep.mubr.msk.f32.mxu0 %vm6418_vm5, %v5105_v47 }
 0x75b   :  { %5902 = vrot.lane.b32.xlu1 %v15672_v10, %s8884_s26  ;;  %v6692_v18 = vpop.f32.mrf.mxu0  ;;  %6731 = vmatmul.mubr.f32.gmra.mxu0 %v5007_v21 }
 0x75c   :  { %v6693_v38 = vadd.f32 %v15274_v27, %v6692_v18  ;;  %7749 = vmatprep.mubr.msk.f32.mxu1 %vm6418_vm5, %v6377_v17  ;;  %v8635_v60 = vpop.permute.xlu0 %8634 }
 0x75d   :  { %v6922_v11 = vpop.f32.mrf.mxu1  ;;  %6961 = vmatmul.mubr.f32.gmra.mxu1 %v6281_v34  ;;  %v8640_v58 = vpop.permute.xlu1 %8639  ;;  %v8637_v23 = vunpack.i.h.bf16 %v8635_v60  ;;  %v8636_v25 = vunpack.i.l.bf16 %v8635_v60 }
 0x75e   :  { %v6999_v5 = vmax.f32 %v6693_v38, 0.0  ;;  %v6923_v46 = vadd.f32 %v15274_v27, %v6922_v11  ;;  %v6694_v19 = vpop.f32.mrf.mxu0  ;;  %5998 = vrot.lane.b32.xlu0 %v5354_v54, %s8892_s16  ;;  %v8642_v3 = vunpack.i.h.bf16 %v8640_v58  ;;  %v8641_v44 = vunpack.i.l.bf16 %v8640_v58 }
 0x75f   :  { %v6924_v57 = vpop.f32.mrf.mxu1  ;;  %5710 = vrot.lane.b32.xlu1 %v15633_v4, %s8893_s4  ;;  %v6154_v7 = vsel %vm1565_vm4, %v8869_v62, %v8637_v23 }
 0x760   :  { %v7063_v0 = vsel %vm1631_vm11, %v6999_v5, -inf  ;;  %v7045_v48 = vmax.f32 %v6923_v46, 0.0  ;;  %v4505_v10 = vpop.permute.xlu0 %4504 }
 0x761   :  { %v7120_v63 = vmax.f32 %v7063_v0, %v15670_v36  ;;  %v4601_v14 = vpop.permute.xlu1 %4600  ;;  %v4876_v36 = vsel %vm1565_vm4, %v8870_v37, %v8636_v25 }
 0x762   :  { %v7159_v9 = vsel %vm1631_vm11, %v7045_v48, -inf  ;;  %6094 = vrot.lane.b32.xlu0 %v5359_v15, %s8894_s17  ;;  %v4909_v8 = vsel %vm4896_vm14, %v4876_v36, %v8641_v44  ;;  %v5040_v12 = vsel %vm1499_vm8, %v4505_v10, %v4601_v14  ;;  %v8872_v14 = vld [vmem:[#allocation3 + $0x2f0] sm:$0xff] }
 0x763   :  { %v7166_v39 = vmax.f32 %v7159_v9, %v15679_v41  ;;  %v6186_v41 = vsel %vm4896_vm14, %v6154_v7, %v8642_v3 }
 0x764   :  { %v5797_v55 = vpop.permute.xlu0 %5796 }
 0x765   :  { %v5893_v2 = vpop.permute.xlu1 %5892 }
 0x766   :  { %v6314_v29 = vsel %vm1499_vm8, %v5797_v55, %v5893_v2 }
 0x768   :  { %v8645_v4 = vpop.permute.xlu0 %8644 }
 0x769   :  { %v4697_v20 = vpop.permute.xlu1 %4696  ;;  %v8647_v49 = vunpack.i.h.bf16 %v8645_v4  ;;  %v8646_v16 = vunpack.i.l.bf16 %v8645_v4 }
 0x76a   :  { %v5073_v30 = vsel %vm5060_vm15, %v5040_v12, %v4697_v20 }
 0x76b   :  { %v4942_v1 = vsel %vm4929_vm1, %v4909_v8, %v8646_v16  ;;  %v6218_v22 = vsel %vm4929_vm1, %v6186_v41, %v8647_v49 }
 0x76c   :  { %v5989_v35 = vpop.permute.xlu0 %5988 }
 0x76d   :  { %v8650_v53 = vpop.permute.xlu1 %8649  ;;  %v6346_v31 = vsel %vm5060_vm15, %v6314_v29, %v5989_v35 }
 0x76e   :  { %v8652_v61 = vunpack.i.h.bf16 %v8650_v53  ;;  %v8651_v45 = vunpack.i.l.bf16 %v8650_v53 }
 0x770   :  { %v4793_v52 = vpop.permute.xlu0 %4792  ;;  %v4975_v26 = vsel %vm4962_vm7, %v4942_v1, %v8651_v45  ;;  %v6250_v40 = vsel %vm4962_vm7, %v6218_v22, %v8652_v61 }
 0x771   :  { %v5106_v13 = vsel %vm5093_vm0, %v5073_v30, %v4793_v52  ;;  %v6085_v56 = vpop.permute.xlu1 %6084  ;;  %v5008_v43 = vsel %vm4995_vm9, %v4975_v26, %v4505_v10  ;;  %v6282_v6 = vsel %vm4995_vm9, %v6250_v40, %v5797_v55  ;;  %v8873_v55 = vld [vmem:[#allocation3 + $0x98] sm:$0xff] }
 0x772   :  { %v6378_v59 = vsel %vm5093_vm0, %v6346_v31, %v6085_v56  ;;  %7704 = vmatprep.mubr.msk.f32.mxu0 %vm6418_vm5, %v5106_v13 }
 0x773   :  { %v6697_v32 = vpop.f32.mrf.mxu0  ;;  %6736 = vmatmul.mubr.f32.gmra.mxu0 %v5008_v43  ;;  %7750 = vmatprep.mubr.msk.f32.mxu1 %vm6418_vm5, %v6378_v59 }
 0x774   :  { %v6698_v28 = vadd.f32 %v15274_v27, %v6697_v32  ;;  %v8655_v50 = vpop.permute.xlu0 %8654  ;;  %6966 = vmatmul.mubr.f32.gmra.mxu1 %v6282_v6 }
 0x775   :  { %v6927_v47 = vpop.f32.mrf.mxu1  ;;  %v8660_v51 = vpop.permute.xlu1 %8659  ;;  %v8657_v19 = vunpack.i.h.bf16 %v8655_v50  ;;  %v8656_v57 = vunpack.i.l.bf16 %v8655_v50 }
 0x776   :  { %v7000_v21 = vmax.f32 %v6698_v28, 0.0  ;;  %v6928_v17 = vadd.f32 %v15752_v24, %v6927_v47  ;;  %v6699_v18 = vpop.f32.mrf.mxu0  ;;  %v8662_v48 = vunpack.i.h.bf16 %v8660_v51  ;;  %v8661_v10 = vunpack.i.l.bf16 %v8660_v51 }
 0x777   :  { %v6929_v54 = vpop.f32.mrf.mxu1  ;;  %v6155_v9 = vsel %vm1565_vm4, %v8872_v14, %v8657_v19 }
 0x778   :  { %v7064_v33 = vsel %vm1631_vm11, %v7000_v21, -inf  ;;  %v7046_v38 = vmax.f32 %v6928_v17, 0.0  ;;  %v4507_v60 = vpop.permute.xlu0 %4506 }
 0x779   :  { %v15756_v34 = vmax.f32 %v7064_v33, %v7120_v63  ;;  %v4603_v27 = vpop.permute.xlu1 %4602  ;;  %v4877_v63 = vsel %vm1565_vm4, %v8873_v55, %v8656_v57 }
 0x77a   :  { %v7161_v11 = vsel %vm1631_vm11, %v7046_v38, -inf  ;;  %v4910_v20 = vsel %vm4896_vm14, %v4877_v63, %v8661_v10  ;;  %v5041_v62 = vsel %vm1499_vm8, %v4507_v60, %v4603_v27  ;;  %v8874_v27 = vld [vmem:[#allocation3 + $0x300] sm:$0xff] }
 0x77b   :  { %v15759_v58 = vmax.f32 %v7161_v11, %v7166_v39  ;;  %v6187_v39 = vsel %vm4896_vm14, %v6155_v9, %v8662_v48 }
 0x77c   :  { %v5799_v5 = vpop.permute.xlu0 %5798 }
 0x77d   :  { %v5895_v46 = vpop.permute.xlu1 %5894 }
 0x77e   :  { %v6315_v36 = vsel %vm1499_vm8, %v5799_v5, %v5895_v46 }
 0x780   :  { %v8665_v15 = vpop.permute.xlu0 %8664 }
 0x781   :  { %v4699_v0 = vpop.permute.xlu1 %4698  ;;  %v8667_v2 = vunpack.i.h.bf16 %v8665_v15  ;;  %v8666_v23 = vunpack.i.l.bf16 %v8665_v15 }
 0x782   :  { %v5074_v49 = vsel %vm5060_vm15, %v5041_v62, %v4699_v0 }
 0x783   :  { %v4943_v7 = vsel %vm4929_vm1, %v4910_v20, %v8666_v23  ;;  %v6219_v37 = vsel %vm4929_vm1, %v6187_v39, %v8667_v2 }
 0x784   :  { %v5991_v25 = vpop.permute.xlu0 %5990 }
 0x785   :  { %v8670_v4 = vpop.permute.xlu1 %8669  ;;  %v6347_v41 = vsel %vm5060_vm15, %v6315_v36, %v5991_v25 }
 0x786   :  { %v8672_v3 = vunpack.i.h.bf16 %v8670_v4  ;;  %v8671_v44 = vunpack.i.l.bf16 %v8670_v4 }
 0x788   :  { %v4795_v16 = vpop.permute.xlu0 %4794  ;;  %v4976_v35 = vsel %vm4962_vm7, %v4943_v7, %v8671_v44  ;;  %v6251_v53 = vsel %vm4962_vm7, %v6219_v37, %v8672_v3 }
 0x789   :  { %v5107_v8 = vsel %vm5093_vm0, %v5074_v49, %v4795_v16  ;;  %v6087_v61 = vpop.permute.xlu1 %6086  ;;  %v5009_v45 = vsel %vm4995_vm9, %v4976_v35, %v4507_v60  ;;  %v6283_v22 = vsel %vm4995_vm9, %v6251_v53, %v5799_v5  ;;  %v8875_v5 = vld [vmem:[#allocation3 + $0xa8] sm:$0xff] }
 0x78a   :  { %v6379_v12 = vsel %vm5093_vm0, %v6347_v41, %v6087_v61  ;;  %7705 = vmatprep.mubr.msk.f32.mxu0 %vm6418_vm5, %v5107_v8 }
 0x78b   :  { %v6702_v1 = vpop.f32.mrf.mxu0  ;;  %6741 = vmatmul.mubr.f32.gmra.mxu0 %v5009_v45  ;;  %7751 = vmatprep.mubr.msk.f32.mxu1 %vm6418_vm5, %v6379_v12 }
 0x78c   :  { %v6703_v29 = vadd.f32 %v15752_v24, %v6702_v1  ;;  %v8675_v30 = vpop.permute.xlu0 %8674  ;;  %6971 = vmatmul.mubr.f32.gmra.mxu1 %v6283_v22 }
 0x78d   :  { %v6932_v52 = vpop.f32.mrf.mxu1  ;;  %v8680_v26 = vpop.permute.xlu1 %8679  ;;  %v8677_v17 = vunpack.i.h.bf16 %v8675_v30  ;;  %v8676_v18 = vunpack.i.l.bf16 %v8675_v30 }
 0x78e   :  { %v7001_v40 = vmax.f32 %v6703_v29, 0.0  ;;  %v6933_v31 = vadd.f32 %v15752_v24, %v6932_v52  ;;  %v6704_v13 = vpop.f32.mrf.mxu0  ;;  %v8682_v38 = vunpack.i.h.bf16 %v8680_v26  ;;  %v8681_v60 = vunpack.i.l.bf16 %v8680_v26 }
 0x78f   :  { %v6934_v56 = vpop.f32.mrf.mxu1  ;;  %v6156_v11 = vsel %vm1565_vm4, %v8874_v27, %v8677_v17  ;;  %v4878_v46 = vsel %vm1565_vm4, %v8875_v5, %v8676_v18 }
 0x790   :  { %v7066_v43 = vsel %vm1631_vm11, %v7001_v40, -inf  ;;  %v7047_v59 = vmax.f32 %v6933_v31, 0.0  ;;  %v4509_v32 = vpop.permute.xlu0 %4508  ;;  %v4911_v0 = vsel %vm4896_vm14, %v4878_v46, %v8681_v60 }
 0x791   :  { %v7093_v6 = vmax.f32 %v15756_v34, %v7066_v43  ;;  %v4605_v28 = vpop.permute.xlu1 %4604 }
 0x792   :  { %v7163_v50 = vsel %vm1631_vm11, %v7047_v59, -inf  ;;  %v5042_v14 = vsel %vm1499_vm8, %v4509_v32, %v4605_v28  ;;  %v8876_v28 = vld [vmem:[#allocation3 + $0x308] sm:$0xff] }
 0x793   :  { %v7170_v47 = vmax.f32 %v7163_v50, %v15759_v58  ;;  %v6188_v58 = vsel %vm4896_vm14, %v6156_v11, %v8682_v38 }
 0x794   :  { %v5801_v51 = vpop.permute.xlu0 %5800 }
 0x795   :  { %v5897_v21 = vpop.permute.xlu1 %5896 }
 0x796   :  { %v6316_v63 = vsel %vm1499_vm8, %v5801_v51, %v5897_v21 }
 0x798   :  { %v8685_v54 = vpop.permute.xlu0 %8684 }
 0x799   :  { %v4701_v33 = vpop.permute.xlu1 %4700  ;;  %v8687_v34 = vunpack.i.h.bf16 %v8685_v54  ;;  %v8686_v19 = vunpack.i.l.bf16 %v8685_v54 }
 0x79a   :  { %v5075_v2 = vsel %vm5060_vm15, %v5042_v14, %v4701_v33 }
 0x79b   :  { %v4944_v9 = vsel %vm4929_vm1, %v4911_v0, %v8686_v19  ;;  %v6220_v55 = vsel %vm4929_vm1, %v6188_v58, %v8687_v34 }
 0x79c   :  { %v5993_v57 = vpop.permute.xlu0 %5992 }
 0x79d   :  { %v8690_v15 = vpop.permute.xlu1 %8689  ;;  %v6348_v39 = vsel %vm5060_vm15, %v6316_v63, %v5993_v57 }
 0x79e   :  { %v8692_v48 = vunpack.i.h.bf16 %v8690_v15  ;;  %v8691_v10 = vunpack.i.l.bf16 %v8690_v15 }
 0x7a0   :  { %v4797_v23 = vpop.permute.xlu0 %4796  ;;  %v4977_v25 = vsel %vm4962_vm7, %v4944_v9, %v8691_v10  ;;  %v6252_v4 = vsel %vm4962_vm7, %v6220_v55, %v8692_v48 }
 0x7a1   :  { %v5108_v20 = vsel %vm5093_vm0, %v5075_v2, %v4797_v23  ;;  %v6089_v3 = vpop.permute.xlu1 %6088  ;;  %v5010_v44 = vsel %vm4995_vm9, %v4977_v25, %v4509_v32  ;;  %v6284_v37 = vsel %vm4995_vm9, %v6252_v4, %v5801_v51  ;;  %v8877_v51 = vld [vmem:[#allocation3 + $0xb0] sm:$0xff] }
 0x7a2   :  { %v6380_v62 = vsel %vm5093_vm0, %v6348_v39, %v6089_v3  ;;  %7706 = vmatprep.mubr.msk.f32.mxu0 %vm6418_vm5, %v5108_v20 }
 0x7a3   :  { %v6707_v7 = vpop.f32.mrf.mxu0  ;;  %6746 = vmatmul.mubr.f32.gmra.mxu0 %v5010_v44  ;;  %7752 = vmatprep.mubr.msk.f32.mxu1 %vm6418_vm5, %v6380_v62 }
 0x7a4   :  { %v6708_v36 = vadd.f32 %v15752_v24, %v6707_v7  ;;  %v8695_v49 = vpop.permute.xlu0 %8694  ;;  %6976 = vmatmul.mubr.f32.gmra.mxu1 %v6284_v37 }
 0x7a5   :  { %v6937_v16 = vpop.f32.mrf.mxu1  ;;  %v8700_v35 = vpop.permute.xlu1 %8699  ;;  %v8697_v31 = vunpack.i.h.bf16 %v8695_v49  ;;  %v8696_v13 = vunpack.i.l.bf16 %v8695_v49 }
 0x7a6   :  { %v7002_v53 = vmax.f32 %v6708_v36, 0.0  ;;  %v6938_v41 = vadd.f32 %v15752_v24, %v6937_v16  ;;  %v6709_v8 = vpop.f32.mrf.mxu0  ;;  %v8702_v59 = vunpack.i.h.bf16 %v8700_v35  ;;  %v8701_v32 = vunpack.i.l.bf16 %v8700_v35 }
 0x7a7   :  { %v6939_v61 = vpop.f32.mrf.mxu1  ;;  %v6157_v50 = vsel %vm1565_vm4, %v8876_v28, %v8697_v31  ;;  %v8879_v28 = vld [vmem:[#allocation3 + $0x320] sm:$0xff] }
 0x7a8   :  { %v7068_v45 = vsel %vm1631_vm11, %v7002_v53, -inf  ;;  %v7048_v12 = vmax.f32 %v6938_v41, 0.0  ;;  %v4511_v1 = vpop.permute.xlu0 %4510  ;;  %v8878_v53 = vld [vmem:[#allocation3 + $0x318] sm:$0xff] }
 0x7a9   :  { %v15806_v22 = vmax.f32 %v7093_v6, %v7068_v45  ;;  %v4607_v29 = vpop.permute.xlu1 %4606  ;;  %v4879_v6 = vsel %vm1565_vm4, %v8877_v51, %v8696_v13 }
 0x7aa   :  { %v7165_v30 = vsel %vm1631_vm11, %v7048_v12, -inf  ;;  %v4912_v33 = vsel %vm4896_vm14, %v4879_v6, %v8701_v32  ;;  %v5043_v27 = vsel %vm1499_vm8, %v4511_v1, %v4607_v29 }
 0x7ab   :  { %v15809_v52 = vmax.f32 %v7165_v30, %v7170_v47  ;;  %v6189_v47 = vsel %vm4896_vm14, %v6157_v50, %v8702_v59 }
 0x7ac   :  { %v5803_v26 = vpop.permute.xlu0 %5802 }
 0x7ad   :  { %v5899_v40 = vpop.permute.xlu1 %5898 }
 0x7ae   :  { %v6317_v46 = vsel %vm1499_vm8, %v5803_v26, %v5899_v40 }
 0x7b0   :  { %v8705_v56 = vpop.permute.xlu0 %8704 }
 0x7b1   :  { %v4703_v43 = vpop.permute.xlu1 %4702  ;;  %v8707_v21 = vunpack.i.h.bf16 %v8705_v56  ;;  %v8706_v17 = vunpack.i.l.bf16 %v8705_v56 }
 0x7b2   :  { %v5076_v34 = vsel %vm5060_vm15, %v5043_v27, %v4703_v43 }
 0x7b3   :  { %v4945_v11 = vsel %vm4929_vm1, %v4912_v33, %v8706_v17  ;;  %v6221_v5 = vsel %vm4929_vm1, %v6189_v47, %v8707_v21 }
 0x7b4   :  { %v5995_v18 = vpop.permute.xlu0 %5994 }
 0x7b5   :  { %v8710_v54 = vpop.permute.xlu1 %8709  ;;  %v6349_v58 = vsel %vm5060_vm15, %v6317_v46, %v5995_v18 }
 0x7b6   :  { %v8712_v38 = vunpack.i.h.bf16 %v8710_v54  ;;  %v8711_v60 = vunpack.i.l.bf16 %v8710_v54 }
 0x7b8   :  { %v4799_v19 = vpop.permute.xlu0 %4798  ;;  %v4978_v57 = vsel %vm4962_vm7, %v4945_v11, %v8711_v60  ;;  %v6253_v15 = vsel %vm4962_vm7, %v6221_v5, %v8712_v38 }
 0x7b9   :  { %v5109_v0 = vsel %vm5093_vm0, %v5076_v34, %v4799_v19  ;;  %v6091_v48 = vpop.permute.xlu1 %6090  ;;  %v5011_v10 = vsel %vm4995_vm9, %v4978_v57, %v4511_v1  ;;  %v6285_v55 = vsel %vm4995_vm9, %v6253_v15, %v5803_v26 }
 0x7ba   :  { %v6381_v14 = vsel %vm5093_vm0, %v6349_v58, %v6091_v48  ;;  %7707 = vmatprep.mubr.msk.f32.mxu0 %vm6418_vm5, %v5109_v0 }
 0x7bb   :  { %v6712_v9 = vpop.f32.mrf.mxu0  ;;  %6751 = vmatmul.mubr.f32.gmra.mxu0 %v5011_v10  ;;  %7753 = vmatprep.mubr.msk.f32.mxu1 %vm6418_vm5, %v6381_v14 }
 0x7bc   :  { %v6713_v63 = vadd.f32 %v15752_v24, %v6712_v9  ;;  %v8715_v2 = vpop.permute.xlu0 %8714  ;;  %6981 = vmatmul.mubr.f32.gmra.mxu1 %v6285_v55  ;;  %v7205_v55 = vld [vmem:[%s16010_s7] sm:$0xff]  ;;  %7968 = vmatprep.mubr.msk.f32.mxu0 %vm8895_vm2, %v16794_v42 }
 0x7bd   :  { %v6942_v23 = vpop.f32.mrf.mxu1  ;;  %v8720_v25 = vpop.permute.xlu1 %8719  ;;  %v8716_v3 = vunpack.i.l.bf16 %v8715_v2  ;;  %v8717_v13 = vunpack.i.h.bf16 %v8715_v2  ;;  %7967 = vmatpush3.msra.mxu0 %v7205_v55 }
 0x7be   :  { %v7003_v4 = vmax.f32 %v6713_v63, 0.0  ;;  %v6943_v39 = vadd.f32 %v15752_v24, %v6942_v23  ;;  %v6714_v20 = vpop.f32.mrf.mxu0  ;;  %v8721_v35 = vunpack.i.l.bf16 %v8720_v25  ;;  %v8722_v59 = vunpack.i.h.bf16 %v8720_v25  ;;  %7971 = vmatprep.subr.mxu0 %v16794_v42 }
 0x7bf   :  { %v6944_v44 = vpop.f32.mrf.mxu1  ;;  %v6158_v41 = vsel %vm1565_vm4, %v8878_v53, %v8716_v3  ;;  %v6159_v50 = vsel %vm1565_vm4, %v8879_v28, %v8717_v13  ;;  %v7204_v28 = vld [vmem:[%s16011_s1] sm:$0x3]  ;;  %vm7619_vm4 = vcmask 9216  }
 0x7c0   :  { %v7070_v62 = vsel %vm1631_vm11, %v7003_v4, -inf  ;;  %v7049_v7 = vmax.f32 %v6943_v39, 0.0  ;;  %v5805_v37 = vpop.permute.xlu0 %5804  ;;  %v6190_v1 = vsel %vm4896_vm14, %v6158_v41, %v8721_v35  ;;  %v6191_v17 = vsel %vm4896_vm14, %v6159_v50, %v8722_v59  ;;  %v7203_v50 = vld [vmem:[%s16012_s6 + $0x18] sm:$0xff]  ;;  %7969 = vmatmul.mubr.msk.f32.vlgmr.msra.gmra.mxu0 %vm1433_vm6, %v7204_v28 }
 0x7c1   :  { %v7109_v36 = vmax.f32 %v15806_v22, %v7070_v62  ;;  %v5901_v49 = vpop.permute.xlu1 %5900  ;;  %7972 = vmatpush3.msra.mxu0 %v7203_v50  ;;  %7979 = vmatprep.mubr.msk.f32.mxu0 %vm8895_vm2, %v16794_v42 }
 0x7c2   :  { %v7167_v16 = vsel %vm1631_vm11, %v7049_v7, -inf  ;;  %v6318_v30 = vsel %vm1499_vm8, %v5805_v37, %v5901_v49  ;;  %7973 = vmatprep.subr.mxu0 %v16794_v42 }
 0x7c3   :  { %v7174_v8 = vmax.f32 %v7167_v16, %v15809_v52 }
 0x7c4   :  { %v8725_v61 = vpop.permute.xlu0 %8724 }
 0x7c5   :  { %v8726_v45 = vunpack.i.l.bf16 %v8725_v61  ;;  %v5997_v12 = vpop.permute.xlu1 %5996  ;;  %v8727_v51 = vunpack.i.h.bf16 %v8725_v61 }
 0x7c6   :  { %v6350_v22 = vsel %vm5060_vm15, %v6318_v30, %v5997_v12 }
 0x7c7   :  { %v6222_v29 = vsel %vm4929_vm1, %v6190_v1, %v8726_v45  ;;  %v6223_v18 = vsel %vm4929_vm1, %v6191_v17, %v8727_v51  ;;  %v7202_v51 = vld [vmem:[%s16012_s6 + $0x10] sm:$0xff] }
 0x7c8   :  { %v5709_v26 = vpop.permute.xlu0 %5708  ;;  %7974 = vmatpush3.msra.mxu0 %v7202_v51 }
 0x7c9   :  { %v6254_v40 = vsel %vm4962_vm7, %v6222_v29, %v5709_v26  ;;  %v6093_v31 = vpop.permute.xlu1 %6092  ;;  %7975 = vmatprep.subr.mxu0 %v16794_v42 }
 0x7ca   :  { %v6382_v56 = vsel %vm5093_vm0, %v6350_v22, %v6093_v31  ;;  %v6286_v52 = vsel %vm4995_vm9, %v6254_v40, %v5805_v37 }
 0x7cb   :  { %7754 = vmatprep.mubr.msk.f32.mxu1 %vm6418_vm5, %v6382_v56 }
 0x7cc   :  { %v5807_v43 = vpop.permute.xlu0 %5806  ;;  %6986 = vmatmul.mubr.f32.gmra.mxu1 %v6286_v52 }
 0x7cd   :  { %v5903_v32 = vpop.permute.xlu1 %5902 }
 0x7ce   :  { %v6319_v54 = vsel %vm1499_vm8, %v5807_v43, %v5903_v32 }
 0x7d0   :  { %v5999_v6 = vpop.permute.xlu0 %5998 }
 0x7d1   :  { %v5711_v21 = vpop.permute.xlu1 %5710  ;;  %v6351_v38 = vsel %vm5060_vm15, %v6319_v54, %v5999_v6  ;;  %v7201_v6 = vld [vmem:[%s16012_s6 + $0x8] sm:$0xff] }
 0x7d2   :  { %v6255_v47 = vsel %vm4962_vm7, %v6223_v18, %v5711_v21  ;;  %v7200_v21 = vld [vmem:[%s16012_s6] sm:$0xff]  ;;  %7976 = vmatpush3.msra.mxu0 %v7201_v6 }
 0x7d3   :  { %v6717_v33 = vpop.f32.mrf.mxu0  ;;  %v6287_v57 = vsel %vm4995_vm9, %v6255_v47, %v5807_v43  ;;  %7977 = vmatprep.subr.mxu0 %v16794_v42 }
 0x7d4   :  { %v6718_v60 = vadd.f32 %v15752_v24, %v6717_v33  ;;  %v6095_v27 = vpop.permute.xlu0 %6094  ;;  %7978 = vmatpush3.msra.mxu0 %v7200_v21 }
 0x7d5   :  { %v6383_v11 = vsel %vm5093_vm0, %v6351_v38, %v6095_v27  ;;  %v6947_v5 = vpop.f32.mrf.mxu1  ;;  %v6719_v46 = vpop.f32.mrf.mxu0  ;;  %7982 = vmatprep.subr.mxu0 %v16794_v42 }
 0x7d6   :  { %v7004_v34 = vmax.f32 %v6718_v60, 0.0  ;;  %v6948_v19 = vadd.f32 %v15752_v24, %v6947_v5  ;;  %7755 = vmatprep.mubr.msk.f32.mxu1 %vm6418_vm5, %v6383_v11 }
 0x7d7   :  { %v6949_v15 = vpop.f32.mrf.mxu1  ;;  %6991 = vmatmul.mubr.f32.gmra.mxu1 %v6287_v57 }
 0x7d8   :  { %v7072_v58 = vsel %vm1631_vm11, %v7004_v34, -inf  ;;  %v7050_v0 = vmax.f32 %v6948_v19, 0.0 }
 0x7d9   :  { %v7117_v48 = vmax.f32 %v7109_v36, %v7072_v58 }
 0x7da   :  { %v7169_v10 = vsel %vm1631_vm11, %v7050_v0, -inf }
 0x7db   :  { %v7176_v14 = vmax.f32 %v7169_v10, %v7174_v8 }
 0x7eb   :  { %v6722_v9 = vpop.f32.mrf.mxu0 }
 0x7ec   :  { %v6723_v63 = vadd.f32 %v15752_v24, %v6722_v9 }
 0x7ed   :  { %v6952_v2 = vpop.f32.mrf.mxu1  ;;  %v6724_v23 = vpop.f32.mrf.mxu0 }
 0x7ee   :  { %v7005_v25 = vmax.f32 %v6723_v63, 0.0  ;;  %v6953_v4 = vadd.f32 %v15752_v24, %v6952_v2 }
 0x7ef   :  { %v6954_v39 = vpop.f32.mrf.mxu1 }
 0x7f0   :  { %v7074_v20 = vsel %vm1631_vm11, %v7005_v25, -inf  ;;  %v7051_v3 = vmax.f32 %v6953_v4, 0.0 }
 0x7f1   :  { %v7087_v44 = vmax.f32 %v7074_v20, %v7117_v48 }
 0x7f2   :  { %v7171_v62 = vsel %vm1631_vm11, %v7051_v3, -inf }
 0x7f3   :  { %v7178_v7 = vmax.f32 %v7171_v62, %v7176_v14 }
 0x803   :  { %v6727_v37 = vpop.f32.mrf.mxu0 }
 0x804   :  { %v6728_v36 = vadd.f32 %v15752_v24, %v6727_v37 }
 0x805   :  { %v6957_v49 = vpop.f32.mrf.mxu1  ;;  %v6729_v16 = vpop.f32.mrf.mxu0 }
 0x806   :  { %v7006_v35 = vmax.f32 %v6728_v36, 0.0  ;;  %v6958_v53 = vadd.f32 %v15752_v24, %v6957_v49 }
 0x807   :  { %v6959_v41 = vpop.f32.mrf.mxu1 }
 0x808   :  { %v7076_v8 = vsel %vm1631_vm11, %v7006_v35, -inf  ;;  %v7052_v61 = vmax.f32 %v6958_v53, 0.0 }
 0x809   :  { %v7095_v45 = vmax.f32 %v7087_v44, %v7076_v8 }
 0x80a   :  { %v7173_v12 = vsel %vm1631_vm11, %v7052_v61, -inf }
 0x80b   :  { %v7180_v1 = vmax.f32 %v7173_v12, %v7178_v7 }
 0x81b   :  { %v6732_v29 = vpop.f32.mrf.mxu0 }
 0x81c   :  { %v6733_v30 = vadd.f32 %v15752_v24, %v6732_v29 }
 0x81d   :  { %v6962_v26 = vpop.f32.mrf.mxu1  ;;  %v6734_v22 = vpop.f32.mrf.mxu0 }
 0x81e   :  { %v7007_v40 = vmax.f32 %v6733_v30, 0.0  ;;  %v6963_v31 = vadd.f32 %v15752_v24, %v6962_v26 }
 0x81f   :  { %v6964_v13 = vpop.f32.mrf.mxu1 }
 0x820   :  { %v7078_v56 = vsel %vm1631_vm11, %v7007_v40, -inf  ;;  %v7053_v52 = vmax.f32 %v6963_v31, 0.0 }
 0x821   :  { %v7103_v43 = vmax.f32 %v7095_v45, %v7078_v56 }
 0x822   :  { %v7175_v59 = vsel %vm1631_vm11, %v7053_v52, -inf }
 0x823   :  { %v7182_v32 = vmax.f32 %v7175_v59, %v7180_v1 }
 0x833   :  { %v6737_v17 = vpop.f32.mrf.mxu0 }
 0x834   :  { %v6738_v18 = vadd.f32 %v15752_v24, %v6737_v17  ;;  %v6967_v54 = vpop.f32.mrf.mxu1 }
 0x835   :  { %v6968_v47 = vadd.f32 %v15752_v24, %v6967_v54  ;;  %v6739_v33 = vpop.f32.mrf.mxu0 }
 0x836   :  { %v7008_v38 = vmax.f32 %v6738_v18, 0.0  ;;  %v6969_v60 = vpop.f32.mrf.mxu1 }
 0x837   :  { %v7054_v27 = vmax.f32 %v6968_v47, 0.0 }
 0x838   :  { %v7080_v11 = vsel %vm1631_vm11, %v7008_v38, -inf }
 0x839   :  { %v7111_v5 = vmax.f32 %v7103_v43, %v7080_v11  ;;  %v7177_v46 = vsel %vm1631_vm11, %v7054_v27, -inf }
 0x83a   :  { %v7184_v34 = vmax.f32 %v7177_v46, %v7182_v32 }
 0x84b   :  { %v6742_v19 = vpop.f32.mrf.mxu0 }
 0x84c   :  { %v6743_v57 = vadd.f32 %v15752_v24, %v6742_v19  ;;  %v6972_v15 = vpop.f32.mrf.mxu1  ;;  %v7364_v19 = vld [vmem:[%s16013_s9 + $0x18] sm:$0xff] }
 0x84d   :  { %v6973_v58 = vadd.f32 %v15752_v24, %v6972_v15  ;;  %v6744_v0 = vpop.f32.mrf.mxu0  ;;  %v7362_v15 = vld [vmem:[%s16013_s9 + $0x8] sm:$0xff] }
 0x84e   :  { %v7009_v48 = vmax.f32 %v6743_v57, 0.0  ;;  %v6974_v10 = vpop.f32.mrf.mxu1  ;;  %v7363_v57 = vld [vmem:[%s16013_s9 + $0x10] sm:$0xff] }
 0x84f   :  { %v7055_v14 = vmax.f32 %v6973_v58, 0.0  ;;  %v7361_v58 = vld [vmem:[%s16013_s9] sm:$0xff] }
 0x850   :  { %v7082_v9 = vsel %vm1631_vm11, %v7009_v48, -inf  ;;  %v7758_v48 = vld [vmem:[%s16014_s8] ss:$0 sm:$0xff] }
 0x851   :  { %v7119_v55 = vmax.f32 %v7111_v5, %v7082_v9  ;;  %v7179_v63 = vsel %vm1631_vm11, %v7055_v14, -inf }
 0x852   :  { %v7189_v2 = vmax.f32 %v7179_v63, %v7184_v34  ;;  %v7453_v63 = vld [vmem:[%s16015_s11 + $0x38] sm:$0xff] }
 0x863   :  { %v6747_v23 = vpop.f32.mrf.mxu0 }
 0x864   :  { %v6977_v25 = vpop.f32.mrf.mxu1  ;;  %v6748_v7 = vadd.f32 %v15752_v24, %v6747_v23  ;;  %v7451_v23 = vld [vmem:[%s16015_s11 + $0x28] sm:$0xff] }
 0x865   :  { %v6749_v4 = vpop.f32.mrf.mxu0  ;;  %v6978_v35 = vadd.f32 %v15752_v24, %v6977_v25  ;;  %v7450_v25 = vld [vmem:[%s16015_s11 + $0x20] sm:$0xff] }
 0x866   :  { %v6979_v39 = vpop.f32.mrf.mxu1  ;;  %v7010_v36 = vmax.f32 %v6748_v7, 0.0  ;;  %v7449_v4 = vld [vmem:[%s16015_s11 + $0x18] sm:$0xff] }
 0x867   :  { %v7056_v12 = vmax.f32 %v6978_v35, 0.0  ;;  %v7448_v39 = vld [vmem:[%s16015_s11 + $0x10] sm:$0xff]  ;;  %v7536_v35 = vld [vmem:[%s16017_s13 + $0x8] sm:$0xff] }
 0x868   :  { %v7084_v16 = vsel %vm1631_vm11, %v7010_v36, -inf }
 0x869   :  { %v7121_v45 = vmax.f32 %v7084_v16, %v7119_v55  ;;  %v7181_v26 = vsel %vm1631_vm11, %v7056_v12, -inf  ;;  %v7537_v16 = vld [vmem:[%s16017_s13 + $0x10] sm:$0xff] }
 0x86a   :  { %v7186_v13 = vmax.f32 %v7181_v26, %v7189_v2  ;;  %v7452_v2 = vld [vmem:[%s16015_s11 + $0x30] sm:$0xff] }
 0x87b   :  { %v6752_v20 = vpop.f32.mrf.mxu0 }
 0x87c   :  { %v6982_v3 = vpop.f32.mrf.mxu1  ;;  %v6753_v37 = vadd.f32 %v15752_v24, %v6752_v20  ;;  %v7447_v20 = vld [vmem:[%s16015_s11 + $0x8] sm:$0xff] }
 0x87d   :  { %v6754_v44 = vpop.f32.mrf.mxu0  ;;  %v6983_v8 = vadd.f32 %v15752_v24, %v6982_v3  ;;  %v7446_v3 = vld [vmem:[%s16015_s11] sm:$0xff] }
 0x87e   :  { %v6984_v62 = vpop.f32.mrf.mxu1  ;;  %v7011_v49 = vmax.f32 %v6753_v37, 0.0  ;;  %v7759_v44 = vld [vmem:[%s16016_s10] ss:$0 sm:$0xff] }
 0x87f   :  { %v7057_v30 = vmax.f32 %v6983_v8, 0.0 }
 0x880   :  { %v7086_v41 = vsel %vm1631_vm11, %v7011_v49, -inf  ;;  %v7275_v46 = vpop.f32.mrf.mxu0  ;;  %v7538_v49 = vld [vmem:[%s16017_s13 + $0x18] sm:$0xff] }
 0x881   :  { %v7122_v29 = vmax.f32 %v7086_v41, %v7121_v45  ;;  %v7183_v31 = vsel %vm1631_vm11, %v7057_v30, -inf  ;;  %v7761_v41 = vld [vmem:[%s16018_s12] ss:$0 sm:$0xff] }
 0x882   :  { %v7188_v59 = vmax.f32 %v7183_v31, %v7186_v13  ;;  %v7970_v34 = vpop.f32.mrf.mxu0 }
 0x883   :  { %v7123_v40 = vrot.slane %v7122_v29, 4 }
 0x885   :  { %v7124_v28 = vmax.f32 %v7122_v29, %v7123_v40 }
 0x887   :  { %v7125_v17 = vrot.slane %v7124_v28, 2 }
 0x889   :  { %v7126_v47 = vmax.f32 %v7124_v28, %v7125_v17 }
 0x88b   :  { %v7127_v60 = vrot.slane %v7126_v47, 1 }
 0x88c   :  { %v6987_v53 = vpop.f32.mrf.mxu1 }
 0x88d   :  { %v6988_v1 = vadd.f32 %v15752_v24, %v6987_v53  ;;  %v7128_v11 = vmax.f32 %v7126_v47, %v7127_v60  ;;  %v7535_v53 = vld [vmem:[%s16017_s13] sm:$0xff] }
 0x88e   :  { %v6989_v61 = vpop.f32.mrf.mxu1 }
 0x88f   :  { %v7058_v22 = vmax.f32 %v6988_v1, 0.0  ;;  %v7763_v1 = vld [vmem:[%s16019_s14] ss:$0 sm:$0xff] }
 0x891   :  { %v7185_v52 = vsel %vm1631_vm11, %v7058_v22, -inf }
 0x892   :  { %v7190_v51 = vmax.f32 %v7185_v52, %v7188_v59 }
 0x897   :  { %v6992_v56 = vpop.f32.mrf.mxu1 }
 0x898   :  { %v6993_v43 = vadd.f32 %v15752_v24, %v6992_v56 }
 0x899   :  { %v6994_v32 = vpop.f32.mrf.mxu1 }
 0x89a   :  { %v7059_v50 = vmax.f32 %v6993_v43, 0.0 }
 0x89c   :  { %v7187_v6 = vsel %vm1631_vm11, %v7059_v50, -inf }
 0x89d   :  { %v7191_v21 = vmax.f32 %v7187_v6, %v7190_v51 }
 0x89f   :  { %v7192_v18 = vrot.slane %v7191_v21, 4 }
 0x8a1   :  { %v7193_v54 = vmax.f32 %v7191_v21, %v7192_v18 }
 0x8a3   :  { %v7194_v33 = vrot.slane %v7193_v54, 2 }
 0x8a5   :  { %v7195_v38 = vmax.f32 %v7193_v54, %v7194_v33 }
 0x8a7   :  { %v7196_v27 = vrot.slane %v7195_v38, 1 }
 0x8a9   :  { %v7197_v5 = vmax.f32 %v7195_v38, %v7196_v27 }
 0x8ab   :  { %v7199_v24 = vsel %vm7198_vm3, %v7128_v11, %v7197_v5 }
 0x8ac   :  { %7980 = vmatmul.mubr.msk.f32.vlgmr.msra.gmra.mxu0 %vm1631_vm11, %v7199_v24 }
 0x8ad   :  { %7990 = vmatprep.mubr.msk.f32.mxu0 %vm8895_vm2, %v16794_v42  ;;  %7983 = vmatpush3.msra.mxu0 %v7364_v19 }
 0x8ae   :  { %7984 = vmatprep.subr.mxu0 %v16794_v42 }
 0x8af   :  { %7985 = vmatpush3.msra.mxu0 %v7363_v57 }
 0x8b0   :  { %7986 = vmatprep.subr.mxu0 %v16794_v42 }
 0x8b1   :  { %7987 = vmatpush3.msra.mxu0 %v7362_v15 }
 0x8b2   :  { %7988 = vmatprep.subr.mxu0 %v16794_v42 }
 0x8b3   :  { %7989 = vmatpush3.msra.mxu0 %v7361_v58 }
 0x8b4   :  { %7993 = vmatprep.subr.mxu0 %v16794_v42 }
 0x96c   :  { %v7348_v0 = vpop.f32.mrf.mxu0 }
 0x96d   :  { %v7349_v10 = vadd.f32 %v7348_v0, %v7275_v46 }
 0x96e   :  { %v7981_v14 = vpop.f32.mrf.mxu0 }
 0x96f   :  { %v7359_v9 = vadd.f32 %v7758_v48, %v7349_v10 }
 0x971   :  { %v7360_v55 = vmax.f32 %v7359_v9, 0.0 }
 0x973   :  { %7991 = vmatmul.mubr.msk.f32.vlgmr.msra.gmra.mxu0 %vm1631_vm11, %v7360_v55 }
 0x974   :  { %7994 = vmatpush3.msra.mxu0 %v7453_v63  ;;  %8009 = vmatprep.mubr.msk.f32.mxu0 %vm8895_vm2, %v16794_v42 }
 0x975   :  { %7995 = vmatprep.subr.mxu0 %v16794_v42 }
 0x976   :  { %7996 = vmatpush3.msra.mxu0 %v7452_v2 }
 0x977   :  { %7997 = vmatprep.subr.mxu0 %v16794_v42 }
 0x978   :  { %7998 = vmatpush3.msra.mxu0 %v7451_v23 }
 0x979   :  { %7999 = vmatprep.subr.mxu0 %v16794_v42 }
 0x97a   :  { %8000 = vmatpush3.msra.mxu0 %v7450_v25 }
 0x97b   :  { %8001 = vmatprep.subr.mxu0 %v16794_v42 }
 0x97c   :  { %8002 = vmatpush3.msra.mxu0 %v7449_v4 }
 0x97d   :  { %8003 = vmatprep.subr.mxu0 %v16794_v42 }
 0x97e   :  { %8004 = vmatpush3.msra.mxu0 %v7448_v39 }
 0x97f   :  { %8005 = vmatprep.subr.mxu0 %v16794_v42 }
 0x980   :  { %8006 = vmatpush3.msra.mxu0 %v7447_v20 }
 0x981   :  { %8007 = vmatprep.subr.mxu0 %v16794_v42 }
 0x982   :  { %8008 = vmatpush3.msra.mxu0 %v7446_v3 }
 0x983   :  { %8012 = vmatprep.subr.mxu0 %v16794_v42 }
 0xa33   :  { %v7441_v62 = vpop.f32.mrf.mxu0 }
 0xa34   :  { %v7442_v7 = vadd.f32 %v7759_v44, %v7441_v62 }
 0xa35   :  { %v7992_v37 = vpop.f32.mrf.mxu0 }
 0xa36   :  { %v7445_v36 = vmax.f32 %v7442_v7, 0.0 }
 0xa38   :  { %8010 = vmatmul.mubr.msk.f32.vlgmr.msra.gmra.mxu0 %vm5093_vm0, %v7445_v36 }
 0xa39   :  { %8013 = vmatpush3.msra.mxu0 %v7538_v49  ;;  %8020 = vmatprep.mubr.msk.f32.mxu0 %vm8895_vm2, %v16794_v42 }
 0xa3a   :  { %8014 = vmatprep.subr.mxu0 %v16794_v42 }
 0xa3b   :  { %8015 = vmatpush3.msra.mxu0 %v7537_v16 }
 0xa3c   :  { %8016 = vmatprep.subr.mxu0 %v16794_v42 }
 0xa3d   :  { %8017 = vmatpush3.msra.mxu0 %v7536_v35 }
 0xa3e   :  { %8018 = vmatprep.subr.mxu0 %v16794_v42 }
 0xa3f   :  { %8019 = vmatpush3.msra.mxu0 %v7535_v53 }
 0xaf8   :  { %v7530_v8 = vpop.f32.mrf.mxu0 }
 0xaf9   :  { %v7531_v61 = vadd.f32 %v7761_v41, %v7530_v8 }
 0xafa   :  { %v8011_v45 = vpop.f32.mrf.mxu0 }
 0xafb   :  { %v7534_v12 = vmax.f32 %v7531_v61, 0.0 }
 0xafd   :  { %8021 = vmatmul.mubr.msk.f32.vlgmr.msra.gmra.mxu0 %vm1631_vm11, %v7534_v12 }
 0xbbd   :  { %v7615_v29 = vpop.f32.mrf.mxu0 }
 0xbbe   :  { %v7616_v30 = vadd.f32 %v7763_v1, %v7615_v29 }
 0xbbf   :  { %v8022_v26 = vpop.f32.mrf.mxu0 }
 0xbc0   :  { %7620 = vst.msk [vmem:[%s16020_s15] sm:$0x3] %vm7619_vm4, %v7616_v30 }

</bundles_post_ra>
